<compile_context>
chip_gen: v5e
topology: v5e:2x2
jax: 0.10.0
libtpu: 0.0.40
codegen_flags: <defaults>
</compile_context>

<pallas_src>
import jax
import jax.numpy as jnp
from jax.experimental import pallas as pl
from jax.experimental.pallas import tpu as pltpu

# ---------------- model hyper-params (small, consistent with ViT-B/32 structure) ----
IMG = 16
PATCH = 8
CHANNELS = 3
WIDTH = 32
HEADS = 4
HEAD_DIM = WIDTH // HEADS
LAYERS = 2
MLP = 4 * WIDTH
EMBED = 16
GRID_HW = IMG // PATCH
NUM_PATCHES = GRID_HW * GRID_HW        # 4
NUM_TOKENS = NUM_PATCHES + 1           # 5 real tokens (cls + patches)
S_PAD = 8                              # token slots padded to the 8-sublane tile
CPP = CHANNELS * PATCH * PATCH         # 192
LN_EPS = 1e-5
VECPAD = 128                           # lane width of the per-layer bias/LN slab

OPENAI_MEAN = (0.48145466, 0.4578275, 0.40821073)
OPENAI_STD = (0.26862954, 0.26130258, 0.27577711)


# ---------------- the single fused Pallas kernel (Bt images per grid step) ----------
def _clip_encode_kernel(
    patches_ref,   # (Bt*S_PAD, CPP) f32  token-slot-padded raw patches (slot 0 / 5..7 zero)
    addslab_ref,   # (S_PAD, WIDTH) f32   row0: cls+pos0; rows1..4: folded patch bias + pos; rest 0
    gvec_ref,      # (4, WIDTH) f32       ln_pre_g, ln_pre_b, ln_post_g, ln_post_b
    wpe_ref,       # (CPP, WIDTH) bf16    patch-embed weights with CLIP Normalize folded in
    proj_ref,      # (WIDTH, EMBED) bf16
    wcat_ref,      # (LAYERS, WIDTH, 3W + W + MLP) bf16   [qkv_w | out_w | mlp_w1]
    w2_ref,        # (LAYERS, MLP, WIDTH) bf16
    vslab_ref,     # (LAYERS, 8, VECPAD) f32  rows: ln1_g,ln1_b,qkv_b,out_b,ln2_g,ln2_b,mlp_b1,mlp_b2
    out_ref,       # (Bt, EMBED) f32
):
    f32 = jnp.float32
    bf16 = jnp.bfloat16
    bt = out_ref.shape[0]
    rows = bt * S_PAD

    def ln(v, g, b):
        m = jnp.mean(v, axis=-1, keepdims=True)
        c = v - m
        var = jnp.mean(c * c, axis=-1, keepdims=True)
        return c * jax.lax.rsqrt(var + LN_EPS) * g + b

    def mm(a, w):  # (rows, K) @ (K, N): bf16 operands on the MXU, f32 accumulation
        return jax.lax.dot_general(a.astype(bf16), w, (((1,), (0,)), ((), ())),
                                   preferred_element_type=f32)

    gvec = gvec_ref[...]
    lnpre_g, lnpre_b = gvec[0:1, :], gvec[1:2, :]
    lnpost_g, lnpost_b = gvec[2:3, :], gvec[3:4, :]

    # ---- patch embedding (Normalize folded into W) + token assembly, all in registers ----
    tok = mm(patches_ref[...], wpe_ref[...])                                    # (rows, W)
    x = (tok.reshape(bt, S_PAD, WIDTH) + addslab_ref[...][None, :, :]).reshape(rows, WIDTH)
    x = ln(x, lnpre_g, lnpre_b)                                                 # ln_pre

    # key-padding mask: token slots >= NUM_TOKENS are padding and must not receive attention
    kidx = jax.lax.broadcasted_iota(jnp.int32, (1, 1, S_PAD), 2)
    kmask = jnp.where(kidx < NUM_TOKENS, 0.0, -1e30).astype(f32)

    scale = 1.0 / (HEAD_DIM ** 0.5)
    for l in range(LAYERS):
        vecs = vslab_ref[l]                                                     # (8, VECPAD)
        ln1_g, ln1_b = vecs[0:1, :WIDTH], vecs[1:2, :WIDTH]
        qkv_b = vecs[2:3, :3 * WIDTH]
        out_b = vecs[3:4, :WIDTH]
        ln2_g, ln2_b = vecs[4:5, :WIDTH], vecs[5:6, :WIDTH]
        b1 = vecs[6:7, :MLP]
        b2 = vecs[7:8, :WIDTH]
        wcat = wcat_ref[l]                                                      # (W, 256) bf16
        qkv_w = wcat[:, 0:3 * WIDTH]
        out_w = wcat[:, 3 * WIDTH:4 * WIDTH]
        w1 = wcat[:, 4 * WIDTH:4 * WIDTH + MLP]
        w2 = w2_ref[l]                                                          # (MLP, W) bf16

        # ---- attention branch (batched over the Bt images of this block, per head) ----
        h = ln(x, ln1_g, ln1_b)
        qkv = mm(h, qkv_w) + qkv_b                                              # (rows, 3W)
        qkv3 = qkv.reshape(bt, S_PAD, 3 * WIDTH)
        heads = []
        for hd in range(HEADS):
            lo = hd * HEAD_DIM
            q = qkv3[:, :, lo:lo + HEAD_DIM].astype(bf16)
            k = qkv3[:, :, WIDTH + lo:WIDTH + lo + HEAD_DIM].astype(bf16)
            v = qkv3[:, :, 2 * WIDTH + lo:2 * WIDTH + lo + HEAD_DIM].astype(bf16)
            s = jnp.einsum("bqd,bkd->bqk", q, k, preferred_element_type=f32) * scale + kmask
            s = s - jnp.max(s, axis=-1, keepdims=True)
            p = jnp.exp(s)
            denom = jnp.sum(p, axis=-1, keepdims=True)
            o = jnp.einsum("bqk,bkd->bqd", p.astype(bf16), v, preferred_element_type=f32)
            # defer the 1/sum onto the (S, HEAD_DIM) output; reciprocal goes to the EUP
            heads.append(o * pl.reciprocal(denom, approx=True))
        attn = jnp.concatenate(heads, axis=-1).reshape(rows, WIDTH)             # in-register concat
        x = x + mm(attn, out_w) + out_b

        # ---- MLP branch ----
        h2 = ln(x, ln2_g, ln2_b)
        h2 = jax.nn.gelu(mm(h2, w1) + b1, approximate=True)
        x = x + mm(h2, w2) + b2

    # ---- pool class token (slot 0 per image) via masked sublane reduction, ln_post, proj ----
    sel = (jax.lax.broadcasted_iota(jnp.int32, (1, S_PAD, 1), 1) == 0).astype(f32)
    pooled = jnp.sum(x.reshape(bt, S_PAD, WIDTH) * sel, axis=1)                 # (Bt, W)
    pooled = ln(pooled, lnpost_g, lnpost_b)
    # NOTE: output is (Bt, EMBED)=(Bt,16) — tiny (64 B/image) vs 6 KB/image of patch reads, so a
    # lane-dense (1, Bt*EMBED) rewrite was skipped: this kernel is not writeback-bound.
    out_ref[...] = mm(pooled, proj_ref[...]).astype(out_ref.dtype)


def _round_up(n, m):
    return ((n + m - 1) // m) * m


# ---------------- wrapper: parameter packing (trace-time) + one pallas_call ----------
@jax.jit
def clip_fwd(x, params):
    """x: (B, 3, 16, 16) f32 in [0, 1] (NCHW, as in PyTorch). Returns (B, EMBED) features."""
    B, C, H, W = x.shape
    assert (C, H, W) == (CHANNELS, IMG, IMG)

    bt = min(64, _round_up(B, S_PAD))          # images per grid step (sublane-aligned)
    b_pad = _round_up(B, bt)
    n_blocks = b_pad // bt

    # unfold the stride==kernel patch conv input; ordering [c, ph, pw] matches conv_w flattening
    patches = x.reshape(B, C, GRID_HW, PATCH, GRID_HW, PATCH)
    patches = patches.transpose(0, 2, 4, 1, 3, 5).reshape(B, NUM_PATCHES, CPP)
    # token-slot layout per image: [cls, p0, p1, p2, p3, pad, pad, pad]; slot 0 / pads are zero
    patches = jnp.concatenate(
        [jnp.zeros((B, 1, CPP), jnp.float32), patches,
         jnp.zeros((B, S_PAD - 1 - NUM_PATCHES, CPP), jnp.float32)], axis=1)
    patches = jnp.concatenate(
        [patches, jnp.zeros((b_pad - B, S_PAD, CPP), jnp.float32)], axis=0)
    patches = patches.reshape(b_pad * S_PAD, CPP)

    # fold CLIP per-channel Normalize into the patch-embed matmul:
    #   ((p - m)/s) @ W  ==  p @ (W * (1/s)) - (m/s) @ W
    mean = jnp.repeat(jnp.array(OPENAI_MEAN, jnp.float32), PATCH * PATCH)        # (CPP,)
    inv_std = jnp.repeat(1.0 / jnp.array(OPENAI_STD, jnp.float32), PATCH * PATCH)
    w_patch = params["conv_w"].reshape(WIDTH, CPP).T                             # (CPP, WIDTH)
    w_pe = (w_patch * inv_std[:, None]).astype(jnp.bfloat16)
    b_pe = -((mean * inv_std) @ w_patch)                                         # (WIDTH,)

    # additive slab: row 0 = cls + pos0; rows 1..4 = folded patch bias + pos; rows 5..7 = 0
    addslab = jnp.zeros((S_PAD, WIDTH), jnp.float32)
    addslab = addslab.at[0].set(params["cls"] + params["pos"][0])
    addslab = addslab.at[1:NUM_TOKENS].set(b_pe[None, :] + params["pos"][1:NUM_TOKENS])

    gvec = jnp.stack([params["ln_pre_g"], params["ln_pre_b"],
                      params["ln_post_g"], params["ln_post_b"]])                 # (4, WIDTH)

    def padrow(v):
        return jnp.pad(v, (0, VECPAD - v.shape[0]))

    wcat, w2s, vslab = [], [], []
    for blk in params["blocks"]:
        wcat.append(jnp.concatenate([blk["in_proj_w"], blk["out_proj_w"], blk["mlp_w1"]], axis=1))
        w2s.append(blk["mlp_w2"])
        vslab.append(jnp.stack([padrow(blk["ln1_g"]), padrow(blk["ln1_b"]),
                                padrow(blk["in_proj_b"]), padrow(blk["out_proj_b"]),
                                padrow(blk["ln2_g"]), padrow(blk["ln2_b"]),
                                padrow(blk["mlp_b1"]), padrow(blk["mlp_b2"])]))
    wcat = jnp.stack(wcat).astype(jnp.bfloat16)        # (L, W, 3W + W + MLP)
    w2s = jnp.stack(w2s).astype(jnp.bfloat16)          # (L, MLP, W)
    vslab = jnp.stack(vslab)                           # (L, 8, VECPAD) f32
    proj = params["proj"].astype(jnp.bfloat16)

    inputs = (patches, addslab, gvec, w_pe, proj, wcat, w2s, vslab)

    def full_spec(arr):
        return pl.BlockSpec(arr.shape, lambda b, _nd=arr.ndim: (0,) * _nd)

    in_specs = [pl.BlockSpec((bt * S_PAD, CPP), lambda b: (b, 0))]
    in_specs += [full_spec(a) for a in inputs[1:]]

    out = pl.pallas_call(
        _clip_encode_kernel,
        out_shape=jax.ShapeDtypeStruct((b_pad, EMBED), jnp.float32),
        grid=(n_blocks,),
        in_specs=in_specs,
        out_specs=pl.BlockSpec((bt, EMBED), lambda b: (b, 0)),
        compiler_params=pltpu.CompilerParams(dimension_semantics=("parallel",)),
    )(*inputs)
    return out[:B]


# ---------------- deterministic synthetic parameters ---------------------------------
def init_params(key):
    keys = iter(jax.random.split(key, 64))

    def rnd(shape, scale=0.02):
        return scale * jax.random.normal(next(keys), shape, jnp.float32)

    params = {
        "conv_w": rnd((WIDTH, CHANNELS, PATCH, PATCH)),
        "cls": rnd((WIDTH,)),
        "pos": rnd((NUM_TOKENS, WIDTH)),
        "ln_pre_g": jnp.ones((WIDTH,), jnp.float32),
        "ln_pre_b": jnp.zeros((WIDTH,), jnp.float32),
        "ln_post_g": jnp.ones((WIDTH,), jnp.float32),
        "ln_post_b": jnp.zeros((WIDTH,), jnp.float32),
        "proj": rnd((WIDTH, EMBED)),
        "blocks": [],
    }
    for _ in range(LAYERS):
        params["blocks"].append({
            "ln1_g": jnp.ones((WIDTH,), jnp.float32),
            "ln1_b": jnp.zeros((WIDTH,), jnp.float32),
            "in_proj_w": rnd((WIDTH, 3 * WIDTH)),   # stored (in, out): x @ W
            "in_proj_b": rnd((3 * WIDTH,)),
            "out_proj_w": rnd((WIDTH, WIDTH)),
            "out_proj_b": rnd((WIDTH,)),
            "ln2_g": jnp.ones((WIDTH,), jnp.float32),
            "ln2_b": jnp.zeros((WIDTH,), jnp.float32),
            "mlp_w1": rnd((WIDTH, MLP)),
            "mlp_b1": rnd((MLP,)),
            "mlp_w2": rnd((MLP, WIDTH)),
            "mlp_b2": rnd((WIDTH,)),
        })
    return params


if __name__ == "__main__":
    key = jax.random.PRNGKey(0)
    pkey, xkey = jax.random.split(key)
    params = init_params(pkey)
    x = jax.random.uniform(xkey, (2, CHANNELS, IMG, IMG), jnp.float32)  # images in [0, 1]
    out = clip_fwd(x, params)
    jax.block_until_ready(out)
    assert out.shape == (2, EMBED) and out.dtype == jnp.float32
    assert bool(jnp.all(jnp.isfinite(out)))
    print("KERNEL_OK")
</pallas_src>

<mosaic_0001>
module attributes {stable_mosaic.version = 11 : i64} {
  func.func @_clip_encode_kernel(%arg0: i32, %arg1: memref<64x192xf32, #tpu.memory_space<vmem>>, %arg2: memref<8x32xf32, #tpu.memory_space<vmem>>, %arg3: memref<4x32xf32, #tpu.memory_space<vmem>>, %arg4: memref<192x32xbf16, #tpu.memory_space<vmem>>, %arg5: memref<32x16xbf16, #tpu.memory_space<vmem>>, %arg6: memref<2x32x256xbf16, #tpu.memory_space<vmem>>, %arg7: memref<2x128x32xbf16, #tpu.memory_space<vmem>>, %arg8: memref<2x8x128xf32, #tpu.memory_space<vmem>>, %arg9: memref<8x16xf32, #tpu.memory_space<vmem>>) attributes {dimension_semantics = [#tpu.dimension_semantics<parallel>], iteration_bounds = array<i64: 1>, scalar_prefetch = 0 : i64, scratch_operands = 0 : i64, tpu.core_type = #tpu.core_type<tc>, window_params = [{transform_indices = @transform_0, window_bounds = array<i64: 64, 192>}, {pipeline_mode = #tpu.pipeline_mode<synchronous>, transform_indices = @transform_1, window_bounds = array<i64: 8, 32>}, {pipeline_mode = #tpu.pipeline_mode<synchronous>, transform_indices = @transform_2, window_bounds = array<i64: 4, 32>}, {pipeline_mode = #tpu.pipeline_mode<synchronous>, transform_indices = @transform_3, window_bounds = array<i64: 192, 32>}, {pipeline_mode = #tpu.pipeline_mode<synchronous>, transform_indices = @transform_4, window_bounds = array<i64: 32, 16>}, {pipeline_mode = #tpu.pipeline_mode<synchronous>, transform_indices = @transform_5, window_bounds = array<i64: 2, 32, 256>}, {pipeline_mode = #tpu.pipeline_mode<synchronous>, transform_indices = @transform_6, window_bounds = array<i64: 2, 128, 32>}, {pipeline_mode = #tpu.pipeline_mode<synchronous>, transform_indices = @transform_7, window_bounds = array<i64: 2, 8, 128>}, {transform_indices = @transform_8, window_bounds = array<i64: 8, 16>}]} {
    %c0 = arith.constant 0 : index
    %c0_0 = arith.constant 0 : index
    %0 = vector.load %arg3[%c0, %c0_0] : memref<4x32xf32, #tpu.memory_space<vmem>>, vector<4x32xf32>
    %1 = vector.extract_strided_slice %0 {offsets = [0, 0], sizes = [1, 32], strides = [1, 1]} : vector<4x32xf32> to vector<1x32xf32>
    %2 = vector.extract_strided_slice %0 {offsets = [1, 0], sizes = [1, 32], strides = [1, 1]} : vector<4x32xf32> to vector<1x32xf32>
    %3 = vector.extract_strided_slice %0 {offsets = [2, 0], sizes = [1, 32], strides = [1, 1]} : vector<4x32xf32> to vector<1x32xf32>
    %4 = vector.extract_strided_slice %0 {offsets = [3, 0], sizes = [1, 32], strides = [1, 1]} : vector<4x32xf32> to vector<1x32xf32>
    %c0_1 = arith.constant 0 : index
    %c0_2 = arith.constant 0 : index
    %5 = vector.load %arg1[%c0_1, %c0_2] : memref<64x192xf32, #tpu.memory_space<vmem>>, vector<64x192xf32>
    %c0_3 = arith.constant 0 : index
    %c0_4 = arith.constant 0 : index
    %6 = vector.load %arg4[%c0_3, %c0_4] : memref<192x32xbf16, #tpu.memory_space<vmem>>, vector<192x32xbf16>
    %7 = arith.truncf %5 : vector<64x192xf32> to vector<64x192xbf16>
    %cst = arith.constant dense<0.000000e+00> : vector<64x32xf32>
    %8 = tpu.matmul %7, %6, %cst {dimension_numbers = #tpu.dot_dimension_numbers<[1], [0], [0], [1], [0, 0, 1, 1], [], []>} : vector<64x192xbf16>, vector<192x32xbf16>, vector<64x32xf32> -> vector<64x32xf32>
    %9 = vector.shape_cast %8 : vector<64x32xf32> to vector<8x8x32xf32>
    %c0_5 = arith.constant 0 : index
    %c0_6 = arith.constant 0 : index
    %10 = vector.load %arg2[%c0_5, %c0_6] : memref<8x32xf32, #tpu.memory_space<vmem>>, vector<8x32xf32>
    %11 = vector.shape_cast %10 : vector<8x32xf32> to vector<1x8x32xf32>
    %12 = vector.broadcast %11 : vector<1x8x32xf32> to vector<8x8x32xf32>
    %13 = arith.addf %9, %12 : vector<8x8x32xf32>
    %14 = vector.shape_cast %13 : vector<8x8x32xf32> to vector<64x32xf32>
    %cst_7 = arith.constant dense<0.000000e+00> : vector<64xf32>
    %15 = vector.multi_reduction <add>, %14, %cst_7 [1] : vector<64x32xf32> to vector<64xf32>
    %16 = vector.shape_cast %15 : vector<64xf32> to vector<64x1xf32>
    %cst_8 = arith.constant 3.200000e+01 : f32
    %17 = vector.broadcast %cst_8 : f32 to vector<64x1xf32>
    %18 = arith.divf %16, %17 : vector<64x1xf32>
    %19 = vector.broadcast %18 : vector<64x1xf32> to vector<64x32xf32>
    %20 = arith.subf %14, %19 : vector<64x32xf32>
    %21 = arith.mulf %20, %20 : vector<64x32xf32>
    %cst_9 = arith.constant dense<0.000000e+00> : vector<64xf32>
    %22 = vector.multi_reduction <add>, %21, %cst_9 [1] : vector<64x32xf32> to vector<64xf32>
    %23 = vector.shape_cast %22 : vector<64xf32> to vector<64x1xf32>
    %cst_10 = arith.constant 3.200000e+01 : f32
    %24 = vector.broadcast %cst_10 : f32 to vector<64x1xf32>
    %25 = arith.divf %23, %24 : vector<64x1xf32>
    %cst_11 = arith.constant 9.99999974E-6 : f32
    %26 = vector.broadcast %cst_11 : f32 to vector<64x1xf32>
    %27 = arith.addf %25, %26 : vector<64x1xf32>
    %28 = math.rsqrt %27 : vector<64x1xf32>
    %29 = vector.broadcast %28 : vector<64x1xf32> to vector<64x32xf32>
    %30 = arith.mulf %20, %29 : vector<64x32xf32>
    %31 = vector.broadcast %1 : vector<1x32xf32> to vector<64x32xf32>
    %32 = arith.mulf %30, %31 : vector<64x32xf32>
    %33 = vector.broadcast %2 : vector<1x32xf32> to vector<64x32xf32>
    %34 = arith.addf %32, %33 : vector<64x32xf32>
    %35 = tpu.iota {dimensions = array<i32: 2>} : vector<1x1x8xi32>
    %c5_i32 = arith.constant 5 : i32
    %36 = vector.broadcast %c5_i32 : i32 to vector<1x1x8xi32>
    %37 = arith.cmpi slt, %35, %36 : vector<1x1x8xi32>
    %cst_12 = arith.constant 0.000000e+00 : f32
    %cst_13 = arith.constant -1.000000e+30 : f32
    %38 = vector.broadcast %cst_12 : f32 to vector<1x1x8xf32>
    %39 = vector.broadcast %cst_13 : f32 to vector<1x1x8xf32>
    %40 = arith.select %37, %38, %39 : vector<1x1x8xi1>, vector<1x1x8xf32>
    %c0_14 = arith.constant 0 : index
    %c0_15 = arith.constant 0 : index
    %c0_16 = arith.constant 0 : index
    %41 = vector.load %arg8[%c0_14, %c0_15, %c0_16] : memref<2x8x128xf32, #tpu.memory_space<vmem>>, vector<1x8x128xf32>
    %42 = vector.shape_cast %41 : vector<1x8x128xf32> to vector<8x128xf32>
    %43 = vector.extract_strided_slice %42 {offsets = [0, 0], sizes = [1, 32], strides = [1, 1]} : vector<8x128xf32> to vector<1x32xf32>
    %44 = vector.extract_strided_slice %42 {offsets = [1, 0], sizes = [1, 32], strides = [1, 1]} : vector<8x128xf32> to vector<1x32xf32>
    %45 = vector.extract_strided_slice %42 {offsets = [2, 0], sizes = [1, 96], strides = [1, 1]} : vector<8x128xf32> to vector<1x96xf32>
    %46 = vector.extract_strided_slice %42 {offsets = [3, 0], sizes = [1, 32], strides = [1, 1]} : vector<8x128xf32> to vector<1x32xf32>
    %47 = vector.extract_strided_slice %42 {offsets = [4, 0], sizes = [1, 32], strides = [1, 1]} : vector<8x128xf32> to vector<1x32xf32>
    %48 = vector.extract_strided_slice %42 {offsets = [5, 0], sizes = [1, 32], strides = [1, 1]} : vector<8x128xf32> to vector<1x32xf32>
    %49 = vector.extract_strided_slice %42 {offsets = [6, 0], sizes = [1, 128], strides = [1, 1]} : vector<8x128xf32> to vector<1x128xf32>
    %50 = vector.extract_strided_slice %42 {offsets = [7, 0], sizes = [1, 32], strides = [1, 1]} : vector<8x128xf32> to vector<1x32xf32>
    %c0_17 = arith.constant 0 : index
    %c0_18 = arith.constant 0 : index
    %c0_19 = arith.constant 0 : index
    %51 = vector.load %arg6[%c0_17, %c0_18, %c0_19] : memref<2x32x256xbf16, #tpu.memory_space<vmem>>, vector<1x32x256xbf16>
    %52 = vector.shape_cast %51 : vector<1x32x256xbf16> to vector<32x256xbf16>
    %53 = vector.extract_strided_slice %52 {offsets = [0, 0], sizes = [32, 96], strides = [1, 1]} : vector<32x256xbf16> to vector<32x96xbf16>
    %54 = vector.extract_strided_slice %52 {offsets = [0, 96], sizes = [32, 32], strides = [1, 1]} : vector<32x256xbf16> to vector<32x32xbf16>
    %55 = vector.extract_strided_slice %52 {offsets = [0, 128], sizes = [32, 128], strides = [1, 1]} : vector<32x256xbf16> to vector<32x128xbf16>
    %c0_20 = arith.constant 0 : index
    %c0_21 = arith.constant 0 : index
    %c0_22 = arith.constant 0 : index
    %56 = vector.load %arg7[%c0_20, %c0_21, %c0_22] : memref<2x128x32xbf16, #tpu.memory_space<vmem>>, vector<1x128x32xbf16>
    %57 = vector.shape_cast %56 : vector<1x128x32xbf16> to vector<128x32xbf16>
    %cst_23 = arith.constant dense<0.000000e+00> : vector<64xf32>
    %58 = vector.multi_reduction <add>, %34, %cst_23 [1] : vector<64x32xf32> to vector<64xf32>
    %59 = vector.shape_cast %58 : vector<64xf32> to vector<64x1xf32>
    %cst_24 = arith.constant 3.200000e+01 : f32
    %60 = vector.broadcast %cst_24 : f32 to vector<64x1xf32>
    %61 = arith.divf %59, %60 : vector<64x1xf32>
    %62 = vector.broadcast %61 : vector<64x1xf32> to vector<64x32xf32>
    %63 = arith.subf %34, %62 : vector<64x32xf32>
    %64 = arith.mulf %63, %63 : vector<64x32xf32>
    %cst_25 = arith.constant dense<0.000000e+00> : vector<64xf32>
    %65 = vector.multi_reduction <add>, %64, %cst_25 [1] : vector<64x32xf32> to vector<64xf32>
    %66 = vector.shape_cast %65 : vector<64xf32> to vector<64x1xf32>
    %cst_26 = arith.constant 3.200000e+01 : f32
    %67 = vector.broadcast %cst_26 : f32 to vector<64x1xf32>
    %68 = arith.divf %66, %67 : vector<64x1xf32>
    %cst_27 = arith.constant 9.99999974E-6 : f32
    %69 = vector.broadcast %cst_27 : f32 to vector<64x1xf32>
    %70 = arith.addf %68, %69 : vector<64x1xf32>
    %71 = math.rsqrt %70 : vector<64x1xf32>
    %72 = vector.broadcast %71 : vector<64x1xf32> to vector<64x32xf32>
    %73 = arith.mulf %63, %72 : vector<64x32xf32>
    %74 = vector.broadcast %43 : vector<1x32xf32> to vector<64x32xf32>
    %75 = arith.mulf %73, %74 : vector<64x32xf32>
    %76 = vector.broadcast %44 : vector<1x32xf32> to vector<64x32xf32>
    %77 = arith.addf %75, %76 : vector<64x32xf32>
    %78 = arith.truncf %77 : vector<64x32xf32> to vector<64x32xbf16>
    %cst_28 = arith.constant dense<0.000000e+00> : vector<64x96xf32>
    %79 = tpu.matmul %78, %53, %cst_28 {dimension_numbers = #tpu.dot_dimension_numbers<[1], [0], [0], [1], [0, 0, 1, 1], [], []>} : vector<64x32xbf16>, vector<32x96xbf16>, vector<64x96xf32> -> vector<64x96xf32>
    %80 = vector.broadcast %45 : vector<1x96xf32> to vector<64x96xf32>
    %81 = arith.addf %79, %80 : vector<64x96xf32>
    %82 = vector.shape_cast %81 : vector<64x96xf32> to vector<8x8x96xf32>
    %83 = vector.extract_strided_slice %82 {offsets = [0, 0, 0], sizes = [8, 8, 8], strides = [1, 1, 1]} : vector<8x8x96xf32> to vector<8x8x8xf32>
    %84 = arith.truncf %83 : vector<8x8x8xf32> to vector<8x8x8xbf16>
    %85 = vector.extract_strided_slice %82 {offsets = [0, 0, 32], sizes = [8, 8, 8], strides = [1, 1, 1]} : vector<8x8x96xf32> to vector<8x8x8xf32>
    %86 = arith.truncf %85 : vector<8x8x8xf32> to vector<8x8x8xbf16>
    %87 = vector.extract_strided_slice %82 {offsets = [0, 0, 64], sizes = [8, 8, 8], strides = [1, 1, 1]} : vector<8x8x96xf32> to vector<8x8x8xf32>
    %88 = arith.truncf %87 : vector<8x8x8xf32> to vector<8x8x8xbf16>
    "tpu.trace_start"() <{level = 10 : i32, message = "bqd,bkd->bqk"}> : () -> ()
    %cst_29 = arith.constant dense<0.000000e+00> : vector<8x8x8xf32>
    %89 = tpu.matmul %84, %86, %cst_29 {dimension_numbers = #tpu.dot_dimension_numbers<[2], [2], [1], [1], [0, 0, 0, 1, 1, 1], [0], [0]>} : vector<8x8x8xbf16>, vector<8x8x8xbf16>, vector<8x8x8xf32> -> vector<8x8x8xf32>
    "tpu.trace_stop"() : () -> ()
    %cst_30 = arith.constant 0.353553385 : f32
    %90 = vector.broadcast %cst_30 : f32 to vector<8x8x8xf32>
    %91 = arith.mulf %89, %90 : vector<8x8x8xf32>
    %92 = vector.broadcast %40 : vector<1x1x8xf32> to vector<8x8x8xf32>
    %93 = arith.addf %91, %92 : vector<8x8x8xf32>
    %cst_31 = arith.constant dense<0xFF800000> : vector<8x8xf32>
    %94 = vector.multi_reduction <maximumf>, %93, %cst_31 [2] : vector<8x8x8xf32> to vector<8x8xf32>
    %95 = vector.shape_cast %94 : vector<8x8xf32> to vector<8x8x1xf32>
    %96 = vector.broadcast %95 : vector<8x8x1xf32> to vector<8x8x8xf32>
    %97 = arith.subf %93, %96 : vector<8x8x8xf32>
    %98 = math.exp %97 : vector<8x8x8xf32>
    %cst_32 = arith.constant dense<0.000000e+00> : vector<8x8xf32>
    %99 = vector.multi_reduction <add>, %98, %cst_32 [2] : vector<8x8x8xf32> to vector<8x8xf32>
    %100 = vector.shape_cast %99 : vector<8x8xf32> to vector<8x8x1xf32>
    %101 = arith.truncf %98 : vector<8x8x8xf32> to vector<8x8x8xbf16>
    "tpu.trace_start"() <{level = 10 : i32, message = "bqk,bkd->bqd"}> : () -> ()
    %cst_33 = arith.constant dense<0.000000e+00> : vector<8x8x8xf32>
    %102 = tpu.matmul %101, %88, %cst_33 {dimension_numbers = #tpu.dot_dimension_numbers<[2], [1], [1], [2], [0, 0, 0, 1, 1, 2], [0], [0]>} : vector<8x8x8xbf16>, vector<8x8x8xbf16>, vector<8x8x8xf32> -> vector<8x8x8xf32>
    "tpu.trace_stop"() : () -> ()
    %103 = tpu.reciprocal %100 {approx = true} : vector<8x8x1xf32> -> vector<8x8x1xf32>
    %104 = vector.broadcast %103 : vector<8x8x1xf32> to vector<8x8x8xf32>
    %105 = arith.mulf %102, %104 : vector<8x8x8xf32>
    %106 = vector.extract_strided_slice %82 {offsets = [0, 0, 8], sizes = [8, 8, 8], strides = [1, 1, 1]} : vector<8x8x96xf32> to vector<8x8x8xf32>
    %107 = arith.truncf %106 : vector<8x8x8xf32> to vector<8x8x8xbf16>
    %108 = vector.extract_strided_slice %82 {offsets = [0, 0, 40], sizes = [8, 8, 8], strides = [1, 1, 1]} : vector<8x8x96xf32> to vector<8x8x8xf32>
    %109 = arith.truncf %108 : vector<8x8x8xf32> to vector<8x8x8xbf16>
    %110 = vector.extract_strided_slice %82 {offsets = [0, 0, 72], sizes = [8, 8, 8], strides = [1, 1, 1]} : vector<8x8x96xf32> to vector<8x8x8xf32>
    %111 = arith.truncf %110 : vector<8x8x8xf32> to vector<8x8x8xbf16>
    "tpu.trace_start"() <{level = 10 : i32, message = "bqd,bkd->bqk"}> : () -> ()
    %cst_34 = arith.constant dense<0.000000e+00> : vector<8x8x8xf32>
    %112 = tpu.matmul %107, %109, %cst_34 {dimension_numbers = #tpu.dot_dimension_numbers<[2], [2], [1], [1], [0, 0, 0, 1, 1, 1], [0], [0]>} : vector<8x8x8xbf16>, vector<8x8x8xbf16>, vector<8x8x8xf32> -> vector<8x8x8xf32>
    "tpu.trace_stop"() : () -> ()
    %cst_35 = arith.constant 0.353553385 : f32
    %113 = vector.broadcast %cst_35 : f32 to vector<8x8x8xf32>
    %114 = arith.mulf %112, %113 : vector<8x8x8xf32>
    %115 = vector.broadcast %40 : vector<1x1x8xf32> to vector<8x8x8xf32>
    %116 = arith.addf %114, %115 : vector<8x8x8xf32>
    %cst_36 = arith.constant dense<0xFF800000> : vector<8x8xf32>
    %117 = vector.multi_reduction <maximumf>, %116, %cst_36 [2] : vector<8x8x8xf32> to vector<8x8xf32>
    %118 = vector.shape_cast %117 : vector<8x8xf32> to vector<8x8x1xf32>
    %119 = vector.broadcast %118 : vector<8x8x1xf32> to vector<8x8x8xf32>
    %120 = arith.subf %116, %119 : vector<8x8x8xf32>
    %121 = math.exp %120 : vector<8x8x8xf32>
    %cst_37 = arith.constant dense<0.000000e+00> : vector<8x8xf32>
    %122 = vector.multi_reduction <add>, %121, %cst_37 [2] : vector<8x8x8xf32> to vector<8x8xf32>
    %123 = vector.shape_cast %122 : vector<8x8xf32> to vector<8x8x1xf32>
    %124 = arith.truncf %121 : vector<8x8x8xf32> to vector<8x8x8xbf16>
    "tpu.trace_start"() <{level = 10 : i32, message = "bqk,bkd->bqd"}> : () -> ()
    %cst_38 = arith.constant dense<0.000000e+00> : vector<8x8x8xf32>
    %125 = tpu.matmul %124, %111, %cst_38 {dimension_numbers = #tpu.dot_dimension_numbers<[2], [1], [1], [2], [0, 0, 0, 1, 1, 2], [0], [0]>} : vector<8x8x8xbf16>, vector<8x8x8xbf16>, vector<8x8x8xf32> -> vector<8x8x8xf32>
    "tpu.trace_stop"() : () -> ()
    %126 = tpu.reciprocal %123 {approx = true} : vector<8x8x1xf32> -> vector<8x8x1xf32>
    %127 = vector.broadcast %126 : vector<8x8x1xf32> to vector<8x8x8xf32>
    %128 = arith.mulf %125, %127 : vector<8x8x8xf32>
    %129 = vector.extract_strided_slice %82 {offsets = [0, 0, 16], sizes = [8, 8, 8], strides = [1, 1, 1]} : vector<8x8x96xf32> to vector<8x8x8xf32>
    %130 = arith.truncf %129 : vector<8x8x8xf32> to vector<8x8x8xbf16>
    %131 = vector.extract_strided_slice %82 {offsets = [0, 0, 48], sizes = [8, 8, 8], strides = [1, 1, 1]} : vector<8x8x96xf32> to vector<8x8x8xf32>
    %132 = arith.truncf %131 : vector<8x8x8xf32> to vector<8x8x8xbf16>
    %133 = vector.extract_strided_slice %82 {offsets = [0, 0, 80], sizes = [8, 8, 8], strides = [1, 1, 1]} : vector<8x8x96xf32> to vector<8x8x8xf32>
    %134 = arith.truncf %133 : vector<8x8x8xf32> to vector<8x8x8xbf16>
    "tpu.trace_start"() <{level = 10 : i32, message = "bqd,bkd->bqk"}> : () -> ()
    %cst_39 = arith.constant dense<0.000000e+00> : vector<8x8x8xf32>
    %135 = tpu.matmul %130, %132, %cst_39 {dimension_numbers = #tpu.dot_dimension_numbers<[2], [2], [1], [1], [0, 0, 0, 1, 1, 1], [0], [0]>} : vector<8x8x8xbf16>, vector<8x8x8xbf16>, vector<8x8x8xf32> -> vector<8x8x8xf32>
    "tpu.trace_stop"() : () -> ()
    %cst_40 = arith.constant 0.353553385 : f32
    %136 = vector.broadcast %cst_40 : f32 to vector<8x8x8xf32>
    %137 = arith.mulf %135, %136 : vector<8x8x8xf32>
    %138 = vector.broadcast %40 : vector<1x1x8xf32> to vector<8x8x8xf32>
    %139 = arith.addf %137, %138 : vector<8x8x8xf32>
    %cst_41 = arith.constant dense<0xFF800000> : vector<8x8xf32>
    %140 = vector.multi_reduction <maximumf>, %139, %cst_41 [2] : vector<8x8x8xf32> to vector<8x8xf32>
    %141 = vector.shape_cast %140 : vector<8x8xf32> to vector<8x8x1xf32>
    %142 = vector.broadcast %141 : vector<8x8x1xf32> to vector<8x8x8xf32>
    %143 = arith.subf %139, %142 : vector<8x8x8xf32>
    %144 = math.exp %143 : vector<8x8x8xf32>
    %cst_42 = arith.constant dense<0.000000e+00> : vector<8x8xf32>
    %145 = vector.multi_reduction <add>, %144, %cst_42 [2] : vector<8x8x8xf32> to vector<8x8xf32>
    %146 = vector.shape_cast %145 : vector<8x8xf32> to vector<8x8x1xf32>
    %147 = arith.truncf %144 : vector<8x8x8xf32> to vector<8x8x8xbf16>
    "tpu.trace_start"() <{level = 10 : i32, message = "bqk,bkd->bqd"}> : () -> ()
    %cst_43 = arith.constant dense<0.000000e+00> : vector<8x8x8xf32>
    %148 = tpu.matmul %147, %134, %cst_43 {dimension_numbers = #tpu.dot_dimension_numbers<[2], [1], [1], [2], [0, 0, 0, 1, 1, 2], [0], [0]>} : vector<8x8x8xbf16>, vector<8x8x8xbf16>, vector<8x8x8xf32> -> vector<8x8x8xf32>
    "tpu.trace_stop"() : () -> ()
    %149 = tpu.reciprocal %146 {approx = true} : vector<8x8x1xf32> -> vector<8x8x1xf32>
    %150 = vector.broadcast %149 : vector<8x8x1xf32> to vector<8x8x8xf32>
    %151 = arith.mulf %148, %150 : vector<8x8x8xf32>
    %152 = vector.extract_strided_slice %82 {offsets = [0, 0, 24], sizes = [8, 8, 8], strides = [1, 1, 1]} : vector<8x8x96xf32> to vector<8x8x8xf32>
    %153 = arith.truncf %152 : vector<8x8x8xf32> to vector<8x8x8xbf16>
    %154 = vector.extract_strided_slice %82 {offsets = [0, 0, 56], sizes = [8, 8, 8], strides = [1, 1, 1]} : vector<8x8x96xf32> to vector<8x8x8xf32>
    %155 = arith.truncf %154 : vector<8x8x8xf32> to vector<8x8x8xbf16>
    %156 = vector.extract_strided_slice %82 {offsets = [0, 0, 88], sizes = [8, 8, 8], strides = [1, 1, 1]} : vector<8x8x96xf32> to vector<8x8x8xf32>
    %157 = arith.truncf %156 : vector<8x8x8xf32> to vector<8x8x8xbf16>
    "tpu.trace_start"() <{level = 10 : i32, message = "bqd,bkd->bqk"}> : () -> ()
    %cst_44 = arith.constant dense<0.000000e+00> : vector<8x8x8xf32>
    %158 = tpu.matmul %153, %155, %cst_44 {dimension_numbers = #tpu.dot_dimension_numbers<[2], [2], [1], [1], [0, 0, 0, 1, 1, 1], [0], [0]>} : vector<8x8x8xbf16>, vector<8x8x8xbf16>, vector<8x8x8xf32> -> vector<8x8x8xf32>
    "tpu.trace_stop"() : () -> ()
    %cst_45 = arith.constant 0.353553385 : f32
    %159 = vector.broadcast %cst_45 : f32 to vector<8x8x8xf32>
    %160 = arith.mulf %158, %159 : vector<8x8x8xf32>
    %161 = vector.broadcast %40 : vector<1x1x8xf32> to vector<8x8x8xf32>
    %162 = arith.addf %160, %161 : vector<8x8x8xf32>
    %cst_46 = arith.constant dense<0xFF800000> : vector<8x8xf32>
    %163 = vector.multi_reduction <maximumf>, %162, %cst_46 [2] : vector<8x8x8xf32> to vector<8x8xf32>
    %164 = vector.shape_cast %163 : vector<8x8xf32> to vector<8x8x1xf32>
    %165 = vector.broadcast %164 : vector<8x8x1xf32> to vector<8x8x8xf32>
    %166 = arith.subf %162, %165 : vector<8x8x8xf32>
    %167 = math.exp %166 : vector<8x8x8xf32>
    %cst_47 = arith.constant dense<0.000000e+00> : vector<8x8xf32>
    %168 = vector.multi_reduction <add>, %167, %cst_47 [2] : vector<8x8x8xf32> to vector<8x8xf32>
    %169 = vector.shape_cast %168 : vector<8x8xf32> to vector<8x8x1xf32>
    %170 = arith.truncf %167 : vector<8x8x8xf32> to vector<8x8x8xbf16>
    "tpu.trace_start"() <{level = 10 : i32, message = "bqk,bkd->bqd"}> : () -> ()
    %cst_48 = arith.constant dense<0.000000e+00> : vector<8x8x8xf32>
    %171 = tpu.matmul %170, %157, %cst_48 {dimension_numbers = #tpu.dot_dimension_numbers<[2], [1], [1], [2], [0, 0, 0, 1, 1, 2], [0], [0]>} : vector<8x8x8xbf16>, vector<8x8x8xbf16>, vector<8x8x8xf32> -> vector<8x8x8xf32>
    "tpu.trace_stop"() : () -> ()
    %172 = tpu.reciprocal %169 {approx = true} : vector<8x8x1xf32> -> vector<8x8x1xf32>
    %173 = vector.broadcast %172 : vector<8x8x1xf32> to vector<8x8x8xf32>
    %174 = arith.mulf %171, %173 : vector<8x8x8xf32>
    %175 = tpu.concatenate %105, %128, %151, %174 in 2 : vector<8x8x8xf32>, vector<8x8x8xf32>, vector<8x8x8xf32>, vector<8x8x8xf32> -> vector<8x8x32xf32>
    %176 = vector.shape_cast %175 : vector<8x8x32xf32> to vector<64x32xf32>
    %177 = arith.truncf %176 : vector<64x32xf32> to vector<64x32xbf16>
    %cst_49 = arith.constant dense<0.000000e+00> : vector<64x32xf32>
    %178 = tpu.matmul %177, %54, %cst_49 {dimension_numbers = #tpu.dot_dimension_numbers<[1], [0], [0], [1], [0, 0, 1, 1], [], []>} : vector<64x32xbf16>, vector<32x32xbf16>, vector<64x32xf32> -> vector<64x32xf32>
    %179 = arith.addf %34, %178 : vector<64x32xf32>
    %180 = vector.broadcast %46 : vector<1x32xf32> to vector<64x32xf32>
    %181 = arith.addf %179, %180 : vector<64x32xf32>
    %cst_50 = arith.constant dense<0.000000e+00> : vector<64xf32>
    %182 = vector.multi_reduction <add>, %181, %cst_50 [1] : vector<64x32xf32> to vector<64xf32>
    %183 = vector.shape_cast %182 : vector<64xf32> to vector<64x1xf32>
    %cst_51 = arith.constant 3.200000e+01 : f32
    %184 = vector.broadcast %cst_51 : f32 to vector<64x1xf32>
    %185 = arith.divf %183, %184 : vector<64x1xf32>
    %186 = vector.broadcast %185 : vector<64x1xf32> to vector<64x32xf32>
    %187 = arith.subf %181, %186 : vector<64x32xf32>
    %188 = arith.mulf %187, %187 : vector<64x32xf32>
    %cst_52 = arith.constant dense<0.000000e+00> : vector<64xf32>
    %189 = vector.multi_reduction <add>, %188, %cst_52 [1] : vector<64x32xf32> to vector<64xf32>
    %190 = vector.shape_cast %189 : vector<64xf32> to vector<64x1xf32>
    %cst_53 = arith.constant 3.200000e+01 : f32
    %191 = vector.broadcast %cst_53 : f32 to vector<64x1xf32>
    %192 = arith.divf %190, %191 : vector<64x1xf32>
    %cst_54 = arith.constant 9.99999974E-6 : f32
    %193 = vector.broadcast %cst_54 : f32 to vector<64x1xf32>
    %194 = arith.addf %192, %193 : vector<64x1xf32>
    %195 = math.rsqrt %194 : vector<64x1xf32>
    %196 = vector.broadcast %195 : vector<64x1xf32> to vector<64x32xf32>
    %197 = arith.mulf %187, %196 : vector<64x32xf32>
    %198 = vector.broadcast %47 : vector<1x32xf32> to vector<64x32xf32>
    %199 = arith.mulf %197, %198 : vector<64x32xf32>
    %200 = vector.broadcast %48 : vector<1x32xf32> to vector<64x32xf32>
    %201 = arith.addf %199, %200 : vector<64x32xf32>
    %202 = arith.truncf %201 : vector<64x32xf32> to vector<64x32xbf16>
    %cst_55 = arith.constant dense<0.000000e+00> : vector<64x128xf32>
    %203 = tpu.matmul %202, %55, %cst_55 {dimension_numbers = #tpu.dot_dimension_numbers<[1], [0], [0], [1], [0, 0, 1, 1], [], []>} : vector<64x32xbf16>, vector<32x128xbf16>, vector<64x128xf32> -> vector<64x128xf32>
    %204 = vector.broadcast %49 : vector<1x128xf32> to vector<64x128xf32>
    %205 = arith.addf %203, %204 : vector<64x128xf32>
    %206 = arith.mulf %205, %205 : vector<64x128xf32>
    %207 = arith.mulf %205, %206 : vector<64x128xf32>
    %cst_56 = arith.constant 4.471500e-02 : f32
    %208 = vector.broadcast %cst_56 : f32 to vector<64x128xf32>
    %209 = arith.mulf %208, %207 : vector<64x128xf32>
    %210 = arith.addf %205, %209 : vector<64x128xf32>
    %cst_57 = arith.constant 0.797884583 : f32
    %211 = vector.broadcast %cst_57 : f32 to vector<64x128xf32>
    %212 = arith.mulf %211, %210 : vector<64x128xf32>
    %213 = math.tanh %212 : vector<64x128xf32>
    %cst_58 = arith.constant 1.000000e+00 : f32
    %214 = vector.broadcast %cst_58 : f32 to vector<64x128xf32>
    %215 = arith.addf %214, %213 : vector<64x128xf32>
    %cst_59 = arith.constant 5.000000e-01 : f32
    %216 = vector.broadcast %cst_59 : f32 to vector<64x128xf32>
    %217 = arith.mulf %216, %215 : vector<64x128xf32>
    %218 = arith.mulf %205, %217 : vector<64x128xf32>
    %219 = arith.truncf %218 : vector<64x128xf32> to vector<64x128xbf16>
    %cst_60 = arith.constant dense<0.000000e+00> : vector<64x32xf32>
    %220 = tpu.matmul %219, %57, %cst_60 {dimension_numbers = #tpu.dot_dimension_numbers<[1], [0], [0], [1], [0, 0, 1, 1], [], []>} : vector<64x128xbf16>, vector<128x32xbf16>, vector<64x32xf32> -> vector<64x32xf32>
    %221 = arith.addf %181, %220 : vector<64x32xf32>
    %222 = vector.broadcast %50 : vector<1x32xf32> to vector<64x32xf32>
    %223 = arith.addf %221, %222 : vector<64x32xf32>
    %c1 = arith.constant 1 : index
    %c0_61 = arith.constant 0 : index
    %c0_62 = arith.constant 0 : index
    %224 = vector.load %arg8[%c1, %c0_61, %c0_62] : memref<2x8x128xf32, #tpu.memory_space<vmem>>, vector<1x8x128xf32>
    %225 = vector.shape_cast %224 : vector<1x8x128xf32> to vector<8x128xf32>
    %226 = vector.extract_strided_slice %225 {offsets = [0, 0], sizes = [1, 32], strides = [1, 1]} : vector<8x128xf32> to vector<1x32xf32>
    %227 = vector.extract_strided_slice %225 {offsets = [1, 0], sizes = [1, 32], strides = [1, 1]} : vector<8x128xf32> to vector<1x32xf32>
    %228 = vector.extract_strided_slice %225 {offsets = [2, 0], sizes = [1, 96], strides = [1, 1]} : vector<8x128xf32> to vector<1x96xf32>
    %229 = vector.extract_strided_slice %225 {offsets = [3, 0], sizes = [1, 32], strides = [1, 1]} : vector<8x128xf32> to vector<1x32xf32>
    %230 = vector.extract_strided_slice %225 {offsets = [4, 0], sizes = [1, 32], strides = [1, 1]} : vector<8x128xf32> to vector<1x32xf32>
    %231 = vector.extract_strided_slice %225 {offsets = [5, 0], sizes = [1, 32], strides = [1, 1]} : vector<8x128xf32> to vector<1x32xf32>
    %232 = vector.extract_strided_slice %225 {offsets = [6, 0], sizes = [1, 128], strides = [1, 1]} : vector<8x128xf32> to vector<1x128xf32>
    %233 = vector.extract_strided_slice %225 {offsets = [7, 0], sizes = [1, 32], strides = [1, 1]} : vector<8x128xf32> to vector<1x32xf32>
    %c1_63 = arith.constant 1 : index
    %c0_64 = arith.constant 0 : index
    %c0_65 = arith.constant 0 : index
    %234 = vector.load %arg6[%c1_63, %c0_64, %c0_65] : memref<2x32x256xbf16, #tpu.memory_space<vmem>>, vector<1x32x256xbf16>
    %235 = vector.shape_cast %234 : vector<1x32x256xbf16> to vector<32x256xbf16>
    %236 = vector.extract_strided_slice %235 {offsets = [0, 0], sizes = [32, 96], strides = [1, 1]} : vector<32x256xbf16> to vector<32x96xbf16>
    %237 = vector.extract_strided_slice %235 {offsets = [0, 96], sizes = [32, 32], strides = [1, 1]} : vector<32x256xbf16> to vector<32x32xbf16>
    %238 = vector.extract_strided_slice %235 {offsets = [0, 128], sizes = [32, 128], strides = [1, 1]} : vector<32x256xbf16> to vector<32x128xbf16>
    %c1_66 = arith.constant 1 : index
    %c0_67 = arith.constant 0 : index
    %c0_68 = arith.constant 0 : index
    %239 = vector.load %arg7[%c1_66, %c0_67, %c0_68] : memref<2x128x32xbf16, #tpu.memory_space<vmem>>, vector<1x128x32xbf16>
    %240 = vector.shape_cast %239 : vector<1x128x32xbf16> to vector<128x32xbf16>
    %cst_69 = arith.constant dense<0.000000e+00> : vector<64xf32>
    %241 = vector.multi_reduction <add>, %223, %cst_69 [1] : vector<64x32xf32> to vector<64xf32>
    %242 = vector.shape_cast %241 : vector<64xf32> to vector<64x1xf32>
    %cst_70 = arith.constant 3.200000e+01 : f32
    %243 = vector.broadcast %cst_70 : f32 to vector<64x1xf32>
    %244 = arith.divf %242, %243 : vector<64x1xf32>
    %245 = vector.broadcast %244 : vector<64x1xf32> to vector<64x32xf32>
    %246 = arith.subf %223, %245 : vector<64x32xf32>
    %247 = arith.mulf %246, %246 : vector<64x32xf32>
    %cst_71 = arith.constant dense<0.000000e+00> : vector<64xf32>
    %248 = vector.multi_reduction <add>, %247, %cst_71 [1] : vector<64x32xf32> to vector<64xf32>
    %249 = vector.shape_cast %248 : vector<64xf32> to vector<64x1xf32>
    %cst_72 = arith.constant 3.200000e+01 : f32
    %250 = vector.broadcast %cst_72 : f32 to vector<64x1xf32>
    %251 = arith.divf %249, %250 : vector<64x1xf32>
    %cst_73 = arith.constant 9.99999974E-6 : f32
    %252 = vector.broadcast %cst_73 : f32 to vector<64x1xf32>
    %253 = arith.addf %251, %252 : vector<64x1xf32>
    %254 = math.rsqrt %253 : vector<64x1xf32>
    %255 = vector.broadcast %254 : vector<64x1xf32> to vector<64x32xf32>
    %256 = arith.mulf %246, %255 : vector<64x32xf32>
    %257 = vector.broadcast %226 : vector<1x32xf32> to vector<64x32xf32>
    %258 = arith.mulf %256, %257 : vector<64x32xf32>
    %259 = vector.broadcast %227 : vector<1x32xf32> to vector<64x32xf32>
    %260 = arith.addf %258, %259 : vector<64x32xf32>
    %261 = arith.truncf %260 : vector<64x32xf32> to vector<64x32xbf16>
    %cst_74 = arith.constant dense<0.000000e+00> : vector<64x96xf32>
    %262 = tpu.matmul %261, %236, %cst_74 {dimension_numbers = #tpu.dot_dimension_numbers<[1], [0], [0], [1], [0, 0, 1, 1], [], []>} : vector<64x32xbf16>, vector<32x96xbf16>, vector<64x96xf32> -> vector<64x96xf32>
    %263 = vector.broadcast %228 : vector<1x96xf32> to vector<64x96xf32>
    %264 = arith.addf %262, %263 : vector<64x96xf32>
    %265 = vector.shape_cast %264 : vector<64x96xf32> to vector<8x8x96xf32>
    %266 = vector.extract_strided_slice %265 {offsets = [0, 0, 0], sizes = [8, 8, 8], strides = [1, 1, 1]} : vector<8x8x96xf32> to vector<8x8x8xf32>
    %267 = arith.truncf %266 : vector<8x8x8xf32> to vector<8x8x8xbf16>
    %268 = vector.extract_strided_slice %265 {offsets = [0, 0, 32], sizes = [8, 8, 8], strides = [1, 1, 1]} : vector<8x8x96xf32> to vector<8x8x8xf32>
    %269 = arith.truncf %268 : vector<8x8x8xf32> to vector<8x8x8xbf16>
    %270 = vector.extract_strided_slice %265 {offsets = [0, 0, 64], sizes = [8, 8, 8], strides = [1, 1, 1]} : vector<8x8x96xf32> to vector<8x8x8xf32>
    %271 = arith.truncf %270 : vector<8x8x8xf32> to vector<8x8x8xbf16>
    "tpu.trace_start"() <{level = 10 : i32, message = "bqd,bkd->bqk"}> : () -> ()
    %cst_75 = arith.constant dense<0.000000e+00> : vector<8x8x8xf32>
    %272 = tpu.matmul %267, %269, %cst_75 {dimension_numbers = #tpu.dot_dimension_numbers<[2], [2], [1], [1], [0, 0, 0, 1, 1, 1], [0], [0]>} : vector<8x8x8xbf16>, vector<8x8x8xbf16>, vector<8x8x8xf32> -> vector<8x8x8xf32>
    "tpu.trace_stop"() : () -> ()
    %cst_76 = arith.constant 0.353553385 : f32
    %273 = vector.broadcast %cst_76 : f32 to vector<8x8x8xf32>
    %274 = arith.mulf %272, %273 : vector<8x8x8xf32>
    %275 = vector.broadcast %40 : vector<1x1x8xf32> to vector<8x8x8xf32>
    %276 = arith.addf %274, %275 : vector<8x8x8xf32>
    %cst_77 = arith.constant dense<0xFF800000> : vector<8x8xf32>
    %277 = vector.multi_reduction <maximumf>, %276, %cst_77 [2] : vector<8x8x8xf32> to vector<8x8xf32>
    %278 = vector.shape_cast %277 : vector<8x8xf32> to vector<8x8x1xf32>
    %279 = vector.broadcast %278 : vector<8x8x1xf32> to vector<8x8x8xf32>
    %280 = arith.subf %276, %279 : vector<8x8x8xf32>
    %281 = math.exp %280 : vector<8x8x8xf32>
    %cst_78 = arith.constant dense<0.000000e+00> : vector<8x8xf32>
    %282 = vector.multi_reduction <add>, %281, %cst_78 [2] : vector<8x8x8xf32> to vector<8x8xf32>
    %283 = vector.shape_cast %282 : vector<8x8xf32> to vector<8x8x1xf32>
    %284 = arith.truncf %281 : vector<8x8x8xf32> to vector<8x8x8xbf16>
    "tpu.trace_start"() <{level = 10 : i32, message = "bqk,bkd->bqd"}> : () -> ()
    %cst_79 = arith.constant dense<0.000000e+00> : vector<8x8x8xf32>
    %285 = tpu.matmul %284, %271, %cst_79 {dimension_numbers = #tpu.dot_dimension_numbers<[2], [1], [1], [2], [0, 0, 0, 1, 1, 2], [0], [0]>} : vector<8x8x8xbf16>, vector<8x8x8xbf16>, vector<8x8x8xf32> -> vector<8x8x8xf32>
    "tpu.trace_stop"() : () -> ()
    %286 = tpu.reciprocal %283 {approx = true} : vector<8x8x1xf32> -> vector<8x8x1xf32>
    %287 = vector.broadcast %286 : vector<8x8x1xf32> to vector<8x8x8xf32>
    %288 = arith.mulf %285, %287 : vector<8x8x8xf32>
    %289 = vector.extract_strided_slice %265 {offsets = [0, 0, 8], sizes = [8, 8, 8], strides = [1, 1, 1]} : vector<8x8x96xf32> to vector<8x8x8xf32>
    %290 = arith.truncf %289 : vector<8x8x8xf32> to vector<8x8x8xbf16>
    %291 = vector.extract_strided_slice %265 {offsets = [0, 0, 40], sizes = [8, 8, 8], strides = [1, 1, 1]} : vector<8x8x96xf32> to vector<8x8x8xf32>
    %292 = arith.truncf %291 : vector<8x8x8xf32> to vector<8x8x8xbf16>
    %293 = vector.extract_strided_slice %265 {offsets = [0, 0, 72], sizes = [8, 8, 8], strides = [1, 1, 1]} : vector<8x8x96xf32> to vector<8x8x8xf32>
    %294 = arith.truncf %293 : vector<8x8x8xf32> to vector<8x8x8xbf16>
    "tpu.trace_start"() <{level = 10 : i32, message = "bqd,bkd->bqk"}> : () -> ()
    %cst_80 = arith.constant dense<0.000000e+00> : vector<8x8x8xf32>
    %295 = tpu.matmul %290, %292, %cst_80 {dimension_numbers = #tpu.dot_dimension_numbers<[2], [2], [1], [1], [0, 0, 0, 1, 1, 1], [0], [0]>} : vector<8x8x8xbf16>, vector<8x8x8xbf16>, vector<8x8x8xf32> -> vector<8x8x8xf32>
    "tpu.trace_stop"() : () -> ()
    %cst_81 = arith.constant 0.353553385 : f32
    %296 = vector.broadcast %cst_81 : f32 to vector<8x8x8xf32>
    %297 = arith.mulf %295, %296 : vector<8x8x8xf32>
    %298 = vector.broadcast %40 : vector<1x1x8xf32> to vector<8x8x8xf32>
    %299 = arith.addf %297, %298 : vector<8x8x8xf32>
    %cst_82 = arith.constant dense<0xFF800000> : vector<8x8xf32>
    %300 = vector.multi_reduction <maximumf>, %299, %cst_82 [2] : vector<8x8x8xf32> to vector<8x8xf32>
    %301 = vector.shape_cast %300 : vector<8x8xf32> to vector<8x8x1xf32>
    %302 = vector.broadcast %301 : vector<8x8x1xf32> to vector<8x8x8xf32>
    %303 = arith.subf %299, %302 : vector<8x8x8xf32>
    %304 = math.exp %303 : vector<8x8x8xf32>
    %cst_83 = arith.constant dense<0.000000e+00> : vector<8x8xf32>
    %305 = vector.multi_reduction <add>, %304, %cst_83 [2] : vector<8x8x8xf32> to vector<8x8xf32>
    %306 = vector.shape_cast %305 : vector<8x8xf32> to vector<8x8x1xf32>
    %307 = arith.truncf %304 : vector<8x8x8xf32> to vector<8x8x8xbf16>
    "tpu.trace_start"() <{level = 10 : i32, message = "bqk,bkd->bqd"}> : () -> ()
    %cst_84 = arith.constant dense<0.000000e+00> : vector<8x8x8xf32>
    %308 = tpu.matmul %307, %294, %cst_84 {dimension_numbers = #tpu.dot_dimension_numbers<[2], [1], [1], [2], [0, 0, 0, 1, 1, 2], [0], [0]>} : vector<8x8x8xbf16>, vector<8x8x8xbf16>, vector<8x8x8xf32> -> vector<8x8x8xf32>
    "tpu.trace_stop"() : () -> ()
    %309 = tpu.reciprocal %306 {approx = true} : vector<8x8x1xf32> -> vector<8x8x1xf32>
    %310 = vector.broadcast %309 : vector<8x8x1xf32> to vector<8x8x8xf32>
    %311 = arith.mulf %308, %310 : vector<8x8x8xf32>
    %312 = vector.extract_strided_slice %265 {offsets = [0, 0, 16], sizes = [8, 8, 8], strides = [1, 1, 1]} : vector<8x8x96xf32> to vector<8x8x8xf32>
    %313 = arith.truncf %312 : vector<8x8x8xf32> to vector<8x8x8xbf16>
    %314 = vector.extract_strided_slice %265 {offsets = [0, 0, 48], sizes = [8, 8, 8], strides = [1, 1, 1]} : vector<8x8x96xf32> to vector<8x8x8xf32>
    %315 = arith.truncf %314 : vector<8x8x8xf32> to vector<8x8x8xbf16>
    %316 = vector.extract_strided_slice %265 {offsets = [0, 0, 80], sizes = [8, 8, 8], strides = [1, 1, 1]} : vector<8x8x96xf32> to vector<8x8x8xf32>
    %317 = arith.truncf %316 : vector<8x8x8xf32> to vector<8x8x8xbf16>
    "tpu.trace_start"() <{level = 10 : i32, message = "bqd,bkd->bqk"}> : () -> ()
    %cst_85 = arith.constant dense<0.000000e+00> : vector<8x8x8xf32>
    %318 = tpu.matmul %313, %315, %cst_85 {dimension_numbers = #tpu.dot_dimension_numbers<[2], [2], [1], [1], [0, 0, 0, 1, 1, 1], [0], [0]>} : vector<8x8x8xbf16>, vector<8x8x8xbf16>, vector<8x8x8xf32> -> vector<8x8x8xf32>
    "tpu.trace_stop"() : () -> ()
    %cst_86 = arith.constant 0.353553385 : f32
    %319 = vector.broadcast %cst_86 : f32 to vector<8x8x8xf32>
    %320 = arith.mulf %318, %319 : vector<8x8x8xf32>
    %321 = vector.broadcast %40 : vector<1x1x8xf32> to vector<8x8x8xf32>
    %322 = arith.addf %320, %321 : vector<8x8x8xf32>
    %cst_87 = arith.constant dense<0xFF800000> : vector<8x8xf32>
    %323 = vector.multi_reduction <maximumf>, %322, %cst_87 [2] : vector<8x8x8xf32> to vector<8x8xf32>
    %324 = vector.shape_cast %323 : vector<8x8xf32> to vector<8x8x1xf32>
    %325 = vector.broadcast %324 : vector<8x8x1xf32> to vector<8x8x8xf32>
    %326 = arith.subf %322, %325 : vector<8x8x8xf32>
    %327 = math.exp %326 : vector<8x8x8xf32>
    %cst_88 = arith.constant dense<0.000000e+00> : vector<8x8xf32>
    %328 = vector.multi_reduction <add>, %327, %cst_88 [2] : vector<8x8x8xf32> to vector<8x8xf32>
    %329 = vector.shape_cast %328 : vector<8x8xf32> to vector<8x8x1xf32>
    %330 = arith.truncf %327 : vector<8x8x8xf32> to vector<8x8x8xbf16>
    "tpu.trace_start"() <{level = 10 : i32, message = "bqk,bkd->bqd"}> : () -> ()
    %cst_89 = arith.constant dense<0.000000e+00> : vector<8x8x8xf32>
    %331 = tpu.matmul %330, %317, %cst_89 {dimension_numbers = #tpu.dot_dimension_numbers<[2], [1], [1], [2], [0, 0, 0, 1, 1, 2], [0], [0]>} : vector<8x8x8xbf16>, vector<8x8x8xbf16>, vector<8x8x8xf32> -> vector<8x8x8xf32>
    "tpu.trace_stop"() : () -> ()
    %332 = tpu.reciprocal %329 {approx = true} : vector<8x8x1xf32> -> vector<8x8x1xf32>
    %333 = vector.broadcast %332 : vector<8x8x1xf32> to vector<8x8x8xf32>
    %334 = arith.mulf %331, %333 : vector<8x8x8xf32>
    %335 = vector.extract_strided_slice %265 {offsets = [0, 0, 24], sizes = [8, 8, 8], strides = [1, 1, 1]} : vector<8x8x96xf32> to vector<8x8x8xf32>
    %336 = arith.truncf %335 : vector<8x8x8xf32> to vector<8x8x8xbf16>
    %337 = vector.extract_strided_slice %265 {offsets = [0, 0, 56], sizes = [8, 8, 8], strides = [1, 1, 1]} : vector<8x8x96xf32> to vector<8x8x8xf32>
    %338 = arith.truncf %337 : vector<8x8x8xf32> to vector<8x8x8xbf16>
    %339 = vector.extract_strided_slice %265 {offsets = [0, 0, 88], sizes = [8, 8, 8], strides = [1, 1, 1]} : vector<8x8x96xf32> to vector<8x8x8xf32>
    %340 = arith.truncf %339 : vector<8x8x8xf32> to vector<8x8x8xbf16>
    "tpu.trace_start"() <{level = 10 : i32, message = "bqd,bkd->bqk"}> : () -> ()
    %cst_90 = arith.constant dense<0.000000e+00> : vector<8x8x8xf32>
    %341 = tpu.matmul %336, %338, %cst_90 {dimension_numbers = #tpu.dot_dimension_numbers<[2], [2], [1], [1], [0, 0, 0, 1, 1, 1], [0], [0]>} : vector<8x8x8xbf16>, vector<8x8x8xbf16>, vector<8x8x8xf32> -> vector<8x8x8xf32>
    "tpu.trace_stop"() : () -> ()
    %cst_91 = arith.constant 0.353553385 : f32
    %342 = vector.broadcast %cst_91 : f32 to vector<8x8x8xf32>
    %343 = arith.mulf %341, %342 : vector<8x8x8xf32>
    %344 = vector.broadcast %40 : vector<1x1x8xf32> to vector<8x8x8xf32>
    %345 = arith.addf %343, %344 : vector<8x8x8xf32>
    %cst_92 = arith.constant dense<0xFF800000> : vector<8x8xf32>
    %346 = vector.multi_reduction <maximumf>, %345, %cst_92 [2] : vector<8x8x8xf32> to vector<8x8xf32>
    %347 = vector.shape_cast %346 : vector<8x8xf32> to vector<8x8x1xf32>
    %348 = vector.broadcast %347 : vector<8x8x1xf32> to vector<8x8x8xf32>
    %349 = arith.subf %345, %348 : vector<8x8x8xf32>
    %350 = math.exp %349 : vector<8x8x8xf32>
    %cst_93 = arith.constant dense<0.000000e+00> : vector<8x8xf32>
    %351 = vector.multi_reduction <add>, %350, %cst_93 [2] : vector<8x8x8xf32> to vector<8x8xf32>
    %352 = vector.shape_cast %351 : vector<8x8xf32> to vector<8x8x1xf32>
    %353 = arith.truncf %350 : vector<8x8x8xf32> to vector<8x8x8xbf16>
    "tpu.trace_start"() <{level = 10 : i32, message = "bqk,bkd->bqd"}> : () -> ()
    %cst_94 = arith.constant dense<0.000000e+00> : vector<8x8x8xf32>
    %354 = tpu.matmul %353, %340, %cst_94 {dimension_numbers = #tpu.dot_dimension_numbers<[2], [1], [1], [2], [0, 0, 0, 1, 1, 2], [0], [0]>} : vector<8x8x8xbf16>, vector<8x8x8xbf16>, vector<8x8x8xf32> -> vector<8x8x8xf32>
    "tpu.trace_stop"() : () -> ()
    %355 = tpu.reciprocal %352 {approx = true} : vector<8x8x1xf32> -> vector<8x8x1xf32>
    %356 = vector.broadcast %355 : vector<8x8x1xf32> to vector<8x8x8xf32>
    %357 = arith.mulf %354, %356 : vector<8x8x8xf32>
    %358 = tpu.concatenate %288, %311, %334, %357 in 2 : vector<8x8x8xf32>, vector<8x8x8xf32>, vector<8x8x8xf32>, vector<8x8x8xf32> -> vector<8x8x32xf32>
    %359 = vector.shape_cast %358 : vector<8x8x32xf32> to vector<64x32xf32>
    %360 = arith.truncf %359 : vector<64x32xf32> to vector<64x32xbf16>
    %cst_95 = arith.constant dense<0.000000e+00> : vector<64x32xf32>
    %361 = tpu.matmul %360, %237, %cst_95 {dimension_numbers = #tpu.dot_dimension_numbers<[1], [0], [0], [1], [0, 0, 1, 1], [], []>} : vector<64x32xbf16>, vector<32x32xbf16>, vector<64x32xf32> -> vector<64x32xf32>
    %362 = arith.addf %223, %361 : vector<64x32xf32>
    %363 = vector.broadcast %229 : vector<1x32xf32> to vector<64x32xf32>
    %364 = arith.addf %362, %363 : vector<64x32xf32>
    %cst_96 = arith.constant dense<0.000000e+00> : vector<64xf32>
    %365 = vector.multi_reduction <add>, %364, %cst_96 [1] : vector<64x32xf32> to vector<64xf32>
    %366 = vector.shape_cast %365 : vector<64xf32> to vector<64x1xf32>
    %cst_97 = arith.constant 3.200000e+01 : f32
    %367 = vector.broadcast %cst_97 : f32 to vector<64x1xf32>
    %368 = arith.divf %366, %367 : vector<64x1xf32>
    %369 = vector.broadcast %368 : vector<64x1xf32> to vector<64x32xf32>
    %370 = arith.subf %364, %369 : vector<64x32xf32>
    %371 = arith.mulf %370, %370 : vector<64x32xf32>
    %cst_98 = arith.constant dense<0.000000e+00> : vector<64xf32>
    %372 = vector.multi_reduction <add>, %371, %cst_98 [1] : vector<64x32xf32> to vector<64xf32>
    %373 = vector.shape_cast %372 : vector<64xf32> to vector<64x1xf32>
    %cst_99 = arith.constant 3.200000e+01 : f32
    %374 = vector.broadcast %cst_99 : f32 to vector<64x1xf32>
    %375 = arith.divf %373, %374 : vector<64x1xf32>
    %cst_100 = arith.constant 9.99999974E-6 : f32
    %376 = vector.broadcast %cst_100 : f32 to vector<64x1xf32>
    %377 = arith.addf %375, %376 : vector<64x1xf32>
    %378 = math.rsqrt %377 : vector<64x1xf32>
    %379 = vector.broadcast %378 : vector<64x1xf32> to vector<64x32xf32>
    %380 = arith.mulf %370, %379 : vector<64x32xf32>
    %381 = vector.broadcast %230 : vector<1x32xf32> to vector<64x32xf32>
    %382 = arith.mulf %380, %381 : vector<64x32xf32>
    %383 = vector.broadcast %231 : vector<1x32xf32> to vector<64x32xf32>
    %384 = arith.addf %382, %383 : vector<64x32xf32>
    %385 = arith.truncf %384 : vector<64x32xf32> to vector<64x32xbf16>
    %cst_101 = arith.constant dense<0.000000e+00> : vector<64x128xf32>
    %386 = tpu.matmul %385, %238, %cst_101 {dimension_numbers = #tpu.dot_dimension_numbers<[1], [0], [0], [1], [0, 0, 1, 1], [], []>} : vector<64x32xbf16>, vector<32x128xbf16>, vector<64x128xf32> -> vector<64x128xf32>
    %387 = vector.broadcast %232 : vector<1x128xf32> to vector<64x128xf32>
    %388 = arith.addf %386, %387 : vector<64x128xf32>
    %389 = arith.mulf %388, %388 : vector<64x128xf32>
    %390 = arith.mulf %388, %389 : vector<64x128xf32>
    %cst_102 = arith.constant 4.471500e-02 : f32
    %391 = vector.broadcast %cst_102 : f32 to vector<64x128xf32>
    %392 = arith.mulf %391, %390 : vector<64x128xf32>
    %393 = arith.addf %388, %392 : vector<64x128xf32>
    %cst_103 = arith.constant 0.797884583 : f32
    %394 = vector.broadcast %cst_103 : f32 to vector<64x128xf32>
    %395 = arith.mulf %394, %393 : vector<64x128xf32>
    %396 = math.tanh %395 : vector<64x128xf32>
    %cst_104 = arith.constant 1.000000e+00 : f32
    %397 = vector.broadcast %cst_104 : f32 to vector<64x128xf32>
    %398 = arith.addf %397, %396 : vector<64x128xf32>
    %cst_105 = arith.constant 5.000000e-01 : f32
    %399 = vector.broadcast %cst_105 : f32 to vector<64x128xf32>
    %400 = arith.mulf %399, %398 : vector<64x128xf32>
    %401 = arith.mulf %388, %400 : vector<64x128xf32>
    %402 = arith.truncf %401 : vector<64x128xf32> to vector<64x128xbf16>
    %cst_106 = arith.constant dense<0.000000e+00> : vector<64x32xf32>
    %403 = tpu.matmul %402, %240, %cst_106 {dimension_numbers = #tpu.dot_dimension_numbers<[1], [0], [0], [1], [0, 0, 1, 1], [], []>} : vector<64x128xbf16>, vector<128x32xbf16>, vector<64x32xf32> -> vector<64x32xf32>
    %404 = arith.addf %364, %403 : vector<64x32xf32>
    %405 = vector.broadcast %233 : vector<1x32xf32> to vector<64x32xf32>
    %406 = arith.addf %404, %405 : vector<64x32xf32>
    %407 = tpu.iota {dimensions = array<i32: 1>} : vector<1x8x1xi32>
    %c0_i32 = arith.constant 0 : i32
    %408 = vector.broadcast %c0_i32 : i32 to vector<1x8x1xi32>
    %409 = arith.cmpi eq, %407, %408 : vector<1x8x1xi32>
    %410 = arith.extui %409 : vector<1x8x1xi1> to vector<1x8x1xi32>
    %411 = arith.sitofp %410 : vector<1x8x1xi32> to vector<1x8x1xf32>
    %412 = vector.shape_cast %406 : vector<64x32xf32> to vector<8x8x32xf32>
    %413 = vector.broadcast %411 : vector<1x8x1xf32> to vector<8x8x32xf32>
    %414 = arith.mulf %412, %413 : vector<8x8x32xf32>
    %cst_107 = arith.constant dense<0.000000e+00> : vector<8x32xf32>
    %415 = vector.multi_reduction <add>, %414, %cst_107 [1] : vector<8x8x32xf32> to vector<8x32xf32>
    %cst_108 = arith.constant dense<0.000000e+00> : vector<8xf32>
    %416 = vector.multi_reduction <add>, %415, %cst_108 [1] : vector<8x32xf32> to vector<8xf32>
    %417 = vector.shape_cast %416 : vector<8xf32> to vector<8x1xf32>
    %cst_109 = arith.constant 3.200000e+01 : f32
    %418 = vector.broadcast %cst_109 : f32 to vector<8x1xf32>
    %419 = arith.divf %417, %418 : vector<8x1xf32>
    %420 = vector.broadcast %419 : vector<8x1xf32> to vector<8x32xf32>
    %421 = arith.subf %415, %420 : vector<8x32xf32>
    %422 = arith.mulf %421, %421 : vector<8x32xf32>
    %cst_110 = arith.constant dense<0.000000e+00> : vector<8xf32>
    %423 = vector.multi_reduction <add>, %422, %cst_110 [1] : vector<8x32xf32> to vector<8xf32>
    %424 = vector.shape_cast %423 : vector<8xf32> to vector<8x1xf32>
    %cst_111 = arith.constant 3.200000e+01 : f32
    %425 = vector.broadcast %cst_111 : f32 to vector<8x1xf32>
    %426 = arith.divf %424, %425 : vector<8x1xf32>
    %cst_112 = arith.constant 9.99999974E-6 : f32
    %427 = vector.broadcast %cst_112 : f32 to vector<8x1xf32>
    %428 = arith.addf %426, %427 : vector<8x1xf32>
    %429 = math.rsqrt %428 : vector<8x1xf32>
    %430 = vector.broadcast %429 : vector<8x1xf32> to vector<8x32xf32>
    %431 = arith.mulf %421, %430 : vector<8x32xf32>
    %432 = vector.broadcast %3 : vector<1x32xf32> to vector<8x32xf32>
    %433 = arith.mulf %431, %432 : vector<8x32xf32>
    %434 = vector.broadcast %4 : vector<1x32xf32> to vector<8x32xf32>
    %435 = arith.addf %433, %434 : vector<8x32xf32>
    %c0_113 = arith.constant 0 : index
    %c0_114 = arith.constant 0 : index
    %436 = vector.load %arg5[%c0_113, %c0_114] : memref<32x16xbf16, #tpu.memory_space<vmem>>, vector<32x16xbf16>
    %437 = arith.truncf %435 : vector<8x32xf32> to vector<8x32xbf16>
    %cst_115 = arith.constant dense<0.000000e+00> : vector<8x16xf32>
    %438 = tpu.matmul %437, %436, %cst_115 {dimension_numbers = #tpu.dot_dimension_numbers<[1], [0], [0], [1], [0, 0, 1, 1], [], []>} : vector<8x32xbf16>, vector<32x16xbf16>, vector<8x16xf32> -> vector<8x16xf32>
    %c0_116 = arith.constant 0 : index
    %c0_117 = arith.constant 0 : index
    %439 = vector.load %arg9[%c0_116, %c0_117] : memref<8x16xf32, #tpu.memory_space<vmem>>, vector<8x16xf32>
    tpu.vector_store %arg9[%c0_116, %c0_117], %438 {strides = array<i32>} : memref<8x16xf32, #tpu.memory_space<vmem>>, vector<8x16xf32>,
    return
  }
  func.func @transform_0(%arg0: i32) -> (i32, i32) {
    %c0_i32 = arith.constant 0 : i32
    %c0_i32_0 = arith.constant 0 : i32
    return %arg0, %c0_i32 : i32, i32
  }
  func.func @transform_1(%arg0: i32) -> (i32, i32) {
    %c0_i32 = arith.constant 0 : i32
    %c0_i32_0 = arith.constant 0 : i32
    %c0_i32_1 = arith.constant 0 : i32
    return %c0_i32, %c0_i32_0 : i32, i32
  }
  func.func @transform_2(%arg0: i32) -> (i32, i32) {
    %c0_i32 = arith.constant 0 : i32
    %c0_i32_0 = arith.constant 0 : i32
    %c0_i32_1 = arith.constant 0 : i32
    return %c0_i32, %c0_i32_0 : i32, i32
  }
  func.func @transform_3(%arg0: i32) -> (i32, i32) {
    %c0_i32 = arith.constant 0 : i32
    %c0_i32_0 = arith.constant 0 : i32
    %c0_i32_1 = arith.constant 0 : i32
    return %c0_i32, %c0_i32_0 : i32, i32
  }
  func.func @transform_4(%arg0: i32) -> (i32, i32) {
    %c0_i32 = arith.constant 0 : i32
    %c0_i32_0 = arith.constant 0 : i32
    %c0_i32_1 = arith.constant 0 : i32
    return %c0_i32, %c0_i32_0 : i32, i32
  }
  func.func @transform_5(%arg0: i32) -> (i32, i32, i32) {
    %c0_i32 = arith.constant 0 : i32
    %c0_i32_0 = arith.constant 0 : i32
    %c0_i32_1 = arith.constant 0 : i32
    %c0_i32_2 = arith.constant 0 : i32
    return %c0_i32, %c0_i32_0, %c0_i32_1 : i32, i32, i32
  }
  func.func @transform_6(%arg0: i32) -> (i32, i32, i32) {
    %c0_i32 = arith.constant 0 : i32
    %c0_i32_0 = arith.constant 0 : i32
    %c0_i32_1 = arith.constant 0 : i32
    %c0_i32_2 = arith.constant 0 : i32
    return %c0_i32, %c0_i32_0, %c0_i32_1 : i32, i32, i32
  }
  func.func @transform_7(%arg0: i32) -> (i32, i32, i32) {
    %c0_i32 = arith.constant 0 : i32
    %c0_i32_0 = arith.constant 0 : i32
    %c0_i32_1 = arith.constant 0 : i32
    %c0_i32_2 = arith.constant 0 : i32
    return %c0_i32, %c0_i32_0, %c0_i32_1 : i32, i32, i32
  }
  func.func @transform_8(%arg0: i32) -> (i32, i32) {
    %c0_i32 = arith.constant 0 : i32
    %c0_i32_0 = arith.constant 0 : i32
    return %arg0, %c0_i32 : i32, i32
  }
}

</mosaic_0001>

<bundles_post_ra>
// kernel: neg.2
= control target key start
LH: loop header
LB: loop body
LE: loop exit
PB: predicated region body
PF: predicated region fallthrough
CT: control target
= control target key end

     0   :  { %s24_s0 = inlined_call_operand.vmem [shape: f32[32], index: 0, kind: input, shape index: {}]   ;;  %s25_s1 = inlined_call_operand.vmem [shape: f32[32], index: 1, kind: output, shape index: {}]  }
   0x1   :  { %v2_v0 = vld [vmem:[%s24_s0] sm:$0x1] }
   0x2   :  { %v5_v1 = vxor.u32 2147483648, %v2_v0 }
   0x4   :  { %7 = vst [vmem:[%s25_s1] sm:$0x1] %v5_v1 }

// kernel: clip_fwd.1
= control target key start
LH: loop header
LB: loop body
LE: loop exit
PB: predicated region body
PF: predicated region fallthrough
CT: control target
= control target key end

     0   :  { %vm151_vm0 = vcmask 523264   ;;  %vm231_vm1 = vcmask 261120   ;;  %s7115_s27 = smov 96   ;;  %s7116_s28 = smov 64   ;;  %s9848_s3 = inlined_call_operand.vmem [shape: bf16[192,32], index: 3, kind: input, shape index: {}]   ;;  %s9849_s0 = inlined_call_operand.vmem [shape: f32[64,192], index: 0, kind: input, shape index: {}]   ;;  %s9850_s1 = inlined_call_operand.vmem [shape: f32[8,32], index: 1, kind: input, shape index: {}]   ;;  %s9851_s2 = inlined_call_operand.vmem [shape: f32[4,32], index: 2, kind: input, shape index: {}]   ;;  %s9852_s5 = inlined_call_operand.vmem [shape: bf16[2,32,256], index: 5, kind: input, shape index: {}]   ;;  %s9853_s7 = inlined_call_operand.vmem [shape: f32[2,8,128], index: 7, kind: input, shape index: {}]   ;;  %s9854_s6 = inlined_call_operand.vmem [shape: bf16[2,128,32], index: 6, kind: input, shape index: {}]   ;;  %s9855_s4 = inlined_call_operand.vmem [shape: bf16[32,16], index: 4, kind: input, shape index: {}]   ;;  %s9856_s8 = inlined_call_operand.vmem [shape: f32[8,16], index: 8, kind: output, shape index: {}]  }
   0x1   :  { %v6568_v0 = vld [vmem:[%s9848_s3 + $0x38] sm:$0xff]  ;;  %v6567_v2 = vld [vmem:[%s9848_s3 + $0x30] sm:$0xff]  ;;  %v6566_v4 = vld [vmem:[%s9848_s3 + $0x28] sm:$0xff]  ;;  %s7117_s29 = smov 120   ;;  %s7118_s30 = smov 88  }
   0x2   :  { %v6572_v1 = vld [vmem:[%s9848_s3 + $0x58] sm:$0xff]  ;;  %164 = vmatpush.bf16.msra.mxu0 %v6568_v0  ;;  %v6571_v3 = vld [vmem:[%s9848_s3 + $0x50] sm:$0xff]  ;;  %v6570_v5 = vld [vmem:[%s9848_s3 + $0x48] sm:$0xff]  ;;  %s7120_s9 = smov 56   ;;  %s7121_s10 = smov 80  }
   0x3   :  { %197 = vmatpush.bf16.msra.mxu1 %v6572_v1  ;;  %v6565_v6 = vld [vmem:[%s9848_s3 + $0x20] sm:$0xff]  ;;  %v32_v8 = vld [vmem:[%s9849_s0 + $0x8] sm:$0xff]  ;;  %v34_v9 = vld [vmem:[%s9849_s0 + $0x18] sm:$0xff]  ;;  %s7122_s11 = smov 112   ;;  %s7123_s12 = smov 48  }
   0x4   :  { %v6569_v7 = vld [vmem:[%s9848_s3 + $0x40] sm:$0xff]  ;;  %v6564_v10 = vld [vmem:[%s9848_s3 + $0x18] sm:$0xff]  ;;  %v72_v11 = vpack.c.bf16 %v34_v9, %v32_v8  ;;  %v6563_v12 = vld [vmem:[%s9848_s3 + $0x10] sm:$0xff]  ;;  %v7114_v8 = vmov 32.0   ;;  %s7124_s13 = smov 72   ;;  %s7125_s14 = smov 104  }
   0x5   :  { %v6562_v13 = vld [vmem:[%s9848_s3 + $0x8] sm:$0xff]  ;;  %v6561_v14 = vld [vmem:[%s9848_s3] sm:$0xff]  ;;  %v33_v16 = vld [vmem:[%s9849_s0 + $0x10] sm:$0xff]  ;;  %6739 = vrcp.f32 %v7114_v8  ;;  %s7126_s15 = smov 40   ;;  %s7127_s16 = smov 32  }
   0x6   :  { %165 = vmatpush.bf16.msra.mxu0 %v6567_v2  ;;  %v31_v15 = vld [vmem:[%s9849_s0] sm:$0xff]  ;;  %v36_v17 = vld [vmem:[%s9849_s0 + $0x28] sm:$0xff]  ;;  %v38_v18 = vld [vmem:[%s9849_s0 + $0x38] sm:$0xff]  ;;  %s7128_s17 = smov 8  }
   0x7   :  { %198 = vmatpush.bf16.msra.mxu1 %v6571_v3  ;;  %v71_v19 = vpack.c.bf16 %v33_v16, %v31_v15  ;;  %v74_v20 = vpack.c.bf16 %v38_v18, %v36_v17  ;;  %v35_v21 = vld [vmem:[%s9849_s0 + $0x20] sm:$0xff]  ;;  %v37_v22 = vld [vmem:[%s9849_s0 + $0x30] sm:$0xff]  ;;  %v40_v23 = vld [vmem:[%s9849_s0 + $0x48] sm:$0xff] }
   0x8   :  { %v42_v24 = vld [vmem:[%s9849_s0 + $0x58] sm:$0xff]  ;;  %v73_v25 = vpack.c.bf16 %v37_v22, %v35_v21  ;;  %v39_v27 = vld [vmem:[%s9849_s0 + $0x40] sm:$0xff]  ;;  %v41_v28 = vld [vmem:[%s9849_s0 + $0x50] sm:$0xff] }
   0x9   :  { %v76_v26 = vpack.c.bf16 %v42_v24, %v40_v23  ;;  %v44_v29 = vld [vmem:[%s9849_s0 + $0x68] sm:$0xff]  ;;  %v46_v30 = vld [vmem:[%s9849_s0 + $0x78] sm:$0xff]  ;;  %v75_v31 = vpack.c.bf16 %v41_v28, %v39_v27  ;;  %v43_v33 = vld [vmem:[%s9849_s0 + $0x60] sm:$0xff] }
   0xa   :  { %166 = vmatpush.bf16.msra.mxu0 %v6566_v4  ;;  %v78_v32 = vpack.c.bf16 %v46_v30, %v44_v29  ;;  %v45_v34 = vld [vmem:[%s9849_s0 + $0x70] sm:$0xff]  ;;  %v222_v39 = vld [vmem:[%s9850_s1] sm:$0xff]  ;;  %s7129_s0 = smov 16   ;;  %s7130_s1 = smov 24  }
   0xb   :  { %199 = vmatpush.bf16.msra.mxu1 %v6570_v5  ;;  %v77_v35 = vpack.c.bf16 %v45_v34, %v43_v33  ;;  %v6740_v9 = vpop.eup %6739 }
   0xc   :  { %vm261_vm2 = vweird.f32 %v6740_v9 }
   0xe   :  { %167 = vmatpush.bf16.msra.mxu0 %v6565_v6 }
   0xf   :  { %200 = vmatpush.bf16.msra.mxu1 %v6569_v7 }
  0x12   :  { %168 = vmatpush.bf16.msra.mxu0 %v6564_v10  ;;  %6278 = vmatmul.msk.bf16.vlgmr.msra.gmra.mxu1 %vm151_vm0, %v72_v11  ;;  %v257_v10 = vmul.f32 32.0, %v6740_v9 }
  0x14   :  { %v258_v11 = vsub.f32 1.0, %v257_v10 }
  0x16   :  { %169 = vmatpush.bf16.msra.mxu0 %v6563_v12  ;;  %v259_v12 = vmul.f32 %v6740_v9, %v258_v11 }
  0x1a   :  { %170 = vmatpush.bf16.msra.mxu0 %v6562_v13  ;;  %v260_v13 = vadd.f32 %v6740_v9, %v259_v12 }
  0x1e   :  { %171 = vmatpush.bf16.msra.mxu0 %v6561_v14  ;;  %v7275_v14 = vsel %vm261_vm2, %v6740_v9, %v260_v13  ;;  %v30_v9 = vld [vmem:[%s9851_s2] sm:$0xf] }
  0x1f   :  { %9873 = vst [vmem:[#allocation2_spill] sm:$0xff] %v7275_v14 }
  0x21   :  { %172 = vmatmul.bf16.vlgmr.msra.gmra.mxu0 %v71_v19 }
  0x22   :  { %6279 = vmatmul.msk.bf16.gmra.mxu1 %vm151_vm0, %v74_v20 }
  0x31   :  { %177 = vmatmul.bf16.gmra.mxu0 %v73_v25 }
  0x32   :  { %6280 = vmatmul.msk.bf16.gmra.mxu1 %vm151_vm0, %v76_v26 }
  0x41   :  { %182 = vmatmul.bf16.gmra.mxu0 %v75_v31 }
  0x42   :  { %6281 = vmatmul.msk.bf16.gmra.mxu1 %vm151_vm0, %v78_v32 }
  0x51   :  { %187 = vmatmul.bf16.gmra.mxu0 %v77_v35 }
  0x8f   :  { %v202_v36 = vpop.f32.mrf.mxu1 }
  0x97   :  { %v204_v37 = vpop.f32.mrf.mxu1 }
  0x9e   :  { %v173_v38 = vpop.f32.mrf.mxu0 }
  0x9f   :  { %v203_v40 = vadd.f32 %v202_v36, %v173_v38  ;;  %v207_v44 = vpop.f32.mrf.mxu1 }
  0xa1   :  { %v223_v41 = vadd.f32 %v222_v39, %v203_v40 }
  0xa3   :  { %v232_v42 = vsel %vm231_vm1, %v223_v41, 0.0 }
  0xa4   :  { %233 = vadd.xlane.f32.xlu0 %v232_v42 }
  0xa6   :  { %v175_v43 = vpop.f32.mrf.mxu0 }
  0xa7   :  { %v205_v45 = vadd.f32 %v204_v37, %v175_v43  ;;  %v209_v50 = vpop.f32.mrf.mxu1 }
  0xa9   :  { %v224_v46 = vadd.f32 %v222_v39, %v205_v45 }
  0xab   :  { %v235_v47 = vsel %vm231_vm1, %v224_v46, 0.0 }
  0xac   :  { %236 = vadd.xlane.f32.xlu0 %v235_v47 }
  0xae   :  { %v178_v48 = vpop.f32.mrf.mxu0 }
  0xaf   :  { %v208_v49 = vadd.f32 %v207_v44, %v178_v48  ;;  %v212_v56 = vpop.f32.mrf.mxu1 }
  0xb1   :  { %v225_v51 = vadd.f32 %v222_v39, %v208_v49 }
  0xb3   :  { %v238_v52 = vsel %vm231_vm1, %v225_v51, 0.0 }
  0xb4   :  { %239 = vadd.xlane.f32.xlu1 %v238_v52 }
  0xb6   :  { %v180_v53 = vpop.f32.mrf.mxu0 }
  0xb7   :  { %v210_v54 = vadd.f32 %v209_v50, %v180_v53  ;;  %v214_v62 = vpop.f32.mrf.mxu1 }
  0xb9   :  { %v226_v55 = vadd.f32 %v222_v39, %v210_v54 }
  0xbb   :  { %v241_v57 = vsel %vm231_vm1, %v226_v55, 0.0 }
  0xbc   :  { %242 = vadd.xlane.f32.xlu1 %v241_v57 }
  0xbe   :  { %v183_v58 = vpop.f32.mrf.mxu0 }
  0xbf   :  { %v213_v59 = vadd.f32 %v212_v56, %v183_v58  ;;  %v217_v3 = vpop.f32.mrf.mxu1 }
  0xc1   :  { %v227_v60 = vadd.f32 %v222_v39, %v213_v59 }
  0xc3   :  { %v244_v61 = vsel %vm231_vm1, %v227_v60, 0.0 }
  0xc4   :  { %245 = vadd.xlane.f32.xlu2 %v244_v61 }
  0xc6   :  { %v185_v63 = vpop.f32.mrf.mxu0 }
  0xc7   :  { %v215_v0 = vadd.f32 %v214_v62, %v185_v63  ;;  %v219_v19 = vpop.f32.mrf.mxu1 }
  0xc9   :  { %v228_v1 = vadd.f32 %v222_v39, %v215_v0 }
  0xcb   :  { %v247_v2 = vsel %vm231_vm1, %v228_v1, 0.0 }
  0xcc   :  { %248 = vadd.xlane.f32.xlu2 %v247_v2 }
  0xce   :  { %v188_v4 = vpop.f32.mrf.mxu0 }
  0xcf   :  { %v218_v5 = vadd.f32 %v217_v3, %v188_v4 }
  0xd1   :  { %v229_v6 = vadd.f32 %v222_v39, %v218_v5 }
  0xd3   :  { %v250_v7 = vsel %vm231_vm1, %v229_v6, 0.0 }
  0xd4   :  { %251 = vadd.xlane.f32.xlu2 %v250_v7 }
  0xd6   :  { %v190_v18 = vpop.f32.mrf.mxu0 }
  0xd7   :  { %v220_v21 = vadd.f32 %v219_v19, %v190_v18 }
  0xd9   :  { %v230_v26 = vadd.f32 %v222_v39, %v220_v21 }
  0xdb   :  { %v253_v29 = vsel %vm231_vm1, %v230_v26, 0.0 }
 0x117   :  { %v234_v15 = vpop.xlane.xlu0 %233 }
 0x118   :  { %v263_v16 = vmul.f32 %v7275_v14, %v234_v15  ;;  %v7332_v15 = vperm.slane %v30_v9, 0 }
 0x11a   :  { %v7278_v17 = vsub.f32 %v223_v41, %v263_v16 }
 0x11c   :  { %v279_v20 = vmul.f32 %v7278_v17, %v7278_v17 }
 0x11e   :  { %v287_v22 = vsel %vm231_vm1, %v279_v20, 0.0  ;;  %v7335_v20 = vperm.slane %v30_v9, 1 }
 0x11f   :  { %288 = vadd.xlane.f32.xlu0 %v287_v22  ;;  %v237_v23 = vpop.xlane.xlu0 %236 }
 0x120   :  { %v264_v24 = vmul.f32 %v7275_v14, %v237_v23 }
 0x122   :  { %v7284_v25 = vsub.f32 %v224_v46, %v264_v24 }
 0x124   :  { %v280_v27 = vmul.f32 %v7284_v25, %v7284_v25 }
 0x126   :  { %v290_v28 = vsel %vm231_vm1, %v280_v27, 0.0 }
 0x127   :  { %v240_v30 = vpop.xlane.xlu1 %239  ;;  %291 = vadd.xlane.f32.xlu1 %v290_v28  ;;  %254 = vadd.xlane.f32.xlu0 %v253_v29 }
 0x128   :  { %v265_v31 = vmul.f32 %v7275_v14, %v240_v30 }
 0x12a   :  { %v7291_v32 = vsub.f32 %v225_v51, %v265_v31 }
 0x12c   :  { %v281_v33 = vmul.f32 %v7291_v32, %v7291_v32 }
 0x12e   :  { %v293_v34 = vsel %vm231_vm1, %v281_v33, 0.0 }
 0x12f   :  { %294 = vadd.xlane.f32.xlu1 %v293_v34  ;;  %v243_v35 = vpop.xlane.xlu1 %242 }
 0x130   :  { %v266_v36 = vmul.f32 %v7275_v14, %v243_v35 }
 0x132   :  { %v7297_v37 = vsub.f32 %v226_v55, %v266_v36 }
 0x134   :  { %v282_v38 = vmul.f32 %v7297_v37, %v7297_v37 }
 0x136   :  { %v296_v39 = vsel %vm231_vm1, %v282_v38, 0.0 }
 0x137   :  { %v246_v40 = vpop.xlane.xlu2 %245  ;;  %297 = vadd.xlane.f32.xlu2 %v296_v39 }
 0x138   :  { %v267_v41 = vmul.f32 %v7275_v14, %v246_v40 }
 0x13a   :  { %v7303_v42 = vsub.f32 %v227_v60, %v267_v41 }
 0x13c   :  { %v283_v43 = vmul.f32 %v7303_v42, %v7303_v42 }
 0x13e   :  { %v299_v44 = vsel %vm231_vm1, %v283_v43, 0.0 }
 0x13f   :  { %v249_v45 = vpop.xlane.xlu2 %248  ;;  %300 = vadd.xlane.f32.xlu0 %v299_v44 }
 0x140   :  { %v268_v46 = vmul.f32 %v7275_v14, %v249_v45 }
 0x142   :  { %v7309_v47 = vsub.f32 %v228_v1, %v268_v46 }
 0x144   :  { %v284_v48 = vmul.f32 %v7309_v47, %v7309_v47 }
 0x146   :  { %v302_v49 = vsel %vm231_vm1, %v284_v48, 0.0 }
 0x147   :  { %303 = vadd.xlane.f32.xlu1 %v302_v49  ;;  %v252_v50 = vpop.xlane.xlu2 %251 }
 0x148   :  { %v269_v51 = vmul.f32 %v7275_v14, %v252_v50 }
 0x14a   :  { %v7315_v52 = vsub.f32 %v229_v6, %v269_v51 }
 0x14c   :  { %v285_v53 = vmul.f32 %v7315_v52, %v7315_v52 }
 0x14e   :  { %v305_v54 = vsel %vm231_vm1, %v285_v53, 0.0 }
 0x14f   :  { %306 = vadd.xlane.f32.xlu2 %v305_v54 }
 0x192   :  { %v289_v55 = vpop.xlane.xlu0 %288 }
 0x193   :  { %v311_v56 = vmul.f32 %v289_v55, %v7275_v14 }
 0x195   :  { %v319_v57 = vadd.f32 1e-05, %v311_v56 }
 0x197   :  { %6741 = vrsqrt.f32 %v319_v57  ;;  %vm333_vm4 = vweird.f32 %v319_v57 }
 0x19a   :  { %v292_v58 = vpop.xlane.xlu1 %291  ;;  %v255_v59 = vpop.xlane.xlu0 %254 }
 0x19b   :  { %v312_v60 = vmul.f32 %v292_v58, %v7275_v14  ;;  %v270_v61 = vmul.f32 %v7275_v14, %v255_v59 }
 0x19d   :  { %v6742_v62 = vpop.eup %6741  ;;  %v320_v63 = vadd.f32 1e-05, %v312_v60  ;;  %v7323_v0 = vsub.f32 %v230_v26, %v270_v61 }
 0x19e   :  { %v328_v1 = vmul.f32 %v6742_v62, %v319_v57  ;;  %vm334_vm3 = vweird.f32 %v6742_v62 }
 0x19f   :  { %6743 = vrsqrt.f32 %v320_v63  ;;  %v286_v2 = vmul.f32 %v7323_v0, %v7323_v0  ;;  %vm335_vm5 = vmor %vm333_vm4, %vm334_vm3  ;;  %vm343_vm7 = vweird.f32 %v320_v63 }
 0x1a0   :  { %v329_v3 = vmul.f32 %v6742_v62, %v328_v1 }
 0x1a1   :  { %v308_v4 = vsel %vm231_vm1, %v286_v2, 0.0 }
 0x1a2   :  { %v330_v5 = vmul.f32 0.5, %v329_v3  ;;  %v295_v6 = vpop.xlane.xlu1 %294  ;;  %309 = vadd.xlane.f32.xlu0 %v308_v4 }
 0x1a3   :  { %v313_v7 = vmul.f32 %v295_v6, %v7275_v14 }
 0x1a4   :  { %v331_v8 = vsub.f32 1.5, %v330_v5 }
 0x1a5   :  { %v6744_v10 = vpop.eup %6743  ;;  %v321_v11 = vadd.f32 1e-05, %v313_v7 }
 0x1a6   :  { %v332_v12 = vmul.f32 %v6742_v62, %v331_v8  ;;  %v338_v13 = vmul.f32 %v6744_v10, %v320_v63  ;;  %vm344_vm6 = vweird.f32 %v6744_v10 }
 0x1a7   :  { %6745 = vrsqrt.f32 %v321_v11  ;;  %vm345_vm8 = vmor %vm343_vm7, %vm344_vm6  ;;  %vm353_vm10 = vweird.f32 %v321_v11 }
 0x1a8   :  { %v339_v16 = vmul.f32 %v6744_v10, %v338_v13  ;;  %v336_v18 = vsel %vm335_vm5, %v6742_v62, %v332_v12 }
 0x1a9   :  { %v407_v19 = vmul.f32 %v336_v18, %v7278_v17 }
 0x1aa   :  { %v340_v21 = vmul.f32 0.5, %v339_v16  ;;  %v298_v22 = vpop.xlane.xlu2 %297 }
 0x1ab   :  { %v314_v23 = vmul.f32 %v298_v22, %v7275_v14  ;;  %v416_v24 = vmul.f32 %v7332_v15, %v407_v19 }
 0x1ac   :  { %v341_v26 = vsub.f32 1.5, %v340_v21 }
 0x1ad   :  { %v6746_v27 = vpop.eup %6745  ;;  %v322_v28 = vadd.f32 1e-05, %v314_v23  ;;  %v7340_v29 = vadd.f32 %v7335_v20, %v416_v24 }
 0x1ae   :  { %v342_v30 = vmul.f32 %v6744_v10, %v341_v26  ;;  %v348_v31 = vmul.f32 %v6746_v27, %v321_v11  ;;  %vm354_vm9 = vweird.f32 %v6746_v27 }
 0x1af   :  { %6747 = vrsqrt.f32 %v322_v28  ;;  %v458_v17 = vsel %vm231_vm1, %v7340_v29, 0.0  ;;  %vm355_vm11 = vmor %vm353_vm10, %vm354_vm9  ;;  %vm363_vm13 = vweird.f32 %v322_v28 }
 0x1b0   :  { %v349_v33 = vmul.f32 %v6746_v27, %v348_v31  ;;  %459 = vadd.xlane.f32.xlu1 %v458_v17  ;;  %v346_v34 = vsel %vm345_vm8, %v6744_v10, %v342_v30 }
 0x1b1   :  { %v408_v35 = vmul.f32 %v346_v34, %v7284_v25 }
 0x1b2   :  { %v350_v36 = vmul.f32 0.5, %v349_v33  ;;  %v301_v38 = vpop.xlane.xlu0 %300 }
 0x1b3   :  { %v315_v39 = vmul.f32 %v301_v38, %v7275_v14  ;;  %v417_v40 = vmul.f32 %v7332_v15, %v408_v35 }
 0x1b4   :  { %v351_v41 = vsub.f32 1.5, %v350_v36 }
 0x1b5   :  { %v6748_v43 = vpop.eup %6747  ;;  %v323_v44 = vadd.f32 1e-05, %v315_v39  ;;  %v7348_v45 = vadd.f32 %v7335_v20, %v417_v40 }
 0x1b6   :  { %v352_v46 = vmul.f32 %v6746_v27, %v351_v41  ;;  %v358_v48 = vmul.f32 %v6748_v43, %v322_v28  ;;  %vm364_vm12 = vweird.f32 %v6748_v43 }
 0x1b7   :  { %6749 = vrsqrt.f32 %v323_v44  ;;  %v461_v25 = vsel %vm231_vm1, %v7348_v45, 0.0  ;;  %vm365_vm14 = vmor %vm363_vm13, %vm364_vm12  ;;  %vm373_vm0 = vweird.f32 %v323_v44 }
 0x1b8   :  { %v359_v49 = vmul.f32 %v6748_v43, %v358_v48  ;;  %462 = vadd.xlane.f32.xlu2 %v461_v25  ;;  %v356_v50 = vsel %vm355_vm11, %v6746_v27, %v352_v46 }
 0x1b9   :  { %v409_v51 = vmul.f32 %v356_v50, %v7291_v32 }
 0x1ba   :  { %v360_v53 = vmul.f32 0.5, %v359_v49  ;;  %v304_v54 = vpop.xlane.xlu1 %303 }
 0x1bb   :  { %v316_v55 = vmul.f32 %v304_v54, %v7275_v14  ;;  %v418_v56 = vmul.f32 %v7332_v15, %v409_v51 }
 0x1bc   :  { %v361_v57 = vsub.f32 1.5, %v360_v53 }
 0x1bd   :  { %v6750_v58 = vpop.eup %6749  ;;  %v324_v59 = vadd.f32 1e-05, %v316_v55  ;;  %v7356_v60 = vadd.f32 %v7335_v20, %v418_v56 }
 0x1be   :  { %v362_v61 = vmul.f32 %v6748_v43, %v361_v57  ;;  %v368_v62 = vmul.f32 %v6750_v58, %v323_v44  ;;  %vm374_vm15 = vweird.f32 %v6750_v58 }
 0x1bf   :  { %9874 = vst [vmem:[#allocation3_spill] sm:$0xff] %v7356_v60  ;;  %6751 = vrsqrt.f32 %v324_v59  ;;  %v464_v32 = vsel %vm231_vm1, %v7356_v60, 0.0  ;;  %vm375_vm2 = vmor %vm373_vm0, %vm374_vm15  ;;  %vm383_vm4 = vweird.f32 %v324_v59 }
 0x1c0   :  { %v369_v63 = vmul.f32 %v6750_v58, %v368_v62  ;;  %465 = vadd.xlane.f32.xlu0 %v464_v32  ;;  %v366_v1 = vsel %vm365_vm14, %v6748_v43, %v362_v61 }
 0x1c1   :  { %v410_v2 = vmul.f32 %v366_v1, %v7297_v37 }
 0x1c2   :  { %v370_v3 = vmul.f32 0.5, %v369_v63  ;;  %v307_v4 = vpop.xlane.xlu2 %306 }
 0x1c3   :  { %v317_v5 = vmul.f32 %v307_v4, %v7275_v14  ;;  %v419_v6 = vmul.f32 %v7332_v15, %v410_v2 }
 0x1c4   :  { %v371_v7 = vsub.f32 1.5, %v370_v3 }
 0x1c5   :  { %v6752_v8 = vpop.eup %6751  ;;  %v325_v9 = vadd.f32 1e-05, %v317_v5  ;;  %v7364_v10 = vadd.f32 %v7335_v20, %v419_v6 }
 0x1c6   :  { %v372_v11 = vmul.f32 %v6750_v58, %v371_v7  ;;  %v378_v12 = vmul.f32 %v6752_v8, %v324_v59  ;;  %vm384_vm3 = vweird.f32 %v6752_v8 }
 0x1c7   :  { %9875 = vst [vmem:[#allocation4_spill] sm:$0xff] %v7364_v10  ;;  %6753 = vrsqrt.f32 %v325_v9  ;;  %v467_v37 = vsel %vm231_vm1, %v7364_v10, 0.0  ;;  %vm385_vm5 = vmor %vm383_vm4, %vm384_vm3  ;;  %vm393_vm7 = vweird.f32 %v325_v9 }
 0x1c8   :  { %v379_v13 = vmul.f32 %v6752_v8, %v378_v12  ;;  %468 = vadd.xlane.f32.xlu1 %v467_v37  ;;  %v376_v16 = vsel %vm375_vm2, %v6750_v58, %v372_v11 }
 0x1c9   :  { %v411_v18 = vmul.f32 %v376_v16, %v7303_v42 }
 0x1ca   :  { %v380_v19 = vmul.f32 0.5, %v379_v13 }
 0x1cb   :  { %v420_v21 = vmul.f32 %v7332_v15, %v411_v18 }
 0x1cc   :  { %v381_v22 = vsub.f32 1.5, %v380_v19 }
 0x1cd   :  { %v6754_v23 = vpop.eup %6753  ;;  %v7371_v24 = vadd.f32 %v7335_v20, %v420_v21 }
 0x1ce   :  { %v382_v26 = vmul.f32 %v6752_v8, %v381_v22  ;;  %v388_v27 = vmul.f32 %v6754_v23, %v325_v9  ;;  %vm394_vm6 = vweird.f32 %v6754_v23 }
 0x1cf   :  { %9876 = vst [vmem:[#allocation5_spill] sm:$0xff] %v7371_v24  ;;  %v470_v28 = vsel %vm231_vm1, %v7371_v24, 0.0  ;;  %vm395_vm8 = vmor %vm393_vm7, %vm394_vm6 }
 0x1d0   :  { %v389_v30 = vmul.f32 %v6754_v23, %v388_v27  ;;  %471 = vadd.xlane.f32.xlu2 %v470_v28  ;;  %v386_v31 = vsel %vm385_vm5, %v6752_v8, %v382_v26 }
 0x1d1   :  { %v412_v42 = vmul.f32 %v386_v31, %v7309_v47 }
 0x1d2   :  { %v390_v17 = vmul.f32 0.5, %v389_v30 }
 0x1d3   :  { %v421_v33 = vmul.f32 %v7332_v15, %v412_v42 }
 0x1d4   :  { %v391_v34 = vsub.f32 1.5, %v390_v17 }
 0x1d5   :  { %v7378_v35 = vadd.f32 %v7335_v20, %v421_v33 }
 0x1d6   :  { %v392_v36 = vmul.f32 %v6754_v23, %v391_v34  ;;  %v6288_v34 = vld [vmem:[%s9852_s5 + $0x10] sm:$0xf] }
 0x1d7   :  { %9877 = vst [vmem:[#allocation6_spill] sm:$0xff] %v7378_v35  ;;  %v473_v38 = vsel %vm231_vm1, %v7378_v35, 0.0 }
 0x1d8   :  { %474 = vadd.xlane.f32.xlu0 %v473_v38  ;;  %v396_v39 = vsel %vm395_vm8, %v6754_v23, %v392_v36  ;;  %v6576_v36 = vld [vmem:[%s9852_s5 + $0x14] sm:$0xf0] }
 0x1d9   :  { %v413_v40 = vmul.f32 %v396_v39, %v7315_v52  ;;  %v7452_v38 = vor.u32 %v6576_v36, %v6288_v34 }
 0x1db   :  { %v422_v47 = vmul.f32 %v7332_v15, %v413_v40  ;;  %687 = vmatpush.bf16.msra.mxu2 %v7452_v38  ;;  %6599 = vmatpush.bf16.msra.mxu3 %v7452_v38 }
 0x1dd   :  { %v7385_v41 = vadd.f32 %v7335_v20, %v422_v47  ;;  %v6284_v47 = vld [vmem:[%s9852_s5] sm:$0xf] }
 0x1df   :  { %9878 = vst [vmem:[#allocation7_spill] sm:$0xff] %v7385_v41  ;;  %v476_v43 = vsel %vm231_vm1, %v7385_v41, 0.0 }
 0x1e0   :  { %477 = vadd.xlane.f32.xlu0 %v476_v43  ;;  %v6574_v43 = vld [vmem:[%s9852_s5 + $0x4] sm:$0xf0] }
 0x215   :  { %v310_v44 = vpop.xlane.xlu0 %309 }
 0x216   :  { %v318_v46 = vmul.f32 %v310_v44, %v7275_v14  ;;  %v7463_v44 = vor.u32 %v6574_v43, %v6284_v47 }
 0x218   :  { %v326_v48 = vadd.f32 1e-05, %v318_v46  ;;  %688 = vmatpush.bf16.msra.mxu2 %v7463_v44  ;;  %6600 = vmatpush.bf16.msra.mxu3 %v7463_v44 }
 0x21a   :  { %6755 = vrsqrt.f32 %v326_v48  ;;  %vm403_vm10 = vweird.f32 %v326_v48 }
 0x220   :  { %v6756_v25 = vpop.eup %6755 }
 0x221   :  { %v398_v49 = vmul.f32 %v6756_v25, %v326_v48  ;;  %vm404_vm9 = vweird.f32 %v6756_v25 }
 0x222   :  { %vm405_vm11 = vmor %vm403_vm10, %vm404_vm9 }
 0x223   :  { %v399_v50 = vmul.f32 %v6756_v25, %v398_v49  ;;  %v460_v51 = vpop.xlane.xlu1 %459 }
 0x224   :  { %v482_v52 = vmul.f32 %v460_v51, %v7275_v14 }
 0x225   :  { %v400_v53 = vmul.f32 0.5, %v399_v50 }
 0x226   :  { %v7392_v54 = vsub.f32 %v7340_v29, %v482_v52 }
 0x227   :  { %v401_v55 = vsub.f32 1.5, %v400_v53 }
 0x228   :  { %v498_v56 = vmul.f32 %v7392_v54, %v7392_v54 }
 0x229   :  { %v402_v57 = vmul.f32 %v6756_v25, %v401_v55 }
 0x22a   :  { %v506_v58 = vsel %vm231_vm1, %v498_v56, 0.0 }
 0x22b   :  { %507 = vadd.xlane.f32.xlu1 %v506_v58  ;;  %v463_v59 = vpop.xlane.xlu2 %462  ;;  %v406_v61 = vsel %vm405_vm11, %v6756_v25, %v402_v57 }
 0x22c   :  { %v483_v62 = vmul.f32 %v463_v59, %v7275_v14  ;;  %v414_v32 = vmul.f32 %v406_v61, %v7323_v0 }
 0x22e   :  { %v7400_v63 = vsub.f32 %v7348_v45, %v483_v62  ;;  %v423_v1 = vmul.f32 %v7332_v15, %v414_v32 }
 0x230   :  { %v499_v2 = vmul.f32 %v7400_v63, %v7400_v63  ;;  %v7406_v3 = vadd.f32 %v7335_v20, %v423_v1 }
 0x232   :  { %9879 = vst [vmem:[#allocation8_spill] sm:$0xff] %v7406_v3  ;;  %v509_v4 = vsel %vm231_vm1, %v499_v2, 0.0  ;;  %v479_v5 = vsel %vm231_vm1, %v7406_v3, 0.0 }
 0x233   :  { %510 = vadd.xlane.f32.xlu2 %v509_v4  ;;  %480 = vadd.xlane.f32.xlu1 %v479_v5  ;;  %v466_v6 = vpop.xlane.xlu0 %465 }
 0x234   :  { %v484_v0 = vmul.f32 %v466_v6, %v7275_v14 }
 0x236   :  { %v7413_v7 = vsub.f32 %v7356_v60, %v484_v0 }
 0x238   :  { %v500_v15 = vmul.f32 %v7413_v7, %v7413_v7 }
 0x23a   :  { %v512_v8 = vsel %vm231_vm1, %v500_v15, 0.0 }
 0x23b   :  { %v469_v20 = vpop.xlane.xlu1 %468  ;;  %513 = vadd.xlane.f32.xlu2 %v512_v8 }
 0x23c   :  { %v485_v9 = vmul.f32 %v469_v20, %v7275_v14  ;;  %v7479_v20 = vld [vmem:[%s9853_s7] sm:$0xff] }
 0x23e   :  { %v7420_v11 = vsub.f32 %v7364_v10, %v485_v9 }
 0x240   :  { %v501_v12 = vmul.f32 %v7420_v11, %v7420_v11 }
 0x242   :  { %v515_v37 = vsel %vm231_vm1, %v501_v12, 0.0 }
 0x243   :  { %516 = vadd.xlane.f32.xlu0 %v515_v37  ;;  %v472_v13 = vpop.xlane.xlu2 %471 }
 0x244   :  { %v486_v16 = vmul.f32 %v472_v13, %v7275_v14 }
 0x246   :  { %v7427_v18 = vsub.f32 %v7371_v24, %v486_v16 }
 0x248   :  { %v502_v19 = vmul.f32 %v7427_v18, %v7427_v18 }
 0x24a   :  { %v518_v21 = vsel %vm231_vm1, %v502_v19, 0.0  ;;  %v7484_v19 = vperm.slane %v7479_v20, 0 }
 0x24b   :  { %519 = vadd.xlane.f32.xlu1 %v518_v21  ;;  %v475_v22 = vpop.xlane.xlu0 %474 }
 0x24c   :  { %v487_v23 = vmul.f32 %v475_v22, %v7275_v14 }
 0x24e   :  { %v7434_v26 = vsub.f32 %v7378_v35, %v487_v23 }
 0x250   :  { %v503_v27 = vmul.f32 %v7434_v26, %v7434_v26 }
 0x252   :  { %v521_v28 = vsel %vm231_vm1, %v503_v27, 0.0 }
 0x253   :  { %522 = vadd.xlane.f32.xlu2 %v521_v28  ;;  %v478_v30 = vpop.xlane.xlu0 %477 }
 0x254   :  { %v488_v31 = vmul.f32 %v478_v30, %v7275_v14 }
 0x256   :  { %v7441_v42 = vsub.f32 %v7385_v41, %v488_v31  ;;  %v7489_v31 = vperm.slane %v7479_v20, 1 }
 0x258   :  { %v504_v17 = vmul.f32 %v7441_v42, %v7441_v42 }
 0x25a   :  { %v524_v33 = vsel %vm231_vm1, %v504_v17, 0.0 }
 0x25b   :  { %525 = vadd.xlane.f32.xlu0 %v524_v33 }
 0x29e   :  { %v508_v39 = vpop.xlane.xlu1 %507 }
 0x29f   :  { %v530_v40 = vmul.f32 %v508_v39, %v7275_v14 }
 0x2a1   :  { %v538_v46 = vadd.f32 1e-05, %v530_v40 }
 0x2a3   :  { %6757 = vrsqrt.f32 %v538_v46  ;;  %vm552_vm13 = vweird.f32 %v538_v46 }
 0x2a6   :  { %v511_v48 = vpop.xlane.xlu2 %510  ;;  %v481_v25 = vpop.xlane.xlu1 %480 }
 0x2a7   :  { %v531_v49 = vmul.f32 %v511_v48, %v7275_v14  ;;  %v489_v50 = vmul.f32 %v481_v25, %v7275_v14 }
 0x2a9   :  { %v6758_v51 = vpop.eup %6757  ;;  %v539_v52 = vadd.f32 1e-05, %v531_v49  ;;  %v7470_v53 = vsub.f32 %v7406_v3, %v489_v50 }
 0x2aa   :  { %v547_v55 = vmul.f32 %v6758_v51, %v538_v46  ;;  %vm553_vm12 = vweird.f32 %v6758_v51 }
 0x2ab   :  { %6759 = vrsqrt.f32 %v539_v52  ;;  %v505_v56 = vmul.f32 %v7470_v53, %v7470_v53  ;;  %vm554_vm14 = vmor %vm552_vm13, %vm553_vm12  ;;  %vm562_vm0 = vweird.f32 %v539_v52 }
 0x2ac   :  { %v548_v57 = vmul.f32 %v6758_v51, %v547_v55 }
 0x2ad   :  { %v527_v58 = vsel %vm231_vm1, %v505_v56, 0.0 }
 0x2ae   :  { %v549_v59 = vmul.f32 0.5, %v548_v57  ;;  %528 = vadd.xlane.f32.xlu1 %v527_v58  ;;  %v514_v61 = vpop.xlane.xlu2 %513 }
 0x2af   :  { %v532_v62 = vmul.f32 %v514_v61, %v7275_v14 }
 0x2b0   :  { %v550_v32 = vsub.f32 1.5, %v549_v59 }
 0x2b1   :  { %v6760_v1 = vpop.eup %6759  ;;  %v540_v2 = vadd.f32 1e-05, %v532_v62 }
 0x2b2   :  { %v551_v4 = vmul.f32 %v6758_v51, %v550_v32  ;;  %v557_v5 = vmul.f32 %v6760_v1, %v539_v52  ;;  %vm563_vm15 = vweird.f32 %v6760_v1 }
 0x2b3   :  { %6761 = vrsqrt.f32 %v540_v2  ;;  %vm564_vm2 = vmor %vm562_vm0, %vm563_vm15  ;;  %vm572_vm4 = vweird.f32 %v540_v2 }
 0x2b4   :  { %v558_v6 = vmul.f32 %v6760_v1, %v557_v5  ;;  %v555_v0 = vsel %vm554_vm14, %v6758_v51, %v551_v4 }
 0x2b5   :  { %v626_v16 = vmul.f32 %v555_v0, %v7392_v54 }
 0x2b6   :  { %v559_v15 = vmul.f32 0.5, %v558_v6  ;;  %v517_v8 = vpop.xlane.xlu0 %516 }
 0x2b7   :  { %v533_v9 = vmul.f32 %v517_v8, %v7275_v14  ;;  %v635_v30 = vmul.f32 %v7484_v19, %v626_v16 }
 0x2b8   :  { %v560_v12 = vsub.f32 1.5, %v559_v15 }
 0x2b9   :  { %v6762_v37 = vpop.eup %6761  ;;  %v541_v13 = vadd.f32 1e-05, %v533_v9  ;;  %v644_v47 = vadd.f32 %v7489_v31, %v635_v30 }
 0x2ba   :  { %v561_v21 = vmul.f32 %v6760_v1, %v560_v12  ;;  %v567_v22 = vmul.f32 %v6762_v37, %v540_v2  ;;  %vm573_vm3 = vweird.f32 %v6762_v37 }
 0x2bb   :  { %6763 = vrsqrt.f32 %v541_v13  ;;  %vm574_vm5 = vmor %vm572_vm4, %vm573_vm3  ;;  %vm582_vm7 = vweird.f32 %v541_v13 }
 0x2bc   :  { %v565_v23 = vsel %vm564_vm2, %v6760_v1, %v561_v21  ;;  %v568_v27 = vmul.f32 %v6762_v37, %v567_v22 }
 0x2bd   :  { %v627_v28 = vmul.f32 %v565_v23, %v7400_v63 }
 0x2be   :  { %v569_v17 = vmul.f32 0.5, %v568_v27  ;;  %v520_v33 = vpop.xlane.xlu1 %519 }
 0x2bf   :  { %v534_v54 = vmul.f32 %v520_v33, %v7275_v14  ;;  %v636_v34 = vmul.f32 %v7484_v19, %v627_v28 }
 0x2c0   :  { %v570_v36 = vsub.f32 1.5, %v569_v17 }
 0x2c1   :  { %v6764_v39 = vpop.eup %6763  ;;  %v542_v40 = vadd.f32 1e-05, %v534_v54  ;;  %v645_v43 = vadd.f32 %v7489_v31, %v636_v34 }
 0x2c2   :  { %v571_v46 = vmul.f32 %v6762_v37, %v570_v36  ;;  %v577_v63 = vmul.f32 %v6764_v39, %v541_v13  ;;  %vm583_vm6 = vweird.f32 %v6764_v39 }
 0x2c3   :  { %6765 = vrsqrt.f32 %v542_v40  ;;  %v652_v48 = vpack.c.bf16 %v645_v43, %v644_v47  ;;  %vm584_vm8 = vmor %vm582_vm7, %vm583_vm6  ;;  %vm592_vm10 = vweird.f32 %v542_v40  ;;  %vm723_vm6 = vcmask 64512  }
 0x2c4   :  { %v578_v25 = vmul.f32 %v6764_v39, %v577_v63  ;;  %v575_v49 = vsel %vm574_vm5, %v6762_v37, %v571_v46  ;;  %vm1012_vm7 = vcmask 1043456  }
 0x2c5   :  { %6290 = vmatmul.msk.bf16.vlgmr.msra.gmra.mxu2 %vm231_vm1, %v652_v48  ;;  %v628_v58 = vmul.f32 %v575_v49, %v7413_v7 }
 0x2c6   :  { %v579_v50 = vmul.f32 0.5, %v578_v25  ;;  %v523_v51 = vpop.xlane.xlu2 %522 }
 0x2c7   :  { %v535_v52 = vmul.f32 %v523_v51, %v7275_v14  ;;  %v637_v2 = vmul.f32 %v7484_v19, %v628_v58 }
 0x2c8   :  { %v580_v55 = vsub.f32 1.5, %v579_v50 }
 0x2c9   :  { %v6766_v56 = vpop.eup %6765  ;;  %v543_v57 = vadd.f32 1e-05, %v535_v52  ;;  %v646_v15 = vadd.f32 %v7489_v31, %v637_v2 }
 0x2ca   :  { %v581_v59 = vmul.f32 %v6764_v39, %v580_v55  ;;  %v587_v61 = vmul.f32 %v6766_v56, %v542_v40  ;;  %vm593_vm9 = vweird.f32 %v6766_v56 }
 0x2cb   :  { %6767 = vrsqrt.f32 %v543_v57  ;;  %vm594_vm11 = vmor %vm592_vm10, %vm593_vm9  ;;  %vm602_vm13 = vweird.f32 %v543_v57  ;;  %vm2688_vm9 = vcmask 130048   ;;  %vm2697_vm10 = vcmask 195584  }
 0x2cc   :  { %v585_v62 = vsel %vm584_vm8, %v6764_v39, %v581_v59  ;;  %v588_v32 = vmul.f32 %v6766_v56, %v587_v61 }
 0x2cd   :  { %v629_v1 = vmul.f32 %v585_v62, %v7420_v11 }
 0x2ce   :  { %v589_v4 = vmul.f32 0.5, %v588_v32  ;;  %v526_v34 = vpop.xlane.xlu0 %525 }
 0x2cf   :  { %v638_v5 = vmul.f32 %v7484_v19, %v629_v1 }
 0x2d0   :  { %v590_v6 = vsub.f32 1.5, %v589_v4 }
 0x2d1   :  { %v6768_v0 = vpop.eup %6767  ;;  %v647_v7 = vadd.f32 %v7489_v31, %v638_v5  ;;  %v656_v5 = vperm.slane %v7479_v20, 2 }
 0x2d2   :  { %v591_v8 = vmul.f32 %v6766_v56, %v590_v6  ;;  %v597_v9 = vmul.f32 %v6768_v0, %v543_v57  ;;  %vm603_vm12 = vweird.f32 %v6768_v0 }
 0x2d3   :  { %v653_v12 = vpack.c.bf16 %v647_v7, %v646_v15  ;;  %vm604_vm14 = vmor %vm602_vm13, %vm603_vm12 }
 0x2d4   :  { %v598_v37 = vmul.f32 %v6768_v0, %v597_v9  ;;  %v595_v11 = vsel %vm594_vm11, %v6766_v56, %v591_v8 }
 0x2d5   :  { %6291 = vmatmul.msk.bf16.vlgmr.msra.gmra.mxu3 %vm231_vm1, %v653_v12  ;;  %v630_v21 = vmul.f32 %v595_v11, %v7427_v18  ;;  %v536_v18 = vmul.f32 %v526_v34, %v7275_v14 }
 0x2d6   :  { %v599_v13 = vmul.f32 0.5, %v598_v37 }
 0x2d7   :  { %v639_v28 = vmul.f32 %v7484_v19, %v630_v21  ;;  %v544_v36 = vadd.f32 1e-05, %v536_v18 }
 0x2d8   :  { %v600_v16 = vsub.f32 1.5, %v599_v13 }
 0x2d9   :  { %v648_v17 = vadd.f32 %v7489_v31, %v639_v28  ;;  %6769 = vrsqrt.f32 %v544_v36  ;;  %vm612_vm0 = vweird.f32 %v544_v36 }
 0x2da   :  { %v601_v22 = vmul.f32 %v6768_v0, %v600_v16 }
 0x2dc   :  { %v605_v23 = vsel %vm604_vm14, %v6768_v0, %v601_v22 }
 0x2dd   :  { %v631_v27 = vmul.f32 %v605_v23, %v7434_v26 }
 0x2df   :  { %v640_v30 = vmul.f32 %v7484_v19, %v631_v27  ;;  %v6770_v39 = vpop.eup %6769 }
 0x2e0   :  { %v607_v40 = vmul.f32 %v6770_v39, %v544_v36  ;;  %vm613_vm15 = vweird.f32 %v6770_v39 }
 0x2e1   :  { %v649_v33 = vadd.f32 %v7489_v31, %v640_v30  ;;  %vm614_vm2 = vmor %vm612_vm0, %vm613_vm15 }
 0x2e2   :  { %v608_v47 = vmul.f32 %v6770_v39, %v607_v40 }
 0x2e3   :  { %v654_v54 = vpack.c.bf16 %v649_v33, %v648_v17 }
 0x2e4   :  { %v609_v63 = vmul.f32 0.5, %v608_v47 }
 0x2e5   :  { %6292 = vmatmul.msk.bf16.gmra.mxu3 %vm231_vm1, %v654_v54 }
 0x2e6   :  { %v610_v48 = vsub.f32 1.5, %v609_v63 }
 0x2e8   :  { %v611_v49 = vmul.f32 %v6770_v39, %v610_v48 }
 0x2ea   :  { %v615_v52 = vsel %vm614_vm2, %v6770_v39, %v611_v49 }
 0x2eb   :  { %v632_v57 = vmul.f32 %v615_v52, %v7441_v42 }
 0x2ed   :  { %v641_v62 = vmul.f32 %v7484_v19, %v632_v57 }
 0x2ef   :  { %v650_v1 = vadd.f32 %v7489_v31, %v641_v62 }
 0x321   :  { %v529_v26 = vpop.xlane.xlu1 %528 }
 0x322   :  { %v537_v43 = vmul.f32 %v529_v26, %v7275_v14 }
 0x324   :  { %v545_v46 = vadd.f32 1e-05, %v537_v43 }
 0x326   :  { %6771 = vrsqrt.f32 %v545_v46  ;;  %vm622_vm4 = vweird.f32 %v545_v46 }
 0x32c   :  { %v6772_v25 = vpop.eup %6771 }
 0x32d   :  { %v617_v50 = vmul.f32 %v6772_v25, %v545_v46  ;;  %vm623_vm3 = vweird.f32 %v6772_v25 }
 0x32e   :  { %vm624_vm5 = vmor %vm622_vm4, %vm623_vm3 }
 0x32f   :  { %v618_v51 = vmul.f32 %v6772_v25, %v617_v50 }
 0x331   :  { %v619_v55 = vmul.f32 0.5, %v618_v51 }
 0x333   :  { %v620_v56 = vsub.f32 1.5, %v619_v55 }
 0x335   :  { %v621_v58 = vmul.f32 %v6772_v25, %v620_v56 }
 0x337   :  { %v625_v59 = vsel %vm624_vm5, %v6772_v25, %v621_v58 }
 0x338   :  { %v633_v61 = vmul.f32 %v625_v59, %v7470_v53 }
 0x33a   :  { %v642_v32 = vmul.f32 %v7484_v19, %v633_v61 }
 0x33c   :  { %v651_v2 = vadd.f32 %v7489_v31, %v642_v32 }
 0x33e   :  { %v655_v4 = vpack.c.bf16 %v651_v2, %v650_v1 }
 0x340   :  { %6293 = vmatmul.msk.bf16.gmra.mxu3 %vm231_vm1, %v655_v4 }
 0x348   :  { %v690_v42 = vpop.f32.mrf.mxu2 }
 0x349   :  { %v691_v6 = vadd.f32 %v690_v42, %v656_v5 }
 0x34b   :  { %v710_v0 = vpack.c.bf16 %v691_v6, %v691_v6 }
 0x34d   :  { %v719_v15 = vunpack.c.l.b16 %v710_v0 }
 0x34f   :  { %v7521_v7 = vpack.c.b16 %v719_v15, %v719_v15 }
 0x350   :  { %v692_v53 = vpop.f32.mrf.mxu2 }
 0x351   :  { %v693_v8 = vadd.f32 %v692_v53, %v656_v5  ;;  %721 = vrot.lane.b32.xlu0 %v7521_v7, %s7115_s27 }
 0x353   :  { %v711_v19 = vpack.c.bf16 %v693_v8, %v693_v8 }
 0x355   :  { %v744_v9 = vunpack.c.l.b16 %v711_v19 }
 0x357   :  { %v7525_v31 = vpack.c.b16 %v744_v9, %v744_v9 }
 0x358   :  { %v695_v12 = vpop.f32.mrf.mxu3 }
 0x359   :  { %v696_v37 = vadd.f32 %v695_v12, %v656_v5  ;;  %746 = vrot.lane.b32.xlu2 %v7525_v31, %s7115_s27 }
 0x35b   :  { %v712_v20 = vpack.c.bf16 %v696_v37, %v696_v37 }
 0x35d   :  { %v768_v11 = vunpack.c.l.b16 %v712_v20 }
 0x35f   :  { %v7529_v13 = vpack.c.b16 %v768_v11, %v768_v11 }
 0x360   :  { %v697_v16 = vpop.f32.mrf.mxu3 }
 0x361   :  { %v698_v21 = vadd.f32 %v697_v16, %v656_v5  ;;  %770 = vrot.lane.b32.xlu1 %v7529_v13, %s7115_s27 }
 0x363   :  { %v7533_v22 = vpack.c.bf16 %v698_v21, %v698_v21 }
 0x365   :  { %v792_v23 = vunpack.c.l.b16 %v7533_v22 }
 0x367   :  { %v7536_v27 = vpack.c.b16 %v792_v23, %v792_v23 }
 0x368   :  { %v700_v28 = vpop.f32.mrf.mxu3 }
 0x369   :  { %v701_v30 = vadd.f32 %v700_v28, %v656_v5  ;;  %794 = vrot.lane.b32.xlu2 %v7536_v27, %s7115_s27 }
 0x36b   :  { %v714_v17 = vpack.c.bf16 %v701_v30, %v701_v30 }
 0x36d   :  { %v816_v33 = vunpack.c.l.b16 %v714_v17 }
 0x36f   :  { %v7540_v54 = vpack.c.b16 %v816_v33, %v816_v33  ;;  %v9857_v33 = vlaneseq }
 0x370   :  { %v702_v34 = vpop.f32.mrf.mxu3 }
 0x371   :  { %v703_v18 = vadd.f32 %v702_v34, %v656_v5  ;;  %818 = vrot.lane.b32.xlu0 %v7540_v54, %s7115_s27 }
 0x373   :  { %v715_v36 = vpack.c.bf16 %v703_v18, %v703_v18  ;;  %v434_v18 = vand.u32 127, %v9857_v33 }
 0x375   :  { %v840_v39 = vunpack.c.l.b16 %v715_v36  ;;  %vm435_vm8 = vcmp.lt.s32.totalorder %v434_v18, 5 }
 0x377   :  { %v7544_v40 = vpack.c.b16 %v840_v39, %v840_v39 }
 0x379   :  { %842 = vrot.lane.b32.xlu1 %v7544_v40, %s7115_s27 }
 0x381   :  { %1007 = vrot.lane.b32.xlu1 %v7521_v7, %s7116_s28 }
 0x389   :  { %1029 = vrot.lane.b32.xlu1 %v7525_v31, %s7116_s28 }
 0x391   :  { %1192 = vrot.lane.b32.xlu1 %v7521_v7, %s7117_s29 }
 0x399   :  { %1050 = vrot.lane.b32.xlu1 %v7529_v13, %s7116_s28 }
 0x3a1   :  { %1113 = vrot.lane.b32.xlu1 %v7544_v40, %s7116_s28 }
 0x3b3   :  { %v747_v47 = vpop.permute.xlu2 %746 }
 0x3b4   :  { %v752_v26 = vsel %vm723_vm6, %v747_v47, 0  ;;  %v7119_v47 = vmov -1e+30  }
 0x3b5   :  { %761 = vmatpush.bf16.xpose.msrb.mxu3 %v752_v26  ;;  %v7615_v26 = vsel %vm435_vm8, 0.0, %v7119_v47 }
 0x3bc   :  { %6295 = vmatmul.msk.bf16.vlgmr.msrb.gmra.mxu3 %vm723_vm6, %v711_v19 }
 0x3c3   :  { %v705_v43 = vpop.f32.mrf.mxu3  ;;  %v722_v63 = vpop.permute.xlu0 %721 }
 0x3c4   :  { %v706_v46 = vadd.f32 %v705_v43, %v656_v5  ;;  %v728_v48 = vsel %vm723_vm6, %v722_v63, 0  ;;  %v795_v57 = vpop.permute.xlu2 %794 }
 0x3c5   :  { %737 = vmatpush.bf16.xpose.msrb.mxu2 %v728_v48  ;;  %v800_v62 = vsel %vm723_vm6, %v795_v57, 0 }
 0x3c6   :  { %v7561_v25 = vpack.c.bf16 %v706_v46, %v706_v46 }
 0x3c8   :  { %v864_v49 = vunpack.c.l.b16 %v7561_v25 }
 0x3ca   :  { %v7564_v50 = vpack.c.b16 %v864_v49, %v864_v49 }
 0x3cb   :  { %v707_v51 = vpop.f32.mrf.mxu3 }
 0x3cc   :  { %v708_v52 = vadd.f32 %v707_v51, %v656_v5  ;;  %866 = vrot.lane.b32.xlu0 %v7564_v50, %s7115_s27  ;;  %6294 = vmatmul.msk.bf16.vlgmr.msrb.gmra.mxu2 %vm723_vm6, %v710_v0 }
 0x3ce   :  { %v717_v55 = vpack.c.bf16 %v708_v52, %v708_v52 }
 0x3d0   :  { %v888_v56 = vunpack.c.l.b16 %v717_v55 }
 0x3d2   :  { %v7569_v58 = vpack.c.b16 %v888_v56, %v888_v56 }
 0x3d3   :  { %v771_v59 = vpop.permute.xlu1 %770 }
 0x3d4   :  { %v776_v61 = vsel %vm723_vm6, %v771_v59, 0  ;;  %1155 = vrot.lane.b32.xlu1 %v7569_v58, %s7116_s28  ;;  %890 = vrot.lane.b32.xlu2 %v7569_v58, %s7115_s27 }
 0x3d5   :  { %1071 = vrot.lane.b32.xlu0 %v7536_v27, %s7116_s28  ;;  %785 = vmatpush.bf16.xpose.msra.mxu3 %v776_v61 }
 0x3dc   :  { %6296 = vmatmul.msk.bf16.vlgmr.msra.gmra.mxu3 %vm723_vm6, %v712_v20  ;;  %1092 = vrot.lane.b32.xlu2 %v7540_v54, %s7116_s28 }
 0x3dd   :  { %809 = vmatpush.bf16.xpose.msrb.mxu3 %v800_v62  ;;  %1194 = vrot.lane.b32.xlu0 %v7521_v7, %s7118_s30 }
 0x3e3   :  { %v819_v32 = vpop.permute.xlu0 %818 }
 0x3e4   :  { %v824_v1 = vsel %vm723_vm6, %v819_v32, 0  ;;  %1263 = vrot.lane.b32.xlu2 %v7536_v27, %s7118_s30 }
 0x3e5   :  { %1286 = vrot.lane.b32.xlu0 %v7540_v54, %s7118_s30  ;;  %833 = vmatpush.bf16.xpose.msra.mxu2 %v824_v1 }
 0x3eb   :  { %v843_v2 = vpop.permute.xlu1 %842 }
 0x3ec   :  { %v848_v4 = vsel %vm723_vm6, %v843_v2, 0  ;;  %6297 = vmatmul.msk.bf16.vlgmr.msrb.gmra.mxu3 %vm723_vm6, %v7533_v22  ;;  %1261 = vrot.lane.b32.xlu2 %v7536_v27, %s7117_s29 }
 0x3ed   :  { %1217 = vrot.lane.b32.xlu0 %v7525_v31, %s7118_s30  ;;  %6298 = vmatmul.msk.bf16.vlgmr.msra.gmra.mxu2 %vm723_vm6, %v714_v17 }
 0x3ee   :  { %857 = vmatpush.bf16.xpose.msra.mxu3 %v848_v4 }
 0x3f3   :  { %v1008_v5 = vpop.permute.xlu1 %1007 }
 0x3f4   :  { %v1014_v42 = vsel %vm1012_vm7, %v1008_v5, 0 }
 0x3f5   :  { %1284 = vrot.lane.b32.xlu0 %v7540_v54, %s7117_s29 }
 0x3f6   :  { %1023 = vmatpush.bf16.msrb.mxu3 %v1014_v42 }
 0x3fb   :  { %v1030_v6 = vpop.permute.xlu1 %1029 }
 0x3fc   :  { %6299 = vmatmul.msk.bf16.vlgmr.msra.gmra.mxu3 %vm723_vm6, %v715_v36  ;;  %v1035_v0 = vsel %vm1012_vm7, %v1030_v6, 0 }
 0x3fd   :  { %1044 = vmatpush.bf16.msrb.mxu0 %v1035_v0 }
 0x403   :  { %v7602_v15 = vpop.permute.xlu1 %1192 }
 0x40b   :  { %v1051_v53 = vpop.permute.xlu1 %1050 }
 0x40c   :  { %v1056_v22 = vsel %vm1012_vm7, %v1051_v53, 0 }
 0x413   :  { %v1114_v8 = vpop.permute.xlu1 %1113 }
 0x414   :  { %v1119_v19 = vsel %vm1012_vm7, %v1114_v8, 0 }
 0x415   :  { %1128 = vmatpush.bf16.msra.mxu0 %v1119_v19 }
 0x42e   :  { %v891_v9 = vpop.permute.xlu2 %890 }
 0x42f   :  { %v896_v12 = vsel %vm723_vm6, %v891_v9, 0 }
 0x430   :  { %905 = vmatpush.bf16.xpose.msrb.mxu2 %v896_v12 }
 0x436   :  { %v1093_v37 = vpop.permute.xlu2 %1092 }
 0x437   :  { %v1098_v20 = vsel %vm1012_vm7, %v1093_v37, 0  ;;  %6301 = vmatmul.msk.bf16.vlgmr.msrb.gmra.mxu2 %vm723_vm6, %v717_v55 }
 0x438   :  { %1107 = vmatpush.bf16.msra.mxu3 %v1098_v20 }
 0x43e   :  { %v867_v11 = vpop.permute.xlu0 %866  ;;  %v1264_v12 = vpop.permute.xlu2 %1263 }
 0x43f   :  { %v763_v16 = vpop.f32.mrf.mxu3  ;;  %v872_v21 = vsel %vm723_vm6, %v867_v11, 0 }
 0x440   :  { %881 = vmatpush.bf16.xpose.msrb.mxu1 %v872_v21  ;;  %v912_v4 = vmul.f32 0.35355338, %v763_v16 }
 0x442   :  { %v7636_v5 = vadd.f32 %v912_v4, %v7615_v26 }
 0x444   :  { %v930_v6 = vsel %vm723_vm6, %v7636_v5, -inf }
 0x446   :  { %v1156_v23 = vpop.permute.xlu1 %1155  ;;  %v7654_v20 = vpop.permute.xlu2 %1261 }
 0x447   :  { %v1161_v28 = vsel %vm1012_vm7, %v1156_v23, 0  ;;  %v1072_v30 = vpop.permute.xlu0 %1071  ;;  %v765_v17 = vpop.f32.mrf.mxu3  ;;  %6300 = vmatmul.msk.bf16.vlgmr.msrb.gmra.mxu1 %vm723_vm6, %v7561_v25 }
 0x448   :  { %1065 = vmatpush.bf16.msra.mxu1 %v1056_v22  ;;  %v1077_v34 = vsel %vm1012_vm7, %v1072_v30, 0 }
 0x449   :  { %1086 = vmatpush.bf16.msra.mxu2 %v1077_v34 }
 0x44d   :  { %1170 = vmatpush.bf16.msrb.mxu2 %v1161_v28 }
 0x44f   :  { %v739_v36 = vpop.f32.mrf.mxu2  ;;  %v1195_v11 = vpop.permute.xlu0 %1194 }
 0x450   :  { %v911_v39 = vmul.f32 0.35355338, %v739_v36 }
 0x452   :  { %v919_v43 = vadd.f32 %v911_v39, %v7615_v26 }
 0x454   :  { %v927_v46 = vsel %vm723_vm6, %v919_v43, -inf }
 0x455   :  { %928 = vmax.xlane.f32.xlu2 %v927_v46 }
 0x457   :  { %v741_v63 = vpop.f32.mrf.mxu2  ;;  %v1287_v18 = vpop.permute.xlu0 %1286 }
 0x45f   :  { %v787_v48 = vpop.f32.mrf.mxu3 }
 0x460   :  { %v913_v42 = vmul.f32 0.35355338, %v787_v48 }
 0x462   :  { %v7641_v0 = vadd.f32 %v913_v42, %v7615_v26  ;;  %v1269_v42 = vsel %vm723_vm6, %v1264_v12, 0 }
 0x464   :  { %v933_v53 = vsel %vm723_vm6, %v7641_v0, -inf }
 0x467   :  { %v789_v25 = vpop.f32.mrf.mxu3 }
 0x46d   :  { %1134 = vrot.lane.b32.xlu2 %v7564_v50, %s7116_s28 }
 0x46f   :  { %v811_v49 = vpop.f32.mrf.mxu3 }
 0x470   :  { %v914_v51 = vmul.f32 0.35355338, %v811_v49  ;;  %v835_v52 = vpop.f32.mrf.mxu2  ;;  %v1218_v49 = vpop.permute.xlu0 %1217 }
 0x471   :  { %v915_v55 = vmul.f32 0.35355338, %v835_v52 }
 0x472   :  { %v7622_v56 = vadd.f32 %v914_v51, %v7615_v26  ;;  %v1200_v51 = vsel %vm723_vm6, %v1195_v11, 0 }
 0x473   :  { %v7625_v57 = vadd.f32 %v915_v55, %v7615_v26 }
 0x474   :  { %v936_v59 = vsel %vm723_vm6, %v7622_v56, -inf }
 0x475   :  { %937 = vmax.xlane.f32.xlu0 %v936_v59  ;;  %v939_v61 = vsel %vm723_vm6, %v7625_v57, -inf }
 0x476   :  { %940 = vmax.xlane.f32.xlu1 %v939_v61 }
 0x477   :  { %v813_v62 = vpop.f32.mrf.mxu3 }
 0x478   :  { %v837_v32 = vpop.f32.mrf.mxu2  ;;  %v1285_v52 = vpop.permute.xlu0 %1284 }
 0x47f   :  { %v859_v1 = vpop.f32.mrf.mxu3 }
 0x480   :  { %v916_v8 = vmul.f32 0.35355338, %v859_v1 }
 0x482   :  { %v7646_v19 = vadd.f32 %v916_v8, %v7615_v26 }
 0x484   :  { %v942_v9 = vsel %vm723_vm6, %v7646_v19, -inf }
 0x487   :  { %v861_v2 = vpop.f32.mrf.mxu3 }
 0x489   :  { %1215 = vrot.lane.b32.xlu0 %v7525_v31, %s7117_s29 }
 0x48f   :  { %1240 = vrot.lane.b32.xlu1 %v7529_v13, %s7118_s30 }
 0x496   :  { %931 = vmax.xlane.f32.xlu2 %v930_v6  ;;  %v1292_v6 = vsel %vm723_vm6, %v1287_v18, 0 }
 0x49e   :  { %934 = vmax.xlane.f32.xlu2 %v933_v53 }
 0x4b3   :  { %943 = vmax.xlane.f32.xlu0 %v942_v9 }
 0x4b6   :  { %1355 = vrot.lane.b32.xlu2 %v7569_v58, %s7118_s30 }
 0x4ba   :  { %v907_v37 = vpop.f32.mrf.mxu2 }
 0x4bb   :  { %v918_v28 = vmul.f32 0.35355338, %v907_v37 }
 0x4bd   :  { %v7666_v47 = vadd.f32 %v918_v28, %v7615_v26 }
 0x4be   :  { %1353 = vrot.lane.b32.xlu2 %v7569_v58, %s7117_s29 }
 0x4bf   :  { %v948_v63 = vsel %vm723_vm6, %v7666_v47, -inf }
 0x4c2   :  { %v909_v16 = vpop.f32.mrf.mxu2 }
 0x4c4   :  { %v883_v21 = vpop.f32.mrf.mxu1 }
 0x4c5   :  { %v917_v22 = vmul.f32 0.35355338, %v883_v21 }
 0x4c6   :  { %1307 = vrot.lane.b32.xlu2 %v7544_v40, %s7117_s29 }
 0x4c7   :  { %1309 = vrot.lane.b32.xlu0 %v7544_v40, %s7118_s30  ;;  %v7661_v23 = vadd.f32 %v917_v22, %v7615_v26 }
 0x4c8   :  { %v929_v30 = vpop.xlane.xlu2 %928 }
 0x4c9   :  { %v945_v17 = vsel %vm723_vm6, %v7661_v23, -inf  ;;  %v951_v34 = vsub.f32 %v919_v43, %v929_v30 }
 0x4ca   :  { %946 = vmax.xlane.f32.xlu1 %v945_v17 }
 0x4cb   :  { %v959_v36 = vmul.f32 1.442695, %v951_v34 }
 0x4cc   :  { %v885_v39 = vpop.f32.mrf.mxu1 }
 0x4cd   :  { %6773 = vpow2.f32 %v959_v36 }
 0x4ce   :  { %1330 = vrot.lane.b32.xlu2 %v7564_v50, %s7117_s29 }
 0x4cf   :  { %1238 = vrot.lane.b32.xlu0 %v7529_v13, %s7117_s29 }
 0x4d0   :  { %v1135_v46 = vpop.permute.xlu2 %1134 }
 0x4d1   :  { %v1140_v43 = vsel %vm1012_vm7, %v1135_v46, 0 }
 0x4d2   :  { %949 = vmax.xlane.f32.xlu1 %v948_v63  ;;  %1149 = vmatpush.bf16.msrb.mxu1 %v1140_v43 }
 0x4d3   :  { %v7675_v48 = vpop.eup %6773 }
 0x4d4   :  { %v999_v25 = vpack.c.bf16 %v7675_v48, %v7675_v48 }
 0x4d6   :  { %1535 = vrot.lane.b32.xlu2 %v7536_v27, %s7120_s9  ;;  %6302 = vmatmul.msk.bf16.vlgmr.msrb.gmra.mxu3 %vm723_vm6, %v999_v25 }
 0x4d7   :  { %1209 = vmatpush.bf16.xpose.msrb.mxu3 %v1200_v51  ;;  %1332 = vrot.lane.b32.xlu0 %v7564_v50, %s7118_s30 }
 0x4de   :  { %1658 = vrot.lane.b32.xlu2 %v7521_v7, %s7121_s10 }
 0x4df   :  { %1472 = vrot.lane.b32.xlu0 %v7521_v7, %s7120_s9 }
 0x4e6   :  { %1656 = vrot.lane.b32.xlu2 %v7521_v7, %s7122_s11 }
 0x4e7   :  { %1493 = vrot.lane.b32.xlu0 %v7525_v31, %s7120_s9 }
 0x4e8   :  { %v938_v55 = vpop.xlane.xlu0 %937 }
 0x4e9   :  { %v941_v59 = vpop.xlane.xlu1 %940  ;;  %v954_v61 = vsub.f32 %v7622_v56, %v938_v55 }
 0x4ea   :  { %v955_v62 = vsub.f32 %v7625_v57, %v941_v59 }
 0x4eb   :  { %v965_v32 = vmul.f32 1.442695, %v954_v61  ;;  %1556 = vrot.lane.b32.xlu1 %v7540_v54, %s7120_s9 }
 0x4ec   :  { %v967_v1 = vmul.f32 1.442695, %v955_v62 }
 0x4ed   :  { %6775 = vpow2.f32 %v965_v32 }
 0x4ee   :  { %6777 = vpow2.f32 %v967_v1  ;;  %1727 = vrot.lane.b32.xlu2 %v7536_v27, %s7121_s10 }
 0x4ef   :  { %1619 = vrot.lane.b32.xlu0 %v7569_v58, %s7120_s9 }
 0x4f3   :  { %v7701_v2 = vpop.eup %6775  ;;  %1514 = vrot.lane.b32.xlu1 %v7529_v13, %s7120_s9 }
 0x4f4   :  { %v7705_v56 = vpop.eup %6777  ;;  %v1002_v57 = vpack.c.bf16 %v7701_v2, %v7701_v2 }
 0x4f5   :  { %v1003_v4 = vpack.c.bf16 %v7705_v56, %v7705_v56 }
 0x4f6   :  { %6305 = vmatmul.msk.bf16.vlgmr.msra.gmra.mxu2 %vm723_vm6, %v1002_v57  ;;  %1681 = vrot.lane.b32.xlu2 %v7525_v31, %s7121_s10 }
 0x4f7   :  { %6306 = vmatmul.msk.bf16.vlgmr.msra.gmra.mxu3 %vm723_vm6, %v1003_v4  ;;  %1278 = vmatpush.bf16.xpose.msra.mxu2 %v1269_v42 }
 0x4f8   :  { %1301 = vmatpush.bf16.xpose.msra.mxu3 %v1292_v6 }
 0x4fb   :  { %v1216_v28 = vpop.permute.xlu0 %1215 }
 0x4fe   :  { %1725 = vrot.lane.b32.xlu2 %v7536_v27, %s7122_s11 }
 0x501   :  { %v1241_v22 = vpop.permute.xlu1 %1240 }
 0x502   :  { %v1246_v30 = vsel %vm723_vm6, %v1241_v22, 0 }
 0x506   :  { %1679 = vrot.lane.b32.xlu2 %v7525_v31, %s7122_s11 }
 0x507   :  { %6310 = vmatmul.msk.bf16.vlgmr.msrb.gmra.mxu3 %vm723_vm6, %v7602_v15  ;;  %v1223_v15 = vsel %vm723_vm6, %v1218_v49, 0 }
 0x509   :  { %v932_v53 = vpop.xlane.xlu2 %931 }
 0x50a   :  { %v952_v8 = vsub.f32 %v7636_v5, %v932_v53 }
 0x50c   :  { %v961_v9 = vmul.f32 1.442695, %v952_v8 }
 0x50e   :  { %6779 = vpow2.f32 %v961_v9  ;;  %1704 = vrot.lane.b32.xlu2 %v7529_v13, %s7121_s10 }
 0x511   :  { %v935_v12 = vpop.xlane.xlu2 %934 }
 0x512   :  { %v953_v37 = vsub.f32 %v7641_v0, %v935_v12 }
 0x514   :  { %v7727_v11 = vpop.eup %6779  ;;  %v963_v16 = vmul.f32 1.442695, %v953_v37 }
 0x515   :  { %v1000_v21 = vpack.c.bf16 %v7727_v11, %v7727_v11 }
 0x516   :  { %6781 = vpow2.f32 %v963_v16 }
 0x517   :  { %6314 = vmatmul.msk.bf16.vlgmr.msra.gmra.mxu3 %vm723_vm6, %v1285_v52  ;;  %6303 = vmatmul.msk.bf16.vlgmr.msrb.gmra.mxu0 %vm723_vm6, %v1000_v21 }
 0x518   :  { %1232 = vmatpush.bf16.xpose.msrb.mxu0 %v1223_v15 }
 0x519   :  { %v1356_v46 = vpop.permute.xlu2 %1355 }
 0x51a   :  { %v1361_v6 = vsel %vm723_vm6, %v1356_v46, 0 }
 0x51c   :  { %v7734_v5 = vpop.eup %6781 }
 0x51d   :  { %v1001_v0 = vpack.c.bf16 %v7734_v5, %v7734_v5 }
 0x51f   :  { %6304 = vmatmul.msk.bf16.vlgmr.msra.gmra.mxu1 %vm723_vm6, %v1001_v0 }
 0x520   :  { %1255 = vmatpush.bf16.xpose.msra.mxu1 %v1246_v30 }
 0x526   :  { %v944_v17 = vpop.xlane.xlu0 %943 }
 0x527   :  { %v956_v34 = vsub.f32 %v7646_v19, %v944_v17  ;;  %v1354_v19 = vpop.permute.xlu2 %1353 }
 0x529   :  { %v969_v18 = vmul.f32 1.442695, %v956_v34 }
 0x52b   :  { %6783 = vpow2.f32 %v969_v18 }
 0x531   :  { %v7741_v36 = vpop.eup %6783 }
 0x532   :  { %v1004_v39 = vpack.c.bf16 %v7741_v36, %v7741_v36 }
 0x534   :  { %6307 = vmatmul.msk.bf16.vlgmr.msra.gmra.mxu0 %vm723_vm6, %v1004_v39 }
 0x539   :  { %v1310_v63 = vpop.permute.xlu0 %1309 }
 0x53a   :  { %v1315_v43 = vsel %vm723_vm6, %v1310_v63, 0 }
 0x53b   :  { %1324 = vmatpush.bf16.xpose.msra.mxu0 %v1315_v43 }
 0x53d   :  { %v947_v25 = vpop.xlane.xlu1 %946 }
 0x53e   :  { %v957_v49 = vsub.f32 %v7661_v23, %v947_v25  ;;  %v1308_v23 = vpop.permute.xlu2 %1307 }
 0x540   :  { %v971_v51 = vmul.f32 1.442695, %v957_v49 }
 0x541   :  { %v1239_v52 = vpop.permute.xlu0 %1238 }
 0x542   :  { %6785 = vpow2.f32 %v971_v51 }
 0x544   :  { %6311 = vmatmul.msk.bf16.vlgmr.msrb.gmra.mxu0 %vm723_vm6, %v1216_v28 }
 0x545   :  { %v950_v55 = vpop.xlane.xlu1 %949 }
 0x546   :  { %v958_v59 = vsub.f32 %v7666_v47, %v950_v55  ;;  %v1331_v8 = vpop.permute.xlu2 %1330 }
 0x548   :  { %v7750_v61 = vpop.eup %6785  ;;  %v973_v62 = vmul.f32 1.442695, %v958_v59 }
 0x549   :  { %v1005_v32 = vpack.c.bf16 %v7750_v61, %v7750_v61  ;;  %v1333_v1 = vpop.permute.xlu0 %1332 }
 0x54a   :  { %6787 = vpow2.f32 %v973_v62  ;;  %v1338_v57 = vsel %vm723_vm6, %v1333_v1, 0 }
 0x54b   :  { %6308 = vmatmul.msk.bf16.vlgmr.msrb.gmra.mxu1 %vm723_vm6, %v1005_v32 }
 0x54c   :  { %1347 = vmatpush.bf16.xpose.msrb.mxu1 %v1338_v57 }
 0x54e   :  { %v1536_v15 = vpop.permute.xlu2 %1535 }
 0x54f   :  { %v1541_v28 = vsel %vm1012_vm7, %v1536_v15, 0 }
 0x550   :  { %v7756_v4 = vpop.eup %6787 }
 0x551   :  { %v1006_v42 = vpack.c.bf16 %v7756_v4, %v7756_v4  ;;  %v1473_v47 = vpop.permute.xlu0 %1472 }
 0x552   :  { %v1478_v53 = vsel %vm1012_vm7, %v1473_v47, 0 }
 0x553   :  { %6309 = vmatmul.msk.bf16.vlgmr.msrb.gmra.mxu2 %vm723_vm6, %v1006_v42  ;;  %1487 = vmatpush.bf16.msrb.mxu3 %v1478_v53 }
 0x554   :  { %1370 = vmatpush.bf16.xpose.msrb.mxu2 %v1361_v6  ;;  %6315 = vmatmul.msk.bf16.vlgmr.msra.gmra.mxu0 %vm723_vm6, %v1308_v23 }
 0x559   :  { %v7764_v9 = vpop.f32.mrf.mxu3  ;;  %v1494_v12 = vpop.permute.xlu0 %1493 }
 0x55a   :  { %v1499_v37 = vsel %vm1012_vm7, %v1494_v12, 0 }
 0x55b   :  { %6312 = vmatmul.msk.bf16.vlgmr.msra.gmra.mxu1 %vm723_vm6, %v1239_v52  ;;  %1508 = vmatpush.bf16.msrb.mxu0 %v1499_v37 }
 0x55d   :  { %v1557_v16 = vpop.permute.xlu1 %1556 }
 0x55e   :  { %v1562_v21 = vsel %vm1012_vm7, %v1557_v16, 0 }
 0x55f   :  { %1571 = vmatpush.bf16.msra.mxu3 %v1562_v21 }
 0x561   :  { %v1027_v22 = vpop.f32.mrf.mxu3  ;;  %v1620_v17 = vpop.permute.xlu0 %1619 }
 0x562   :  { %v1625_v34 = vsel %vm1012_vm7, %v1620_v17, 0 }
 0x563   :  { %6313 = vmatmul.msk.bf16.vlgmr.msra.gmra.mxu2 %vm723_vm6, %v7654_v20 }
 0x564   :  { %1550 = vmatpush.bf16.msra.mxu2 %v1541_v28 }
 0x565   :  { %v1515_v0 = vpop.permute.xlu1 %1514 }
 0x566   :  { %v1520_v30 = vsel %vm1012_vm7, %v1515_v0, 0 }
 0x567   :  { %1529 = vmatpush.bf16.msra.mxu1 %v1520_v30 }
 0x56b   :  { %6316 = vmatmul.msk.bf16.vlgmr.msrb.gmra.mxu1 %vm723_vm6, %v1331_v8 }
 0x573   :  { %6317 = vmatmul.msk.bf16.vlgmr.msrb.gmra.mxu2 %vm723_vm6, %v1354_v19 }
 0x574   :  { %1634 = vmatpush.bf16.msrb.mxu2 %v1625_v34 }
 0x579   :  { %v7776_v18 = vpop.f32.mrf.mxu2 }
 0x57a   :  { %v7778_v39 = vpop.f32.mrf.mxu3 }
 0x581   :  { %v1090_v46 = vpop.f32.mrf.mxu2 }
 0x582   :  { %v1111_v63 = vpop.f32.mrf.mxu3 }
 0x58a   :  { %v1211_v20 = vpop.f32.mrf.mxu3 }
 0x58b   :  { %v1376_v43 = vmul.f32 0.35355338, %v1211_v20 }
 0x58d   :  { %v1384_v25 = vadd.f32 %v1376_v43, %v7615_v26 }
 0x58f   :  { %v1392_v49 = vsel %vm723_vm6, %v1384_v25, -inf }
 0x590   :  { %1393 = vmax.xlane.f32.xlu1 %v1392_v49 }
 0x592   :  { %v1213_v51 = vpop.f32.mrf.mxu3 }
 0x594   :  { %v7782_v52 = vpop.f32.mrf.mxu0 }
 0x59a   :  { %v1303_v55 = vpop.f32.mrf.mxu3 }
 0x59b   :  { %v1380_v22 = vmul.f32 0.35355338, %v1303_v55 }
 0x59c   :  { %v1048_v59 = vpop.f32.mrf.mxu0  ;;  %v7784_v19 = vpop.f32.mrf.mxu1 }
 0x59d   :  { %v7807_v34 = vadd.f32 %v1380_v22, %v7615_v26 }
 0x59f   :  { %v1404_v63 = vsel %vm723_vm6, %v7807_v34, -inf }
 0x5a2   :  { %v1305_v62 = vpop.f32.mrf.mxu3 }
 0x5a4   :  { %v1069_v32 = vpop.f32.mrf.mxu1 }
 0x5a9   :  { %1750 = vrot.lane.b32.xlu1 %v7540_v54, %s7121_s10 }
 0x5b1   :  { %1598 = vrot.lane.b32.xlu1 %v7564_v50, %s7120_s9  ;;  %v7790_v1 = vpop.f32.mrf.mxu0 }
 0x5b9   :  { %1748 = vrot.lane.b32.xlu1 %v7540_v54, %s7122_s11  ;;  %v1132_v57 = vpop.f32.mrf.mxu0 }
 0x5c1   :  { %v1234_v23 = vpop.f32.mrf.mxu0 }
 0x5c2   :  { %v1377_v16 = vmul.f32 0.35355338, %v1234_v23 }
 0x5c4   :  { %v7804_v30 = vadd.f32 %v1377_v16, %v7615_v26 }
 0x5c6   :  { %v1395_v46 = vsel %vm723_vm6, %v7804_v30, -inf }
 0x5c8   :  { %v7794_v42 = vpop.f32.mrf.mxu1 }
 0x5c9   :  { %v1236_v47 = vpop.f32.mrf.mxu0 }
 0x5d0   :  { %v1153_v6 = vpop.f32.mrf.mxu1 }
 0x5d1   :  { %v1326_v53 = vpop.f32.mrf.mxu0 }
 0x5d6   :  { %v7796_v8 = vpop.f32.mrf.mxu2 }
 0x5d7   :  { %9880 = vst [vmem:[#allocation9_spill] sm:$0xff] %v7796_v8 }
 0x5d8   :  { %v1257_v12 = vpop.f32.mrf.mxu1 }
 0x5d9   :  { %v1378_v37 = vmul.f32 0.35355338, %v1257_v12  ;;  %v1328_v21 = vpop.f32.mrf.mxu0 }
 0x5db   :  { %v7799_v15 = vadd.f32 %v1378_v37, %v7615_v26  ;;  %v1659_v37 = vpop.permute.xlu2 %1658 }
 0x5dc   :  { %v1664_v21 = vsel %vm723_vm6, %v1659_v37, 0 }
 0x5dd   :  { %v1398_v28 = vsel %vm723_vm6, %v7799_v15, -inf }
 0x5de   :  { %v1174_v0 = vpop.f32.mrf.mxu2  ;;  %1399 = vmax.xlane.f32.xlu0 %v1398_v28 }
 0x5df   :  { %v1381_v0 = vmul.f32 0.35355338, %v1326_v53 }
 0x5e0   :  { %v1259_v17 = vpop.f32.mrf.mxu1 }
 0x5e1   :  { %v7834_v17 = vadd.f32 %v1381_v0, %v7615_v26 }
 0x5e3   :  { %1396 = vmax.xlane.f32.xlu1 %v1395_v46  ;;  %v1407_v53 = vsel %vm723_vm6, %v7834_v17, -inf }
 0x5e6   :  { %v1280_v20 = vpop.f32.mrf.mxu2  ;;  %1405 = vmax.xlane.f32.xlu0 %v1404_v63 }
 0x5e7   :  { %v1379_v43 = vmul.f32 0.35355338, %v1280_v20 }
 0x5e8   :  { %v1349_v49 = vpop.f32.mrf.mxu1 }
 0x5e9   :  { %v7814_v51 = vadd.f32 %v1379_v43, %v7615_v26  ;;  %v1382_v22 = vmul.f32 0.35355338, %v1349_v49 }
 0x5eb   :  { %v1401_v55 = vsel %vm723_vm6, %v7814_v51, -inf }
 0x5ec   :  { %1402 = vmax.xlane.f32.xlu2 %v1401_v55  ;;  %v7839_v55 = vpop.permute.xlu2 %1656 }
 0x5ee   :  { %v1282_v59 = vpop.f32.mrf.mxu2 }
 0x5f0   :  { %v1351_v62 = vpop.f32.mrf.mxu1 }
 0x5f4   :  { %v1728_v62 = vpop.permute.xlu2 %1727 }
 0x5f6   :  { %v1372_v32 = vpop.f32.mrf.mxu2 }
 0x5f7   :  { %v1383_v20 = vmul.f32 0.35355338, %v1372_v32 }
 0x5f9   :  { %v7844_v49 = vadd.f32 %v1383_v20, %v7615_v26 }
 0x5fa   :  { %1577 = vrot.lane.b32.xlu0 %v7544_v40, %s7120_s9 }
 0x5fb   :  { %v1413_v59 = vsel %vm723_vm6, %v7844_v49, -inf }
 0x5fc   :  { %1819 = vrot.lane.b32.xlu1 %v7569_v58, %s7121_s10  ;;  %v1682_v32 = vpop.permute.xlu2 %1681 }
 0x5fe   :  { %v1374_v57 = vpop.f32.mrf.mxu2 }
 0x603   :  { %v1394_v23 = vpop.xlane.xlu1 %1393 }
 0x604   :  { %v1416_v47 = vsub.f32 %v1384_v25, %v1394_v23  ;;  %1817 = vrot.lane.b32.xlu2 %v7569_v58, %s7122_s11  ;;  %v7831_v25 = vadd.f32 %v1382_v22, %v7615_v26  ;;  %v7854_v57 = vpop.permute.xlu2 %1725 }
 0x606   :  { %v1424_v6 = vmul.f32 1.442695, %v1416_v47  ;;  %v1410_v63 = vsel %vm723_vm6, %v7831_v25, -inf }
 0x608   :  { %6789 = vpow2.f32 %v1424_v6 }
 0x60c   :  { %v7862_v23 = vpop.permute.xlu2 %1679 }
 0x60e   :  { %v7824_v12 = vpop.eup %6789 }
 0x60f   :  { %v1464_v16 = vpack.c.bf16 %v7824_v12, %v7824_v12 }
 0x611   :  { %6318 = vmatmul.msk.bf16.vlgmr.msrb.gmra.mxu3 %vm723_vm6, %v1464_v16 }
 0x612   :  { %1673 = vmatpush.bf16.xpose.msrb.mxu3 %v1664_v21 }
 0x614   :  { %v1705_v22 = vpop.permute.xlu2 %1704 }
 0x61b   :  { %v1751_v28 = vpop.permute.xlu1 %1750 }
 0x623   :  { %v1599_v46 = vpop.permute.xlu1 %1598 }
 0x624   :  { %v1604_v43 = vsel %vm1012_vm7, %v1599_v46, 0  ;;  %1411 = vmax.xlane.f32.xlu0 %v1410_v63 }
 0x625   :  { %1613 = vmatpush.bf16.msrb.mxu1 %v1604_v43 }
 0x626   :  { %1408 = vmax.xlane.f32.xlu1 %v1407_v53 }
 0x62b   :  { %v1749_v47 = vpop.permute.xlu1 %1748 }
 0x62d   :  { %1414 = vmax.xlane.f32.xlu2 %v1413_v59  ;;  %v1710_v59 = vsel %vm723_vm6, %v1705_v22, 0 }
 0x638   :  { %1771 = vrot.lane.b32.xlu0 %v7544_v40, %s7122_s11 }
 0x63f   :  { %1773 = vrot.lane.b32.xlu1 %v7544_v40, %s7121_s10 }
 0x640   :  { %1957 = vrot.lane.b32.xlu0 %v7525_v31, %s7123_s12 }
 0x645   :  { %1796 = vrot.lane.b32.xlu2 %v7564_v50, %s7121_s10 }
 0x647   :  { %1702 = vrot.lane.b32.xlu1 %v7529_v13, %s7122_s11 }
 0x648   :  { %1978 = vrot.lane.b32.xlu0 %v7529_v13, %s7123_s12 }
 0x64d   :  { %1999 = vrot.lane.b32.xlu2 %v7536_v27, %s7123_s12 }
 0x64f   :  { %1794 = vrot.lane.b32.xlu1 %v7564_v50, %s7122_s11 }
 0x651   :  { %v1400_v6 = vpop.xlane.xlu0 %1399 }
 0x652   :  { %v1418_v37 = vsub.f32 %v7799_v15, %v1400_v6 }
 0x654   :  { %v1428_v16 = vmul.f32 1.442695, %v1418_v37 }
 0x655   :  { %2041 = vrot.lane.b32.xlu2 %v7544_v40, %s7123_s12 }
 0x656   :  { %6791 = vpow2.f32 %v1428_v16  ;;  %v1397_v21 = vpop.xlane.xlu1 %1396 }
 0x657   :  { %v1417_v0 = vsub.f32 %v7804_v30, %v1397_v21  ;;  %1936 = vrot.lane.b32.xlu1 %v7521_v7, %s7123_s12 }
 0x659   :  { %v1426_v46 = vmul.f32 1.442695, %v1417_v0  ;;  %v1406_v63 = vpop.xlane.xlu0 %1405  ;;  %v1756_v0 = vsel %vm723_vm6, %v1751_v28, 0  ;;  %v1687_v28 = vsel %vm723_vm6, %v1682_v32, 0 }
 0x65a   :  { %v1420_v20 = vsub.f32 %v7807_v34, %v1406_v63 }
 0x65b   :  { %6793 = vpow2.f32 %v1426_v46 }
 0x65c   :  { %v7875_v43 = vpop.eup %6791  ;;  %v1432_v15 = vmul.f32 1.442695, %v1420_v20  ;;  %v1733_v20 = vsel %vm723_vm6, %v1728_v62, 0 }
 0x65d   :  { %v1466_v53 = vpack.c.bf16 %v7875_v43, %v7875_v43 }
 0x65e   :  { %6795 = vpow2.f32 %v1432_v15 }
 0x65f   :  { %2020 = vrot.lane.b32.xlu1 %v7540_v54, %s7123_s12  ;;  %v1403_v30 = vpop.xlane.xlu2 %1402  ;;  %6320 = vmatmul.msk.bf16.vlgmr.msra.gmra.mxu1 %vm723_vm6, %v1466_v53 }
 0x660   :  { %v1419_v6 = vsub.f32 %v7814_v51, %v1403_v30  ;;  %1719 = vmatpush.bf16.xpose.msra.mxu1 %v1710_v59 }
 0x661   :  { %v7884_v34 = vpop.eup %6793 }
 0x662   :  { %v1465_v37 = vpack.c.bf16 %v7884_v34, %v7884_v34  ;;  %v1430_v16 = vmul.f32 1.442695, %v1419_v6 }
 0x664   :  { %v7888_v21 = vpop.eup %6795  ;;  %6797 = vpow2.f32 %v1430_v16  ;;  %6319 = vmatmul.msk.bf16.vlgmr.msrb.gmra.mxu0 %vm723_vm6, %v1465_v37 }
 0x665   :  { %v1468_v22 = vpack.c.bf16 %v7888_v21, %v7888_v21 }
 0x667   :  { %2122 = vrot.lane.b32.xlu1 %v7521_v7, %s7124_s13  ;;  %6322 = vmatmul.msk.bf16.vlgmr.msra.gmra.mxu3 %vm723_vm6, %v1468_v22  ;;  %v1818_v30 = vpop.permute.xlu2 %1817 }
 0x668   :  { %1765 = vmatpush.bf16.xpose.msra.mxu3 %v1756_v0 }
 0x66a   :  { %v7897_v51 = vpop.eup %6797 }
 0x66b   :  { %v1467_v46 = vpack.c.bf16 %v7897_v51, %v7897_v51 }
 0x66c   :  { %v1578_v63 = vpop.permute.xlu0 %1577 }
 0x66d   :  { %v1583_v15 = vsel %vm1012_vm7, %v1578_v63, 0  ;;  %6321 = vmatmul.msk.bf16.vlgmr.msra.gmra.mxu2 %vm723_vm6, %v1467_v46 }
 0x66e   :  { %1742 = vmatpush.bf16.xpose.msra.mxu2 %v1733_v20  ;;  %1592 = vmatpush.bf16.msra.mxu0 %v1583_v15  ;;  %v1820_v62 = vpop.permute.xlu1 %1819 }
 0x66f   :  { %2145 = vrot.lane.b32.xlu1 %v7525_v31, %s7124_s13 }
 0x672   :  { %1696 = vmatpush.bf16.xpose.msrb.mxu0 %v1687_v28 }
 0x677   :  { %2191 = vrot.lane.b32.xlu1 %v7536_v27, %s7124_s13  ;;  %6326 = vmatmul.msk.bf16.vlgmr.msrb.gmra.mxu3 %vm723_vm6, %v7839_v55 }
 0x687   :  { %6330 = vmatmul.msk.bf16.vlgmr.msra.gmra.mxu3 %vm723_vm6, %v1749_v47 }
 0x694   :  { %v7912_v53 = vpop.f32.mrf.mxu3 }
 0x697   :  { %v1412_v59 = vpop.xlane.xlu0 %1411 }
 0x698   :  { %v1422_v32 = vsub.f32 %v7831_v25, %v1412_v59 }
 0x699   :  { %v1409_v6 = vpop.xlane.xlu1 %1408 }
 0x69a   :  { %v1436_v37 = vmul.f32 1.442695, %v1422_v32  ;;  %v1421_v16 = vsub.f32 %v7834_v17, %v1409_v6  ;;  %v1825_v6 = vsel %vm723_vm6, %v1820_v62, 0 }
 0x69c   :  { %6799 = vpow2.f32 %v1436_v37  ;;  %v1434_v22 = vmul.f32 1.442695, %v1421_v16  ;;  %v1491_v0 = vpop.f32.mrf.mxu3 }
 0x69e   :  { %6801 = vpow2.f32 %v1434_v22 }
 0x6a0   :  { %v1415_v46 = vpop.xlane.xlu2 %1414 }
 0x6a1   :  { %v1423_v55 = vsub.f32 %v7844_v49, %v1415_v46 }
 0x6a2   :  { %v7917_v63 = vpop.eup %6799 }
 0x6a3   :  { %v1470_v47 = vpack.c.bf16 %v7917_v63, %v7917_v63  ;;  %v1438_v20 = vmul.f32 1.442695, %v1423_v55 }
 0x6a4   :  { %v7921_v15 = vpop.eup %6801 }
 0x6a5   :  { %v1469_v25 = vpack.c.bf16 %v7921_v15, %v7921_v15  ;;  %6803 = vpow2.f32 %v1438_v20  ;;  %6324 = vmatmul.msk.bf16.vlgmr.msrb.gmra.mxu1 %vm723_vm6, %v1470_v47 }
 0x6a7   :  { %6323 = vmatmul.msk.bf16.vlgmr.msra.gmra.mxu0 %vm723_vm6, %v1469_v25 }
 0x6a8   :  { %v1797_v17 = vpop.permute.xlu2 %1796 }
 0x6a9   :  { %v1802_v28 = vsel %vm723_vm6, %v1797_v17, 0 }
 0x6aa   :  { %1811 = vmatpush.bf16.xpose.msrb.mxu1 %v1802_v28  ;;  %v1772_v49 = vpop.permute.xlu0 %1771 }
 0x6ab   :  { %v7928_v59 = vpop.eup %6803 }
 0x6ac   :  { %v1471_v32 = vpack.c.bf16 %v7928_v59, %v7928_v59 }
 0x6ae   :  { %6325 = vmatmul.msk.bf16.vlgmr.msrb.gmra.mxu2 %vm723_vm6, %v1471_v32 }
 0x6af   :  { %1834 = vmatpush.bf16.xpose.msrb.mxu2 %v1825_v6 }
 0x6b0   :  { %v2000_v55 = vpop.permute.xlu2 %1999 }
 0x6b1   :  { %v1774_v37 = vpop.permute.xlu1 %1773  ;;  %v2005_v20 = vsel %vm1012_vm7, %v2000_v55, 0 }
 0x6b2   :  { %v1779_v16 = vsel %vm723_vm6, %v1774_v37, 0  ;;  %v1958_v22 = vpop.permute.xlu0 %1957 }
 0x6b3   :  { %1788 = vmatpush.bf16.xpose.msra.mxu0 %v1779_v16  ;;  %v1963_v0 = vsel %vm1012_vm7, %v1958_v22, 0 }
 0x6b7   :  { %6327 = vmatmul.msk.bf16.vlgmr.msrb.gmra.mxu0 %vm723_vm6, %v7862_v23 }
 0x6b8   :  { %v2042_v17 = vpop.permute.xlu2 %2041 }
 0x6b9   :  { %v1703_v46 = vpop.permute.xlu1 %1702  ;;  %v2047_v28 = vsel %vm1012_vm7, %v2042_v17, 0 }
 0x6ba   :  { %6328 = vmatmul.msk.bf16.vlgmr.msra.gmra.mxu1 %vm723_vm6, %v1703_v46  ;;  %v1979_v47 = vpop.permute.xlu0 %1978 }
 0x6bb   :  { %1972 = vmatpush.bf16.msrb.mxu0 %v1963_v0  ;;  %v1984_v62 = vsel %vm1012_vm7, %v1979_v47, 0 }
 0x6bc   :  { %1993 = vmatpush.bf16.msra.mxu1 %v1984_v62 }
 0x6be   :  { %6329 = vmatmul.msk.bf16.vlgmr.msra.gmra.mxu2 %vm723_vm6, %v7854_v57 }
 0x6bf   :  { %2014 = vmatpush.bf16.msra.mxu2 %v2005_v20 }
 0x6c1   :  { %v1795_v25 = vpop.permute.xlu1 %1794 }
 0x6c7   :  { %6331 = vmatmul.msk.bf16.vlgmr.msra.gmra.mxu0 %vm723_vm6, %v1772_v49 }
 0x6c8   :  { %2056 = vmatpush.bf16.msra.mxu0 %v2047_v28 }
 0x6c9   :  { %v1937_v23 = vpop.permute.xlu1 %1936 }
 0x6ca   :  { %v1942_v32 = vsel %vm1012_vm7, %v1937_v23, 0  ;;  %6332 = vmatmul.msk.bf16.vlgmr.msrb.gmra.mxu1 %vm723_vm6, %v1795_v25 }
 0x6cb   :  { %1951 = vmatpush.bf16.msrb.mxu3 %v1942_v32 }
 0x6ce   :  { %6333 = vmatmul.msk.bf16.vlgmr.msrb.gmra.mxu2 %vm723_vm6, %v1818_v30 }
 0x6d1   :  { %v2021_v6 = vpop.permute.xlu1 %2020 }
 0x6d2   :  { %v2026_v37 = vsel %vm1012_vm7, %v2021_v6, 0 }
 0x6d3   :  { %2035 = vmatpush.bf16.msra.mxu3 %v2026_v37 }
 0x6dc   :  { %v7949_v57 = vpop.f32.mrf.mxu1 }
 0x6e1   :  { %v7951_v16 = vpop.f32.mrf.mxu0 }
 0x6e4   :  { %v1533_v22 = vpop.f32.mrf.mxu1 }
 0x6e9   :  { %v1512_v0 = vpop.f32.mrf.mxu0 }
 0x6ea   :  { %v7953_v49 = vpop.f32.mrf.mxu3 }
 0x6f0   :  { %v7955_v46 = vpop.f32.mrf.mxu2 }
 0x6f2   :  { %v1575_v55 = vpop.f32.mrf.mxu3 }
 0x6f8   :  { %v1554_v47 = vpop.f32.mrf.mxu2 }
 0x6fa   :  { %v1675_v62 = vpop.f32.mrf.mxu3 }
 0x6fb   :  { %v1840_v20 = vmul.f32 0.35355338, %v1675_v62 }
 0x6fd   :  { %v1848_v30 = vadd.f32 %v1840_v20, %v7615_v26 }
 0x6ff   :  { %v1856_v25 = vsel %vm723_vm6, %v1848_v30, -inf }
 0x700   :  { %1857 = vmax.xlane.f32.xlu2 %v1856_v25 }
 0x702   :  { %v1677_v17 = vpop.f32.mrf.mxu3 }
 0x70a   :  { %v1767_v28 = vpop.f32.mrf.mxu3 }
 0x70b   :  { %v1844_v41 = vmul.f32 0.35355338, %v1767_v28 }
 0x712   :  { %v1769_v23 = vpop.f32.mrf.mxu3 }
 0x718   :  { %2120 = vrot.lane.b32.xlu2 %v7521_v7, %s7125_s14 }
 0x720   :  { %2062 = vrot.lane.b32.xlu2 %v7564_v50, %s7123_s12 }
 0x722   :  { %v7963_v32 = vpop.f32.mrf.mxu1 }
 0x724   :  { %v7965_v6 = vpop.f32.mrf.mxu0 }
 0x72a   :  { %v1617_v37 = vpop.f32.mrf.mxu1 }
 0x72c   :  { %v1596_v22 = vpop.f32.mrf.mxu0 }
 0x731   :  { %v7967_v0 = vpop.f32.mrf.mxu2 }
 0x734   :  { %v1698_v55 = vpop.f32.mrf.mxu0 }
 0x735   :  { %v1841_v17 = vmul.f32 0.35355338, %v1698_v55  ;;  %v7983_v55 = vadd.f32 %v1844_v41, %v7615_v26 }
 0x737   :  { %v1721_v47 = vpop.f32.mrf.mxu1  ;;  %v7975_v37 = vadd.f32 %v1841_v17, %v7615_v26  ;;  %v1868_v28 = vsel %vm723_vm6, %v7983_v55, -inf }
 0x738   :  { %v1842_v62 = vmul.f32 0.35355338, %v1721_v47 }
 0x739   :  { %v1638_v20 = vpop.f32.mrf.mxu2  ;;  %v1859_v47 = vsel %vm723_vm6, %v7975_v37, -inf }
 0x73a   :  { %v7970_v25 = vadd.f32 %v1842_v62, %v7615_v26 }
 0x73c   :  { %v1700_v23 = vpop.f32.mrf.mxu0  ;;  %v1862_v33 = vsel %vm723_vm6, %v7970_v25, -inf }
 0x73d   :  { %1863 = vmax.xlane.f32.xlu0 %v1862_v33 }
 0x73f   :  { %v1723_v3 = vpop.f32.mrf.mxu1 }
 0x741   :  { %v1744_v22 = vpop.f32.mrf.mxu2 }
 0x742   :  { %v1843_v35 = vmul.f32 0.35355338, %v1744_v22 }
 0x744   :  { %v1790_v14 = vpop.f32.mrf.mxu0  ;;  %v7980_v62 = vadd.f32 %v1843_v35, %v7615_v26 }
 0x745   :  { %1860 = vmax.xlane.f32.xlu0 %v1859_v47  ;;  %v1845_v60 = vmul.f32 0.35355338, %v1790_v14 }
 0x746   :  { %v1865_v3 = vsel %vm723_vm6, %v7980_v62, -inf }
 0x747   :  { %v1813_v33 = vpop.f32.mrf.mxu1  ;;  %1866 = vmax.xlane.f32.xlu1 %v1865_v3 }
 0x748   :  { %v1846_v24 = vmul.f32 0.35355338, %v1813_v33 }
 0x749   :  { %v1746_v20 = vpop.f32.mrf.mxu2  ;;  %1869 = vmax.xlane.f32.xlu2 %v1868_v28 }
 0x74c   :  { %v1792_v17 = vpop.f32.mrf.mxu0 }
 0x74d   :  { %v2123_v17 = vpop.permute.xlu1 %2122 }
 0x74e   :  { %v2128_v10 = vsel %vm723_vm6, %v2123_v17, 0 }
 0x74f   :  { %v1815_v23 = vpop.f32.mrf.mxu1 }
 0x750   :  { %v8000_v23 = vadd.f32 %v1846_v24, %v7615_v26 }
 0x751   :  { %v1836_v22 = vpop.f32.mrf.mxu2 }
 0x752   :  { %v1847_v8 = vmul.f32 0.35355338, %v1836_v22 }
 0x754   :  { %v8010_v24 = vadd.f32 %v1847_v8, %v7615_v26 }
 0x756   :  { %v1877_v14 = vsel %vm723_vm6, %v8010_v24, -inf }
 0x759   :  { %2083 = vrot.lane.b32.xlu0 %v7569_v58, %s7123_s12  ;;  %v1838_v35 = vpop.f32.mrf.mxu2 }
 0x760   :  { %2189 = vrot.lane.b32.xlu1 %v7536_v27, %s7125_s14 }
 0x761   :  { %2143 = vrot.lane.b32.xlu2 %v7525_v31, %s7125_s14 }
 0x773   :  { %v1858_v41 = vpop.xlane.xlu2 %1857 }
 0x774   :  { %v1880_v47 = vsub.f32 %v1848_v30, %v1858_v41  ;;  %v1874_v30 = vsel %vm723_vm6, %v8000_v23, -inf }
 0x776   :  { %v1888_v3 = vmul.f32 1.442695, %v1880_v47  ;;  %v8013_v47 = vadd.f32 %v1845_v60, %v7615_v26  ;;  %v2146_v60 = vpop.permute.xlu1 %2145 }
 0x778   :  { %6805 = vpow2.f32 %v1888_v3 }
 0x77b   :  { %v7995_v20 = vpop.permute.xlu2 %2120 }
 0x77e   :  { %v7997_v28 = vpop.eup %6805  ;;  %v2192_v22 = vpop.permute.xlu1 %2191 }
 0x77f   :  { %v1928_v35 = vpack.c.bf16 %v7997_v28, %v7997_v28 }
 0x781   :  { %6334 = vmatmul.msk.bf16.vlgmr.msrb.gmra.mxu3 %vm723_vm6, %v1928_v35 }
 0x782   :  { %2137 = vmatpush.bf16.xpose.msrb.mxu3 %v2128_v10  ;;  %v1871_v10 = vsel %vm723_vm6, %v8013_v47, -inf }
 0x783   :  { %1875 = vmax.xlane.f32.xlu0 %v1874_v30  ;;  %v2063_v33 = vpop.permute.xlu2 %2062 }
 0x784   :  { %v2068_v41 = vsel %vm1012_vm7, %v2063_v33, 0 }
 0x785   :  { %2077 = vmatpush.bf16.msrb.mxu1 %v2068_v41 }
 0x78a   :  { %1878 = vmax.xlane.f32.xlu1 %v1877_v14  ;;  %1872 = vmax.xlane.f32.xlu2 %v1871_v10 }
 0x797   :  { %2283 = vrot.lane.b32.xlu0 %v7569_v58, %s7124_s13 }
 0x79f   :  { %2463 = vrot.lane.b32.xlu0 %v7536_v27, %s7126_s15 }
 0x7a2   :  { %2168 = vrot.lane.b32.xlu2 %v7529_v13, %s7124_s13 }
 0x7a3   :  { %2214 = vrot.lane.b32.xlu1 %v7540_v54, %s7124_s13 }
 0x7a7   :  { %2484 = vrot.lane.b32.xlu0 %v7540_v54, %s7126_s15 }
 0x7aa   :  { %2166 = vrot.lane.b32.xlu2 %v7529_v13, %s7125_s14 }
 0x7ab   :  { %2212 = vrot.lane.b32.xlu1 %v7540_v54, %s7125_s14 }
 0x7af   :  { %2526 = vrot.lane.b32.xlu0 %v7564_v50, %s7126_s15 }
 0x7b0   :  { %v1864_v27 = vpop.xlane.xlu0 %1863 }
 0x7b1   :  { %v1882_v8 = vsub.f32 %v7970_v25, %v1864_v27 }
 0x7b2   :  { %2237 = vrot.lane.b32.xlu2 %v7544_v40, %s7124_s13 }
 0x7b3   :  { %v1892_v3 = vmul.f32 1.442695, %v1882_v8  ;;  %2235 = vrot.lane.b32.xlu1 %v7544_v40, %s7125_s14 }
 0x7b5   :  { %6807 = vpow2.f32 %v1892_v3 }
 0x7b8   :  { %v1861_v17 = vpop.xlane.xlu0 %1860 }
 0x7b9   :  { %v1881_v35 = vsub.f32 %v7975_v37, %v1861_v17  ;;  %v2151_v17 = vsel %vm723_vm6, %v2146_v60, 0 }
 0x7ba   :  { %v1867_v30 = vpop.xlane.xlu1 %1866  ;;  %2281 = vrot.lane.b32.xlu2 %v7569_v58, %s7125_s14 }
 0x7bb   :  { %v8043_v54 = vpop.eup %6807  ;;  %v1890_v33 = vmul.f32 1.442695, %v1881_v35  ;;  %v1883_v25 = vsub.f32 %v7980_v62, %v1867_v30  ;;  %2260 = vrot.lane.b32.xlu1 %v7564_v50, %s7124_s13  ;;  %v2197_v30 = vsel %vm723_vm6, %v2192_v22, 0 }
 0x7bc   :  { %v1930_v41 = vpack.c.bf16 %v8043_v54, %v8043_v54  ;;  %v1870_v14 = vpop.xlane.xlu2 %1869 }
 0x7bd   :  { %6809 = vpow2.f32 %v1890_v33  ;;  %v1894_v10 = vmul.f32 1.442695, %v1883_v25  ;;  %v1884_v37 = vsub.f32 %v7983_v55, %v1870_v14 }
 0x7be   :  { %6336 = vmatmul.msk.bf16.vlgmr.msra.gmra.mxu1 %vm723_vm6, %v1930_v41 }
 0x7bf   :  { %6811 = vpow2.f32 %v1894_v10  ;;  %v1896_v27 = vmul.f32 1.442695, %v1884_v37 }
 0x7c1   :  { %6813 = vpow2.f32 %v1896_v27 }
 0x7c2   :  { %2258 = vrot.lane.b32.xlu2 %v7564_v50, %s7125_s14 }
 0x7c3   :  { %v6810_v62 = vpop.eup %6809  ;;  %2421 = vrot.lane.b32.xlu1 %v7525_v31, %s7126_s15 }
 0x7c4   :  { %v1929_v8 = vpack.c.bf16 %v6810_v62, %v6810_v62 }
 0x7c5   :  { %v8056_v3 = vpop.eup %6811 }
 0x7c6   :  { %v1931_v55 = vpack.c.bf16 %v8056_v3, %v8056_v3  ;;  %6335 = vmatmul.msk.bf16.vlgmr.msrb.gmra.mxu0 %vm723_vm6, %v1929_v8 }
 0x7c7   :  { %v8062_v35 = vpop.eup %6813  ;;  %2160 = vmatpush.bf16.xpose.msrb.mxu0 %v2151_v17 }
 0x7c8   :  { %v1932_v50 = vpack.c.bf16 %v8062_v35, %v8062_v35  ;;  %6337 = vmatmul.msk.bf16.vlgmr.msra.gmra.mxu2 %vm723_vm6, %v1931_v55 }
 0x7ca   :  { %6338 = vmatmul.msk.bf16.vlgmr.msra.gmra.mxu3 %vm723_vm6, %v1932_v50  ;;  %2400 = vrot.lane.b32.xlu2 %v7521_v7, %s7126_s15  ;;  %v2144_v7 = vpop.permute.xlu2 %2143 }
 0x7cb   :  { %v2084_v31 = vpop.permute.xlu0 %2083  ;;  %2547 = vrot.lane.b32.xlu1 %v7569_v58, %s7126_s15 }
 0x7cc   :  { %v2089_v60 = vsel %vm1012_vm7, %v2084_v31, 0 }
 0x7cd   :  { %2098 = vmatpush.bf16.msrb.mxu2 %v2089_v60 }
 0x7d1   :  { %2206 = vmatpush.bf16.xpose.msra.mxu2 %v2197_v30  ;;  %v1907_v30 = vsel %vm723_vm6, %v6810_v62, 0.0 }
 0x7d2   :  { %2442 = vrot.lane.b32.xlu2 %v7529_v13, %s7126_s15  ;;  %v2190_v33 = vpop.permute.xlu1 %2189 }
 0x7da   :  { %6342 = vmatmul.msk.bf16.vlgmr.msrb.gmra.mxu3 %vm723_vm6, %v7995_v20  ;;  %2505 = vrot.lane.b32.xlu2 %v7544_v40, %s7126_s15  ;;  %v1440_v20 = vsel %vm723_vm6, %v7824_v12, 0.0 }
 0x7f6   :  { %v1876_v25 = vpop.xlane.xlu0 %1875 }
 0x7f7   :  { %v1886_v58 = vsub.f32 %v8000_v23, %v1876_v25 }
 0x7f9   :  { %v1900_v41 = vmul.f32 1.442695, %v1886_v58 }
 0x7fb   :  { %6815 = vpow2.f32 %v1900_v41  ;;  %v1446_v41 = vsel %vm723_vm6, %v7875_v43, 0.0 }
 0x7fd   :  { %v1879_v14 = vpop.xlane.xlu1 %1878  ;;  %v1873_v22 = vpop.xlane.xlu2 %1872 }
 0x7fe   :  { %v1887_v10 = vsub.f32 %v8010_v24, %v1879_v14  ;;  %v1885_v37 = vsub.f32 %v8013_v47, %v1873_v22 }
 0x800   :  { %v1902_v13 = vmul.f32 1.442695, %v1887_v10  ;;  %v1898_v27 = vmul.f32 1.442695, %v1885_v37 }
 0x801   :  { %v8083_v8 = vpop.eup %6815 }
 0x802   :  { %v1934_v40 = vpack.c.bf16 %v8083_v8, %v8083_v8  ;;  %6817 = vpow2.f32 %v1902_v13  ;;  %v1449_v13 = vsel %vm723_vm6, %v7897_v51, 0.0 }
 0x803   :  { %6819 = vpow2.f32 %v1898_v27  ;;  %1441 = vadd.xlane.f32.xlu2 %v1440_v20  ;;  %v1913_v20 = vsel %vm723_vm6, %v8056_v3, 0.0 }
 0x804   :  { %6340 = vmatmul.msk.bf16.vlgmr.msrb.gmra.mxu1 %vm723_vm6, %v1934_v40  ;;  %v8090_v23 = vpop.f32.mrf.mxu3 }
 0x805   :  { %v2169_v24 = vpop.permute.xlu2 %2168 }
 0x806   :  { %v2174_v47 = vsel %vm723_vm6, %v2169_v24, 0 }
 0x807   :  { %2183 = vmatpush.bf16.xpose.msra.mxu1 %v2174_v47 }
 0x808   :  { %v8093_v17 = vpop.eup %6817 }
 0x809   :  { %v8095_v55 = vpop.eup %6819  ;;  %v1935_v50 = vpack.c.bf16 %v8093_v17, %v8093_v17  ;;  %v2284_v31 = vpop.permute.xlu0 %2283 }
 0x80a   :  { %v1933_v12 = vpack.c.bf16 %v8095_v55, %v8095_v55  ;;  %v2289_v60 = vsel %vm723_vm6, %v2284_v31, 0 }
 0x80b   :  { %1908 = vadd.xlane.f32.xlu2 %v1907_v30  ;;  %6341 = vmatmul.msk.bf16.vlgmr.msrb.gmra.mxu2 %vm723_vm6, %v1935_v50 }
 0x80c   :  { %6339 = vmatmul.msk.bf16.vlgmr.msra.gmra.mxu0 %vm723_vm6, %v1933_v12  ;;  %2298 = vmatpush.bf16.xpose.msrb.mxu2 %v2289_v60  ;;  %v1955_v25 = vpop.f32.mrf.mxu3 }
 0x80d   :  { %v2167_v58 = vpop.permute.xlu2 %2166 }
 0x811   :  { %v2464_v37 = vpop.permute.xlu0 %2463 }
 0x812   :  { %v2469_v27 = vsel %vm1012_vm7, %v2464_v37, 0 }
 0x813   :  { %1447 = vadd.xlane.f32.xlu2 %v1446_v41 }
 0x814   :  { %6344 = vmatmul.msk.bf16.vlgmr.msra.gmra.mxu1 %vm723_vm6, %v2167_v58 }
 0x815   :  { %v2215_v14 = vpop.permute.xlu1 %2214  ;;  %v2238_v22 = vpop.permute.xlu2 %2237 }
 0x816   :  { %v2220_v10 = vsel %vm723_vm6, %v2215_v14, 0  ;;  %v2243_v62 = vsel %vm723_vm6, %v2238_v22, 0 }
 0x817   :  { %2229 = vmatpush.bf16.xpose.msra.mxu3 %v2220_v10  ;;  %2252 = vmatpush.bf16.xpose.msra.mxu0 %v2243_v62 }
 0x819   :  { %v2485_v50 = vpop.permute.xlu0 %2484 }
 0x81a   :  { %v2490_v12 = vsel %vm1012_vm7, %v2485_v50, 0 }
 0x81b   :  { %1450 = vadd.xlane.f32.xlu2 %v1449_v13  ;;  %6345 = vmatmul.msk.bf16.vlgmr.msra.gmra.mxu2 %vm723_vm6, %v2190_v33 }
 0x81c   :  { %6343 = vmatmul.msk.bf16.vlgmr.msrb.gmra.mxu0 %vm723_vm6, %v2144_v7  ;;  %2478 = vmatpush.bf16.msra.mxu2 %v2469_v27 }
 0x81d   :  { %v2213_v43 = vpop.permute.xlu1 %2212  ;;  %v2282_v40 = vpop.permute.xlu2 %2281 }
 0x81e   :  { %6346 = vmatmul.msk.bf16.vlgmr.msra.gmra.mxu3 %vm723_vm6, %v2213_v43 }
 0x821   :  { %v2527_v3 = vpop.permute.xlu0 %2526 }
 0x822   :  { %v2532_v41 = vsel %vm1012_vm7, %v2527_v3, 0  ;;  %v1910_v3 = vsel %vm723_vm6, %v8043_v54, 0.0 }
 0x823   :  { %1914 = vadd.xlane.f32.xlu2 %v1913_v20 }
 0x825   :  { %v2236_v24 = vpop.permute.xlu1 %2235  ;;  %v2259_v47 = vpop.permute.xlu2 %2258 }
 0x82b   :  { %6349 = vmatmul.msk.bf16.vlgmr.msrb.gmra.mxu2 %vm723_vm6, %v2282_v40 }
 0x82c   :  { %6347 = vmatmul.msk.bf16.vlgmr.msra.gmra.mxu0 %vm723_vm6, %v2236_v24 }
 0x82d   :  { %v2261_v51 = vpop.permute.xlu1 %2260  ;;  %v2401_v33 = vpop.permute.xlu2 %2400 }
 0x82e   :  { %v2266_v7 = vsel %vm723_vm6, %v2261_v51, 0  ;;  %v2406_v31 = vsel %vm1012_vm7, %v2401_v33, 0 }
 0x82f   :  { %2275 = vmatpush.bf16.xpose.msrb.mxu1 %v2266_v7  ;;  %2415 = vmatpush.bf16.msrb.mxu3 %v2406_v31 }
 0x833   :  { %2499 = vmatpush.bf16.msra.mxu3 %v2490_v12  ;;  %v1443_v12 = vsel %vm723_vm6, %v7884_v34, 0.0 }
 0x835   :  { %v2422_v60 = vpop.permute.xlu1 %2421  ;;  %v2443_v30 = vpop.permute.xlu2 %2442 }
 0x836   :  { %v2427_v25 = vsel %vm1012_vm7, %v2422_v60, 0  ;;  %v2448_v58 = vsel %vm1012_vm7, %v2443_v30, 0  ;;  %6348 = vmatmul.msk.bf16.vlgmr.msrb.gmra.mxu1 %vm723_vm6, %v2259_v47 }
 0x837   :  { %2436 = vmatpush.bf16.msrb.mxu0 %v2427_v25  ;;  %2457 = vmatpush.bf16.msra.mxu1 %v2448_v58 }
 0x83b   :  { %2541 = vmatpush.bf16.msrb.mxu1 %v2532_v41  ;;  %v8127_v14 = vpop.f32.mrf.mxu1 }
 0x83d   :  { %v2548_v22 = vpop.permute.xlu1 %2547  ;;  %v2506_v10 = vpop.permute.xlu2 %2505 }
 0x83e   :  { %v2553_v62 = vsel %vm1012_vm7, %v2548_v22, 0  ;;  %v2511_v37 = vsel %vm1012_vm7, %v2506_v10, 0 }
 0x83f   :  { %2520 = vmatpush.bf16.msra.mxu0 %v2511_v37  ;;  %2562 = vmatpush.bf16.msrb.mxu2 %v2553_v62 }
 0x843   :  { %v8131_v13 = vpop.f32.mrf.mxu0  ;;  %v1997_v27 = vpop.f32.mrf.mxu1 }
 0x84b   :  { %v1976_v43 = vpop.f32.mrf.mxu0  ;;  %v8133_v40 = vpop.f32.mrf.mxu2 }
 0x84d   :  { %v8135_v20 = vpop.f32.mrf.mxu3 }
 0x853   :  { %v2018_v24 = vpop.f32.mrf.mxu2 }
 0x855   :  { %v2039_v47 = vpop.f32.mrf.mxu3 }
 0x856   :  { %v1904_v47 = vsel %vm723_vm6, %v7997_v28, 0.0 }
 0x85d   :  { %v2139_v50 = vpop.f32.mrf.mxu3 }
 0x85e   :  { %v2304_v51 = vmul.f32 0.35355338, %v2139_v50 }
 0x860   :  { %v8138_v33 = vadd.f32 %v2304_v51, %v7615_v26 }
 0x862   :  { %v2320_v7 = vsel %vm723_vm6, %v8138_v33, -inf }
 0x863   :  { %2321 = vmax.xlane.f32.xlu1 %v2320_v7 }
 0x865   :  { %v2141_v31 = vpop.f32.mrf.mxu3 }
 0x86b   :  { %1444 = vadd.xlane.f32.xlu1 %v1443_v12 }
 0x873   :  { %1911 = vadd.xlane.f32.xlu1 %v1910_v3 }
 0x876   :  { %v8164_v3 = vpop.xlane.xlu2 %1441 }
 0x881   :  { %v8146_v60 = vpop.f32.mrf.mxu1 }
 0x889   :  { %v8148_v30 = vpop.f32.mrf.mxu0  ;;  %v2081_v25 = vpop.f32.mrf.mxu1 }
 0x88e   :  { %v8150_v58 = vpop.f32.mrf.mxu2 }
 0x891   :  { %v2060_v41 = vpop.f32.mrf.mxu0  ;;  %v2185_v22 = vpop.f32.mrf.mxu1 }
 0x892   :  { %v2306_v10 = vmul.f32 0.35355338, %v2185_v22 }
 0x894   :  { %v8153_v62 = vadd.f32 %v2306_v10, %v7615_v26 }
 0x896   :  { %v2102_v37 = vpop.f32.mrf.mxu2  ;;  %v2326_v34 = vsel %vm723_vm6, %v8153_v62, -inf }
 0x897   :  { %2327 = vmax.xlane.f32.xlu0 %v2326_v34  ;;  %v1455_v37 = vsel %vm723_vm6, %v7921_v15, 0.0 }
 0x899   :  { %v2162_v54 = vpop.f32.mrf.mxu0  ;;  %v2187_v27 = vpop.f32.mrf.mxu1 }
 0x89a   :  { %v2305_v43 = vmul.f32 0.35355338, %v2162_v54  ;;  %v8175_v27 = vpop.xlane.xlu2 %1908 }
 0x89c   :  { %v8160_v7 = vadd.f32 %v2305_v43, %v7615_v26 }
 0x89e   :  { %v2208_v24 = vpop.f32.mrf.mxu2  ;;  %v2323_v12 = vsel %vm723_vm6, %v8160_v7, -inf }
 0x89f   :  { %1905 = vadd.xlane.f32.xlu0 %v1904_v47 }
 0x8a1   :  { %v2164_v50 = vpop.f32.mrf.mxu0  ;;  %v2231_v51 = vpop.f32.mrf.mxu3 }
 0x8a2   :  { %v2308_v15 = vmul.f32 0.35355338, %v2231_v51 }
 0x8a6   :  { %v2210_v31 = vpop.f32.mrf.mxu2 }
 0x8a7   :  { %2324 = vmax.xlane.f32.xlu0 %v2323_v12  ;;  %v1916_v31 = vsel %vm723_vm6, %v8062_v35, 0.0  ;;  %v978_v12 = vsel %vm723_vm6, %v7727_v11, 0.0  ;;  %v2307_v35 = vmul.f32 0.35355338, %v2208_v24  ;;  %v1452_v24 = vsel %vm723_vm6, %v7888_v21, 0.0 }
 0x8a8   :  { %v975_v21 = vsel %vm723_vm6, %v7675_v48, 0.0 }
 0x8a9   :  { %v2254_v25 = vpop.f32.mrf.mxu0  ;;  %v2233_v41 = vpop.f32.mrf.mxu3  ;;  %v8194_v51 = vadd.f32 %v2307_v35, %v7615_v26 }
 0x8aa   :  { %v2309_v22 = vmul.f32 0.35355338, %v2254_v25 }
 0x8ac   :  { %v8167_v10 = vadd.f32 %v2309_v22, %v7615_v26 }
 0x8ae   :  { %v2335_v28 = vsel %vm723_vm6, %v8167_v10, -inf  ;;  %v8173_v34 = vpop.f32.mrf.mxu2 }
 0x8af   :  { %2336 = vmax.xlane.f32.xlu1 %v2335_v28  ;;  %1456 = vadd.xlane.f32.xlu0 %v1455_v37  ;;  %v1448_v28 = vpop.xlane.xlu2 %1447  ;;  %v8187_v37 = vadd.f32 %v2308_v15, %v7615_v26 }
 0x8b1   :  { %v2256_v54 = vpop.f32.mrf.mxu0  ;;  %v2332_v11 = vsel %vm723_vm6, %v8187_v37, -inf }
 0x8b2   :  { %v1461_v54 = vsel %vm723_vm6, %v7928_v59, 0.0 }
 0x8b3   :  { %v2277_v43 = vpop.f32.mrf.mxu1 }
 0x8b4   :  { %v2310_v47 = vmul.f32 0.35355338, %v2277_v43 }
 0x8b6   :  { %v8178_v50 = vadd.f32 %v2310_v47, %v7615_v26  ;;  %v2302_v25 = vpop.f32.mrf.mxu2  ;;  %v1925_v47 = vsel %vm723_vm6, %v8093_v17, 0.0 }
 0x8b7   :  { %1917 = vadd.xlane.f32.xlu1 %v1916_v31  ;;  %979 = vadd.xlane.f32.xlu0 %v978_v12  ;;  %v1451_v43 = vpop.xlane.xlu2 %1450  ;;  %v2329_v31 = vsel %vm723_vm6, %v8194_v51, -inf }
 0x8b8   :  { %v2338_v41 = vsel %vm723_vm6, %v8178_v50, -inf  ;;  %6821 = vrcp.f32 %v1451_v43 }
 0x8b9   :  { %2339 = vmax.xlane.f32.xlu2 %v2338_v41  ;;  %6823 = vrcp.f32 %v1448_v28  ;;  %v1919_v28 = vsel %vm723_vm6, %v8095_v55, 0.0  ;;  %v1922_v55 = vsel %vm723_vm6, %v8083_v8, 0.0 }
 0x8bb   :  { %v2279_v22 = vpop.f32.mrf.mxu1 }
 0x8be   :  { %v6822_v59 = vpop.eup %6821 }
 0x8bf   :  { %1462 = vadd.xlane.f32.xlu0 %v1461_v54  ;;  %v6824_v12 = vpop.eup %6823  ;;  %v1651_v25 = vmul.f32 %v6822_v59, %v7955_v46  ;;  %v1458_v46 = vsel %vm723_vm6, %v7917_v63, 0.0 }
 0x8c0   :  { %v1650_v17 = vmul.f32 %v6824_v12, %v7949_v57 }
 0x8c1   :  { %2333 = vmax.xlane.f32.xlu2 %v2332_v11 }
 0x8c2   :  { %v6629_v41 = vpack.i.bf16 %v1651_v25, %v1650_v17 }
 0x8c7   :  { %1926 = vadd.xlane.f32.xlu0 %v1925_v47 }
 0x8c9   :  { %2330 = vmax.xlane.f32.xlu2 %v2329_v31 }
 0x8d0   :  { %2712 = vrot.lane.b32.xlu1 %v7452_v38, %s7127_s16 }
 0x8d1   :  { %1453 = vadd.xlane.f32.xlu2 %v1452_v24 }
 0x8d6   :  { %v2322_v15 = vpop.xlane.xlu1 %2321 }
 0x8d7   :  { %v2344_v22 = vsub.f32 %v8138_v33, %v2322_v15 }
 0x8d8   :  { %6630 = vrot.lane.b32.xlu1 %v6629_v41, %s7128_s17 }
 0x8d9   :  { %v2352_v38 = vmul.f32 1.442695, %v2344_v22  ;;  %1920 = vadd.xlane.f32.xlu2 %v1919_v28 }
 0x8db   :  { %6825 = vpow2.f32 %v2352_v38  ;;  %v1915_v38 = vpop.xlane.xlu2 %1914 }
 0x8de   :  { %v1445_v33 = vpop.xlane.xlu1 %1444 }
 0x8df   :  { %6827 = vrcp.f32 %v1445_v33 }
 0x8e0   :  { %6829 = vrcp.f32 %v8164_v3 }
 0x8e1   :  { %v8212_v54 = vpop.eup %6825  ;;  %976 = vadd.xlane.f32.xlu2 %v975_v21 }
 0x8e2   :  { %v2392_v57 = vpack.c.bf16 %v8212_v54, %v8212_v54 }
 0x8e4   :  { %6350 = vmatmul.msk.bf16.vlgmr.msrb.gmra.mxu3 %vm723_vm6, %v2392_v57 }
 0x8e5   :  { %v6828_v48 = vpop.eup %6827 }
 0x8e6   :  { %v6830_v35 = vpop.eup %6829  ;;  %v1649_v11 = vmul.f32 %v6828_v48, %v7951_v16  ;;  %v8233_v25 = vpop.xlane.xlu1 %1911  ;;  %v981_v48 = vsel %vm723_vm6, %v7734_v5, 0.0 }
 0x8e7   :  { %v1648_v43 = vmul.f32 %v6830_v35, %v7912_v53 }
 0x8e9   :  { %1459 = vadd.xlane.f32.xlu2 %v1458_v46  ;;  %v6619_v47 = vpack.i.bf16 %v1649_v11, %v1648_v43 }
 0x8f1   :  { %1923 = vadd.xlane.f32.xlu2 %v1922_v55 }
 0x909   :  { %6620 = vrot.lane.b32.xlu2 %v6619_v47, %s7128_s17 }
 0x90a   :  { %v2328_v31 = vpop.xlane.xlu0 %2327 }
 0x90b   :  { %v2346_v63 = vsub.f32 %v8153_v62, %v2328_v31 }
 0x90d   :  { %v2356_v59 = vmul.f32 1.442695, %v2346_v63 }
 0x90f   :  { %6831 = vpow2.f32 %v2356_v59 }
 0x910   :  { %6833 = vrcp.f32 %v8175_v27 }
 0x912   :  { %v1906_v8 = vpop.xlane.xlu0 %1905 }
 0x913   :  { %6835 = vrcp.f32 %v1906_v8 }
 0x915   :  { %v8227_v24 = vpop.eup %6831 }
 0x916   :  { %v2394_v3 = vpack.c.bf16 %v8227_v24, %v8227_v24  ;;  %v6834_v16 = vpop.eup %6833 }
 0x917   :  { %v2113_v12 = vmul.f32 %v6834_v16, %v8131_v13 }
 0x918   :  { %6352 = vmatmul.msk.bf16.vlgmr.msra.gmra.mxu1 %vm723_vm6, %v2394_v3 }
 0x919   :  { %v6836_v53 = vpop.eup %6835 }
 0x91a   :  { %v2112_v62 = vmul.f32 %v6836_v53, %v8090_v23  ;;  %v2325_v17 = vpop.xlane.xlu0 %2324 }
 0x91b   :  { %v2345_v27 = vsub.f32 %v8160_v7, %v2325_v17 }
 0x91c   :  { %v6624_v15 = vpack.i.bf16 %v2113_v12, %v2112_v62 }
 0x91d   :  { %v2354_v41 = vmul.f32 1.442695, %v2345_v27 }
 0x91e   :  { %6625 = vrot.lane.b32.xlu0 %v6624_v15, %s7129_s0 }
 0x91f   :  { %6837 = vpow2.f32 %v2354_v41 }
 0x922   :  { %v2337_v22 = vpop.xlane.xlu1 %2336 }
 0x923   :  { %v2349_v28 = vsub.f32 %v8167_v10, %v2337_v22 }
 0x925   :  { %v6838_v21 = vpop.eup %6837  ;;  %v2362_v57 = vmul.f32 1.442695, %v2349_v28 }
 0x926   :  { %v2393_v13 = vpack.c.bf16 %v6838_v21, %v6838_v21  ;;  %v2371_v53 = vsel %vm723_vm6, %v6838_v21, 0.0 }
 0x927   :  { %6839 = vpow2.f32 %v2362_v57 }
 0x928   :  { %6351 = vmatmul.msk.bf16.vlgmr.msrb.gmra.mxu0 %vm723_vm6, %v2393_v13 }
 0x92a   :  { %v1918_v63 = vpop.xlane.xlu1 %1917 }
 0x92c   :  { %v2340_v23 = vpop.xlane.xlu2 %2339 }
 0x92d   :  { %v6840_v46 = vpop.eup %6839  ;;  %v2350_v7 = vsub.f32 %v8178_v50, %v2340_v23  ;;  %v2368_v50 = vsel %vm723_vm6, %v8212_v54, 0.0 }
 0x92e   :  { %v2383_v55 = vsel %vm723_vm6, %v6840_v46, 0.0  ;;  %v2397_v11 = vpack.c.bf16 %v6840_v46, %v6840_v46 }
 0x92f   :  { %v2364_v33 = vmul.f32 1.442695, %v2350_v7  ;;  %2384 = vadd.xlane.f32.xlu1 %v2383_v55 }
 0x931   :  { %6841 = vpow2.f32 %v2364_v33 }
 0x932   :  { %982 = vadd.xlane.f32.xlu2 %v981_v48  ;;  %v1457_v48 = vpop.xlane.xlu0 %1456 }
 0x934   :  { %v2334_v10 = vpop.xlane.xlu2 %2333 }
 0x935   :  { %v2348_v35 = vsub.f32 %v8187_v37, %v2334_v10  ;;  %v2311_v37 = vmul.f32 0.35355338, %v8173_v34 }
 0x937   :  { %v6842_v43 = vpop.eup %6841  ;;  %v2360_v47 = vmul.f32 1.442695, %v2348_v35  ;;  %v8254_v54 = vadd.f32 %v2311_v37, %v7615_v26 }
 0x938   :  { %v2398_v31 = vpack.c.bf16 %v6842_v43, %v6842_v43  ;;  %6355 = vmatmul.msk.bf16.vlgmr.msra.gmra.mxu0 %vm723_vm6, %v2397_v11  ;;  %v2386_v35 = vsel %vm723_vm6, %v6842_v43, 0.0 }
 0x939   :  { %6843 = vpow2.f32 %v2360_v47 }
 0x93a   :  { %2369 = vadd.xlane.f32.xlu2 %v2368_v50  ;;  %6356 = vmatmul.msk.bf16.vlgmr.msrb.gmra.mxu1 %vm723_vm6, %v2398_v31  ;;  %v8280_v11 = vpop.xlane.xlu0 %979 }
 0x93c   :  { %v2331_v59 = vpop.xlane.xlu2 %2330 }
 0x93d   :  { %v2347_v5 = vsub.f32 %v8194_v51, %v2331_v59  ;;  %v2341_v51 = vsel %vm723_vm6, %v8254_v54, -inf }
 0x93f   :  { %v6844_v8 = vpop.eup %6843  ;;  %v2358_v3 = vmul.f32 1.442695, %v2347_v5 }
 0x940   :  { %v2396_v16 = vpack.c.bf16 %v6844_v8, %v6844_v8  ;;  %v2380_v31 = vsel %vm723_vm6, %v6844_v8, 0.0 }
 0x941   :  { %6845 = vpow2.f32 %v2358_v3 }
 0x942   :  { %v2713_v12 = vpop.permute.xlu1 %2712  ;;  %6354 = vmatmul.msk.bf16.vlgmr.msra.gmra.mxu3 %vm723_vm6, %v2396_v16  ;;  %2372 = vadd.xlane.f32.xlu2 %v2371_v53  ;;  %6847 = vrcp.f32 %v1918_v63 }
 0x943   :  { %2734 = vmatpush.bf16.msrb.mxu3 %v2713_v12 }
 0x944   :  { %v1454_v62 = vpop.xlane.xlu2 %1453 }
 0x947   :  { %v6846_v17 = vpop.eup %6845 }
 0x948   :  { %v2395_v27 = vpack.c.bf16 %v6846_v17, %v6846_v17  ;;  %2342 = vmax.xlane.f32.xlu0 %v2341_v51  ;;  %v2377_v34 = vsel %vm723_vm6, %v6846_v17, 0.0  ;;  %v6848_v41 = vpop.eup %6847 }
 0x949   :  { %2378 = vadd.xlane.f32.xlu1 %v2377_v34  ;;  %v2116_v21 = vmul.f32 %v6848_v41, %v8135_v20  ;;  %v984_v20 = vsel %vm723_vm6, %v7701_v2, 0.0 }
 0x94a   :  { %6353 = vmatmul.msk.bf16.vlgmr.msra.gmra.mxu2 %vm723_vm6, %v2395_v27 }
 0x94c   :  { %v1921_v15 = vpop.xlane.xlu2 %1920 }
 0x94d   :  { %6849 = vrcp.f32 %v1921_v15 }
 0x94e   :  { %6851 = vrcp.f32 %v8233_v25 }
 0x94f   :  { %6853 = vrcp.f32 %v1915_v38 }
 0x950   :  { %6855 = vrcp.f32 %v1454_v62 }
 0x951   :  { %6857 = vrcp.f32 %v1457_v48 }
 0x953   :  { %v6850_v22 = vpop.eup %6849 }
 0x954   :  { %v2117_v28 = vmul.f32 %v6850_v22, %v8148_v30  ;;  %v6852_v13 = vpop.eup %6851  ;;  %v8269_v38 = vpop.xlane.xlu2 %976 }
 0x955   :  { %v6854_v23 = vpop.eup %6853  ;;  %v2114_v46 = vmul.f32 %v6852_v13, %v8127_v14  ;;  %v987_v14 = vsel %vm723_vm6, %v7705_v56, 0.0  ;;  %v1463_v56 = vpop.xlane.xlu0 %1462 }
 0x956   :  { %v6644_v57 = vpack.i.bf16 %v2117_v28, %v2116_v21  ;;  %v2115_v7 = vmul.f32 %v6854_v23, %v8133_v40  ;;  %v6856_v37 = vpop.eup %6855 }
 0x957   :  { %v6858_v3 = vpop.eup %6857  ;;  %v1652_v8 = vmul.f32 %v6856_v37, %v7953_v49 }
 0x958   :  { %v6634_v55 = vpack.i.bf16 %v2115_v7, %v2114_v46  ;;  %v1653_v17 = vmul.f32 %v6858_v3, %v7965_v6 }
 0x95a   :  { %6645 = vrot.lane.b32.xlu2 %v6644_v57, %s7129_s0  ;;  %v6639_v51 = vpack.i.bf16 %v1653_v17, %v1652_v8 }
 0x95c   :  { %2710 = vrot.lane.b32.xlu0 %v7463_v44, %s7127_s16  ;;  %v1460_v33 = vpop.xlane.xlu2 %1459  ;;  %v2374_v44 = vsel %vm723_vm6, %v8227_v24, 0.0  ;;  %v990_v24 = vsel %vm723_vm6, %v7741_v36, 0.0 }
 0x95d   :  { %v1927_v59 = vpop.xlane.xlu0 %1926 }
 0x962   :  { %6635 = vrot.lane.b32.xlu1 %v6634_v55, %s7129_s0 }
 0x964   :  { %v1924_v40 = vpop.xlane.xlu2 %1923 }
 0x967   :  { %v2417_v25 = vpop.f32.mrf.mxu3 }
 0x96c   :  { %v8282_v2 = vpop.permute.xlu2 %6620 }
 0x96d   :  { %v6623_v8 = vunpack.i.h.bf16 %v8282_v2 }
 0x96f   :  { %v2419_v30 = vpop.f32.mrf.mxu3 }
 0x986   :  { %985 = vadd.xlane.f32.xlu0 %v984_v20 }
 0x98c   :  { %988 = vadd.xlane.f32.xlu1 %v987_v14 }
 0x98e   :  { %2375 = vadd.xlane.f32.xlu0 %v2374_v44 }
 0x990   :  { %v8289_v16 = vpop.permute.xlu0 %6625 }
 0x991   :  { %v6628_v17 = vunpack.i.h.bf16 %v8289_v16 }
 0x995   :  { %v8277_v10 = vpop.f32.mrf.mxu1 }
 0x996   :  { %2387 = vadd.xlane.f32.xlu0 %v2386_v35 }
 0x99d   :  { %v2461_v47 = vpop.f32.mrf.mxu1 }
 0x99e   :  { %2381 = vadd.xlane.f32.xlu0 %v2380_v31 }
 0x9a5   :  { %v2438_v50 = vpop.f32.mrf.mxu0  ;;  %v8285_v63 = vpop.xlane.xlu2 %982 }
 0x9a6   :  { %991 = vadd.xlane.f32.xlu0 %v990_v24  ;;  %v8312_v24 = vpop.permute.xlu1 %6630 }
 0x9ad   :  { %v2440_v43 = vpop.f32.mrf.mxu0  ;;  %v2370_v5 = vpop.xlane.xlu2 %2369 }
 0x9ae   :  { %6859 = vrcp.f32 %v2370_v5 }
 0x9b4   :  { %v6860_v62 = vpop.eup %6859 }
 0x9b5   :  { %v8292_v53 = vpop.f32.mrf.mxu0  ;;  %v2373_v12 = vpop.xlane.xlu2 %2372  ;;  %v2576_v41 = vmul.f32 %v6860_v62, %v2417_v25 }
 0x9b6   :  { %6861 = vrcp.f32 %v2373_v12  ;;  %v6622_v12 = vunpack.i.l.bf16 %v8282_v2 }
 0x9b7   :  { %v8295_v36 = vpop.f32.mrf.mxu1 }
 0x9ba   :  { %6640 = vrot.lane.b32.xlu0 %v6639_v51, %s7128_s17 }
 0x9bb   :  { %v2343_v27 = vpop.xlane.xlu0 %2342 }
 0x9bc   :  { %v6862_v34 = vpop.eup %6861  ;;  %v2351_v15 = vsub.f32 %v8254_v54, %v2343_v27 }
 0x9bd   :  { %v2577_v22 = vmul.f32 %v6862_v34, %v2438_v50  ;;  %v2524_v49 = vpop.f32.mrf.mxu0 }
 0x9be   :  { %v2366_v28 = vmul.f32 1.442695, %v2351_v15 }
 0x9bf   :  { %v2545_v21 = vpop.f32.mrf.mxu1  ;;  %v6649_v57 = vpack.i.bf16 %v2577_v22, %v2576_v41 }
 0x9c0   :  { %6863 = vpow2.f32 %v2366_v28 }
 0x9c1   :  { %6650 = vrot.lane.b32.xlu2 %v6649_v57, %s7130_s1  ;;  %6865 = vrcp.f32 %v1460_v33  ;;  %v993_v33 = vsel %vm723_vm6, %v7750_v61, 0.0  ;;  %v8316_v61 = vpop.permute.xlu2 %6645 }
 0x9c2   :  { %6867 = vrcp.f32 %v1463_v56 }
 0x9c3   :  { %6869 = vrcp.f32 %v1924_v40 }
 0x9c4   :  { %6871 = vrcp.f32 %v1927_v59  ;;  %v2385_v59 = vpop.xlane.xlu1 %2384 }
 0x9c5   :  { %v2501_v6 = vpop.f32.mrf.mxu3  ;;  %6873 = vrcp.f32 %v8280_v11  ;;  %v6627_v11 = vunpack.i.l.bf16 %v8289_v16 }
 0x9c6   :  { %v6864_v13 = vpop.eup %6863  ;;  %6875 = vrcp.f32 %v8269_v38 }
 0x9c7   :  { %v2399_v23 = vpack.c.bf16 %v6864_v13, %v6864_v13  ;;  %v2389_v46 = vsel %vm723_vm6, %v6864_v13, 0.0  ;;  %v6866_v30 = vpop.eup %6865  ;;  %6877 = vrcp.f32 %v2385_v59 }
 0x9c8   :  { %2390 = vadd.xlane.f32.xlu1 %v2389_v46  ;;  %v6868_v20 = vpop.eup %6867  ;;  %v1654_v14 = vmul.f32 %v6866_v30, %v7963_v32 }
 0x9c9   :  { %6357 = vmatmul.msk.bf16.vlgmr.msrb.gmra.mxu2 %vm723_vm6, %v2399_v23  ;;  %v1655_v48 = vmul.f32 %v6868_v20, %v7967_v0  ;;  %v6870_v35 = vpop.eup %6869 }
 0x9ca   :  { %v6872_v47 = vpop.eup %6871  ;;  %v2118_v31 = vmul.f32 %v6870_v35, %v8146_v60 }
 0x9cb   :  { %v6664_v44 = vpack.i.bf16 %v1655_v48, %v1654_v14  ;;  %v2119_v56 = vmul.f32 %v6872_v47, %v8150_v58  ;;  %v6874_v43 = vpop.eup %6873  ;;  %v996_v48 = vsel %vm723_vm6, %v7756_v4, 0.0  ;;  %v6632_v4 = vunpack.i.l.bf16 %v8312_v24 }
 0x9cc   :  { %v6876_v58 = vpop.eup %6875  ;;  %v2379_v37 = vpop.xlane.xlu1 %2378  ;;  %v1185_v62 = vmul.f32 %v6874_v43, %v7782_v52 }
 0x9cd   :  { %v8302_v7 = vpop.f32.mrf.mxu2  ;;  %v2503_v54 = vpop.f32.mrf.mxu3  ;;  %v6669_v50 = vpack.i.bf16 %v2119_v56, %v2118_v31  ;;  %v1184_v27 = vmul.f32 %v6876_v58, %v7764_v9  ;;  %v6633_v56 = vunpack.i.h.bf16 %v8312_v24 }
 0x9ce   :  { %v2711_v55 = vpop.permute.xlu0 %2710  ;;  %v6878_v5 = vpop.eup %6877  ;;  %v2681_v2 = vsel %vm723_vm6, %v1185_v62, %v6623_v8 }
 0x9cf   :  { %2735 = vmatpush.bf16.msrb.mxu3 %v2711_v55  ;;  %v2581_v38 = vmul.f32 %v6878_v5, %v8292_v53  ;;  %v2680_v22 = vsel %vm723_vm6, %v1184_v27, %v6622_v12  ;;  %v2690_v16 = vsel %vm2688_vm9, %v2681_v2, %v6628_v17 }
 0x9d0   :  { %v2689_v53 = vsel %vm2688_vm9, %v2680_v22, %v6627_v11 }
 0x9d4   :  { %v6636_v46 = vpop.permute.xlu1 %6635 }
 0x9d5   :  { %v2482_v25 = vpop.f32.mrf.mxu2  ;;  %v6638_v59 = vunpack.i.h.bf16 %v6636_v46 }
 0x9e1   :  { %6665 = vrot.lane.b32.xlu1 %v6664_v44, %s7128_s17 }
 0x9e4   :  { %994 = vadd.xlane.f32.xlu0 %v993_v33 }
 0x9e9   :  { %6670 = vrot.lane.b32.xlu1 %v6669_v50, %s7129_s0  ;;  %v6637_v50 = vunpack.i.l.bf16 %v6636_v46 }
 0x9f9   :  { %v986_v32 = vpop.xlane.xlu0 %985 }
 0x9ff   :  { %v989_v54 = vpop.xlane.xlu1 %988 }
 0xa01   :  { %v2376_v40 = vpop.xlane.xlu0 %2375 }
 0xa09   :  { %v2388_v0 = vpop.xlane.xlu0 %2387 }
 0xa11   :  { %v2382_v60 = vpop.xlane.xlu0 %2381 }
 0xa12   :  { %6879 = vrcp.f32 %v2382_v60 }
 0xa13   :  { %6881 = vrcp.f32 %v2376_v40 }
 0xa14   :  { %6883 = vrcp.f32 %v2379_v37 }
 0xa15   :  { %6885 = vrcp.f32 %v2388_v0 }
 0xa18   :  { %v6880_v3 = vpop.eup %6879 }
 0xa19   :  { %v2580_v51 = vmul.f32 %v6880_v3, %v2501_v6  ;;  %v6882_v41 = vpop.eup %6881  ;;  %v992_v40 = vpop.xlane.xlu0 %991 }
 0xa1a   :  { %v2578_v21 = vmul.f32 %v6882_v41, %v8277_v10  ;;  %v6884_v6 = vpop.eup %6883  ;;  %v6647_v41 = vunpack.i.l.bf16 %v8316_v61 }
 0xa1b   :  { %v6651_v34 = vpop.permute.xlu2 %6650  ;;  %v6654_v15 = vpack.i.bf16 %v2581_v38, %v2580_v51  ;;  %v2579_v13 = vmul.f32 %v6884_v6, %v8302_v7  ;;  %v6886_v25 = vpop.eup %6885 }
 0xa1c   :  { %v6653_v49 = vunpack.i.h.bf16 %v6651_v34  ;;  %v6652_v28 = vunpack.i.l.bf16 %v6651_v34  ;;  %v2582_v14 = vmul.f32 %v6886_v25, %v8295_v36 }
 0xa1d   :  { %6655 = vrot.lane.b32.xlu2 %v6654_v15, %s7130_s1  ;;  %v6659_v23 = vpack.i.bf16 %v2579_v13, %v2578_v21  ;;  %v6648_v15 = vunpack.i.h.bf16 %v8316_v61 }
 0xa1e   :  { %v2698_v9 = vsel %vm2697_vm10, %v2689_v53, %v6652_v28  ;;  %v2699_v52 = vsel %vm2697_vm10, %v2690_v16, %v6653_v49 }
 0xa1f   :  { %v2706_v57 = vpack.c.bf16 %v2699_v52, %v2698_v9 }
 0xa21   :  { %6358 = vmatmul.msk.bf16.vlgmr.msrb.gmra.mxu3 %vm231_vm1, %v2706_v57 }
 0xa25   :  { %6660 = vrot.lane.b32.xlu2 %v6659_v23, %s7130_s1 }
 0xa2c   :  { %v6641_v24 = vpop.permute.xlu0 %6640 }
 0xa2d   :  { %v6643_v12 = vunpack.i.h.bf16 %v6641_v24  ;;  %v6642_v17 = vunpack.i.l.bf16 %v6641_v24 }
 0xa3b   :  { %v2391_v55 = vpop.xlane.xlu1 %2390 }
 0xa3c   :  { %6887 = vrcp.f32 %v2391_v55 }
 0xa3d   :  { %6889 = vrcp.f32 %v986_v32 }
 0xa3e   :  { %6891 = vrcp.f32 %v8285_v63 }
 0xa3f   :  { %6893 = vrcp.f32 %v989_v54 }
 0xa40   :  { %6895 = vrcp.f32 %v992_v40 }
 0xa42   :  { %v6888_v30 = vpop.eup %6887 }
 0xa43   :  { %v6890_v35 = vpop.eup %6889 }
 0xa44   :  { %v6892_v31 = vpop.eup %6891  ;;  %v1187_v33 = vmul.f32 %v6890_v35, %v7776_v18 }
 0xa45   :  { %v1186_v36 = vmul.f32 %v6892_v31, %v7784_v19  ;;  %v6894_v3 = vpop.eup %6893 }
 0xa46   :  { %v2683_v0 = vsel %vm723_vm6, %v1187_v33, %v6633_v56  ;;  %v6896_v8 = vpop.eup %6895  ;;  %v1188_v11 = vmul.f32 %v6894_v3, %v7778_v39 }
 0xa47   :  { %v2682_v32 = vsel %vm723_vm6, %v1186_v36, %v6632_v4  ;;  %v2692_v18 = vsel %vm2688_vm9, %v2683_v0, %v6638_v59  ;;  %v1189_v38 = vmul.f32 %v6896_v8, %v7790_v1  ;;  %v8366_v1 = vld [vmem:[%s9853_s7] sm:$0xff]  ;;  %v9882_v0 = vld [vmem:[#allocation3_spill] sm:$0xff] }
 0xa48   :  { %v2691_v58 = vsel %vm2688_vm9, %v2682_v32, %v6637_v50  ;;  %v2684_v62 = vsel %vm723_vm6, %v1188_v11, %v6642_v17  ;;  %v8369_v16 = vperm.slane %v8366_v1, 3  ;;  %v9885_v11 = vld [vmem:[#allocation2_spill] sm:$0xff] }
 0xa49   :  { %v2685_v51 = vsel %vm723_vm6, %v1189_v38, %v6643_v12  ;;  %v2693_v22 = vsel %vm2688_vm9, %v2684_v62, %v6647_v41 }
 0xa4a   :  { %v2694_v2 = vsel %vm2688_vm9, %v2685_v51, %v6648_v15  ;;  %v9886_v51 = vld [vmem:[#allocation6_spill] sm:$0xff] }
 0xa4c   :  { %v2564_v20 = vpop.f32.mrf.mxu2 }
 0xa4d   :  { %v2583_v10 = vmul.f32 %v6888_v30, %v2564_v20 }
 0xa4e   :  { %997 = vadd.xlane.f32.xlu2 %v996_v48  ;;  %v9881_v48 = vld [vmem:[#allocation9_spill] sm:$0xff] }
 0xa4f   :  { %v6674_v7 = vpack.i.bf16 %v2583_v10, %v2582_v14 }
 0xa51   :  { %6675 = vrot.lane.b32.xlu0 %v6674_v7, %s7130_s1 }
 0xa54   :  { %v2566_v44 = vpop.f32.mrf.mxu2 }
 0xa57   :  { %v995_v23 = vpop.xlane.xlu0 %994 }
 0xa58   :  { %6897 = vrcp.f32 %v995_v23 }
 0xa5e   :  { %v6898_v54 = vpop.eup %6897 }
 0xa5f   :  { %v1190_v55 = vmul.f32 %v6898_v54, %v7794_v42 }
 0xa77   :  { %v6656_v47 = vpop.permute.xlu2 %6655 }
 0xa78   :  { %v6658_v27 = vunpack.i.h.bf16 %v6656_v47  ;;  %v6657_v34 = vunpack.i.l.bf16 %v6656_v47 }
 0xa7a   :  { %v2702_v49 = vsel %vm2697_vm10, %v2693_v22, %v6657_v34  ;;  %v2703_v39 = vsel %vm2697_vm10, %v2694_v2, %v6658_v27 }
 0xa7b   :  { %v2708_v28 = vpack.c.bf16 %v2703_v39, %v2702_v49 }
 0xa7f   :  { %v6661_v60 = vpop.permute.xlu2 %6660 }
 0xa80   :  { %v6663_v63 = vunpack.i.h.bf16 %v6661_v60  ;;  %v6662_v43 = vunpack.i.l.bf16 %v6661_v60 }
 0xa82   :  { %v2701_v19 = vsel %vm2697_vm10, %v2692_v18, %v6663_v63  ;;  %v2700_v5 = vsel %vm2697_vm10, %v2691_v58, %v6662_v43  ;;  %v9883_v43 = vld [vmem:[#allocation4_spill] sm:$0xff] }
 0xa83   :  { %v2707_v37 = vpack.c.bf16 %v2701_v19, %v2700_v5 }
 0xa85   :  { %6359 = vmatmul.msk.bf16.gmra.mxu3 %vm231_vm1, %v2707_v37  ;;  %v9884_v37 = vld [vmem:[#allocation5_spill] sm:$0xff] }
 0xa95   :  { %6360 = vmatmul.msk.bf16.gmra.mxu3 %vm231_vm1, %v2708_v28 }
 0xaa4   :  { %v2737_v61 = vpop.f32.mrf.mxu3 }
 0xaa5   :  { %v2757_v53 = vadd.f32 %v2737_v61, %v7340_v29  ;;  %v6666_v29 = vpop.permute.xlu1 %6665 }
 0xaa6   :  { %v6667_v30 = vunpack.i.l.bf16 %v6666_v29 }
 0xaa7   :  { %v8373_v9 = vadd.f32 %v8369_v16, %v2757_v53 }
 0xaa8   :  { %v2686_v10 = vsel %vm723_vm6, %v1190_v55, %v6667_v30 }
 0xaa9   :  { %v2774_v52 = vsel %vm231_vm1, %v8373_v9, 0.0 }
 0xaaa   :  { %2775 = vadd.xlane.f32.xlu1 %v2774_v52  ;;  %v9887_v52 = vld [vmem:[#allocation7_spill] sm:$0xff] }
 0xaac   :  { %v2739_v21 = vpop.f32.mrf.mxu3 }
 0xaad   :  { %v2758_v57 = vadd.f32 %v2739_v21, %v7348_v45  ;;  %v6671_v20 = vpop.permute.xlu1 %6670  ;;  %v6668_v45 = vunpack.i.h.bf16 %v6666_v29  ;;  %v9888_v29 = vld [vmem:[#allocation8_spill] sm:$0xff] }
 0xaae   :  { %v6673_v35 = vunpack.i.h.bf16 %v6671_v20  ;;  %v6672_v47 = vunpack.i.l.bf16 %v6671_v20 }
 0xaaf   :  { %v8379_v6 = vadd.f32 %v8369_v16, %v2758_v57 }
 0xab0   :  { %v2695_v56 = vsel %vm2688_vm9, %v2686_v10, %v6672_v47 }
 0xab1   :  { %v2777_v13 = vsel %vm231_vm1, %v8379_v6, 0.0 }
 0xab2   :  { %2778 = vadd.xlane.f32.xlu2 %v2777_v13 }
 0xac1   :  { %v998_v46 = vpop.xlane.xlu2 %997 }
 0xac2   :  { %6899 = vrcp.f32 %v998_v46 }
 0xac3   :  { %v6676_v25 = vpop.permute.xlu0 %6675 }
 0xac4   :  { %v6677_v44 = vunpack.i.l.bf16 %v6676_v25  ;;  %v6678_v33 = vunpack.i.h.bf16 %v6676_v25 }
 0xac6   :  { %v2704_v50 = vsel %vm2697_vm10, %v2695_v56, %v6677_v44 }
 0xac8   :  { %v6900_v14 = vpop.eup %6899 }
 0xac9   :  { %v1191_v7 = vmul.f32 %v6900_v14, %v9881_v48 }
 0xacb   :  { %v2687_v31 = vsel %vm723_vm6, %v1191_v7, %v6668_v45 }
 0xacc   :  { %v2696_v36 = vsel %vm2688_vm9, %v2687_v31, %v6673_v35 }
 0xacd   :  { %v2705_v42 = vsel %vm2697_vm10, %v2696_v36, %v6678_v33 }
 0xace   :  { %v2709_v40 = vpack.c.bf16 %v2705_v42, %v2704_v50 }
 0xad0   :  { %6361 = vmatmul.msk.bf16.gmra.mxu3 %vm231_vm1, %v2709_v40 }
 0xb08   :  { %v2742_v4 = vpop.f32.mrf.mxu3 }
 0xb09   :  { %v2759_v59 = vadd.f32 %v2742_v4, %v9882_v0  ;;  %v6575_v4 = vld [vmem:[%s9852_s5 + $0x14] sm:$0xf]  ;;  %v6366_v0 = vld [vmem:[%s9852_s5 + $0x18] sm:$0xf0] }
 0xb0b   :  { %v8394_v60 = vadd.f32 %v8369_v16, %v2759_v59 }
 0xb0d   :  { %v2780_v32 = vsel %vm231_vm1, %v8394_v60, 0.0 }
 0xb0e   :  { %2781 = vadd.xlane.f32.xlu2 %v2780_v32  ;;  %v6369_v32 = vor.u32 %v6575_v4, %v6366_v0 }
 0xb10   :  { %v2744_v63 = vpop.f32.mrf.mxu3  ;;  %2999 = vmatpush.bf16.msrb.mxu0 %v6369_v32 }
 0xb11   :  { %v2760_v58 = vadd.f32 %v2744_v63, %v9883_v43 }
 0xb13   :  { %v8400_v18 = vadd.f32 %v8369_v16, %v2760_v58  ;;  %v6573_v58 = vld [vmem:[%s9852_s5 + $0x4] sm:$0xf] }
 0xb15   :  { %v2783_v19 = vsel %vm231_vm1, %v8400_v18, 0.0 }
 0xb16   :  { %2784 = vadd.xlane.f32.xlu0 %v2783_v19  ;;  %v6362_v19 = vld [vmem:[%s9852_s5 + $0x8] sm:$0xf0] }
 0xb18   :  { %v2747_v5 = vpop.f32.mrf.mxu3 }
 0xb19   :  { %v2761_v24 = vadd.f32 %v2747_v5, %v9884_v37  ;;  %v6365_v37 = vor.u32 %v6573_v58, %v6362_v19 }
 0xb1b   :  { %v8406_v3 = vadd.f32 %v8369_v16, %v2761_v24  ;;  %3000 = vmatpush.bf16.msrb.mxu0 %v6365_v37 }
 0xb1d   :  { %v2786_v8 = vsel %vm231_vm1, %v8406_v3, 0.0  ;;  %v2776_v12 = vpop.xlane.xlu1 %2775 }
 0xb1e   :  { %2787 = vadd.xlane.f32.xlu2 %v2786_v8  ;;  %v2798_v38 = vmul.f32 %v2776_v12, %v9885_v11 }
 0xb20   :  { %v2749_v17 = vpop.f32.mrf.mxu3  ;;  %v8416_v34 = vsub.f32 %v8373_v9, %v2798_v38 }
 0xb21   :  { %v2762_v62 = vadd.f32 %v2749_v17, %v9886_v51 }
 0xb22   :  { %v2814_v2 = vmul.f32 %v8416_v34, %v8416_v34 }
 0xb23   :  { %v8413_v27 = vadd.f32 %v8369_v16, %v2762_v62 }
 0xb24   :  { %v2822_v39 = vsel %vm231_vm1, %v2814_v2, 0.0 }
 0xb25   :  { %v2789_v15 = vsel %vm231_vm1, %v8413_v27, 0.0  ;;  %v2779_v41 = vpop.xlane.xlu2 %2778 }
 0xb26   :  { %2790 = vadd.xlane.f32.xlu2 %v2789_v15  ;;  %v2799_v22 = vmul.f32 %v2779_v41, %v9885_v11 }
 0xb28   :  { %v8424_v49 = vsub.f32 %v8379_v6, %v2799_v22 }
 0xb2a   :  { %v2815_v28 = vmul.f32 %v8424_v49, %v8424_v49 }
 0xb2c   :  { %v2825_v61 = vsel %vm231_vm1, %v2815_v28, 0.0 }
 0xb2e   :  { %2823 = vadd.xlane.f32.xlu2 %v2822_v39 }
 0xb36   :  { %2826 = vadd.xlane.f32.xlu2 %v2825_v61 }
 0xb53   :  { %v2752_v53 = vpop.f32.mrf.mxu3 }
 0xb54   :  { %v2763_v21 = vadd.f32 %v2752_v53, %v9887_v52  ;;  %v8485_v52 = vperm.slane %v8366_v1, 4 }
 0xb56   :  { %v8432_v57 = vadd.f32 %v8369_v16, %v2763_v21 }
 0xb58   :  { %v2792_v13 = vsel %vm231_vm1, %v8432_v57, 0.0 }
 0xb59   :  { %2793 = vadd.xlane.f32.xlu1 %v2792_v13 }
 0xb5b   :  { %v2754_v23 = vpop.f32.mrf.mxu3 }
 0xb5c   :  { %v2764_v46 = vadd.f32 %v2754_v23, %v9888_v29  ;;  %v8489_v29 = vperm.slane %v8366_v1, 5 }
 0xb5e   :  { %v8438_v54 = vadd.f32 %v8369_v16, %v2764_v46 }
 0xb60   :  { %v2795_v55 = vsel %vm231_vm1, %v8438_v54, 0.0 }
 0xb61   :  { %2796 = vadd.xlane.f32.xlu2 %v2795_v55 }
 0xb81   :  { %v2782_v25 = vpop.xlane.xlu2 %2781 }
 0xb82   :  { %v2800_v30 = vmul.f32 %v2782_v25, %v9885_v11 }
 0xb84   :  { %v8444_v20 = vsub.f32 %v8394_v60, %v2800_v30 }
 0xb86   :  { %v2816_v14 = vmul.f32 %v8444_v20, %v8444_v20 }
 0xb88   :  { %v2828_v45 = vsel %vm231_vm1, %v2816_v14, 0.0 }
 0xb89   :  { %v2785_v10 = vpop.xlane.xlu0 %2784  ;;  %2829 = vadd.xlane.f32.xlu1 %v2828_v45 }
 0xb8a   :  { %v2801_v16 = vmul.f32 %v2785_v10, %v9885_v11 }
 0xb8c   :  { %v8451_v48 = vsub.f32 %v8400_v18, %v2801_v16 }
 0xb8e   :  { %v2817_v7 = vmul.f32 %v8451_v48, %v8451_v48 }
 0xb90   :  { %v2831_v44 = vsel %vm231_vm1, %v2817_v7, 0.0 }
 0xb91   :  { %v2788_v35 = vpop.xlane.xlu2 %2787  ;;  %2832 = vadd.xlane.f32.xlu2 %v2831_v44 }
 0xb92   :  { %v2802_v47 = vmul.f32 %v2788_v35, %v9885_v11 }
 0xb94   :  { %v8458_v31 = vsub.f32 %v8406_v3, %v2802_v47 }
 0xb96   :  { %v2818_v33 = vmul.f32 %v8458_v31, %v8458_v31 }
 0xb98   :  { %v2834_v56 = vsel %vm231_vm1, %v2818_v33, 0.0 }
 0xb99   :  { %2835 = vadd.xlane.f32.xlu0 %v2834_v56  ;;  %v2791_v36 = vpop.xlane.xlu2 %2790 }
 0xb9a   :  { %v2803_v42 = vmul.f32 %v2791_v36, %v9885_v11 }
 0xb9c   :  { %v8465_v50 = vsub.f32 %v8413_v27, %v2803_v42 }
 0xb9e   :  { %v2819_v40 = vmul.f32 %v8465_v50, %v8465_v50 }
 0xba0   :  { %v2837_v59 = vsel %vm231_vm1, %v2819_v40, 0.0 }
 0xba1   :  { %v2824_v63 = vpop.xlane.xlu2 %2823  ;;  %2838 = vadd.xlane.f32.xlu1 %v2837_v59 }
 0xba2   :  { %v2846_v43 = vmul.f32 %v2824_v63, %v9885_v11 }
 0xba4   :  { %v2854_v5 = vadd.f32 1e-05, %v2846_v43 }
 0xba6   :  { %6901 = vrsqrt.f32 %v2854_v5  ;;  %vm2868_vm12 = vweird.f32 %v2854_v5 }
 0xba9   :  { %v2827_v24 = vpop.xlane.xlu2 %2826 }
 0xbaa   :  { %v2847_v8 = vmul.f32 %v2827_v24, %v9885_v11 }
 0xbac   :  { %v6902_v12 = vpop.eup %6901  ;;  %v2855_v17 = vadd.f32 1e-05, %v2847_v8 }
 0xbad   :  { %v2863_v38 = vmul.f32 %v6902_v12, %v2854_v5  ;;  %vm2869_vm11 = vweird.f32 %v6902_v12 }
 0xbae   :  { %6903 = vrsqrt.f32 %v2855_v17  ;;  %vm2870_vm13 = vmor %vm2868_vm12, %vm2869_vm11  ;;  %vm2878_vm15 = vweird.f32 %v2855_v17 }
 0xbaf   :  { %v2864_v51 = vmul.f32 %v6902_v12, %v2863_v38 }
 0xbb1   :  { %v2865_v62 = vmul.f32 0.5, %v2864_v51 }
 0xbb3   :  { %v2866_v15 = vsub.f32 1.5, %v2865_v62 }
 0xbb4   :  { %v6904_v41 = vpop.eup %6903 }
 0xbb5   :  { %v2867_v22 = vmul.f32 %v6902_v12, %v2866_v15  ;;  %v2873_v2 = vmul.f32 %v6904_v41, %v2855_v17  ;;  %vm2879_vm14 = vweird.f32 %v6904_v41 }
 0xbb6   :  { %vm2880_vm0 = vmor %vm2878_vm15, %vm2879_vm14 }
 0xbb7   :  { %v2874_v39 = vmul.f32 %v6904_v41, %v2873_v2  ;;  %v2871_v28 = vsel %vm2870_vm13, %v6902_v12, %v2867_v22 }
 0xbb8   :  { %v2942_v21 = vmul.f32 %v2871_v28, %v8416_v34 }
 0xbb9   :  { %v2875_v61 = vmul.f32 0.5, %v2874_v39 }
 0xbba   :  { %v2951_v46 = vmul.f32 %v8485_v52, %v2942_v21 }
 0xbbb   :  { %v2876_v53 = vsub.f32 1.5, %v2875_v61 }
 0xbbc   :  { %v2960_v30 = vadd.f32 %v8489_v29, %v2951_v46 }
 0xbbd   :  { %v2877_v13 = vmul.f32 %v6904_v41, %v2876_v53 }
 0xbbf   :  { %v2881_v23 = vsel %vm2880_vm0, %v6904_v41, %v2877_v13 }
 0xbc0   :  { %v2943_v55 = vmul.f32 %v2881_v23, %v8424_v49 }
 0xbc2   :  { %v2952_v25 = vmul.f32 %v8485_v52, %v2943_v55 }
 0xbc4   :  { %v2961_v14 = vadd.f32 %v8489_v29, %v2952_v25 }
 0xbc6   :  { %v2968_v45 = vpack.c.bf16 %v2961_v14, %v2960_v30 }
 0xbc8   :  { %6370 = vmatmul.msk.bf16.vlgmr.msrb.gmra.mxu0 %vm231_vm1, %v2968_v45 }
 0xbcc   :  { %v2794_v34 = vpop.xlane.xlu1 %2793 }
 0xbcd   :  { %v2804_v10 = vmul.f32 %v2794_v34, %v9885_v11 }
 0xbcf   :  { %v8499_v16 = vsub.f32 %v8432_v57, %v2804_v10 }
 0xbd1   :  { %v2820_v7 = vmul.f32 %v8499_v16, %v8499_v16 }
 0xbd3   :  { %v2840_v49 = vsel %vm231_vm1, %v2820_v7, 0.0 }
 0xbd4   :  { %2841 = vadd.xlane.f32.xlu2 %v2840_v49  ;;  %v2797_v44 = vpop.xlane.xlu2 %2796 }
 0xbd5   :  { %v2805_v35 = vmul.f32 %v2797_v44, %v9885_v11 }
 0xbd7   :  { %v8506_v47 = vsub.f32 %v8438_v54, %v2805_v35 }
 0xbd9   :  { %v2821_v33 = vmul.f32 %v8506_v47, %v8506_v47 }
 0xbdb   :  { %v2843_v56 = vsel %vm231_vm1, %v2821_v33, 0.0 }
 0xbdc   :  { %2844 = vadd.xlane.f32.xlu0 %v2843_v56 }
 0xbfc   :  { %v2830_v36 = vpop.xlane.xlu1 %2829 }
 0xbfd   :  { %v2848_v42 = vmul.f32 %v2830_v36, %v9885_v11  ;;  %v6584_v36 = vld [vmem:[%s9854_s6 + $0x38] sm:$0xff] }
 0xbfe   :  { %3146 = vmatpush.bf16.msra.mxu1 %v6584_v36 }
 0xbff   :  { %v2856_v40 = vadd.f32 1e-05, %v2848_v42 }
 0xc01   :  { %6905 = vrsqrt.f32 %v2856_v40  ;;  %vm2888_vm3 = vweird.f32 %v2856_v40 }
 0xc04   :  { %v2833_v4 = vpop.xlane.xlu2 %2832 }
 0xc05   :  { %v2849_v0 = vmul.f32 %v2833_v4, %v9885_v11 }
 0xc07   :  { %v6906_v59 = vpop.eup %6905  ;;  %v2857_v32 = vadd.f32 1e-05, %v2849_v0 }
 0xc08   :  { %v2883_v63 = vmul.f32 %v6906_v59, %v2856_v40  ;;  %vm2889_vm2 = vweird.f32 %v6906_v59 }
 0xc09   :  { %6907 = vrsqrt.f32 %v2857_v32  ;;  %vm2890_vm4 = vmor %vm2888_vm3, %vm2889_vm2  ;;  %vm2898_vm8 = vweird.f32 %v2857_v32 }
 0xc0a   :  { %v2884_v43 = vmul.f32 %v6906_v59, %v2883_v63 }
 0xc0c   :  { %v2885_v58 = vmul.f32 0.5, %v2884_v43  ;;  %v2836_v19 = vpop.xlane.xlu0 %2835  ;;  %v6582_v43 = vld [vmem:[%s9854_s6 + $0x28] sm:$0xff] }
 0xc0d   :  { %v2850_v5 = vmul.f32 %v2836_v19, %v9885_v11  ;;  %v6579_v19 = vld [vmem:[%s9854_s6 + $0x10] sm:$0xff] }
 0xc0e   :  { %v2886_v37 = vsub.f32 1.5, %v2885_v58  ;;  %v6580_v58 = vld [vmem:[%s9854_s6 + $0x18] sm:$0xff] }
 0xc0f   :  { %v6908_v24 = vpop.eup %6907  ;;  %v2858_v8 = vadd.f32 1e-05, %v2850_v5  ;;  %v6578_v5 = vld [vmem:[%s9854_s6 + $0x8] sm:$0xff] }
 0xc10   :  { %v2887_v12 = vmul.f32 %v6906_v59, %v2886_v37  ;;  %v2893_v17 = vmul.f32 %v6908_v24, %v2857_v32  ;;  %vm2899_vm5 = vweird.f32 %v6908_v24  ;;  %v8551_v37 = vperm.slane %v8366_v1, 6 }
 0xc11   :  { %6909 = vrsqrt.f32 %v2858_v8  ;;  %vm2900_vm11 = vmor %vm2898_vm8, %vm2899_vm5  ;;  %vm2908_vm13 = vweird.f32 %v2858_v8 }
 0xc12   :  { %v2894_v38 = vmul.f32 %v6908_v24, %v2893_v17  ;;  %v2891_v51 = vsel %vm2890_vm4, %v6906_v59, %v2887_v12  ;;  %v6583_v59 = vld [vmem:[%s9854_s6 + $0x30] sm:$0xff] }
 0xc13   :  { %v2944_v39 = vmul.f32 %v2891_v51, %v8444_v20  ;;  %3147 = vmatpush.bf16.msra.mxu1 %v6583_v59 }
 0xc14   :  { %v2895_v62 = vmul.f32 0.5, %v2894_v38  ;;  %v2839_v15 = vpop.xlane.xlu1 %2838 }
 0xc15   :  { %v2851_v41 = vmul.f32 %v2839_v15, %v9885_v11  ;;  %v2953_v46 = vmul.f32 %v8485_v52, %v2944_v39 }
 0xc16   :  { %v2896_v22 = vsub.f32 1.5, %v2895_v62 }
 0xc17   :  { %v6910_v2 = vpop.eup %6909  ;;  %v2859_v28 = vadd.f32 1e-05, %v2851_v41  ;;  %v2962_v45 = vadd.f32 %v8489_v29, %v2953_v46  ;;  %3148 = vmatpush.bf16.msra.mxu1 %v6582_v43 }
 0xc18   :  { %v2897_v61 = vmul.f32 %v6908_v24, %v2896_v22  ;;  %v2903_v53 = vmul.f32 %v6910_v2, %v2858_v8  ;;  %vm2909_vm12 = vweird.f32 %v6910_v2  ;;  %v6577_v8 = vld [vmem:[%s9854_s6] sm:$0xff] }
 0xc19   :  { %6911 = vrsqrt.f32 %v2859_v28  ;;  %vm2910_vm14 = vmor %vm2908_vm13, %vm2909_vm12  ;;  %vm2918_vm0 = vweird.f32 %v2859_v28 }
 0xc1a   :  { %v2901_v21 = vsel %vm2900_vm11, %v6908_v24, %v2897_v61  ;;  %v2904_v13 = vmul.f32 %v6910_v2, %v2903_v53 }
 0xc1b   :  { %v2945_v23 = vmul.f32 %v2901_v21, %v8451_v48 }
 0xc1c   :  { %v2905_v55 = vmul.f32 0.5, %v2904_v13 }
 0xc1d   :  { %v2954_v25 = vmul.f32 %v8485_v52, %v2945_v23 }
 0xc1e   :  { %v2906_v30 = vsub.f32 1.5, %v2905_v55 }
 0xc1f   :  { %v6912_v14 = vpop.eup %6911  ;;  %v2963_v20 = vadd.f32 %v8489_v29, %v2954_v25 }
 0xc20   :  { %v2907_v34 = vmul.f32 %v6910_v2, %v2906_v30  ;;  %v2913_v10 = vmul.f32 %v6912_v14, %v2859_v28  ;;  %vm2919_vm15 = vweird.f32 %v6912_v14 }
 0xc21   :  { %v2969_v7 = vpack.c.bf16 %v2963_v20, %v2962_v45  ;;  %vm2920_vm2 = vmor %vm2918_vm0, %vm2919_vm15 }
 0xc22   :  { %v2914_v49 = vmul.f32 %v6912_v14, %v2913_v10  ;;  %v2911_v48 = vsel %vm2910_vm14, %v6910_v2, %v2907_v34 }
 0xc23   :  { %6371 = vmatmul.msk.bf16.gmra.mxu0 %vm231_vm1, %v2969_v7  ;;  %v2946_v33 = vmul.f32 %v2911_v48, %v8458_v31 }
 0xc24   :  { %v2915_v44 = vmul.f32 0.5, %v2914_v49 }
 0xc25   :  { %v2955_v4 = vmul.f32 %v8485_v52, %v2946_v33 }
 0xc26   :  { %v2916_v35 = vsub.f32 1.5, %v2915_v44 }
 0xc27   :  { %v2964_v31 = vadd.f32 %v8489_v29, %v2955_v4 }
 0xc28   :  { %v2917_v56 = vmul.f32 %v6912_v14, %v2916_v35 }
 0xc2a   :  { %v2921_v42 = vsel %vm2920_vm2, %v6912_v14, %v2917_v56 }
 0xc2b   :  { %v2947_v40 = vmul.f32 %v2921_v42, %v8465_v50  ;;  %v6581_v50 = vld [vmem:[%s9854_s6 + $0x20] sm:$0xff] }
 0xc2c   :  { %3149 = vmatpush.bf16.msra.mxu1 %v6581_v50 }
 0xc2d   :  { %v2956_v0 = vmul.f32 %v8485_v52, %v2947_v40 }
 0xc2f   :  { %v2965_v32 = vadd.f32 %v8489_v29, %v2956_v0 }
 0xc30   :  { %3150 = vmatpush.bf16.msra.mxu1 %v6580_v58 }
 0xc31   :  { %v2970_v63 = vpack.c.bf16 %v2965_v32, %v2964_v31 }
 0xc33   :  { %6372 = vmatmul.msk.bf16.gmra.mxu0 %vm231_vm1, %v2970_v63 }
 0xc34   :  { %3151 = vmatpush.bf16.msra.mxu1 %v6579_v19 }
 0xc38   :  { %3152 = vmatpush.bf16.msra.mxu1 %v6578_v5 }
 0xc3c   :  { %3153 = vmatpush.bf16.msra.mxu1 %v6577_v8 }
 0xc45   :  { %v3002_v24 = vpop.f32.mrf.mxu0 }
 0xc46   :  { %v3003_v12 = vadd.f32 %v3002_v24, %v8551_v37 }
 0xc47   :  { %v2842_v17 = vpop.xlane.xlu2 %2841 }
 0xc48   :  { %v3022_v38 = vmul.f32 %v3003_v12, %v3003_v12  ;;  %v2852_v51 = vmul.f32 %v2842_v17, %v9885_v11 }
 0xc4a   :  { %v3030_v62 = vmul.f32 %v3022_v38, %v3003_v12  ;;  %v2860_v15 = vadd.f32 1e-05, %v2852_v51 }
 0xc4c   :  { %v3038_v41 = vmul.f32 0.044715, %v3030_v62  ;;  %6913 = vrsqrt.f32 %v2860_v15  ;;  %vm2928_vm4 = vweird.f32 %v2860_v15 }
 0xc4d   :  { %v3004_v22 = vpop.f32.mrf.mxu0 }
 0xc4e   :  { %v3046_v2 = vadd.f32 %v3038_v41, %v3003_v12  ;;  %v3005_v39 = vadd.f32 %v3004_v22, %v8551_v37 }
 0xc4f   :  { %v2845_v28 = vpop.xlane.xlu0 %2844 }
 0xc50   :  { %v3054_v61 = vmul.f32 0.7978846, %v3046_v2  ;;  %v3023_v53 = vmul.f32 %v3005_v39, %v3005_v39  ;;  %v2853_v21 = vmul.f32 %v2845_v28, %v9885_v11 }
 0xc52   :  { %v6914_v13 = vpop.eup %6913  ;;  %v3031_v23 = vmul.f32 %v3023_v53, %v3005_v39  ;;  %v2861_v46 = vadd.f32 1e-05, %v2853_v21  ;;  %6915 = vtanh.f32 %v3054_v61 }
 0xc53   :  { %v2923_v55 = vmul.f32 %v6914_v13, %v2860_v15  ;;  %vm2929_vm3 = vweird.f32 %v6914_v13 }
 0xc54   :  { %v3039_v25 = vmul.f32 0.044715, %v3031_v23  ;;  %6917 = vrsqrt.f32 %v2861_v46  ;;  %vm2930_vm5 = vmor %vm2928_vm4, %vm2929_vm3  ;;  %vm2938_vm11 = vweird.f32 %v2861_v46 }
 0xc55   :  { %v2924_v30 = vmul.f32 %v6914_v13, %v2923_v55 }
 0xc56   :  { %v3047_v14 = vadd.f32 %v3039_v25, %v3005_v39 }
 0xc57   :  { %v2925_v45 = vmul.f32 0.5, %v2924_v30 }
 0xc58   :  { %v3055_v20 = vmul.f32 0.7978846, %v3047_v14  ;;  %v6916_v34 = vpop.eup %6915 }
 0xc59   :  { %v2926_v10 = vsub.f32 1.5, %v2925_v45  ;;  %v3070_v44 = vadd.f32 1.0, %v6916_v34 }
 0xc5a   :  { %v6918_v7 = vpop.eup %6917  ;;  %6919 = vtanh.f32 %v3055_v20 }
 0xc5b   :  { %v2927_v49 = vmul.f32 %v6914_v13, %v2926_v10  ;;  %v2933_v48 = vmul.f32 %v6918_v7, %v2861_v46  ;;  %v3078_v42 = vmul.f32 0.5, %v3070_v44  ;;  %vm2939_vm8 = vweird.f32 %v6918_v7 }
 0xc5c   :  { %vm2940_vm12 = vmor %vm2938_vm11, %vm2939_vm8 }
 0xc5d   :  { %v2934_v35 = vmul.f32 %v6918_v7, %v2933_v48  ;;  %v2931_v33 = vsel %vm2930_vm5, %v6914_v13, %v2927_v49  ;;  %v3086_v32 = vmul.f32 %v3078_v42, %v3003_v12 }
 0xc5e   :  { %v2948_v0 = vmul.f32 %v2931_v33, %v8499_v16 }
 0xc5f   :  { %v2935_v56 = vmul.f32 0.5, %v2934_v35 }
 0xc60   :  { %v6920_v36 = vpop.eup %6919  ;;  %v2957_v58 = vmul.f32 %v8485_v52, %v2948_v0 }
 0xc61   :  { %v3071_v40 = vadd.f32 1.0, %v6920_v36  ;;  %v2936_v4 = vsub.f32 1.5, %v2935_v56 }
 0xc62   :  { %v2966_v24 = vadd.f32 %v8489_v29, %v2957_v58  ;;  %v8572_v58 = vperm.slane %v8366_v1, 7 }
 0xc63   :  { %v3079_v59 = vmul.f32 0.5, %v3071_v40  ;;  %v2937_v31 = vmul.f32 %v6918_v7, %v2936_v4 }
 0xc65   :  { %v3087_v63 = vmul.f32 %v3079_v59, %v3005_v39  ;;  %v2941_v43 = vsel %vm2940_vm12, %v6918_v7, %v2937_v31 }
 0xc66   :  { %v2949_v50 = vmul.f32 %v2941_v43, %v8506_v47 }
 0xc67   :  { %v3094_v19 = vpack.c.bf16 %v3087_v63, %v3086_v32 }
 0xc68   :  { %v2958_v5 = vmul.f32 %v8485_v52, %v2949_v50 }
 0xc69   :  { %3154 = vmatmul.bf16.vlgmr.msra.gmra.mxu1 %v3094_v19 }
 0xc6a   :  { %v2967_v8 = vadd.f32 %v8489_v29, %v2958_v5 }
 0xc6c   :  { %v2971_v16 = vpack.c.bf16 %v2967_v8, %v2966_v24 }
 0xc6e   :  { %6373 = vmatmul.msk.bf16.gmra.mxu0 %vm231_vm1, %v2971_v16 }
 0xca0   :  { %v3007_v17 = vpop.f32.mrf.mxu0 }
 0xca1   :  { %v3008_v12 = vadd.f32 %v3007_v17, %v8551_v37 }
 0xca3   :  { %v3024_v38 = vmul.f32 %v3008_v12, %v3008_v12 }
 0xca5   :  { %v3032_v51 = vmul.f32 %v3024_v38, %v3008_v12 }
 0xca7   :  { %v3040_v62 = vmul.f32 0.044715, %v3032_v51 }
 0xca8   :  { %v3009_v47 = vpop.f32.mrf.mxu0 }
 0xca9   :  { %v3048_v15 = vadd.f32 %v3040_v62, %v3008_v12  ;;  %v3010_v41 = vadd.f32 %v3009_v47, %v8551_v37 }
 0xcab   :  { %v3056_v22 = vmul.f32 0.7978846, %v3048_v15  ;;  %v3025_v52 = vmul.f32 %v3010_v41, %v3010_v41 }
 0xcad   :  { %v3033_v2 = vmul.f32 %v3025_v52, %v3010_v41  ;;  %6921 = vtanh.f32 %v3056_v22 }
 0xcaf   :  { %v3041_v39 = vmul.f32 0.044715, %v3033_v2 }
 0xcb0   :  { %v3012_v28 = vpop.f32.mrf.mxu0 }
 0xcb1   :  { %v3049_v29 = vadd.f32 %v3041_v39, %v3010_v41  ;;  %v3013_v61 = vadd.f32 %v3012_v28, %v8551_v37 }
 0xcb3   :  { %v3057_v53 = vmul.f32 0.7978846, %v3049_v29  ;;  %v3026_v21 = vmul.f32 %v3013_v61, %v3013_v61  ;;  %v6922_v13 = vpop.eup %6921 }
 0xcb4   :  { %v3072_v25 = vadd.f32 1.0, %v6922_v13 }
 0xcb5   :  { %v3034_v23 = vmul.f32 %v3026_v21, %v3013_v61  ;;  %6923 = vtanh.f32 %v3057_v53 }
 0xcb6   :  { %v3080_v7 = vmul.f32 0.5, %v3072_v25 }
 0xcb7   :  { %v3042_v46 = vmul.f32 0.044715, %v3034_v23 }
 0xcb8   :  { %v3014_v55 = vpop.f32.mrf.mxu0  ;;  %v3088_v35 = vmul.f32 %v3080_v7, %v3008_v12 }
 0xcb9   :  { %v3050_v30 = vadd.f32 %v3042_v46, %v3013_v61  ;;  %v3015_v14 = vadd.f32 %v3014_v55, %v8551_v37 }
 0xcbb   :  { %v6924_v45 = vpop.eup %6923  ;;  %v3058_v20 = vmul.f32 0.7978846, %v3050_v30  ;;  %v3027_v34 = vmul.f32 %v3015_v14, %v3015_v14 }
 0xcbc   :  { %v3073_v10 = vadd.f32 1.0, %v6924_v45 }
 0xcbd   :  { %v3035_v49 = vmul.f32 %v3027_v34, %v3015_v14  ;;  %6925 = vtanh.f32 %v3058_v20 }
 0xcbe   :  { %v3081_v48 = vmul.f32 0.5, %v3073_v10 }
 0xcbf   :  { %v3043_v44 = vmul.f32 0.044715, %v3035_v49 }
 0xcc0   :  { %v3089_v33 = vmul.f32 %v3081_v48, %v3010_v41 }
 0xcc1   :  { %v3051_v56 = vadd.f32 %v3043_v44, %v3015_v14 }
 0xcc2   :  { %v3095_v36 = vpack.c.bf16 %v3089_v33, %v3088_v35 }
 0xcc3   :  { %v3059_v42 = vmul.f32 0.7978846, %v3051_v56  ;;  %v6926_v40 = vpop.eup %6925 }
 0xcc4   :  { %3159 = vmatmul.bf16.gmra.mxu1 %v3095_v36  ;;  %v3074_v4 = vadd.f32 1.0, %v6926_v40 }
 0xcc5   :  { %6927 = vtanh.f32 %v3059_v42 }
 0xcc6   :  { %v3082_v31 = vmul.f32 0.5, %v3074_v4 }
 0xcc8   :  { %v3090_v63 = vmul.f32 %v3082_v31, %v3013_v61 }
 0xccb   :  { %v6928_v0 = vpop.eup %6927 }
 0xccc   :  { %v3075_v59 = vadd.f32 1.0, %v6928_v0 }
 0xcce   :  { %v3083_v32 = vmul.f32 0.5, %v3075_v59 }
 0xcd0   :  { %v3091_v43 = vmul.f32 %v3083_v32, %v3015_v14 }
 0xcd2   :  { %v3096_v50 = vpack.c.bf16 %v3091_v43, %v3090_v63 }
 0xcd4   :  { %3164 = vmatmul.bf16.gmra.mxu1 %v3096_v50 }
 0xce6   :  { %v3155_v19 = vpop.f32.mrf.mxu1 }
 0xce7   :  { %v3175_v5 = vadd.f32 %v3155_v19, %v8373_v9 }
 0xce9   :  { %v8576_v24 = vadd.f32 %v8572_v58, %v3175_v5 }
 0xceb   :  { %v3017_v8 = vpop.f32.mrf.mxu0  ;;  %v3216_v16 = vsel %vm231_vm1, %v8576_v24, 0.0 }
 0xcec   :  { %v3018_v17 = vadd.f32 %v3017_v8, %v8551_v37  ;;  %3217 = vadd.xlane.f32.xlu1 %v3216_v16 }
 0xcee   :  { %v3028_v12 = vmul.f32 %v3018_v17, %v3018_v17  ;;  %v3157_v38 = vpop.f32.mrf.mxu1 }
 0xcef   :  { %v3176_v51 = vadd.f32 %v3157_v38, %v8379_v6 }
 0xcf0   :  { %v3036_v62 = vmul.f32 %v3028_v12, %v3018_v17 }
 0xcf1   :  { %v8583_v1 = vadd.f32 %v8572_v58, %v3176_v51 }
 0xcf2   :  { %v3044_v47 = vmul.f32 0.044715, %v3036_v62 }
 0xcf3   :  { %v3019_v9 = vpop.f32.mrf.mxu0  ;;  %v3219_v15 = vsel %vm231_vm1, %v8583_v1, 0.0 }
 0xcf4   :  { %v3052_v41 = vadd.f32 %v3044_v47, %v3018_v17  ;;  %v3020_v22 = vadd.f32 %v3019_v9, %v8551_v37  ;;  %3220 = vadd.xlane.f32.xlu2 %v3219_v15 }
 0xcf6   :  { %v3060_v52 = vmul.f32 0.7978846, %v3052_v41  ;;  %v3029_v2 = vmul.f32 %v3020_v22, %v3020_v22 }
 0xcf8   :  { %v3037_v39 = vmul.f32 %v3029_v2, %v3020_v22  ;;  %6929 = vtanh.f32 %v3060_v52 }
 0xcfa   :  { %v3045_v28 = vmul.f32 0.044715, %v3037_v39 }
 0xcfc   :  { %v3053_v29 = vadd.f32 %v3045_v28, %v3020_v22 }
 0xcfe   :  { %v3061_v6 = vmul.f32 0.7978846, %v3053_v29  ;;  %v6930_v61 = vpop.eup %6929 }
 0xcff   :  { %v3076_v53 = vadd.f32 1.0, %v6930_v61 }
 0xd00   :  { %6931 = vtanh.f32 %v3061_v6 }
 0xd01   :  { %v3084_v23 = vmul.f32 0.5, %v3076_v53 }
 0xd03   :  { %v3092_v55 = vmul.f32 %v3084_v23, %v3018_v17 }
 0xd06   :  { %v6932_v21 = vpop.eup %6931 }
 0xd07   :  { %v3077_v13 = vadd.f32 1.0, %v6932_v21  ;;  %v6433_v21 = vld [vmem:[%s9852_s5 + $0x30] sm:$0xf] }
 0xd09   :  { %v3085_v46 = vmul.f32 0.5, %v3077_v13  ;;  %v6588_v13 = vld [vmem:[%s9852_s5 + $0x34] sm:$0xf0] }
 0xd0b   :  { %v3093_v25 = vmul.f32 %v3085_v46, %v3020_v22  ;;  %v8672_v46 = vor.u32 %v6588_v13, %v6433_v21 }
 0xd0d   :  { %v3097_v30 = vpack.c.bf16 %v3093_v25, %v3092_v55  ;;  %3445 = vmatpush.bf16.msra.mxu2 %v8672_v46 }
 0xd0f   :  { %3169 = vmatmul.bf16.gmra.mxu1 %v3097_v30  ;;  %v6429_v30 = vld [vmem:[%s9852_s5 + $0x20] sm:$0xf] }
 0xd41   :  { %v3160_v37 = vpop.f32.mrf.mxu1 }
 0xd42   :  { %v3177_v14 = vadd.f32 %v3160_v37, %v8394_v60  ;;  %v6586_v37 = vld [vmem:[%s9852_s5 + $0x24] sm:$0xf0] }
 0xd44   :  { %v8590_v45 = vadd.f32 %v8572_v58, %v3177_v14 }
 0xd46   :  { %9889 = vst [vmem:[#allocation9_spill] sm:$0xff] %v8590_v45  ;;  %v3222_v20 = vsel %vm231_vm1, %v8590_v45, 0.0 }
 0xd47   :  { %3223 = vadd.xlane.f32.xlu0 %v3222_v20  ;;  %v8682_v20 = vor.u32 %v6586_v37, %v6429_v30 }
 0xd49   :  { %v3162_v34 = vpop.f32.mrf.mxu1  ;;  %3446 = vmatpush.bf16.msra.mxu2 %v8682_v20 }
 0xd4a   :  { %v3178_v10 = vadd.f32 %v3162_v34, %v8400_v18 }
 0xd4c   :  { %v8596_v7 = vadd.f32 %v8572_v58, %v3178_v10 }
 0xd4e   :  { %9890 = vst [vmem:[#allocation3_spill] sm:$0xff] %v8596_v7  ;;  %v3225_v49 = vsel %vm231_vm1, %v8596_v7, 0.0 }
 0xd4f   :  { %3226 = vadd.xlane.f32.xlu1 %v3225_v49 }
 0xd51   :  { %v3165_v48 = vpop.f32.mrf.mxu1 }
 0xd52   :  { %v3179_v60 = vadd.f32 %v3165_v48, %v8406_v3 }
 0xd54   :  { %v8602_v44 = vadd.f32 %v8572_v58, %v3179_v60 }
 0xd56   :  { %9891 = vst [vmem:[#allocation4_spill] sm:$0xff] %v8602_v44  ;;  %v3228_v35 = vsel %vm231_vm1, %v8602_v44, 0.0 }
 0xd57   :  { %3229 = vadd.xlane.f32.xlu2 %v3228_v35 }
 0xd59   :  { %v3167_v33 = vpop.f32.mrf.mxu1 }
 0xd5a   :  { %v3180_v18 = vadd.f32 %v3167_v33, %v8413_v27 }
 0xd5c   :  { %v8608_v56 = vadd.f32 %v8572_v58, %v3180_v18 }
 0xd5e   :  { %9892 = vst [vmem:[#allocation5_spill] sm:$0xff] %v8608_v56  ;;  %v3231_v36 = vsel %vm231_vm1, %v8608_v56, 0.0 }
 0xd5f   :  { %v3218_v42 = vpop.xlane.xlu1 %3217  ;;  %3232 = vadd.xlane.f32.xlu0 %v3231_v36 }
 0xd60   :  { %v3240_v3 = vmul.f32 %v3218_v42, %v9885_v11 }
 0xd62   :  { %v8614_v40 = vsub.f32 %v8576_v24, %v3240_v3 }
 0xd64   :  { %v3256_v4 = vmul.f32 %v8614_v40, %v8614_v40 }
 0xd66   :  { %v3264_v0 = vsel %vm231_vm1, %v3256_v4, 0.0 }
 0xd67   :  { %3265 = vadd.xlane.f32.xlu1 %v3264_v0  ;;  %v3221_v27 = vpop.xlane.xlu2 %3220  ;;  %v8689_v0 = vld [vmem:[%s9853_s7 + $0x8] sm:$0xff] }
 0xd68   :  { %v3241_v59 = vmul.f32 %v3221_v27, %v9885_v11 }
 0xd6a   :  { %v8621_v31 = vsub.f32 %v8583_v1, %v3241_v59 }
 0xd6c   :  { %v3257_v32 = vmul.f32 %v8621_v31, %v8621_v31 }
 0xd6e   :  { %v3267_v63 = vsel %vm231_vm1, %v3257_v32, 0.0 }
 0xd6f   :  { %3268 = vadd.xlane.f32.xlu2 %v3267_v63  ;;  %v8692_v63 = vperm.slane %v8689_v0, 0 }
 0xd8c   :  { %v3170_v43 = vpop.f32.mrf.mxu1 }
 0xd8d   :  { %v3181_v50 = vadd.f32 %v3170_v43, %v8432_v57 }
 0xd8f   :  { %v8628_v19 = vadd.f32 %v8572_v58, %v3181_v50 }
 0xd91   :  { %9893 = vst [vmem:[#allocation6_spill] sm:$0xff] %v8628_v19  ;;  %v3234_v5 = vsel %vm231_vm1, %v8628_v19, 0.0 }
 0xd92   :  { %3235 = vadd.xlane.f32.xlu0 %v3234_v5 }
 0xd94   :  { %v3172_v8 = vpop.f32.mrf.mxu1 }
 0xd95   :  { %v3182_v16 = vadd.f32 %v3172_v8, %v8438_v54  ;;  %v8696_v8 = vperm.slane %v8689_v0, 1 }
 0xd97   :  { %v8634_v17 = vadd.f32 %v8572_v58, %v3182_v16 }
 0xd99   :  { %9894 = vst [vmem:[#allocation7_spill] sm:$0xff] %v8634_v17  ;;  %v3237_v12 = vsel %vm231_vm1, %v8634_v17, 0.0 }
 0xd9a   :  { %3238 = vadd.xlane.f32.xlu1 %v3237_v12 }
 0xdba   :  { %v3224_v38 = vpop.xlane.xlu0 %3223 }
 0xdbb   :  { %v3242_v57 = vmul.f32 %v3224_v38, %v9885_v11 }
 0xdbd   :  { %v8640_v51 = vsub.f32 %v8590_v45, %v3242_v57 }
 0xdbf   :  { %v3258_v62 = vmul.f32 %v8640_v51, %v8640_v51 }
 0xdc1   :  { %v3270_v47 = vsel %vm231_vm1, %v3258_v62, 0.0 }
 0xdc2   :  { %v3227_v9 = vpop.xlane.xlu1 %3226  ;;  %3271 = vadd.xlane.f32.xlu2 %v3270_v47 }
 0xdc3   :  { %v3243_v54 = vmul.f32 %v3227_v9, %v9885_v11 }
 0xdc5   :  { %v8647_v58 = vsub.f32 %v8596_v7, %v3243_v54 }
 0xdc7   :  { %v3259_v15 = vmul.f32 %v8647_v58, %v8647_v58 }
 0xdc9   :  { %v3273_v41 = vsel %vm231_vm1, %v3259_v15, 0.0 }
 0xdca   :  { %3274 = vadd.xlane.f32.xlu0 %v3273_v41  ;;  %v3230_v22 = vpop.xlane.xlu2 %3229 }
 0xdcb   :  { %v3244_v52 = vmul.f32 %v3230_v22, %v9885_v11 }
 0xdcd   :  { %v8654_v2 = vsub.f32 %v8602_v44, %v3244_v52 }
 0xdcf   :  { %v3260_v39 = vmul.f32 %v8654_v2, %v8654_v2 }
 0xdd1   :  { %v3276_v28 = vsel %vm231_vm1, %v3260_v39, 0.0 }
 0xdd2   :  { %v3233_v29 = vpop.xlane.xlu0 %3232  ;;  %3277 = vadd.xlane.f32.xlu1 %v3276_v28 }
 0xdd3   :  { %v3245_v6 = vmul.f32 %v3233_v29, %v9885_v11 }
 0xdd5   :  { %v8661_v61 = vsub.f32 %v8608_v56, %v3245_v6 }
 0xdd7   :  { %v3261_v53 = vmul.f32 %v8661_v61, %v8661_v61 }
 0xdd9   :  { %v3279_v23 = vsel %vm231_vm1, %v3261_v53, 0.0 }
 0xdda   :  { %v3266_v55 = vpop.xlane.xlu1 %3265  ;;  %3280 = vadd.xlane.f32.xlu2 %v3279_v23 }
 0xddb   :  { %v3288_v25 = vmul.f32 %v3266_v55, %v9885_v11 }
 0xddd   :  { %v3296_v14 = vadd.f32 1e-05, %v3288_v25 }
 0xddf   :  { %6933 = vrsqrt.f32 %v3296_v14  ;;  %vm3310_vm14 = vweird.f32 %v3296_v14 }
 0xde2   :  { %v3269_v34 = vpop.xlane.xlu2 %3268 }
 0xde3   :  { %v3289_v10 = vmul.f32 %v3269_v34, %v9885_v11 }
 0xde5   :  { %v6934_v49 = vpop.eup %6933  ;;  %v3297_v48 = vadd.f32 1e-05, %v3289_v10 }
 0xde6   :  { %v3305_v60 = vmul.f32 %v6934_v49, %v3296_v14  ;;  %vm3311_vm13 = vweird.f32 %v6934_v49 }
 0xde7   :  { %6935 = vrsqrt.f32 %v3297_v48  ;;  %vm3312_vm15 = vmor %vm3310_vm14, %vm3311_vm13  ;;  %vm3320_vm2 = vweird.f32 %v3297_v48 }
 0xde8   :  { %v3306_v35 = vmul.f32 %v6934_v49, %v3305_v60 }
 0xdea   :  { %v3307_v33 = vmul.f32 0.5, %v3306_v35 }
 0xdec   :  { %v3308_v18 = vsub.f32 1.5, %v3307_v33 }
 0xded   :  { %v6936_v36 = vpop.eup %6935 }
 0xdee   :  { %v3309_v42 = vmul.f32 %v6934_v49, %v3308_v18  ;;  %v3315_v3 = vmul.f32 %v6936_v36, %v3297_v48  ;;  %vm3321_vm0 = vweird.f32 %v6936_v36 }
 0xdef   :  { %vm3322_vm3 = vmor %vm3320_vm2, %vm3321_vm0 }
 0xdf0   :  { %v3316_v4 = vmul.f32 %v6936_v36, %v3315_v3  ;;  %v3313_v27 = vsel %vm3312_vm15, %v6934_v49, %v3309_v42 }
 0xdf1   :  { %v3384_v43 = vmul.f32 %v3313_v27, %v8614_v40 }
 0xdf2   :  { %v3317_v59 = vmul.f32 0.5, %v3316_v4 }
 0xdf3   :  { %v3393_v16 = vmul.f32 %v8692_v63, %v3384_v43 }
 0xdf4   :  { %v3318_v32 = vsub.f32 1.5, %v3317_v59 }
 0xdf5   :  { %v3402_v57 = vadd.f32 %v8696_v8, %v3393_v16 }
 0xdf6   :  { %v3319_v50 = vmul.f32 %v6936_v36, %v3318_v32 }
 0xdf8   :  { %v3323_v5 = vsel %vm3322_vm3, %v6936_v36, %v3319_v50 }
 0xdf9   :  { %v3385_v12 = vmul.f32 %v3323_v5, %v8621_v31 }
 0xdfb   :  { %v3394_v38 = vmul.f32 %v8692_v63, %v3385_v12 }
 0xdfd   :  { %v3403_v62 = vadd.f32 %v8696_v8, %v3394_v38 }
 0xdff   :  { %v3410_v47 = vpack.c.bf16 %v3403_v62, %v3402_v57 }
 0xe01   :  { %6435 = vmatmul.msk.bf16.vlgmr.msra.gmra.mxu2 %vm231_vm1, %v3410_v47 }
 0xe05   :  { %v3236_v40 = vpop.xlane.xlu0 %3235 }
 0xe06   :  { %v3246_v9 = vmul.f32 %v3236_v40, %v9885_v11 }
 0xe08   :  { %v8706_v54 = vsub.f32 %v8628_v19, %v3246_v9 }
 0xe0a   :  { %v3262_v15 = vmul.f32 %v8706_v54, %v8706_v54 }
 0xe0c   :  { %v3282_v31 = vsel %vm231_vm1, %v3262_v15, 0.0 }
 0xe0d   :  { %3283 = vadd.xlane.f32.xlu0 %v3282_v31  ;;  %v3239_v41 = vpop.xlane.xlu1 %3238 }
 0xe0e   :  { %v3247_v22 = vmul.f32 %v3239_v41, %v9885_v11 }
 0xe10   :  { %v8713_v52 = vsub.f32 %v8634_v17, %v3247_v22 }
 0xe12   :  { %v3263_v39 = vmul.f32 %v8713_v52, %v8713_v52 }
 0xe14   :  { %v3285_v28 = vsel %vm231_vm1, %v3263_v39, 0.0 }
 0xe15   :  { %3286 = vadd.xlane.f32.xlu1 %v3285_v28 }
 0xe35   :  { %v3272_v29 = vpop.xlane.xlu2 %3271 }
 0xe36   :  { %v3290_v6 = vmul.f32 %v3272_v29, %v9885_v11 }
 0xe38   :  { %v3298_v53 = vadd.f32 1e-05, %v3290_v6 }
 0xe3a   :  { %6937 = vrsqrt.f32 %v3298_v53  ;;  %vm3330_vm5 = vweird.f32 %v3298_v53 }
 0xe3d   :  { %v3275_v21 = vpop.xlane.xlu0 %3274 }
 0xe3e   :  { %v3291_v13 = vmul.f32 %v3275_v21, %v9885_v11 }
 0xe40   :  { %v6938_v23 = vpop.eup %6937  ;;  %v3299_v55 = vadd.f32 1e-05, %v3291_v13 }
 0xe41   :  { %v3325_v25 = vmul.f32 %v6938_v23, %v3298_v53  ;;  %vm3331_vm4 = vweird.f32 %v6938_v23 }
 0xe42   :  { %6939 = vrsqrt.f32 %v3299_v55  ;;  %vm3332_vm8 = vmor %vm3330_vm5, %vm3331_vm4  ;;  %vm3340_vm12 = vweird.f32 %v3299_v55 }
 0xe43   :  { %v3326_v30 = vmul.f32 %v6938_v23, %v3325_v25 }
 0xe45   :  { %v3327_v37 = vmul.f32 0.5, %v3326_v30  ;;  %v3278_v14 = vpop.xlane.xlu1 %3277 }
 0xe46   :  { %v3292_v34 = vmul.f32 %v3278_v14, %v9885_v11  ;;  %v8738_v14 = vperm.slane %v8689_v0, 2 }
 0xe47   :  { %v3328_v10 = vsub.f32 1.5, %v3327_v37 }
 0xe48   :  { %v6940_v49 = vpop.eup %6939  ;;  %v3300_v48 = vadd.f32 1e-05, %v3292_v34 }
 0xe49   :  { %v3329_v60 = vmul.f32 %v6938_v23, %v3328_v10  ;;  %v3335_v35 = vmul.f32 %v6940_v49, %v3299_v55  ;;  %vm3341_vm11 = vweird.f32 %v6940_v49 }
 0xe4a   :  { %6941 = vrsqrt.f32 %v3300_v48  ;;  %vm3342_vm13 = vmor %vm3340_vm12, %vm3341_vm11  ;;  %vm3350_vm15 = vweird.f32 %v3300_v48 }
 0xe4b   :  { %v3336_v33 = vmul.f32 %v6940_v49, %v3335_v35  ;;  %v3333_v18 = vsel %vm3332_vm8, %v6938_v23, %v3329_v60 }
 0xe4c   :  { %v3386_v59 = vmul.f32 %v3333_v18, %v8640_v51 }
 0xe4d   :  { %v3337_v36 = vmul.f32 0.5, %v3336_v33  ;;  %v3281_v42 = vpop.xlane.xlu2 %3280 }
 0xe4e   :  { %v3293_v3 = vmul.f32 %v3281_v42, %v9885_v11  ;;  %v3395_v38 = vmul.f32 %v8692_v63, %v3386_v59 }
 0xe4f   :  { %v3338_v4 = vsub.f32 1.5, %v3337_v36 }
 0xe50   :  { %v6942_v27 = vpop.eup %6941  ;;  %v3301_v32 = vadd.f32 1e-05, %v3293_v3  ;;  %v3404_v9 = vadd.f32 %v8696_v8, %v3395_v38 }
 0xe51   :  { %v3339_v43 = vmul.f32 %v6940_v49, %v3338_v4  ;;  %v3345_v50 = vmul.f32 %v6942_v27, %v3300_v48  ;;  %vm3351_vm14 = vweird.f32 %v6942_v27 }
 0xe52   :  { %6943 = vrsqrt.f32 %v3301_v32  ;;  %vm3352_vm0 = vmor %vm3350_vm15, %vm3351_vm14  ;;  %vm3360_vm3 = vweird.f32 %v3301_v32 }
 0xe53   :  { %v3343_v5 = vsel %vm3342_vm13, %v6940_v49, %v3339_v43  ;;  %v3346_v16 = vmul.f32 %v6942_v27, %v3345_v50 }
 0xe54   :  { %v3387_v12 = vmul.f32 %v3343_v5, %v8647_v58 }
 0xe55   :  { %v3347_v57 = vmul.f32 0.5, %v3346_v16 }
 0xe56   :  { %v3396_v62 = vmul.f32 %v8692_v63, %v3387_v12 }
 0xe57   :  { %v3348_v47 = vsub.f32 1.5, %v3347_v57 }
 0xe58   :  { %v6944_v40 = vpop.eup %6943  ;;  %v3405_v51 = vadd.f32 %v8696_v8, %v3396_v62 }
 0xe59   :  { %v3349_v15 = vmul.f32 %v6942_v27, %v3348_v47  ;;  %v3355_v31 = vmul.f32 %v6944_v40, %v3301_v32  ;;  %vm3361_vm2 = vweird.f32 %v6944_v40 }
 0xe5a   :  { %v3411_v41 = vpack.c.bf16 %v3405_v51, %v3404_v9  ;;  %vm3362_vm4 = vmor %vm3360_vm3, %vm3361_vm2 }
 0xe5b   :  { %v3356_v22 = vmul.f32 %v6944_v40, %v3355_v31  ;;  %v3353_v58 = vsel %vm3352_vm0, %v6942_v27, %v3349_v15 }
 0xe5c   :  { %6436 = vmatmul.msk.bf16.gmra.mxu2 %vm231_vm1, %v3411_v41  ;;  %v3388_v29 = vmul.f32 %v3353_v58, %v8654_v2 }
 0xe5d   :  { %v3357_v39 = vmul.f32 0.5, %v3356_v22 }
 0xe5e   :  { %v3397_v13 = vmul.f32 %v8692_v63, %v3388_v29 }
 0xe5f   :  { %v3358_v28 = vsub.f32 1.5, %v3357_v39 }
 0xe60   :  { %v3406_v55 = vadd.f32 %v8696_v8, %v3397_v13 }
 0xe61   :  { %v3359_v6 = vmul.f32 %v6944_v40, %v3358_v28 }
 0xe63   :  { %v3363_v53 = vsel %vm3362_vm4, %v6944_v40, %v3359_v6 }
 0xe64   :  { %v3389_v21 = vmul.f32 %v3363_v53, %v8661_v61 }
 0xe66   :  { %v3398_v23 = vmul.f32 %v8692_v63, %v3389_v21 }
 0xe68   :  { %v3407_v25 = vadd.f32 %v8696_v8, %v3398_v23 }
 0xe6a   :  { %v3412_v30 = vpack.c.bf16 %v3407_v25, %v3406_v55 }
 0xe6c   :  { %6437 = vmatmul.msk.bf16.gmra.mxu2 %vm231_vm1, %v3412_v30 }
 0xe80   :  { %v3284_v37 = vpop.xlane.xlu0 %3283 }
 0xe81   :  { %v3294_v2 = vmul.f32 %v3284_v37, %v9885_v11 }
 0xe83   :  { %v3302_v34 = vadd.f32 1e-05, %v3294_v2 }
 0xe84   :  { %v3448_v10 = vpop.f32.mrf.mxu2 }
 0xe85   :  { %6945 = vrsqrt.f32 %v3302_v34  ;;  %v3449_v61 = vadd.f32 %v3448_v10, %v8738_v14  ;;  %vm3370_vm8 = vweird.f32 %v3302_v34 }
 0xe87   :  { %v3468_v49 = vpack.c.bf16 %v3449_v61, %v3449_v61 }
 0xe88   :  { %v3287_v48 = vpop.xlane.xlu1 %3286 }
 0xe89   :  { %v3477_v60 = vunpack.c.l.b16 %v3468_v49  ;;  %v3295_v35 = vmul.f32 %v3287_v48, %v9885_v11 }
 0xe8b   :  { %v6946_v33 = vpop.eup %6945  ;;  %v8742_v18 = vpack.c.b16 %v3477_v60, %v3477_v60  ;;  %v3303_v36 = vadd.f32 1e-05, %v3295_v35 }
 0xe8c   :  { %v3365_v42 = vmul.f32 %v6946_v33, %v3302_v34  ;;  %vm3371_vm5 = vweird.f32 %v6946_v33  ;;  %v3450_v31 = vpop.f32.mrf.mxu2 }
 0xe8d   :  { %6947 = vrsqrt.f32 %v3303_v36  ;;  %3479 = vrot.lane.b32.xlu2 %v8742_v18, %s7115_s27  ;;  %vm3372_vm11 = vmor %vm3370_vm8, %vm3371_vm5  ;;  %vm3380_vm13 = vweird.f32 %v3303_v36  ;;  %v3451_v22 = vadd.f32 %v3450_v31, %v8738_v14 }
 0xe8e   :  { %v3366_v0 = vmul.f32 %v6946_v33, %v3365_v42 }
 0xe90   :  { %v3367_v3 = vmul.f32 0.5, %v3366_v0 }
 0xe92   :  { %v3368_v4 = vsub.f32 1.5, %v3367_v3 }
 0xe93   :  { %v6948_v27 = vpop.eup %6947 }
 0xe94   :  { %v3369_v59 = vmul.f32 %v6946_v33, %v3368_v4  ;;  %v3375_v32 = vmul.f32 %v6948_v27, %v3303_v36  ;;  %vm3381_vm12 = vweird.f32 %v6948_v27 }
 0xe95   :  { %vm3382_vm14 = vmor %vm3380_vm13, %vm3381_vm12 }
 0xe96   :  { %v3376_v43 = vmul.f32 %v6948_v27, %v3375_v32  ;;  %v3373_v50 = vsel %vm3372_vm11, %v6946_v33, %v3369_v59 }
 0xe97   :  { %v3390_v12 = vmul.f32 %v3373_v50, %v8706_v54 }
 0xe98   :  { %v3377_v5 = vmul.f32 0.5, %v3376_v43 }
 0xe99   :  { %v3399_v47 = vmul.f32 %v8692_v63, %v3390_v12 }
 0xe9a   :  { %v3378_v16 = vsub.f32 1.5, %v3377_v5 }
 0xe9b   :  { %v3408_v9 = vadd.f32 %v8696_v8, %v3399_v47 }
 0xe9c   :  { %v3379_v38 = vmul.f32 %v6948_v27, %v3378_v16 }
 0xe9e   :  { %v3383_v57 = vsel %vm3382_vm14, %v6948_v27, %v3379_v38 }
 0xe9f   :  { %v3391_v62 = vmul.f32 %v3383_v57, %v8713_v52  ;;  %v8755_v52 = vpack.c.bf16 %v3451_v22, %v3451_v22 }
 0xea1   :  { %v3400_v40 = vmul.f32 %v8692_v63, %v3391_v62  ;;  %v3501_v53 = vunpack.c.l.b16 %v8755_v52 }
 0xea3   :  { %v3409_v51 = vadd.f32 %v8696_v8, %v3400_v40  ;;  %v8764_v23 = vpack.c.b16 %v3501_v53, %v3501_v53 }
 0xea5   :  { %v3413_v15 = vpack.c.bf16 %v3409_v51, %v3408_v9 }
 0xea7   :  { %6438 = vmatmul.msk.bf16.gmra.mxu2 %vm231_vm1, %v3413_v15 }
 0xedf   :  { %v3453_v41 = vpop.f32.mrf.mxu2 }
 0xee0   :  { %v3454_v54 = vadd.f32 %v3453_v41, %v8738_v14 }
 0xee2   :  { %v3470_v58 = vpack.c.bf16 %v3454_v54, %v3454_v54 }
 0xee4   :  { %v3525_v39 = vunpack.c.l.b16 %v3470_v58 }
 0xee6   :  { %v8757_v28 = vpack.c.b16 %v3525_v39, %v3525_v39 }
 0xee7   :  { %v3455_v63 = vpop.f32.mrf.mxu2  ;;  %v3480_v29 = vpop.permute.xlu2 %3479 }
 0xee8   :  { %v3456_v6 = vadd.f32 %v3455_v63, %v8738_v14  ;;  %v3485_v8 = vsel %vm723_vm6, %v3480_v29, 0  ;;  %3527 = vrot.lane.b32.xlu0 %v8757_v28, %s7115_s27 }
 0xee9   :  { %3494 = vmatpush.bf16.xpose.msra.mxu3 %v3485_v8 }
 0xeea   :  { %v3471_v21 = vpack.c.bf16 %v3456_v6, %v3456_v6 }
 0xeec   :  { %v3549_v13 = vunpack.c.l.b16 %v3471_v21 }
 0xeee   :  { %v8766_v55 = vpack.c.b16 %v3549_v13, %v3549_v13 }
 0xeef   :  { %v3458_v25 = vpop.f32.mrf.mxu2 }
 0xef0   :  { %v3459_v30 = vadd.f32 %v3458_v25, %v8738_v14  ;;  %3551 = vrot.lane.b32.xlu1 %v8766_v55, %s7115_s27  ;;  %3503 = vrot.lane.b32.xlu0 %v8764_v23, %s7115_s27 }
 0xef1   :  { %6439 = vmatmul.msk.bf16.vlgmr.msra.gmra.mxu3 %vm723_vm6, %v3468_v49 }
 0xef2   :  { %v3472_v37 = vpack.c.bf16 %v3459_v30, %v3459_v30 }
 0xef4   :  { %v3573_v2 = vunpack.c.l.b16 %v3472_v37 }
 0xef6   :  { %v8774_v34 = vpack.c.b16 %v3573_v2, %v3573_v2 }
 0xef7   :  { %v3460_v10 = vpop.f32.mrf.mxu2 }
 0xef8   :  { %3575 = vrot.lane.b32.xlu0 %v8774_v34, %s7115_s27  ;;  %v3461_v48 = vadd.f32 %v3460_v10, %v8738_v14 }
 0xefa   :  { %v3473_v33 = vpack.c.bf16 %v3461_v48, %v3461_v48 }
 0xefc   :  { %v3597_v3 = vunpack.c.l.b16 %v3473_v33 }
 0xefe   :  { %v8796_v59 = vpack.c.b16 %v3597_v3, %v3597_v3 }
 0xf00   :  { %3806 = vrot.lane.b32.xlu0 %v8757_v28, %s7116_s28 }
 0xf08   :  { %3764 = vrot.lane.b32.xlu0 %v8742_v18, %s7116_s28 }
 0xf10   :  { %3996 = vrot.lane.b32.xlu0 %v8757_v28, %s7118_s30 }
 0xf18   :  { %3994 = vrot.lane.b32.xlu0 %v8757_v28, %s7117_s29 }
 0xf2a   :  { %v3463_v61 = vpop.f32.mrf.mxu2 }
 0xf2b   :  { %v3464_v49 = vadd.f32 %v3463_v61, %v8738_v14 }
 0xf2d   :  { %v3474_v60 = vpack.c.bf16 %v3464_v49, %v3464_v49 }
 0xf2f   :  { %v3621_v35 = vunpack.c.l.b16 %v3474_v60 }
 0xf31   :  { %v8788_v36 = vpack.c.b16 %v3621_v35, %v3621_v35 }
 0xf32   :  { %v3465_v42 = vpop.f32.mrf.mxu2 }
 0xf33   :  { %v3466_v0 = vadd.f32 %v3465_v42, %v8738_v14  ;;  %3623 = vrot.lane.b32.xlu2 %v8788_v36, %s7115_s27 }
 0xf35   :  { %v8793_v4 = vpack.c.bf16 %v3466_v0, %v3466_v0 }
 0xf37   :  { %v3645_v27 = vunpack.c.l.b16 %v8793_v4 }
 0xf39   :  { %v8798_v32 = vpack.c.b16 %v3645_v27, %v3645_v27 }
 0xf3b   :  { %3647 = vrot.lane.b32.xlu1 %v8798_v32, %s7115_s27  ;;  %3599 = vrot.lane.b32.xlu2 %v8796_v59, %s7115_s27 }
 0xf43   :  { %3785 = vrot.lane.b32.xlu1 %v8764_v23, %s7116_s28  ;;  %3827 = vrot.lane.b32.xlu2 %v8766_v55, %s7116_s28 }
 0xf4b   :  { %3890 = vrot.lane.b32.xlu1 %v8788_v36, %s7116_s28  ;;  %3869 = vrot.lane.b32.xlu2 %v8796_v59, %s7116_s28 }
 0xf53   :  { %4017 = vrot.lane.b32.xlu2 %v8766_v55, %s7117_s29  ;;  %3848 = vrot.lane.b32.xlu1 %v8774_v34, %s7116_s28 }
 0xf5a   :  { %v3528_v14 = vpop.permute.xlu0 %3527 }
 0xf5b   :  { %v3533_v43 = vsel %vm723_vm6, %v3528_v14, 0  ;;  %4019 = vrot.lane.b32.xlu1 %v8766_v55, %s7118_s30 }
 0xf5c   :  { %3542 = vmatpush.bf16.xpose.msrb.mxu2 %v3533_v43 }
 0xf62   :  { %v3552_v50 = vpop.permute.xlu1 %3551  ;;  %v3504_v5 = vpop.permute.xlu0 %3503 }
 0xf63   :  { %v3557_v16 = vsel %vm723_vm6, %v3552_v50, 0  ;;  %v3509_v12 = vsel %vm723_vm6, %v3504_v5, 0  ;;  %6441 = vmatmul.msk.bf16.vlgmr.msrb.gmra.mxu2 %vm723_vm6, %v3470_v58  ;;  %3950 = vrot.lane.b32.xlu1 %v8742_v18, %s7118_s30 }
 0xf64   :  { %3518 = vmatpush.bf16.xpose.msra.mxu0 %v3509_v12  ;;  %3566 = vmatpush.bf16.xpose.msrb.mxu3 %v3557_v16 }
 0xf6a   :  { %v3576_v38 = vpop.permute.xlu0 %3575 }
 0xf6b   :  { %v3581_v57 = vsel %vm723_vm6, %v3576_v38, 0  ;;  %6440 = vmatmul.msk.bf16.vlgmr.msra.gmra.mxu0 %vm723_vm6, %v8755_v52  ;;  %3973 = vrot.lane.b32.xlu1 %v8764_v23, %s7118_s30 }
 0xf6c   :  { %6442 = vmatmul.msk.bf16.vlgmr.msrb.gmra.mxu3 %vm723_vm6, %v3471_v21  ;;  %3590 = vmatpush.bf16.xpose.msrb.mxu0 %v3581_v57 }
 0xf72   :  { %v3807_v62 = vpop.permute.xlu0 %3806 }
 0xf73   :  { %3948 = vrot.lane.b32.xlu1 %v8742_v18, %s7117_s29  ;;  %v3812_v58 = vsel %vm1012_vm7, %v3807_v62, 0 }
 0xf74   :  { %v3496_v47 = vpop.f32.mrf.mxu3 }
 0xf75   :  { %v3668_v40 = vmul.f32 0.35355338, %v3496_v47 }
 0xf77   :  { %v3676_v9 = vadd.f32 %v3668_v40, %v7615_v26 }
 0xf79   :  { %v3684_v31 = vsel %vm723_vm6, %v3676_v9, -inf }
 0xf7a   :  { %v3765_v51 = vpop.permute.xlu0 %3764 }
 0xf7b   :  { %v3770_v15 = vsel %vm1012_vm7, %v3765_v51, 0  ;;  %3911 = vrot.lane.b32.xlu1 %v8798_v32, %s7116_s28  ;;  %6443 = vmatmul.msk.bf16.vlgmr.msrb.gmra.mxu0 %vm723_vm6, %v3472_v37 }
 0xf7c   :  { %v3498_v41 = vpop.f32.mrf.mxu3  ;;  %3779 = vmatpush.bf16.msra.mxu0 %v3770_v15  ;;  %3685 = vmax.xlane.f32.xlu2 %v3684_v31 }
 0xf8d   :  { %v3624_v54 = vpop.permute.xlu2 %3623 }
 0xf8e   :  { %v3629_v22 = vsel %vm723_vm6, %v3624_v54, 0 }
 0xf8f   :  { %3638 = vmatpush.bf16.xpose.msra.mxu2 %v3629_v22 }
 0xf94   :  { %4088 = vrot.lane.b32.xlu2 %v8788_v36, %s7118_s30 }
 0xf95   :  { %v3600_v39 = vpop.permute.xlu2 %3599 }
 0xf96   :  { %v3605_v52 = vsel %vm723_vm6, %v3600_v39, 0  ;;  %6445 = vmatmul.msk.bf16.vlgmr.msra.gmra.mxu2 %vm723_vm6, %v3474_v60 }
 0xf97   :  { %3821 = vmatpush.bf16.msrb.mxu2 %v3812_v58  ;;  %3614 = vmatpush.bf16.xpose.msrb.mxu1 %v3605_v52 }
 0xf9d   :  { %v3828_v63 = vpop.permute.xlu2 %3827 }
 0xf9e   :  { %6444 = vmatmul.msk.bf16.vlgmr.msrb.gmra.mxu1 %vm723_vm6, %v3473_v33  ;;  %v3833_v8 = vsel %vm1012_vm7, %v3828_v63, 0 }
 0xfa5   :  { %v3870_v53 = vpop.permute.xlu2 %3869 }
 0xfa6   :  { %v3875_v25 = vsel %vm1012_vm7, %v3870_v53, 0 }
 0xfad   :  { %v3648_v29 = vpop.permute.xlu1 %3647  ;;  %v8859_v33 = vpop.permute.xlu2 %4017 }
 0xfae   :  { %v3653_v6 = vsel %vm723_vm6, %v3648_v29, 0 }
 0xfaf   :  { %3662 = vmatpush.bf16.xpose.msra.mxu3 %v3653_v6 }
 0xfb5   :  { %v3786_v21 = vpop.permute.xlu1 %3785 }
 0xfb6   :  { %v3791_v13 = vsel %vm1012_vm7, %v3786_v21, 0  ;;  %6446 = vmatmul.msk.bf16.vlgmr.msra.gmra.mxu3 %vm723_vm6, %v8793_v4 }
 0xfb7   :  { %3842 = vmatpush.bf16.msrb.mxu3 %v3833_v8  ;;  %3800 = vmatpush.bf16.msra.mxu1 %v3791_v13 }
 0xfbb   :  { %3884 = vmatpush.bf16.msrb.mxu1 %v3875_v25 }
 0xfbd   :  { %v3891_v30 = vpop.permute.xlu1 %3890 }
 0xfbe   :  { %v3896_v37 = vsel %vm1012_vm7, %v3891_v30, 0 }
 0xfbf   :  { %3905 = vmatpush.bf16.msra.mxu2 %v3896_v37 }
 0xfc5   :  { %v3849_v2 = vpop.permute.xlu1 %3848 }
 0xfc6   :  { %v3854_v10 = vsel %vm1012_vm7, %v3849_v2, 0 }
 0xfc7   :  { %3863 = vmatpush.bf16.msrb.mxu0 %v3854_v10 }
 0xfcd   :  { %v8853_v61 = vpop.permute.xlu1 %4019 }
 0xfd5   :  { %v3951_v49 = vpop.permute.xlu1 %3950 }
 0xfd6   :  { %v3956_v39 = vsel %vm723_vm6, %v3951_v49, 0 }
 0xfdd   :  { %v8855_v48 = vpop.permute.xlu1 %3973 }
 0xfe5   :  { %v8857_v60 = vpop.permute.xlu1 %3948 }
 0xfe6   :  { %v3544_v35 = vpop.f32.mrf.mxu2 }
 0xfe7   :  { %v3670_v4 = vmul.f32 0.35355338, %v3544_v35 }
 0xfe8   :  { %v3520_v42 = vpop.f32.mrf.mxu0 }
 0xfe9   :  { %v3669_v0 = vmul.f32 0.35355338, %v3520_v42  ;;  %v8868_v62 = vadd.f32 %v3670_v4, %v7615_v26  ;;  %v3997_v4 = vpop.permute.xlu0 %3996 }
 0xfeb   :  { %v8862_v3 = vadd.f32 %v3669_v0, %v7615_v26  ;;  %v3690_v15 = vsel %vm723_vm6, %v8868_v62, -inf }
 0xfed   :  { %v3912_v27 = vpop.permute.xlu1 %3911  ;;  %v3687_v14 = vsel %vm723_vm6, %v8862_v3, -inf }
 0xfee   :  { %v3917_v43 = vsel %vm1012_vm7, %v3912_v27, 0  ;;  %v3546_v50 = vpop.f32.mrf.mxu2  ;;  %3688 = vmax.xlane.f32.xlu1 %v3687_v14 }
 0xfef   :  { %v3568_v5 = vpop.f32.mrf.mxu3  ;;  %3926 = vmatpush.bf16.msra.mxu3 %v3917_v43  ;;  %v3686_v16 = vpop.xlane.xlu2 %3685 }
 0xff0   :  { %v3671_v12 = vmul.f32 0.35355338, %v3568_v5  ;;  %v3708_v38 = vsub.f32 %v3676_v9, %v3686_v16  ;;  %v3522_v57 = vpop.f32.mrf.mxu0 }
 0xff1   :  { %v8927_v27 = vpop.permute.xlu0 %3994 }
 0xff2   :  { %v8871_v47 = vadd.f32 %v3671_v12, %v7615_v26  ;;  %v3716_v40 = vmul.f32 1.442695, %v3708_v38 }
 0xff4   :  { %6949 = vpow2.f32 %v3716_v40  ;;  %v3693_v51 = vsel %vm723_vm6, %v8871_v47, -inf }
 0xff5   :  { %3694 = vmax.xlane.f32.xlu0 %v3693_v51 }
 0xff6   :  { %3691 = vmax.xlane.f32.xlu1 %v3690_v15 }
 0xff7   :  { %v3570_v31 = vpop.f32.mrf.mxu3  ;;  %v4089_v16 = vpop.permute.xlu2 %4088 }
 0xff8   :  { %v3592_v41 = vpop.f32.mrf.mxu0  ;;  %v3979_v31 = vsel %vm723_vm6, %v8855_v48, 0 }
 0xff9   :  { %v3672_v9 = vmul.f32 0.35355338, %v3592_v41 }
 0xffa   :  { %v8877_v54 = vpop.eup %6949 }
 0xffb   :  { %v3756_v22 = vpack.c.bf16 %v8877_v54, %v8877_v54  ;;  %v8882_v58 = vadd.f32 %v3672_v9, %v7615_v26 }
 0xffd   :  { %6447 = vmatmul.msk.bf16.vlgmr.msra.gmra.mxu0 %vm723_vm6, %v3756_v22  ;;  %v3696_v52 = vsel %vm723_vm6, %v8882_v58, -inf }
 0xffe   :  { %3965 = vmatpush.bf16.xpose.msra.mxu0 %v3956_v39  ;;  %3697 = vmax.xlane.f32.xlu2 %v3696_v52  ;;  %v4025_v52 = vsel %vm723_vm6, %v8853_v61, 0 }
0x1000   :  { %v3594_v63 = vpop.f32.mrf.mxu0 }
0x1009   :  { %3971 = vrot.lane.b32.xlu0 %v8764_v23, %s7117_s29 }
0x1016   :  { %4065 = vrot.lane.b32.xlu2 %v8796_v59, %s7118_s30 }
0x1019   :  { %v3640_v29 = vpop.f32.mrf.mxu2 }
0x101a   :  { %v3674_v6 = vmul.f32 0.35355338, %v3640_v29 }
0x101b   :  { %v3616_v8 = vpop.f32.mrf.mxu1 }
0x101c   :  { %v8893_v53 = vadd.f32 %v3674_v6, %v7615_v26  ;;  %v3673_v30 = vmul.f32 0.35355338, %v3616_v8 }
0x101e   :  { %4040 = vrot.lane.b32.xlu2 %v8774_v34, %s7117_s29  ;;  %v3702_v21 = vsel %vm723_vm6, %v8893_v53, -inf  ;;  %v8902_v37 = vadd.f32 %v3673_v30, %v7615_v26 }
0x101f   :  { %3703 = vmax.xlane.f32.xlu1 %v3702_v21 }
0x1020   :  { %v3699_v2 = vsel %vm723_vm6, %v8902_v37, -inf }
0x1021   :  { %v3642_v13 = vpop.f32.mrf.mxu2 }
0x1023   :  { %v3618_v25 = vpop.f32.mrf.mxu1 }
0x1026   :  { %4228 = vrot.lane.b32.xlu2 %v8742_v18, %s7120_s9 }
0x102e   :  { %4375 = vrot.lane.b32.xlu2 %v8798_v32, %s7120_s9 }
0x1033   :  { %3700 = vmax.xlane.f32.xlu0 %v3699_v2 }
0x1036   :  { %4460 = vrot.lane.b32.xlu2 %v8757_v28, %s7121_s10 }
0x1039   :  { %v3664_v10 = vpop.f32.mrf.mxu3 }
0x103a   :  { %v3675_v49 = vmul.f32 0.35355338, %v3664_v10  ;;  %v4094_v10 = vsel %vm723_vm6, %v4089_v16, 0 }
0x103c   :  { %v8911_v35 = vadd.f32 %v3675_v49, %v7615_v26 }
0x103e   :  { %4437 = vrot.lane.b32.xlu2 %v8764_v23, %s7121_s10  ;;  %v3705_v42 = vsel %vm723_vm6, %v8911_v35, -inf }
0x103f   :  { %3706 = vmax.xlane.f32.xlu1 %v3705_v42 }
0x1041   :  { %v3666_v0 = vpop.f32.mrf.mxu3 }
0x1047   :  { %4042 = vrot.lane.b32.xlu0 %v8774_v34, %s7118_s30 }
0x104f   :  { %4109 = vrot.lane.b32.xlu0 %v8798_v32, %s7117_s29 }
0x1057   :  { %4270 = vrot.lane.b32.xlu0 %v8757_v28, %s7120_s9 }
0x1058   :  { %4111 = vrot.lane.b32.xlu1 %v8798_v32, %s7118_s30 }
0x105f   :  { %4249 = vrot.lane.b32.xlu0 %v8764_v23, %s7120_s9 }
0x1060   :  { %4086 = vrot.lane.b32.xlu1 %v8788_v36, %s7117_s29 }
0x1061   :  { %v3689_v14 = vpop.xlane.xlu1 %3688 }
0x1062   :  { %v3709_v43 = vsub.f32 %v8862_v3, %v3689_v14 }
0x1064   :  { %v3718_v50 = vmul.f32 1.442695, %v3709_v43 }
0x1066   :  { %6951 = vpow2.f32 %v3718_v50 }
0x1067   :  { %4312 = vrot.lane.b32.xlu0 %v8774_v34, %s7120_s9 }
0x1068   :  { %v3695_v5 = vpop.xlane.xlu0 %3694  ;;  %4063 = vrot.lane.b32.xlu1 %v8796_v59, %s7117_s29 }
0x1069   :  { %v3711_v12 = vsub.f32 %v8871_v47, %v3695_v5  ;;  %v3692_v38 = vpop.xlane.xlu1 %3691 }
0x106a   :  { %v3710_v57 = vsub.f32 %v8868_v62, %v3692_v38 }
0x106b   :  { %v3722_v40 = vmul.f32 1.442695, %v3711_v12 }
0x106c   :  { %v8938_v51 = vpop.eup %6951  ;;  %v3720_v15 = vmul.f32 1.442695, %v3710_v57 }
0x106d   :  { %v3757_v3 = vpack.c.bf16 %v8938_v51, %v8938_v51  ;;  %6953 = vpow2.f32 %v3722_v40 }
0x106e   :  { %6955 = vpow2.f32 %v3720_v15 }
0x106f   :  { %4483 = vrot.lane.b32.xlu0 %v8766_v55, %s7121_s10  ;;  %6448 = vmatmul.msk.bf16.vlgmr.msra.gmra.mxu1 %vm723_vm6, %v3757_v3 }
0x1070   :  { %3988 = vmatpush.bf16.xpose.msra.mxu1 %v3979_v31  ;;  %4291 = vrot.lane.b32.xlu1 %v8766_v55, %s7120_s9 }
0x1071   :  { %v3698_v62 = vpop.xlane.xlu2 %3697 }
0x1072   :  { %v3712_v47 = vsub.f32 %v8882_v58, %v3698_v62  ;;  %v4002_v58 = vsel %vm723_vm6, %v3997_v4, 0 }
0x1073   :  { %v8950_v41 = vpop.eup %6953 }
0x1074   :  { %v8952_v9 = vpop.eup %6955  ;;  %v3759_v22 = vpack.c.bf16 %v8950_v41, %v8950_v41  ;;  %v3724_v48 = vmul.f32 1.442695, %v3712_v47 }
0x1075   :  { %v3758_v39 = vpack.c.bf16 %v8952_v9, %v8952_v9 }
0x1076   :  { %6957 = vpow2.f32 %v3724_v48  ;;  %6450 = vmatmul.msk.bf16.vlgmr.msrb.gmra.mxu3 %vm723_vm6, %v3759_v22 }
0x1077   :  { %4034 = vmatpush.bf16.xpose.msrb.mxu3 %v4025_v52  ;;  %4458 = vrot.lane.b32.xlu0 %v8757_v28, %s7122_s11 }
0x1078   :  { %6449 = vmatmul.msk.bf16.vlgmr.msrb.gmra.mxu2 %vm723_vm6, %v3758_v39  ;;  %4354 = vrot.lane.b32.xlu1 %v8788_v36, %s7120_s9 }
0x1079   :  { %4011 = vmatpush.bf16.xpose.msrb.mxu2 %v4002_v58 }
0x107a   :  { %v8967_v63 = vpop.f32.mrf.mxu0 }
0x107b   :  { %v3972_v30 = vpop.permute.xlu0 %3971 }
0x107c   :  { %v8969_v29 = vpop.eup %6957 }
0x107d   :  { %v3760_v61 = vpack.c.bf16 %v8969_v29, %v8969_v29 }
0x107f   :  { %6451 = vmatmul.msk.bf16.vlgmr.msrb.gmra.mxu0 %vm723_vm6, %v3760_v61 }
0x1080   :  { %4333 = vrot.lane.b32.xlu1 %v8796_v59, %s7120_s9 }
0x1082   :  { %v3783_v6 = vpop.f32.mrf.mxu0 }
0x1088   :  { %4414 = vrot.lane.b32.xlu1 %v8742_v18, %s7121_s10 }
0x108f   :  { %6455 = vmatmul.msk.bf16.vlgmr.msra.gmra.mxu0 %vm723_vm6, %v8857_v60  ;;  %v4066_v60 = vpop.permute.xlu2 %4065 }
0x1090   :  { %4481 = vrot.lane.b32.xlu1 %v8766_v55, %s7122_s11  ;;  %v4071_v5 = vsel %vm723_vm6, %v4066_v60, 0 }
0x1092   :  { %v3704_v8 = vpop.xlane.xlu1 %3703 }
0x1093   :  { %v3714_v21 = vsub.f32 %v8893_v53, %v3704_v8 }
0x1095   :  { %v3728_v13 = vmul.f32 1.442695, %v3714_v21 }
0x1097   :  { %6959 = vpow2.f32 %v3728_v13  ;;  %v4041_v53 = vpop.permute.xlu2 %4040 }
0x109d   :  { %v8983_v25 = vpop.eup %6959 }
0x109e   :  { %v3762_v2 = vpack.c.bf16 %v8983_v25, %v8983_v25 }
0x10a0   :  { %6453 = vmatmul.msk.bf16.vlgmr.msra.gmra.mxu2 %vm723_vm6, %v3762_v2 }
0x10a1   :  { %4103 = vmatpush.bf16.xpose.msra.mxu2 %v4094_v10 }
0x10a6   :  { %v3701_v49 = vpop.xlane.xlu0 %3700 }
0x10a7   :  { %v3713_v42 = vsub.f32 %v8902_v37, %v3701_v49  ;;  %v4229_v37 = vpop.permute.xlu2 %4228 }
0x10a9   :  { %v3726_v0 = vmul.f32 1.442695, %v3713_v42 }
0x10ab   :  { %6961 = vpow2.f32 %v3726_v0 }
0x10af   :  { %v4376_v61 = vpop.permute.xlu2 %4375 }
0x10b0   :  { %6457 = vmatmul.msk.bf16.vlgmr.msrb.gmra.mxu2 %vm723_vm6, %v8927_v27  ;;  %v4234_v27 = vsel %vm1012_vm7, %v4229_v37, 0  ;;  %v4381_v8 = vsel %vm1012_vm7, %v4376_v61, 0 }
0x10b1   :  { %v8992_v4 = vpop.eup %6961 }
0x10b2   :  { %v3761_v14 = vpack.c.bf16 %v8992_v4, %v8992_v4  ;;  %v3707_v43 = vpop.xlane.xlu1 %3706 }
0x10b3   :  { %v3715_v50 = vsub.f32 %v8911_v35, %v3707_v43 }
0x10b4   :  { %6452 = vmatmul.msk.bf16.vlgmr.msrb.gmra.mxu1 %vm723_vm6, %v3761_v14 }
0x10b5   :  { %v3730_v16 = vmul.f32 1.442695, %v3715_v50  ;;  %4080 = vmatpush.bf16.xpose.msrb.mxu1 %v4071_v5 }
0x10b7   :  { %6963 = vpow2.f32 %v3730_v16 }
0x10b9   :  { %v4043_v12 = vpop.permute.xlu0 %4042 }
0x10ba   :  { %v4048_v38 = vsel %vm723_vm6, %v4043_v12, 0 }
0x10bb   :  { %4057 = vmatpush.bf16.xpose.msrb.mxu0 %v4048_v38 }
0x10bd   :  { %v9001_v57 = vpop.eup %6963 }
0x10be   :  { %v3763_v35 = vpack.c.bf16 %v9001_v57, %v9001_v57 }
0x10c0   :  { %6454 = vmatmul.msk.bf16.vlgmr.msra.gmra.mxu3 %vm723_vm6, %v3763_v35 }
0x10c1   :  { %v4110_v40 = vpop.permute.xlu0 %4109 }
0x10c2   :  { %6459 = vmatmul.msk.bf16.vlgmr.msrb.gmra.mxu0 %vm723_vm6, %v4041_v53 }
0x10c3   :  { %4243 = vmatpush.bf16.msra.mxu0 %v4234_v27 }
0x10c4   :  { %6456 = vmatmul.msk.bf16.vlgmr.msra.gmra.mxu1 %vm723_vm6, %v3972_v30 }
0x10c9   :  { %v4271_v15 = vpop.permute.xlu0 %4270 }
0x10ca   :  { %v4276_v3 = vsel %vm1012_vm7, %v4271_v15, 0  ;;  %v4112_v31 = vpop.permute.xlu1 %4111 }
0x10cb   :  { %v4117_v62 = vsel %vm723_vm6, %v4112_v31, 0  ;;  %4285 = vmatpush.bf16.msrb.mxu2 %v4276_v3 }
0x10cc   :  { %4126 = vmatpush.bf16.xpose.msra.mxu3 %v4117_v62 }
0x10d0   :  { %6458 = vmatmul.msk.bf16.vlgmr.msrb.gmra.mxu3 %vm723_vm6, %v8859_v33 }
0x10d1   :  { %v4250_v47 = vpop.permute.xlu0 %4249 }
0x10d2   :  { %v4255_v22 = vsel %vm1012_vm7, %v4250_v47, 0  ;;  %v4087_v48 = vpop.permute.xlu1 %4086 }
0x10d3   :  { %4264 = vmatpush.bf16.msra.mxu1 %v4255_v22  ;;  %6461 = vmatmul.msk.bf16.vlgmr.msra.gmra.mxu2 %vm723_vm6, %v4087_v48 }
0x10d9   :  { %v4313_v39 = vpop.permute.xlu0 %4312 }
0x10da   :  { %v4318_v52 = vsel %vm1012_vm7, %v4313_v39, 0  ;;  %v4064_v58 = vpop.permute.xlu1 %4063 }
0x10db   :  { %4327 = vmatpush.bf16.msrb.mxu0 %v4318_v52  ;;  %6460 = vmatmul.msk.bf16.vlgmr.msrb.gmra.mxu1 %vm723_vm6, %v4064_v58 }
0x10e0   :  { %6462 = vmatmul.msk.bf16.vlgmr.msra.gmra.mxu3 %vm723_vm6, %v4110_v40 }
0x10e2   :  { %v4292_v6 = vpop.permute.xlu1 %4291 }
0x10e3   :  { %v4297_v33 = vsel %vm1012_vm7, %v4292_v6, 0 }
0x10e4   :  { %4306 = vmatpush.bf16.msrb.mxu3 %v4297_v33 }
0x10e8   :  { %4390 = vmatpush.bf16.msra.mxu3 %v4381_v8 }
0x10ea   :  { %v4355_v21 = vpop.permute.xlu1 %4354 }
0x10eb   :  { %v4360_v13 = vsel %vm1012_vm7, %v4355_v21, 0 }
0x10ec   :  { %v9020_v30 = vpop.f32.mrf.mxu1  ;;  %4369 = vmatpush.bf16.msra.mxu2 %v4360_v13 }
0x10f2   :  { %v4334_v2 = vpop.permute.xlu1 %4333 }
0x10f3   :  { %v4339_v10 = vsel %vm1012_vm7, %v4334_v2, 0 }
0x10f4   :  { %v3804_v60 = vpop.f32.mrf.mxu1  ;;  %4348 = vmatpush.bf16.msrb.mxu1 %v4339_v10 }
0x10f9   :  { %v9023_v49 = vpop.f32.mrf.mxu3 }
0x10fb   :  { %v9025_v42 = vpop.f32.mrf.mxu2 }
0x10fc   :  { %v9027_v0 = vpop.f32.mrf.mxu0 }
0x1101   :  { %v3846_v53 = vpop.f32.mrf.mxu3 }
0x1103   :  { %v3825_v14 = vpop.f32.mrf.mxu2 }
0x1104   :  { %v3867_v43 = vpop.f32.mrf.mxu0 }
0x110c   :  { %v3967_v50 = vpop.f32.mrf.mxu0 }
0x110d   :  { %v4132_v5 = vmul.f32 0.35355338, %v3967_v50 }
0x110f   :  { %v4140_v16 = vadd.f32 %v4132_v5, %v7615_v26 }
0x1111   :  { %v4148_v37 = vsel %vm723_vm6, %v4140_v16, -inf }
0x1112   :  { %4149 = vmax.xlane.f32.xlu1 %v4148_v37 }
0x1114   :  { %v3969_v12 = vpop.f32.mrf.mxu0 }
0x1123   :  { %v9031_v38 = vpop.f32.mrf.mxu2 }
0x112b   :  { %v3909_v27 = vpop.f32.mrf.mxu2  ;;  %4552 = vrot.lane.b32.xlu1 %v8788_v36, %s7121_s10 }
0x1131   :  { %v9035_v35 = vpop.f32.mrf.mxu1 }
0x1133   :  { %v4013_v40 = vpop.f32.mrf.mxu2 }
0x1134   :  { %v4134_v5 = vmul.f32 0.35355338, %v4013_v40 }
0x1139   :  { %v3888_v15 = vpop.f32.mrf.mxu1 }
0x113a   :  { %v9060_v15 = vadd.f32 %v4134_v5, %v7615_v26 }
0x113b   :  { %v4015_v3 = vpop.f32.mrf.mxu2 }
0x113f   :  { %v4059_v31 = vpop.f32.mrf.mxu0 }
0x1140   :  { %v4136_v39 = vmul.f32 0.35355338, %v4059_v31 }
0x1141   :  { %v3990_v62 = vpop.f32.mrf.mxu1 }
0x1142   :  { %v4133_v47 = vmul.f32 0.35355338, %v3990_v62  ;;  %v9045_v6 = vadd.f32 %v4136_v39, %v7615_v26  ;;  %v4154_v62 = vsel %vm723_vm6, %v9060_v15, -inf }
0x1143   :  { %v9037_v22 = vpop.f32.mrf.mxu3 }
0x1144   :  { %v9040_v48 = vadd.f32 %v4133_v47, %v7615_v26  ;;  %v4160_v8 = vsel %vm723_vm6, %v9045_v6, -inf }
0x1146   :  { %v4151_v52 = vsel %vm723_vm6, %v9040_v48, -inf }
0x1147   :  { %4152 = vmax.xlane.f32.xlu2 %v4151_v52  ;;  %v4061_v58 = vpop.f32.mrf.mxu0  ;;  %v4415_v52 = vpop.permute.xlu1 %4414 }
0x1149   :  { %v3992_v61 = vpop.f32.mrf.mxu1 }
0x114b   :  { %v3930_v33 = vpop.f32.mrf.mxu3 }
0x114f   :  { %4161 = vmax.xlane.f32.xlu2 %v4160_v8  ;;  %v9075_v58 = vpop.permute.xlu1 %4481 }
0x1153   :  { %v4036_v21 = vpop.f32.mrf.mxu3 }
0x1154   :  { %v4135_v13 = vmul.f32 0.35355338, %v4036_v21 }
0x1156   :  { %v9050_v2 = vadd.f32 %v4135_v13, %v7615_v26  ;;  %v4105_v10 = vpop.f32.mrf.mxu2 }
0x1158   :  { %v4082_v60 = vpop.f32.mrf.mxu1  ;;  %v4157_v53 = vsel %vm723_vm6, %v9050_v2, -inf }
0x1159   :  { %v4137_v14 = vmul.f32 0.35355338, %v4082_v60  ;;  %4158 = vmax.xlane.f32.xlu2 %v4157_v53  ;;  %v4138_v60 = vmul.f32 0.35355338, %v4105_v10 }
0x115b   :  { %v9055_v43 = vadd.f32 %v4137_v14, %v7615_v26  ;;  %v4038_v50 = vpop.f32.mrf.mxu3  ;;  %v9100_v53 = vadd.f32 %v4138_v60, %v7615_v26 }
0x115c   :  { %v4461_v50 = vpop.permute.xlu2 %4460 }
0x115d   :  { %v4163_v37 = vsel %vm723_vm6, %v9055_v43, -inf  ;;  %v4166_v14 = vsel %vm723_vm6, %v9100_v53, -inf }
0x115e   :  { %v4107_v12 = vpop.f32.mrf.mxu2  ;;  %4164 = vmax.xlane.f32.xlu0 %v4163_v37 }
0x1160   :  { %v4084_v27 = vpop.f32.mrf.mxu1 }
0x1161   :  { %v4484_v27 = vpop.permute.xlu0 %4483 }
0x1163   :  { %v4128_v3 = vpop.f32.mrf.mxu3 }
0x1164   :  { %v4139_v31 = vmul.f32 0.35355338, %v4128_v3  ;;  %v4438_v10 = vpop.permute.xlu2 %4437 }
0x1166   :  { %v9065_v47 = vadd.f32 %v4139_v31, %v7615_v26  ;;  %4155 = vmax.xlane.f32.xlu0 %v4154_v62 }
0x1168   :  { %v4169_v40 = vsel %vm723_vm6, %v9065_v47, -inf }
0x1169   :  { %4170 = vmax.xlane.f32.xlu1 %v4169_v40 }
0x116b   :  { %v4130_v39 = vpop.f32.mrf.mxu3 }
0x1171   :  { %4412 = vrot.lane.b32.xlu2 %v8742_v18, %s7122_s11 }
0x1179   :  { %4575 = vrot.lane.b32.xlu2 %v8798_v32, %s7121_s10 }
0x117a   :  { %4435 = vrot.lane.b32.xlu0 %v8764_v23, %s7122_s11 }
0x1181   :  { %4550 = vrot.lane.b32.xlu2 %v8788_v36, %s7122_s11 }
0x1182   :  { %4529 = vrot.lane.b32.xlu1 %v8796_v59, %s7121_s10 }
0x1185   :  { %v4150_v61 = vpop.xlane.xlu1 %4149 }
0x1186   :  { %v4172_v33 = vsub.f32 %v4140_v16, %v4150_v61  ;;  %v4420_v16 = vsel %vm723_vm6, %v4415_v52, 0  ;;  %v4443_v52 = vsel %vm723_vm6, %v4438_v10, 0 }
0x1188   :  { %v4180_v8 = vmul.f32 1.442695, %v4172_v33 }
0x1189   :  { %4527 = vrot.lane.b32.xlu2 %v8796_v59, %s7122_s11 }
0x118a   :  { %6965 = vpow2.f32 %v4180_v8  ;;  %4504 = vrot.lane.b32.xlu1 %v8774_v34, %s7122_s11 }
0x1190   :  { %v9085_v21 = vpop.eup %6965 }
0x1191   :  { %v4220_v13 = vpack.c.bf16 %v9085_v21, %v9085_v21  ;;  %4692 = vrot.lane.b32.xlu2 %v8742_v18, %s7123_s12 }
0x1192   :  { %4713 = vrot.lane.b32.xlu1 %v8764_v23, %s7123_s12 }
0x1193   :  { %6463 = vmatmul.msk.bf16.vlgmr.msra.gmra.mxu0 %vm723_vm6, %v4220_v13 }
0x1194   :  { %4429 = vmatpush.bf16.xpose.msra.mxu0 %v4420_v16 }
0x1199   :  { %4818 = vrot.lane.b32.xlu2 %v8788_v36, %s7123_s12 }
0x119a   :  { %4776 = vrot.lane.b32.xlu1 %v8774_v34, %s7123_s12 }
0x11a1   :  { %4901 = vrot.lane.b32.xlu2 %v8764_v23, %s7124_s13 }
0x11a2   :  { %4878 = vrot.lane.b32.xlu1 %v8742_v18, %s7124_s13 }
0x11a4   :  { %4167 = vmax.xlane.f32.xlu0 %v4166_v14  ;;  %v4553_v14 = vpop.permute.xlu1 %4552 }
0x11a9   :  { %4876 = vrot.lane.b32.xlu2 %v8742_v18, %s7125_s14 }
0x11aa   :  { %4947 = vrot.lane.b32.xlu1 %v8766_v55, %s7124_s13 }
0x11b8   :  { %4506 = vrot.lane.b32.xlu0 %v8774_v34, %s7121_s10 }
0x11ba   :  { %v4153_v5 = vpop.xlane.xlu2 %4152 }
0x11bb   :  { %v4173_v37 = vsub.f32 %v9040_v48, %v4153_v5  ;;  %v9126_v48 = vpop.permute.xlu0 %4458 }
0x11bd   :  { %v4182_v12 = vmul.f32 1.442695, %v4173_v37 }
0x11bf   :  { %6967 = vpow2.f32 %v4182_v12  ;;  %v4489_v12 = vsel %vm723_vm6, %v4484_v27, 0 }
0x11c0   :  { %4573 = vrot.lane.b32.xlu0 %v8798_v32, %s7122_s11 }
0x11c2   :  { %v4162_v3 = vpop.xlane.xlu2 %4161 }
0x11c3   :  { %v4176_v31 = vsub.f32 %v9045_v6, %v4162_v3 }
0x11c5   :  { %v9118_v62 = vpop.eup %6967  ;;  %v4188_v40 = vmul.f32 1.442695, %v4176_v31 }
0x11c6   :  { %v4221_v39 = vpack.c.bf16 %v9118_v62, %v9118_v62 }
0x11c7   :  { %6969 = vpow2.f32 %v4188_v40 }
0x11c8   :  { %6464 = vmatmul.msk.bf16.vlgmr.msra.gmra.mxu1 %vm723_vm6, %v4221_v39  ;;  %4734 = vrot.lane.b32.xlu0 %v8757_v28, %s7123_s12 }
0x11c9   :  { %4452 = vmatpush.bf16.xpose.msra.mxu1 %v4443_v52 }
0x11cc   :  { %v4159_v61 = vpop.xlane.xlu2 %4158 }
0x11cd   :  { %v9128_v33 = vpop.eup %6969  ;;  %v4175_v6 = vsub.f32 %v9050_v2, %v4159_v61 }
0x11ce   :  { %v4224_v8 = vpack.c.bf16 %v9128_v33, %v9128_v33 }
0x11cf   :  { %v4186_v13 = vmul.f32 1.442695, %v4175_v6 }
0x11d0   :  { %6467 = vmatmul.msk.bf16.vlgmr.msrb.gmra.mxu0 %vm723_vm6, %v4224_v8  ;;  %4755 = vrot.lane.b32.xlu0 %v8766_v55, %s7123_s12 }
0x11d1   :  { %6971 = vpow2.f32 %v4186_v13  ;;  %v4165_v16 = vpop.xlane.xlu0 %4164  ;;  %v4466_v13 = vsel %vm723_vm6, %v4461_v50, 0 }
0x11d2   :  { %v4177_v60 = vsub.f32 %v9055_v43, %v4165_v16 }
0x11d4   :  { %v4190_v10 = vmul.f32 1.442695, %v4177_v60  ;;  %v4413_v52 = vpop.permute.xlu2 %4412 }
0x11d6   :  { %6973 = vpow2.f32 %v4190_v10 }
0x11d7   :  { %v9137_v5 = vpop.eup %6971 }
0x11d8   :  { %v4223_v2 = vpack.c.bf16 %v9137_v5, %v9137_v5  ;;  %4797 = vrot.lane.b32.xlu0 %v8796_v59, %s7123_s12 }
0x11d9   :  { %v4156_v37 = vpop.xlane.xlu0 %4155 }
0x11da   :  { %v4174_v3 = vsub.f32 %v9060_v15, %v4156_v37  ;;  %6466 = vmatmul.msk.bf16.vlgmr.msrb.gmra.mxu3 %vm723_vm6, %v4223_v2 }
0x11db   :  { %4498 = vmatpush.bf16.xpose.msrb.mxu3 %v4489_v12 }
0x11dc   :  { %v9146_v43 = vpop.eup %6973  ;;  %v4184_v31 = vmul.f32 1.442695, %v4174_v3  ;;  %v4171_v40 = vpop.xlane.xlu1 %4170 }
0x11dd   :  { %v4225_v39 = vpack.c.bf16 %v9146_v43, %v9146_v43  ;;  %v4179_v61 = vsub.f32 %v9065_v47, %v4171_v40  ;;  %v4576_v47 = vpop.permute.xlu2 %4575 }
0x11de   :  { %6975 = vpow2.f32 %v4184_v31  ;;  %v4581_v60 = vsel %vm723_vm6, %v4576_v47, 0  ;;  %v4558_v47 = vsel %vm723_vm6, %v4553_v14, 0 }
0x11df   :  { %v4194_v6 = vmul.f32 1.442695, %v4179_v61  ;;  %6468 = vmatmul.msk.bf16.vlgmr.msrb.gmra.mxu1 %vm723_vm6, %v4225_v39 }
0x11e0   :  { %6471 = vmatmul.msk.bf16.vlgmr.msra.gmra.mxu0 %vm723_vm6, %v4413_v52  ;;  %4839 = vrot.lane.b32.xlu0 %v8798_v32, %s7123_s12 }
0x11e1   :  { %6977 = vpow2.f32 %v4194_v6 }
0x11e4   :  { %v9155_v15 = vpop.eup %6975 }
0x11e5   :  { %v4222_v27 = vpack.c.bf16 %v9155_v15, %v9155_v15  ;;  %v4551_v2 = vpop.permute.xlu2 %4550 }
0x11e7   :  { %v9159_v8 = vpop.eup %6977  ;;  %6465 = vmatmul.msk.bf16.vlgmr.msrb.gmra.mxu2 %vm723_vm6, %v4222_v27 }
0x11e8   :  { %v4227_v16 = vpack.c.bf16 %v9159_v8, %v9159_v8  ;;  %4475 = vmatpush.bf16.xpose.msrb.mxu2 %v4466_v13  ;;  %4924 = vrot.lane.b32.xlu0 %v8757_v28, %s7124_s13 }
0x11ea   :  { %6470 = vmatmul.msk.bf16.vlgmr.msra.gmra.mxu3 %vm723_vm6, %v4227_v16 }
0x11eb   :  { %4590 = vmatpush.bf16.xpose.msra.mxu3 %v4581_v60 }
0x11ec   :  { %v4436_v10 = vpop.permute.xlu0 %4435 }
0x11ed   :  { %v4528_v3 = vpop.permute.xlu2 %4527 }
0x11ef   :  { %6472 = vmatmul.msk.bf16.vlgmr.msra.gmra.mxu1 %vm723_vm6, %v4436_v10 }
0x11f4   :  { %v4530_v50 = vpop.permute.xlu1 %4529 }
0x11f5   :  { %v4535_v37 = vsel %vm723_vm6, %v4530_v50, 0  ;;  %v4693_v16 = vpop.permute.xlu2 %4692 }
0x11f6   :  { %4544 = vmatpush.bf16.xpose.msrb.mxu1 %v4535_v37  ;;  %v4698_v50 = vsel %vm1012_vm7, %v4693_v16, 0 }
0x11fa   :  { %6474 = vmatmul.msk.bf16.vlgmr.msrb.gmra.mxu3 %vm723_vm6, %v9075_v58 }
0x11fc   :  { %v4505_v12 = vpop.permute.xlu1 %4504 }
0x11ff   :  { %6476 = vmatmul.msk.bf16.vlgmr.msrb.gmra.mxu1 %vm723_vm6, %v4528_v3 }
0x1204   :  { %v4714_v31 = vpop.permute.xlu1 %4713 }
0x1205   :  { %v4719_v40 = vsel %vm1012_vm7, %v4714_v31, 0 }
0x1206   :  { %4728 = vmatpush.bf16.msra.mxu1 %v4719_v40  ;;  %v4819_v40 = vpop.permute.xlu2 %4818 }
0x1210   :  { %v9175_v39 = vpop.f32.mrf.mxu0 }
0x1217   :  { %v4168_v52 = vpop.xlane.xlu0 %4167 }
0x1218   :  { %v4178_v61 = vsub.f32 %v9100_v53, %v4168_v52  ;;  %v4247_v6 = vpop.f32.mrf.mxu0  ;;  %v4777_v53 = vpop.permute.xlu1 %4776 }
0x1219   :  { %v4782_v3 = vsel %vm1012_vm7, %v4777_v53, 0  ;;  %v4824_v6 = vsel %vm1012_vm7, %v4819_v40, 0 }
0x121a   :  { %v4192_v27 = vmul.f32 1.442695, %v4178_v61 }
0x121c   :  { %6979 = vpow2.f32 %v4192_v27 }
0x1222   :  { %v9178_v13 = vpop.eup %6979 }
0x1223   :  { %v4226_v58 = vpack.c.bf16 %v9178_v13, %v9178_v13 }
0x1225   :  { %6469 = vmatmul.msk.bf16.vlgmr.msra.gmra.mxu2 %vm723_vm6, %v4226_v58 }
0x1226   :  { %4567 = vmatpush.bf16.xpose.msra.mxu2 %v4558_v47 }
0x122a   :  { %v4507_v60 = vpop.permute.xlu0 %4506 }
0x122b   :  { %v4512_v10 = vsel %vm723_vm6, %v4507_v60, 0 }
0x122c   :  { %4521 = vmatpush.bf16.xpose.msrb.mxu0 %v4512_v10 }
0x1232   :  { %v4574_v37 = vpop.permute.xlu0 %4573 }
0x1233   :  { %6475 = vmatmul.msk.bf16.vlgmr.msrb.gmra.mxu0 %vm723_vm6, %v4505_v12  ;;  %6478 = vmatmul.msk.bf16.vlgmr.msra.gmra.mxu3 %vm723_vm6, %v4574_v37 }
0x1234   :  { %4707 = vmatpush.bf16.msra.mxu0 %v4698_v50 }
0x1235   :  { %6473 = vmatmul.msk.bf16.vlgmr.msrb.gmra.mxu2 %vm723_vm6, %v9126_v48 }
0x1238   :  { %4791 = vmatpush.bf16.msrb.mxu0 %v4782_v3 }
0x123a   :  { %v4735_v14 = vpop.permute.xlu0 %4734 }
0x123b   :  { %v4740_v31 = vsel %vm1012_vm7, %v4735_v14, 0 }
0x123c   :  { %4749 = vmatpush.bf16.msrb.mxu2 %v4740_v31 }
0x1242   :  { %v4756_v52 = vpop.permute.xlu0 %4755 }
0x1243   :  { %v4761_v61 = vsel %vm1012_vm7, %v4756_v52, 0 }
0x1244   :  { %4770 = vmatpush.bf16.msrb.mxu3 %v4761_v61 }
0x1245   :  { %v9194_v27 = vpop.f32.mrf.mxu1  ;;  %6477 = vmatmul.msk.bf16.vlgmr.msra.gmra.mxu2 %vm723_vm6, %v4551_v2 }
0x1246   :  { %4833 = vmatpush.bf16.msra.mxu2 %v4824_v6 }
0x124a   :  { %v4798_v12 = vpop.permute.xlu0 %4797 }
0x124b   :  { %v4803_v58 = vsel %vm1012_vm7, %v4798_v12, 0 }
0x124c   :  { %4812 = vmatpush.bf16.msrb.mxu1 %v4803_v58 }
0x124d   :  { %v4268_v48 = vpop.f32.mrf.mxu1  ;;  %v9198_v47 = vpop.f32.mrf.mxu0 }
0x1252   :  { %v4840_v16 = vpop.permute.xlu0 %4839 }
0x1253   :  { %v4845_v60 = vsel %vm1012_vm7, %v4840_v16, 0 }
0x1254   :  { %4854 = vmatpush.bf16.msra.mxu3 %v4845_v60 }
0x1255   :  { %v4331_v10 = vpop.f32.mrf.mxu0 }
0x125c   :  { %v9201_v50 = vpop.f32.mrf.mxu1 }
0x125d   :  { %v4431_v53 = vpop.f32.mrf.mxu0  ;;  %v9203_v37 = vpop.f32.mrf.mxu3 }
0x125e   :  { %v4596_v3 = vmul.f32 0.35355338, %v4431_v53 }
0x1260   :  { %v9206_v2 = vadd.f32 %v4596_v3, %v7615_v26 }
0x1262   :  { %v4612_v14 = vsel %vm723_vm6, %v9206_v2, -inf }
0x1263   :  { %4613 = vmax.xlane.f32.xlu0 %v4612_v14 }
0x1264   :  { %v4352_v31 = vpop.f32.mrf.mxu1 }
0x1265   :  { %v4433_v40 = vpop.f32.mrf.mxu0  ;;  %v4310_v52 = vpop.f32.mrf.mxu3 }
0x126a   :  { %v9210_v61 = vpop.f32.mrf.mxu2 }
0x126c   :  { %v4454_v6 = vpop.f32.mrf.mxu1 }
0x126d   :  { %v4597_v12 = vmul.f32 0.35355338, %v4454_v6  ;;  %v9212_v58 = vpop.f32.mrf.mxu3 }
0x126f   :  { %v9215_v48 = vadd.f32 %v4597_v12, %v7615_v26 }
0x1271   :  { %v4615_v16 = vsel %vm723_vm6, %v9215_v48, -inf }
0x1272   :  { %v4289_v60 = vpop.f32.mrf.mxu2  ;;  %4616 = vmax.xlane.f32.xlu1 %v4615_v16 }
0x1274   :  { %v4456_v10 = vpop.f32.mrf.mxu1 }
0x1275   :  { %v4394_v53 = vpop.f32.mrf.mxu3 }
0x127c   :  { %v4546_v3 = vpop.f32.mrf.mxu1 }
0x127d   :  { %v4601_v14 = vmul.f32 0.35355338, %v4546_v3  ;;  %v4500_v31 = vpop.f32.mrf.mxu3 }
0x127e   :  { %v4599_v40 = vmul.f32 0.35355338, %v4500_v31 }
0x127f   :  { %v9220_v52 = vadd.f32 %v4601_v14, %v7615_v26 }
0x1280   :  { %v9223_v6 = vadd.f32 %v4599_v40, %v7615_v26 }
0x1281   :  { %v4627_v12 = vsel %vm723_vm6, %v9220_v52, -inf }
0x1282   :  { %4628 = vmax.xlane.f32.xlu1 %v4627_v12  ;;  %v4621_v60 = vsel %vm723_vm6, %v9223_v6, -inf }
0x1283   :  { %4622 = vmax.xlane.f32.xlu0 %v4621_v60 }
0x1284   :  { %v4548_v16 = vpop.f32.mrf.mxu1 }
0x1285   :  { %v4502_v10 = vpop.f32.mrf.mxu3 }
0x129b   :  { %4922 = vrot.lane.b32.xlu1 %v8757_v28, %s7125_s14 }
0x12a3   :  { %4993 = vrot.lane.b32.xlu1 %v8796_v59, %s7124_s13 }
0x12a8   :  { %v9233_v53 = vpop.f32.mrf.mxu2 }
0x12ab   :  { %4968 = vrot.lane.b32.xlu1 %v8774_v34, %s7125_s14 }
0x12b0   :  { %v4373_v3 = vpop.f32.mrf.mxu2  ;;  %v4523_v14 = vpop.f32.mrf.mxu0 }
0x12b1   :  { %v4600_v31 = vmul.f32 0.35355338, %v4523_v14 }
0x12b3   :  { %v9238_v40 = vadd.f32 %v4600_v31, %v7615_v26  ;;  %5037 = vrot.lane.b32.xlu1 %v8798_v32, %s7125_s14 }
0x12b5   :  { %v4624_v12 = vsel %vm723_vm6, %v9238_v40, -inf }
0x12b6   :  { %4625 = vmax.xlane.f32.xlu2 %v4624_v12  ;;  %v4592_v60 = vpop.f32.mrf.mxu3 }
0x12b7   :  { %v4603_v3 = vmul.f32 0.35355338, %v4592_v60 }
0x12b8   :  { %v4477_v16 = vpop.f32.mrf.mxu2  ;;  %v4525_v10 = vpop.f32.mrf.mxu0 }
0x12b9   :  { %v4598_v17 = vmul.f32 0.35355338, %v4477_v16  ;;  %v9252_v56 = vadd.f32 %v4603_v3, %v7615_v26  ;;  %v4879_v3 = vpop.permute.xlu1 %4878 }
0x12bb   :  { %v9245_v19 = vadd.f32 %v4598_v17, %v7615_v26  ;;  %5177 = vrot.lane.b32.xlu1 %v8764_v23, %s7126_s15  ;;  %v4633_v17 = vsel %vm723_vm6, %v9252_v56, -inf }
0x12bd   :  { %v4618_v14 = vsel %vm723_vm6, %v9245_v19, -inf }
0x12be   :  { %4619 = vmax.xlane.f32.xlu2 %v4618_v14  ;;  %v4594_v31 = vpop.f32.mrf.mxu3  ;;  %v9263_v14 = vpop.permute.xlu0 %4924 }
0x12c0   :  { %v4479_v11 = vpop.f32.mrf.mxu2 }
0x12c1   :  { %v4948_v45 = vpop.permute.xlu1 %4947 }
0x12c3   :  { %5282 = vrot.lane.b32.xlu1 %v8788_v36, %s7126_s15 }
0x12c6   :  { %4634 = vmax.xlane.f32.xlu2 %v4633_v17 }
0x12c8   :  { %v4569_v12 = vpop.f32.mrf.mxu2 }
0x12c9   :  { %v4602_v16 = vmul.f32 0.35355338, %v4569_v12 }
0x12cb   :  { %v9259_v60 = vadd.f32 %v4602_v16, %v7615_v26  ;;  %v4884_v16 = vsel %vm723_vm6, %v4879_v3, 0 }
0x12cd   :  { %v4630_v10 = vsel %vm723_vm6, %v9259_v60, -inf }
0x12ce   :  { %4631 = vmax.xlane.f32.xlu0 %v4630_v10 }
0x12d0   :  { %v4571_v11 = vpop.f32.mrf.mxu2 }
0x12d6   :  { %v4614_v31 = vpop.xlane.xlu0 %4613 }
0x12d7   :  { %v4636_v44 = vsub.f32 %v9206_v2, %v4614_v31  ;;  %v4902_v2 = vpop.permute.xlu2 %4901 }
0x12d9   :  { %v4644_v7 = vmul.f32 1.442695, %v4636_v44  ;;  %v4202_v44 = vsel %vm723_vm6, %v9155_v15, 0.0 }
0x12db   :  { %6981 = vpow2.f32 %v4644_v7 }
0x12de   :  { %4945 = vrot.lane.b32.xlu2 %v8766_v55, %s7125_s14 }
0x12e1   :  { %v6982_v17 = vpop.eup %6981 }
0x12e2   :  { %v4684_v12 = vpack.c.bf16 %v6982_v17, %v6982_v17  ;;  %4899 = vrot.lane.b32.xlu0 %v8764_v23, %s7125_s14  ;;  %v4660_v31 = vsel %vm723_vm6, %v6982_v17, 0.0 }
0x12e4   :  { %6479 = vmatmul.msk.bf16.vlgmr.msra.gmra.mxu0 %vm723_vm6, %v4684_v12 }
0x12e5   :  { %4893 = vmatpush.bf16.xpose.msra.mxu0 %v4884_v16  ;;  %v4617_v10 = vpop.xlane.xlu1 %4616 }
0x12e6   :  { %v4637_v11 = vsub.f32 %v9215_v48, %v4617_v10  ;;  %5016 = vrot.lane.b32.xlu2 %v8788_v36, %s7124_s13  ;;  %v4907_v48 = vsel %vm723_vm6, %v4902_v2, 0 }
0x12e8   :  { %v4646_v7 = vmul.f32 1.442695, %v4637_v11 }
0x12ea   :  { %6983 = vpow2.f32 %v4646_v7  ;;  %4970 = vrot.lane.b32.xlu0 %v8774_v34, %s7124_s13 }
0x12ed   :  { %4203 = vadd.xlane.f32.xlu1 %v4202_v44 }
0x12ee   :  { %4991 = vrot.lane.b32.xlu2 %v8796_v59, %s7125_s14 }
0x12f0   :  { %v6984_v23 = vpop.eup %6983 }
0x12f1   :  { %v4685_v3 = vpack.c.bf16 %v6984_v23, %v6984_v23 }
0x12f2   :  { %5039 = vrot.lane.b32.xlu0 %v8798_v32, %s7124_s13 }
0x12f3   :  { %6480 = vmatmul.msk.bf16.vlgmr.msra.gmra.mxu1 %vm723_vm6, %v4685_v3 }
0x12f4   :  { %4916 = vmatpush.bf16.xpose.msra.mxu1 %v4907_v48  ;;  %v4196_v48 = vsel %vm723_vm6, %v9085_v21, 0.0 }
0x12f5   :  { %4661 = vadd.xlane.f32.xlu1 %v4660_v31  ;;  %v4629_v12 = vpop.xlane.xlu1 %4628 }
0x12f6   :  { %v4641_v15 = vsub.f32 %v9220_v52, %v4629_v12  ;;  %v4623_v16 = vpop.xlane.xlu0 %4622  ;;  %5198 = vrot.lane.b32.xlu2 %v8757_v28, %s7126_s15 }
0x12f7   :  { %v4639_v10 = vsub.f32 %v9223_v6, %v4623_v16  ;;  %v4953_v6 = vsel %vm723_vm6, %v4948_v45, 0 }
0x12f8   :  { %v4654_v11 = vmul.f32 1.442695, %v4641_v15  ;;  %v4663_v15 = vsel %vm723_vm6, %v6984_v23, 0.0 }
0x12f9   :  { %v4650_v7 = vmul.f32 1.442695, %v4639_v10 }
0x12fa   :  { %6985 = vpow2.f32 %v4654_v11  ;;  %5014 = vrot.lane.b32.xlu0 %v8788_v36, %s7125_s14 }
0x12fb   :  { %6987 = vpow2.f32 %v4650_v7 }
0x12fe   :  { %5240 = vrot.lane.b32.xlu2 %v8774_v34, %s7126_s15  ;;  %v4208_v34 = vsel %vm723_vm6, %v9128_v33, 0.0  ;;  %v4877_v33 = vpop.permute.xlu2 %4876 }
0x1300   :  { %v6986_v17 = vpop.eup %6985 }
0x1301   :  { %v6988_v44 = vpop.eup %6987  ;;  %v4689_v2 = vpack.c.bf16 %v6986_v17, %v6986_v17 }
0x1302   :  { %v4687_v52 = vpack.c.bf16 %v6988_v44, %v6988_v44  ;;  %5156 = vrot.lane.b32.xlu0 %v8742_v18, %s7126_s15  ;;  %v4669_v28 = vsel %vm723_vm6, %v6988_v44, 0.0  ;;  %v4675_v18 = vsel %vm723_vm6, %v6986_v17, 0.0 }
0x1303   :  { %4670 = vadd.xlane.f32.xlu1 %v4669_v28  ;;  %6484 = vmatmul.msk.bf16.vlgmr.msrb.gmra.mxu1 %vm723_vm6, %v4689_v2 }
0x1304   :  { %6482 = vmatmul.msk.bf16.vlgmr.msrb.gmra.mxu3 %vm723_vm6, %v4687_v52 }
0x1305   :  { %4962 = vmatpush.bf16.xpose.msrb.mxu3 %v4953_v6 }
0x130a   :  { %5219 = vrot.lane.b32.xlu0 %v8766_v55, %s7126_s15  ;;  %v3732_v55 = vsel %vm723_vm6, %v8877_v54, 0.0 }
0x130b   :  { %4209 = vadd.xlane.f32.xlu1 %v4208_v34 }
0x130d   :  { %v9304_v36 = vpop.permute.xlu1 %4922 }
0x1312   :  { %5261 = vrot.lane.b32.xlu0 %v8796_v59, %s7126_s15 }
0x1313   :  { %4676 = vadd.xlane.f32.xlu1 %v4675_v18 }
0x1315   :  { %v4994_v3 = vpop.permute.xlu1 %4993 }
0x1316   :  { %v4999_v45 = vsel %vm723_vm6, %v4994_v3, 0 }
0x1317   :  { %5008 = vmatpush.bf16.xpose.msrb.mxu1 %v4999_v45 }
0x131a   :  { %5303 = vrot.lane.b32.xlu0 %v8798_v32, %s7126_s15 }
0x131b   :  { %3733 = vadd.xlane.f32.xlu1 %v3732_v55 }
0x131d   :  { %v4969_v44 = vpop.permute.xlu1 %4968 }
0x1327   :  { %4197 = vadd.xlane.f32.xlu2 %v4196_v48 }
0x1329   :  { %v4626_v59 = vpop.xlane.xlu2 %4625 }
0x132a   :  { %v4640_v31 = vsub.f32 %v9238_v40, %v4626_v59 }
0x132c   :  { %v4652_v12 = vmul.f32 1.442695, %v4640_v31 }
0x132e   :  { %6989 = vpow2.f32 %v4652_v12 }
0x132f   :  { %4664 = vadd.xlane.f32.xlu2 %v4663_v15 }
0x1331   :  { %v4620_v16 = vpop.xlane.xlu2 %4619 }
0x1332   :  { %v4638_v32 = vsub.f32 %v9245_v19, %v4620_v16  ;;  %v4930_v19 = vsel %vm723_vm6, %v9263_v14, 0  ;;  %v5038_v14 = vpop.permute.xlu1 %5037 }
0x1334   :  { %v9319_v10 = vpop.eup %6989  ;;  %v4648_v54 = vmul.f32 1.442695, %v4638_v32 }
0x1335   :  { %v4688_v11 = vpack.c.bf16 %v9319_v10, %v9319_v10 }
0x1336   :  { %6991 = vpow2.f32 %v4648_v54 }
0x1337   :  { %6483 = vmatmul.msk.bf16.vlgmr.msrb.gmra.mxu0 %vm723_vm6, %v4688_v11 }
0x1339   :  { %v4635_v21 = vpop.xlane.xlu2 %4634 }
0x133a   :  { %v4643_v40 = vsub.f32 %v9252_v56, %v4635_v21  ;;  %v4199_v56 = vsel %vm723_vm6, %v9118_v62, 0.0  ;;  %v5178_v55 = vpop.permute.xlu1 %5177 }
0x133b   :  { %v5183_v31 = vsel %vm1012_vm7, %v5178_v55, 0 }
0x133c   :  { %v9325_v7 = vpop.eup %6991  ;;  %v4658_v17 = vmul.f32 1.442695, %v4643_v40 }
0x133d   :  { %v4686_v23 = vpack.c.bf16 %v9325_v7, %v9325_v7 }
0x133e   :  { %6993 = vpow2.f32 %v4658_v17 }
0x133f   :  { %6481 = vmatmul.msk.bf16.vlgmr.msrb.gmra.mxu2 %vm723_vm6, %v4686_v23 }
0x1340   :  { %4939 = vmatpush.bf16.xpose.msrb.mxu2 %v4930_v19 }
0x1341   :  { %v4632_v2 = vpop.xlane.xlu0 %4631  ;;  %v4946_v52 = vpop.permute.xlu2 %4945 }
0x1342   :  { %v4642_v28 = vsub.f32 %v9259_v60, %v4632_v2  ;;  %v5283_v54 = vpop.permute.xlu1 %5282 }
0x1343   :  { %v5288_v19 = vsel %vm1012_vm7, %v5283_v54, 0 }
0x1344   :  { %v9335_v6 = vpop.eup %6993  ;;  %v4656_v34 = vmul.f32 1.442695, %v4642_v28  ;;  %4200 = vadd.xlane.f32.xlu0 %v4199_v56 }
0x1345   :  { %v4691_v18 = vpack.c.bf16 %v9335_v6, %v9335_v6 }
0x1346   :  { %6995 = vpow2.f32 %v4656_v34 }
0x1347   :  { %6486 = vmatmul.msk.bf16.vlgmr.msra.gmra.mxu3 %vm723_vm6, %v4691_v18  ;;  %6487 = vmatmul.msk.bf16.vlgmr.msra.gmra.mxu0 %vm723_vm6, %v4877_v33 }
0x1349   :  { %v5017_v3 = vpop.permute.xlu2 %5016 }
0x134a   :  { %v5022_v62 = vsel %vm723_vm6, %v5017_v3, 0 }
0x134c   :  { %v9341_v45 = vpop.eup %6995 }
0x134d   :  { %v4690_v60 = vpack.c.bf16 %v9341_v45, %v9341_v45 }
0x134f   :  { %6485 = vmatmul.msk.bf16.vlgmr.msra.gmra.mxu2 %vm723_vm6, %v4690_v60 }
0x1350   :  { %5031 = vmatpush.bf16.xpose.msra.mxu2 %v5022_v62 }
0x1351   :  { %v4992_v48 = vpop.permute.xlu2 %4991 }
0x1354   :  { %v4900_v59 = vpop.permute.xlu0 %4899 }
0x1355   :  { %6488 = vmatmul.msk.bf16.vlgmr.msra.gmra.mxu1 %vm723_vm6, %v4900_v59 }
0x1356   :  { %5192 = vmatpush.bf16.msra.mxu1 %v5183_v31 }
0x1357   :  { %6490 = vmatmul.msk.bf16.vlgmr.msrb.gmra.mxu3 %vm723_vm6, %v4946_v52 }
0x1359   :  { %v5199_v33 = vpop.permute.xlu2 %5198 }
0x135a   :  { %v5204_v16 = vsel %vm1012_vm7, %v5199_v33, 0 }
0x135c   :  { %v4971_v12 = vpop.permute.xlu0 %4970 }
0x135d   :  { %v4976_v15 = vsel %vm723_vm6, %v4971_v12, 0 }
0x135e   :  { %4985 = vmatpush.bf16.xpose.msrb.mxu0 %v4976_v15 }
0x135f   :  { %6489 = vmatmul.msk.bf16.vlgmr.msrb.gmra.mxu2 %vm723_vm6, %v9304_v36 }
0x1360   :  { %5213 = vmatpush.bf16.msrb.mxu2 %v5204_v16  ;;  %v9357_v17 = vpop.xlane.xlu1 %4203 }
0x1361   :  { %v4709_v32 = vpop.f32.mrf.mxu0  ;;  %v5241_v2 = vpop.permute.xlu2 %5240 }
0x1364   :  { %v5040_v11 = vpop.permute.xlu0 %5039 }
0x1365   :  { %v5045_v21 = vsel %vm723_vm6, %v5040_v11, 0  ;;  %6491 = vmatmul.msk.bf16.vlgmr.msrb.gmra.mxu0 %vm723_vm6, %v4969_v44  ;;  %6492 = vmatmul.msk.bf16.vlgmr.msrb.gmra.mxu1 %vm723_vm6, %v4992_v48  ;;  %v5246_v44 = vsel %vm1012_vm7, %v5241_v2, 0 }
0x1366   :  { %5054 = vmatpush.bf16.xpose.msra.mxu3 %v5045_v21 }
0x1368   :  { %v4662_v56 = vpop.xlane.xlu1 %4661 }
0x1369   :  { %v4711_v40 = vpop.f32.mrf.mxu0 }
0x136c   :  { %v5015_v23 = vpop.permute.xlu0 %5014 }
0x136d   :  { %6494 = vmatmul.msk.bf16.vlgmr.msra.gmra.mxu3 %vm723_vm6, %v5038_v14 }
0x136f   :  { %6493 = vmatmul.msk.bf16.vlgmr.msra.gmra.mxu2 %vm723_vm6, %v5015_v23 }
0x1370   :  { %5297 = vmatpush.bf16.msra.mxu2 %v5288_v19  ;;  %v4730_v36 = vpop.f32.mrf.mxu1 }
0x1374   :  { %v5157_v52 = vpop.permute.xlu0 %5156 }
0x1375   :  { %v5162_v28 = vsel %vm1012_vm7, %v5157_v52, 0 }
0x1376   :  { %5171 = vmatpush.bf16.msra.mxu0 %v5162_v28  ;;  %v4671_v14 = vpop.xlane.xlu1 %4670 }
0x1377   :  { %6997 = vrcp.f32 %v4671_v14 }
0x1378   :  { %v4732_v34 = vpop.f32.mrf.mxu1  ;;  %6999 = vrcp.f32 %v4662_v56 }
0x137a   :  { %5255 = vmatpush.bf16.msrb.mxu0 %v5246_v44 }
0x137c   :  { %v5220_v18 = vpop.permute.xlu0 %5219 }
0x137d   :  { %v5225_v3 = vsel %vm1012_vm7, %v5220_v18, 0  ;;  %v6998_v48 = vpop.eup %6997 }
0x137e   :  { %5234 = vmatpush.bf16.msrb.mxu3 %v5225_v3  ;;  %v7000_v21 = vpop.eup %6999 }
0x137f   :  { %v9373_v23 = vmul.f32 %v7000_v21, %v4709_v32 }
0x1380   :  { %v9365_v60 = vpop.f32.mrf.mxu1 }
0x1384   :  { %v5262_v62 = vpop.permute.xlu0 %5261 }
0x1385   :  { %v5267_v55 = vsel %vm1012_vm7, %v5262_v62, 0  ;;  %v4666_v62 = vsel %vm723_vm6, %v9325_v7, 0.0 }
0x1386   :  { %5276 = vmatpush.bf16.msrb.mxu1 %v5267_v55 }
0x1387   :  { %v4772_v59 = vpop.f32.mrf.mxu3 }
0x1388   :  { %v9368_v31 = vmul.f32 %v6998_v48, %v4772_v59  ;;  %v4816_v33 = vpop.f32.mrf.mxu1 }
0x138c   :  { %v5304_v12 = vpop.permute.xlu0 %5303 }
0x138d   :  { %v5309_v15 = vsel %vm1012_vm7, %v5304_v12, 0 }
0x138e   :  { %5318 = vmatpush.bf16.msra.mxu3 %v5309_v15 }
0x138f   :  { %v4774_v16 = vpop.f32.mrf.mxu3 }
0x1390   :  { %v4672_v16 = vsel %vm723_vm6, %v9319_v10, 0.0 }
0x139a   :  { %v9371_v54 = vpop.xlane.xlu2 %4197 }
0x13a2   :  { %v4665_v11 = vpop.xlane.xlu2 %4664 }
0x13a3   :  { %7001 = vrcp.f32 %v4665_v11 }
0x13a9   :  { %v7002_v40 = vpop.eup %7001 }
0x13aa   :  { %v9375_v19 = vmul.f32 %v7002_v40, %v4730_v36  ;;  %v4205_v40 = vsel %vm723_vm6, %v9137_v5, 0.0 }
0x13ac   :  { %v6684_v2 = vpack.i.bf16 %v9375_v19, %v9373_v23 }
0x13b4   :  { %v9379_v52 = vpop.f32.mrf.mxu0 }
0x13bc   :  { %v4795_v28 = vpop.f32.mrf.mxu0 }
0x13c2   :  { %v9381_v44 = vpop.f32.mrf.mxu2 }
0x13c4   :  { %v4895_v34 = vpop.f32.mrf.mxu0 }
0x13c5   :  { %v5060_v18 = vmul.f32 0.35355338, %v4895_v34 }
0x13c7   :  { %v9384_v56 = vadd.f32 %v5060_v18, %v7615_v26 }
0x13c9   :  { %v5076_v3 = vsel %vm723_vm6, %v9384_v56, -inf }
0x13ca   :  { %5077 = vmax.xlane.f32.xlu2 %v5076_v3  ;;  %v4753_v32 = vpop.f32.mrf.mxu2  ;;  %v9388_v36 = vpop.f32.mrf.mxu3 }
0x13cc   :  { %v4897_v14 = vpop.f32.mrf.mxu0 }
0x13d2   :  { %v9392_v55 = vpop.f32.mrf.mxu2  ;;  %v4918_v48 = vpop.f32.mrf.mxu1  ;;  %4667 = vadd.xlane.f32.xlu2 %v4666_v62 }
0x13d3   :  { %v5061_v59 = vmul.f32 0.35355338, %v4918_v48  ;;  %v4858_v33 = vpop.f32.mrf.mxu3 }
0x13d5   :  { %v9395_v12 = vadd.f32 %v5061_v59, %v7615_v26  ;;  %v4211_v59 = vsel %vm723_vm6, %v9146_v43, 0.0  ;;  %v3735_v43 = vsel %vm723_vm6, %v8938_v51, 0.0 }
0x13d7   :  { %v5079_v15 = vsel %vm723_vm6, %v9395_v12, -inf }
0x13d8   :  { %5080 = vmax.xlane.f32.xlu0 %v5079_v15 }
0x13da   :  { %v4837_v11 = vpop.f32.mrf.mxu2  ;;  %v4920_v21 = vpop.f32.mrf.mxu1  ;;  %4673 = vadd.xlane.f32.xlu2 %v4672_v16 }
0x13db   :  { %v4964_v7 = vpop.f32.mrf.mxu3 }
0x13dc   :  { %v5063_v33 = vmul.f32 0.35355338, %v4964_v7 }
0x13e0   :  { %4206 = vadd.xlane.f32.xlu0 %v4205_v40 }
0x13e2   :  { %v4941_v28 = vpop.f32.mrf.mxu2  ;;  %v4987_v34 = vpop.f32.mrf.mxu0 }
0x13e3   :  { %v4966_v18 = vpop.f32.mrf.mxu3  ;;  %v5064_v3 = vmul.f32 0.35355338, %v4987_v34  ;;  %v5010_v32 = vpop.f32.mrf.mxu1  ;;  %v5062_v10 = vmul.f32 0.35355338, %v4941_v28  ;;  %v9419_v28 = vadd.f32 %v5063_v33, %v7615_v26  ;;  %v4678_v33 = vsel %vm723_vm6, %v9341_v45, 0.0 }
0x13e4   :  { %v5065_v14 = vmul.f32 0.35355338, %v5010_v32 }
0x13e5   :  { %v9404_v62 = vadd.f32 %v5064_v3, %v7615_v26  ;;  %v9416_v21 = vadd.f32 %v5062_v10, %v7615_v26  ;;  %v5085_v18 = vsel %vm723_vm6, %v9419_v28, -inf  ;;  %v4214_v10 = vsel %vm723_vm6, %v9178_v13, 0.0 }
0x13e6   :  { %v9407_v48 = vadd.f32 %v5065_v14, %v7615_v26  ;;  %v4217_v14 = vsel %vm723_vm6, %v9159_v8, 0.0  ;;  %v4681_v8 = vsel %vm723_vm6, %v9335_v6, 0.0 }
0x13e7   :  { %v5088_v5 = vsel %vm723_vm6, %v9404_v62, -inf  ;;  %v5082_v7 = vsel %vm723_vm6, %v9416_v21, -inf }
0x13e8   :  { %4212 = vadd.xlane.f32.xlu0 %v4211_v59  ;;  %5089 = vmax.xlane.f32.xlu1 %v5088_v5  ;;  %v5091_v15 = vsel %vm723_vm6, %v9407_v48, -inf }
0x13e9   :  { %5092 = vmax.xlane.f32.xlu2 %v5091_v15 }
0x13ea   :  { %v4943_v16 = vpop.f32.mrf.mxu2  ;;  %v4989_v11 = vpop.f32.mrf.mxu0 }
0x13eb   :  { %v5012_v40 = vpop.f32.mrf.mxu1  ;;  %v4201_v16 = vpop.xlane.xlu0 %4200 }
0x13ec   :  { %7003 = vrcp.f32 %v4201_v16 }
0x13ed   :  { %7005 = vrcp.f32 %v9371_v54 }
0x13f0   :  { %3736 = vadd.xlane.f32.xlu0 %v3735_v43  ;;  %5083 = vmax.xlane.f32.xlu1 %v5082_v7  ;;  %v5056_v34 = vpop.f32.mrf.mxu3 }
0x13f1   :  { %5086 = vmax.xlane.f32.xlu2 %v5085_v18  ;;  %v5067_v6 = vmul.f32 0.35355338, %v5056_v34  ;;  %v4210_v18 = vpop.xlane.xlu1 %4209 }
0x13f2   :  { %v5033_v3 = vpop.f32.mrf.mxu2  ;;  %v7004_v13 = vpop.eup %7003 }
0x13f3   :  { %v5066_v32 = vmul.f32 0.35355338, %v5033_v3  ;;  %v7006_v11 = vpop.eup %7005  ;;  %v4405_v45 = vmul.f32 %v7004_v13, %v9194_v27 }
0x13f4   :  { %v4404_v40 = vmul.f32 %v7006_v11, %v9175_v39 }
0x13f5   :  { %v9432_v5 = vadd.f32 %v5066_v32, %v7615_v26  ;;  %v3738_v32 = vsel %vm723_vm6, %v8952_v9, 0.0 }
0x13f6   :  { %v6679_v43 = vpack.i.bf16 %v4405_v45, %v4404_v40 }
0x13f7   :  { %v5094_v15 = vsel %vm723_vm6, %v9432_v5, -inf }
0x13f8   :  { %4218 = vadd.xlane.f32.xlu0 %v4217_v14  ;;  %4215 = vadd.xlane.f32.xlu1 %v4214_v10  ;;  %v5058_v51 = vpop.f32.mrf.mxu3 }
0x13f9   :  { %v9458_v19 = vpop.xlane.xlu1 %4676 }
0x13fa   :  { %v5035_v59 = vpop.f32.mrf.mxu2 }
0x1400   :  { %4679 = vadd.xlane.f32.xlu1 %v4678_v33  ;;  %5095 = vmax.xlane.f32.xlu0 %v5094_v15 }
0x1401   :  { %v9469_v59 = vpop.xlane.xlu1 %3733 }
0x1408   :  { %4682 = vadd.xlane.f32.xlu0 %v4681_v8 }
0x1409   :  { %5466 = vrot.lane.b32.xlu2 %v8672_v46, %s7127_s16  ;;  %v9451_v46 = vadd.f32 %v5067_v6, %v7615_v26 }
0x140b   :  { %v5097_v39 = vsel %vm723_vm6, %v9451_v46, -inf }
0x1419   :  { %6680 = vrot.lane.b32.xlu1 %v6679_v43, %s7128_s17 }
0x141c   :  { %6685 = vrot.lane.b32.xlu0 %v6684_v2, %s7129_s0 }
0x143d   :  { %v5078_v7 = vpop.xlane.xlu2 %5077 }
0x143e   :  { %v5100_v54 = vsub.f32 %v9384_v56, %v5078_v7 }
0x1440   :  { %v5108_v3 = vmul.f32 1.442695, %v5100_v54 }
0x1442   :  { %7007 = vpow2.f32 %v5108_v3 }
0x1443   :  { %5098 = vmax.xlane.f32.xlu1 %v5097_v39 }
0x1445   :  { %v4668_v27 = vpop.xlane.xlu2 %4667 }
0x1446   :  { %7009 = vrcp.f32 %v4668_v27  ;;  %3739 = vadd.xlane.f32.xlu0 %v3738_v32 }
0x1448   :  { %v7008_v23 = vpop.eup %7007 }
0x1449   :  { %v5148_v26 = vpack.c.bf16 %v7008_v23, %v7008_v23  ;;  %v5124_v10 = vsel %vm723_vm6, %v7008_v23, 0.0 }
0x144b   :  { %v5081_v2 = vpop.xlane.xlu0 %5080  ;;  %6495 = vmatmul.msk.bf16.vlgmr.msra.gmra.mxu0 %vm723_vm6, %v5148_v26 }
0x144c   :  { %v7010_v56 = vpop.eup %7009  ;;  %v5101_v34 = vsub.f32 %v9395_v12, %v5081_v2 }
0x144d   :  { %v9463_v14 = vmul.f32 %v7010_v56, %v9381_v44  ;;  %v9471_v15 = vpop.xlane.xlu2 %4673 }
0x144e   :  { %v5110_v51 = vmul.f32 1.442695, %v5101_v34  ;;  %5125 = vadd.xlane.f32.xlu0 %v5124_v10 }
0x144f   :  { %v6694_v9 = vpack.i.bf16 %v9368_v31, %v9463_v14 }
0x1450   :  { %7011 = vpow2.f32 %v5110_v51 }
0x1451   :  { %7013 = vrcp.f32 %v9357_v17 }
0x1453   :  { %v4207_v33 = vpop.xlane.xlu0 %4206 }
0x1454   :  { %7015 = vrcp.f32 %v4207_v33 }
0x1455   :  { %7017 = vrcp.f32 %v4210_v18 }
0x1456   :  { %v9473_v12 = vpop.eup %7011 }
0x1457   :  { %v5149_v44 = vpack.c.bf16 %v9473_v12, %v9473_v12  ;;  %v7014_v16 = vpop.eup %7013 }
0x1458   :  { %v4406_v13 = vmul.f32 %v7014_v16, %v9210_v61 }
0x1459   :  { %6496 = vmatmul.msk.bf16.vlgmr.msra.gmra.mxu1 %vm723_vm6, %v5149_v44 }
0x145a   :  { %v7016_v8 = vpop.eup %7015 }
0x145b   :  { %v4407_v17 = vmul.f32 %v7016_v8, %v9203_v37  ;;  %v4213_v11 = vpop.xlane.xlu0 %4212  ;;  %v5090_v45 = vpop.xlane.xlu1 %5089 }
0x145c   :  { %7019 = vrcp.f32 %v4213_v11  ;;  %v5104_v40 = vsub.f32 %v9404_v62, %v5090_v45  ;;  %v5093_v43 = vpop.xlane.xlu2 %5092  ;;  %5464 = vrot.lane.b32.xlu1 %v8682_v20, %s7127_s16  ;;  %v7018_v18 = vpop.eup %7017 }
0x145d   :  { %v5105_v6 = vsub.f32 %v9407_v48, %v5093_v43  ;;  %v6689_v7 = vpack.i.bf16 %v4407_v17, %v4406_v13  ;;  %v9486_v61 = vmul.f32 %v7018_v18, %v9198_v47 }
0x145e   :  { %v5116_v54 = vmul.f32 1.442695, %v5104_v40 }
0x145f   :  { %v5118_v3 = vmul.f32 1.442695, %v5105_v6  ;;  %6690 = vrot.lane.b32.xlu2 %v6689_v7, %s7128_s17 }
0x1460   :  { %7021 = vpow2.f32 %v5116_v54 }
0x1461   :  { %7023 = vpow2.f32 %v5118_v3 }
0x1462   :  { %v7020_v37 = vpop.eup %7019 }
0x1463   :  { %v9489_v62 = vmul.f32 %v7020_v37, %v9201_v50  ;;  %v3737_v39 = vpop.xlane.xlu0 %3736  ;;  %v5084_v27 = vpop.xlane.xlu1 %5083  ;;  %v5127_v37 = vsel %vm723_vm6, %v9473_v12, 0.0 }
0x1464   :  { %v5102_v20 = vsub.f32 %v9416_v21, %v5084_v27  ;;  %v5087_v48 = vpop.xlane.xlu2 %5086 }
0x1465   :  { %v5103_v32 = vsub.f32 %v9419_v28, %v5087_v48  ;;  %v6704_v23 = vpack.i.bf16 %v9489_v62, %v9486_v61 }
0x1466   :  { %v7022_v26 = vpop.eup %7021  ;;  %v5112_v2 = vmul.f32 1.442695, %v5102_v20 }
0x1467   :  { %v7024_v56 = vpop.eup %7023  ;;  %v5152_v34 = vpack.c.bf16 %v7022_v26, %v7022_v26  ;;  %v5114_v10 = vmul.f32 1.442695, %v5103_v32  ;;  %v5136_v47 = vsel %vm723_vm6, %v7022_v26, 0.0 }
0x1468   :  { %v5153_v51 = vpack.c.bf16 %v7024_v56, %v7024_v56  ;;  %7025 = vpow2.f32 %v5112_v2  ;;  %5137 = vadd.xlane.f32.xlu0 %v5136_v47  ;;  %v5139_v12 = vsel %vm723_vm6, %v7024_v56, 0.0 }
0x1469   :  { %7027 = vpow2.f32 %v5114_v10  ;;  %6499 = vmatmul.msk.bf16.vlgmr.msrb.gmra.mxu0 %vm723_vm6, %v5152_v34 }
0x146a   :  { %6500 = vmatmul.msk.bf16.vlgmr.msrb.gmra.mxu1 %vm723_vm6, %v5153_v51 }
0x146b   :  { %v4219_v50 = vpop.xlane.xlu0 %4218  ;;  %v4216_v21 = vpop.xlane.xlu1 %4215 }
0x146c   :  { %7029 = vrcp.f32 %v4219_v50 }
0x146d   :  { %7031 = vrcp.f32 %v4216_v21 }
0x146e   :  { %v7026_v28 = vpop.eup %7025 }
0x146f   :  { %v7028_v33 = vpop.eup %7027  ;;  %v5150_v44 = vpack.c.bf16 %v7026_v28, %v7026_v28  ;;  %v5130_v16 = vsel %vm723_vm6, %v7026_v28, 0.0 }
0x1470   :  { %v5151_v8 = vpack.c.bf16 %v7028_v33, %v7028_v33  ;;  %5131 = vadd.xlane.f32.xlu0 %v5130_v16  ;;  %v5133_v28 = vsel %vm723_vm6, %v7028_v33, 0.0 }
0x1471   :  { %6497 = vmatmul.msk.bf16.vlgmr.msrb.gmra.mxu2 %vm723_vm6, %v5150_v44 }
0x1472   :  { %v7030_v13 = vpop.eup %7029  ;;  %6498 = vmatmul.msk.bf16.vlgmr.msrb.gmra.mxu3 %vm723_vm6, %v5151_v8 }
0x1473   :  { %v7032_v17 = vpop.eup %7031  ;;  %v9502_v11 = vmul.f32 %v7030_v13, %v9212_v58  ;;  %v5096_v45 = vpop.xlane.xlu0 %5095 }
0x1474   :  { %v9505_v40 = vmul.f32 %v7032_v17, %v9233_v53  ;;  %v5106_v43 = vsub.f32 %v9432_v5, %v5096_v45  ;;  %v4680_v58 = vpop.xlane.xlu1 %4679  ;;  %v3741_v53 = vsel %vm723_vm6, %v8950_v41, 0.0 }
0x1476   :  { %v5120_v6 = vmul.f32 1.442695, %v5106_v43  ;;  %v6724_v7 = vpack.i.bf16 %v9502_v11, %v9505_v40  ;;  %v3744_v43 = vsel %vm723_vm6, %v8969_v29, 0.0 }
0x1478   :  { %7033 = vpow2.f32 %v5120_v6 }
0x1479   :  { %7035 = vrcp.f32 %v3737_v39 }
0x147a   :  { %7037 = vrcp.f32 %v9469_v59 }
0x147b   :  { %7039 = vrcp.f32 %v9471_v15  ;;  %v4683_v5 = vpop.xlane.xlu0 %4682 }
0x147c   :  { %7041 = vrcp.f32 %v9458_v19 }
0x147e   :  { %v7034_v54 = vpop.eup %7033 }
0x147f   :  { %v5154_v3 = vpack.c.bf16 %v7034_v54, %v7034_v54  ;;  %v5142_v18 = vsel %vm723_vm6, %v7034_v54, 0.0  ;;  %v7036_v27 = vpop.eup %7035 }
0x1480   :  { %5143 = vadd.xlane.f32.xlu0 %v5142_v18  ;;  %v7038_v20 = vpop.eup %7037  ;;  %v3941_v32 = vmul.f32 %v7036_v27, %v9020_v30  ;;  %v5467_v30 = vpop.permute.xlu2 %5466 }
0x1481   :  { %6501 = vmatmul.msk.bf16.vlgmr.msra.gmra.mxu2 %vm723_vm6, %v5154_v3  ;;  %v7040_v48 = vpop.eup %7039  ;;  %v3940_v2 = vmul.f32 %v7038_v20, %v8967_v63  ;;  %5488 = vmatpush.bf16.msra.mxu0 %v5467_v30 }
0x1482   :  { %v7042_v15 = vpop.eup %7041  ;;  %v4872_v41 = vmul.f32 %v7040_v48, %v9379_v52 }
0x1483   :  { %v4873_v51 = vmul.f32 %v7042_v15, %v9365_v60 }
0x1485   :  { %v6709_v52 = vpack.i.bf16 %v4873_v51, %v4872_v41 }
0x1486   :  { %3742 = vadd.xlane.f32.xlu1 %v3741_v53 }
0x1488   :  { %5128 = vadd.xlane.f32.xlu2 %v5127_v37 }
0x148b   :  { %v6681_v39 = vpop.permute.xlu1 %6680 }
0x148c   :  { %v6683_v59 = vunpack.i.h.bf16 %v6681_v39  ;;  %v6682_v26 = vunpack.i.l.bf16 %v6681_v39 }
0x148e   :  { %v5437_v34 = vsel %vm723_vm6, %v3941_v32, %v6683_v59  ;;  %v6686_v19 = vpop.permute.xlu0 %6685  ;;  %v5436_v50 = vsel %vm723_vm6, %v3940_v2, %v6682_v26 }
0x148f   :  { %v6688_v10 = vunpack.i.h.bf16 %v6686_v19  ;;  %v6687_v47 = vunpack.i.l.bf16 %v6686_v19 }
0x1490   :  { %5140 = vadd.xlane.f32.xlu2 %v5139_v12 }
0x1491   :  { %v9527_v21 = vsel %vm2688_vm9, %v5437_v34, %v6688_v10  ;;  %v9530_v63 = vsel %vm2688_vm9, %v5436_v50, %v6687_v47 }
0x1494   :  { %6710 = vrot.lane.b32.xlu0 %v6709_v52, %s7129_s0 }
0x1498   :  { %5134 = vadd.xlane.f32.xlu2 %v5133_v28 }
0x14b0   :  { %6695 = vrot.lane.b32.xlu2 %v6694_v9, %s7129_s0 }
0x14b6   :  { %v5099_v60 = vpop.xlane.xlu1 %5098 }
0x14b7   :  { %v5107_v56 = vsub.f32 %v9451_v46, %v5099_v60 }
0x14b9   :  { %v5122_v44 = vmul.f32 1.442695, %v5107_v56  ;;  %v3740_v6 = vpop.xlane.xlu0 %3739  ;;  %v9543_v18 = vpop.permute.xlu2 %6690 }
0x14ba   :  { %v6692_v56 = vunpack.i.l.bf16 %v9543_v18 }
0x14bb   :  { %7043 = vpow2.f32 %v5122_v44 }
0x14bc   :  { %7045 = vrcp.f32 %v4683_v5 }
0x14bd   :  { %7047 = vrcp.f32 %v4680_v58 }
0x14c1   :  { %v7044_v16 = vpop.eup %7043  ;;  %v5126_v27 = vpop.xlane.xlu0 %5125 }
0x14c2   :  { %v5155_v8 = vpack.c.bf16 %v7044_v16, %v7044_v16  ;;  %v5145_v14 = vsel %vm723_vm6, %v7044_v16, 0.0  ;;  %v7046_v20 = vpop.eup %7045  ;;  %7049 = vrcp.f32 %v5126_v27  ;;  %v3753_v27 = vsel %vm723_vm6, %v9001_v57, 0.0 }
0x14c3   :  { %v7048_v29 = vpop.eup %7047  ;;  %v4875_v48 = vmul.f32 %v7046_v20, %v9388_v36 }
0x14c4   :  { %6502 = vmatmul.msk.bf16.vlgmr.msra.gmra.mxu3 %vm723_vm6, %v5155_v8  ;;  %v4874_v5 = vmul.f32 %v7048_v29, %v9392_v55 }
0x14c6   :  { %v6729_v26 = vpack.i.bf16 %v4875_v48, %v4874_v5 }
0x14c8   :  { %v5173_v13 = vpop.f32.mrf.mxu0  ;;  %v7050_v15 = vpop.eup %7049 }
0x14c9   :  { %v5332_v41 = vmul.f32 %v7050_v15, %v5173_v13 }
0x14ce   :  { %v5465_v17 = vpop.permute.xlu1 %5464 }
0x14cf   :  { %5489 = vmatpush.bf16.msra.mxu0 %v5465_v17 }
0x14d0   :  { %v5175_v45 = vpop.f32.mrf.mxu0 }
0x14d6   :  { %v5194_v33 = vpop.f32.mrf.mxu1 }
0x14d9   :  { %3745 = vadd.xlane.f32.xlu2 %v3744_v43  ;;  %v3747_v43 = vsel %vm723_vm6, %v8992_v4, 0.0 }
0x14db   :  { %v5138_v58 = vpop.xlane.xlu0 %5137 }
0x14de   :  { %v5196_v31 = vpop.f32.mrf.mxu1 }
0x14e1   :  { %5146 = vadd.xlane.f32.xlu2 %v5145_v14 }
0x14e3   :  { %v5132_v36 = vpop.xlane.xlu0 %5131 }
0x14e6   :  { %v5257_v46 = vpop.f32.mrf.mxu0 }
0x14e7   :  { %v5278_v9 = vpop.f32.mrf.mxu1 }
0x14ee   :  { %v5259_v54 = vpop.f32.mrf.mxu0 }
0x14ef   :  { %v5280_v3 = vpop.f32.mrf.mxu1 }
0x14f4   :  { %v5215_v53 = vpop.f32.mrf.mxu2 }
0x14f5   :  { %v5236_v37 = vpop.f32.mrf.mxu3 }
0x14f9   :  { %6725 = vrot.lane.b32.xlu2 %v6724_v7, %s7128_s17 }
0x14fb   :  { %v5129_v39 = vpop.xlane.xlu2 %5128 }
0x14fc   :  { %7051 = vrcp.f32 %v5129_v39  ;;  %v5217_v32 = vpop.f32.mrf.mxu2 }
0x14fd   :  { %v5238_v59 = vpop.f32.mrf.mxu3  ;;  %7053 = vrcp.f32 %v5138_v58  ;;  %v6693_v58 = vunpack.i.h.bf16 %v9543_v18 }
0x1501   :  { %6730 = vrot.lane.b32.xlu2 %v6729_v26, %s7129_s0 }
0x1502   :  { %v7052_v2 = vpop.eup %7051 }
0x1503   :  { %v5333_v11 = vmul.f32 %v7052_v2, %v5194_v33  ;;  %v5141_v40 = vpop.xlane.xlu2 %5140  ;;  %v7054_v19 = vpop.eup %7053 }
0x1504   :  { %7055 = vrcp.f32 %v5141_v40  ;;  %v5299_v7 = vpop.f32.mrf.mxu2  ;;  %v5336_v10 = vmul.f32 %v7054_v19, %v5257_v46 }
0x1505   :  { %v6699_v34 = vpack.i.bf16 %v5333_v11, %v5332_v41  ;;  %7057 = vrcp.f32 %v3740_v6 }
0x1506   :  { %7059 = vrcp.f32 %v5132_v36 }
0x1507   :  { %6700 = vrot.lane.b32.xlu1 %v6699_v34, %s7130_s1 }
0x150a   :  { %v7056_v55 = vpop.eup %7055 }
0x150b   :  { %v5337_v47 = vmul.f32 %v7056_v55, %v5278_v9  ;;  %v5135_v12 = vpop.xlane.xlu2 %5134  ;;  %v7058_v30 = vpop.eup %7057 }
0x150c   :  { %7061 = vrcp.f32 %v5135_v12  ;;  %v5301_v51 = vpop.f32.mrf.mxu2  ;;  %v7060_v52 = vpop.eup %7059  ;;  %v3942_v28 = vmul.f32 %v7058_v30, %v9025_v42  ;;  %v3750_v42 = vsel %vm723_vm6, %v8983_v25, 0.0 }
0x150d   :  { %v6714_v50 = vpack.i.bf16 %v5337_v47, %v5336_v10  ;;  %v5334_v44 = vmul.f32 %v7060_v52, %v5215_v53  ;;  %v5144_v9 = vpop.xlane.xlu0 %5143  ;;  %v3743_v25 = vpop.xlane.xlu1 %3742 }
0x150e   :  { %v5438_v17 = vsel %vm723_vm6, %v3942_v28, %v6692_v56  ;;  %7063 = vrcp.f32 %v5144_v9 }
0x150f   :  { %6715 = vrot.lane.b32.xlu0 %v6714_v50, %s7130_s1 }
0x1512   :  { %v7062_v60 = vpop.eup %7061 }
0x1513   :  { %v5335_v16 = vmul.f32 %v7062_v60, %v5236_v37  ;;  %v6696_v8 = vpop.permute.xlu2 %6695 }
0x1514   :  { %v6697_v13 = vunpack.i.l.bf16 %v6696_v8  ;;  %v7064_v54 = vpop.eup %7063  ;;  %v6698_v57 = vunpack.i.h.bf16 %v6696_v8 }
0x1515   :  { %v6719_v45 = vpack.i.bf16 %v5335_v16, %v5334_v44  ;;  %v5338_v4 = vmul.f32 %v7064_v54, %v5299_v7  ;;  %v6711_v61 = vpop.permute.xlu0 %6710 }
0x1516   :  { %v5446_v33 = vsel %vm2688_vm9, %v5438_v17, %v6697_v13  ;;  %v6713_v47 = vunpack.i.h.bf16 %v6711_v61  ;;  %v6712_v12 = vunpack.i.l.bf16 %v6711_v61 }
0x1517   :  { %6720 = vrot.lane.b32.xlu0 %v6719_v45, %s7130_s1 }
0x1531   :  { %3748 = vadd.xlane.f32.xlu1 %v3747_v43 }
0x1541   :  { %3751 = vadd.xlane.f32.xlu0 %v3750_v42 }
0x1547   :  { %v5320_v31 = vpop.f32.mrf.mxu3 }
0x154a   :  { %6705 = vrot.lane.b32.xlu1 %v6704_v23, %s7128_s17 }
0x154c   :  { %v3746_v14 = vpop.xlane.xlu2 %3745 }
0x154f   :  { %v5322_v46 = vpop.f32.mrf.mxu3 }
0x1554   :  { %v5147_v6 = vpop.xlane.xlu2 %5146 }
0x1555   :  { %7065 = vrcp.f32 %v5147_v6 }
0x1556   :  { %7067 = vrcp.f32 %v3743_v25 }
0x1557   :  { %7069 = vrcp.f32 %v3746_v14 }
0x155b   :  { %v7066_v3 = vpop.eup %7065 }
0x155c   :  { %v5339_v53 = vmul.f32 %v7066_v3, %v5320_v31  ;;  %v7068_v5 = vpop.eup %7067 }
0x155d   :  { %v3943_v59 = vmul.f32 %v7068_v5, %v9023_v49  ;;  %v7070_v49 = vpop.eup %7069 }
0x155e   :  { %v6734_v37 = vpack.i.bf16 %v5339_v53, %v5338_v4  ;;  %v3944_v36 = vmul.f32 %v7070_v49, %v9027_v0 }
0x155f   :  { %v5439_v15 = vsel %vm723_vm6, %v3943_v59, %v6693_v58 }
0x1560   :  { %6735 = vrot.lane.b32.xlu2 %v6734_v37, %s7130_s1 }
0x1574   :  { %3754 = vadd.xlane.f32.xlu1 %v3753_v27 }
0x1579   :  { %v6701_v62 = vpop.permute.xlu1 %6700 }
0x157a   :  { %v6703_v23 = vunpack.i.h.bf16 %v6701_v62  ;;  %v6702_v20 = vunpack.i.l.bf16 %v6701_v62 }
0x157c   :  { %v5453_v29 = vsel %vm2697_vm10, %v9527_v21, %v6703_v23  ;;  %v5452_v48 = vsel %vm2697_vm10, %v9530_v63, %v6702_v20  ;;  %v5447_v21 = vsel %vm2688_vm9, %v5439_v15, %v6698_v57  ;;  %v9895_v57 = vld [vmem:[#allocation9_spill] sm:$0xff] }
0x157d   :  { %v5460_v39 = vpack.c.bf16 %v5453_v29, %v5452_v48 }
0x157f   :  { %6503 = vmatmul.msk.bf16.vlgmr.msra.gmra.mxu0 %vm231_vm1, %v5460_v39 }
0x1581   :  { %v6716_v32 = vpop.permute.xlu0 %6715 }
0x1582   :  { %v6718_v51 = vunpack.i.h.bf16 %v6716_v32  ;;  %v6717_v50 = vunpack.i.l.bf16 %v6716_v32 }
0x1589   :  { %v6721_v26 = vpop.permute.xlu0 %6720 }
0x158a   :  { %v6723_v2 = vunpack.i.h.bf16 %v6721_v26  ;;  %v6722_v41 = vunpack.i.l.bf16 %v6721_v26 }
0x158c   :  { %v5454_v63 = vsel %vm2697_vm10, %v5446_v33, %v6722_v41  ;;  %v5455_v11 = vsel %vm2697_vm10, %v5447_v21, %v6723_v2  ;;  %v9896_v2 = vld [vmem:[#allocation3_spill] sm:$0xff] }
0x158d   :  { %v5461_v40 = vpack.c.bf16 %v5455_v11, %v5454_v63  ;;  %v9897_v11 = vld [vmem:[#allocation4_spill] sm:$0xff] }
0x158f   :  { %6504 = vmatmul.msk.bf16.gmra.mxu0 %vm231_vm1, %v5461_v40 }
0x15a4   :  { %v3749_v7 = vpop.xlane.xlu1 %3748 }
0x15a5   :  { %7071 = vrcp.f32 %v3749_v7 }
0x15ab   :  { %v7072_v34 = vpop.eup %7071 }
0x15ac   :  { %v3945_v19 = vmul.f32 %v7072_v34, %v9035_v35  ;;  %v6726_v35 = vpop.permute.xlu2 %6725 }
0x15ad   :  { %v6727_v33 = vunpack.i.l.bf16 %v6726_v35  ;;  %v6728_v46 = vunpack.i.h.bf16 %v6726_v35 }
0x15b4   :  { %v3752_v16 = vpop.xlane.xlu0 %3751  ;;  %v6731_v13 = vpop.permute.xlu2 %6730 }
0x15b5   :  { %7073 = vrcp.f32 %v3752_v16  ;;  %v6732_v31 = vunpack.i.l.bf16 %v6731_v13  ;;  %v6733_v6 = vunpack.i.h.bf16 %v6731_v13  ;;  %v9901_v13 = vld [vmem:[#allocation7_spill] sm:$0xff] }
0x15bb   :  { %v7074_v8 = vpop.eup %7073 }
0x15bc   :  { %v6706_v18 = vpop.permute.xlu1 %6705  ;;  %v3946_v45 = vmul.f32 %v7074_v8, %v9031_v38  ;;  %v6736_v14 = vpop.permute.xlu2 %6735 }
0x15bd   :  { %v6708_v55 = vunpack.i.h.bf16 %v6706_v18  ;;  %v6707_v10 = vunpack.i.l.bf16 %v6706_v18  ;;  %v6738_v3 = vunpack.i.h.bf16 %v6736_v14  ;;  %v6737_v4 = vunpack.i.l.bf16 %v6736_v14  ;;  %v9898_v18 = vld [vmem:[#allocation5_spill] sm:$0xff] }
0x15be   :  { %v5442_v43 = vsel %vm723_vm6, %v3946_v45, %v6727_v33 }
0x15bf   :  { %v5441_v30 = vsel %vm723_vm6, %v3945_v19, %v6708_v55  ;;  %v5440_v52 = vsel %vm723_vm6, %v3944_v36, %v6707_v10  ;;  %v5450_v54 = vsel %vm2688_vm9, %v5442_v43, %v6732_v31 }
0x15c0   :  { %v5449_v28 = vsel %vm2688_vm9, %v5441_v30, %v6713_v47  ;;  %v5448_v60 = vsel %vm2688_vm9, %v5440_v52, %v6712_v12  ;;  %v5458_v38 = vsel %vm2697_vm10, %v5450_v54, %v6737_v4  ;;  %v9899_v47 = vld [vmem:[#allocation2_spill] sm:$0xff] }
0x15c1   :  { %v5456_v56 = vsel %vm2697_vm10, %v5448_v60, %v6717_v50  ;;  %v5457_v0 = vsel %vm2697_vm10, %v5449_v28, %v6718_v51  ;;  %v9900_v52 = vld [vmem:[#allocation6_spill] sm:$0xff] }
0x15c2   :  { %v5462_v44 = vpack.c.bf16 %v5457_v0, %v5456_v56 }
0x15c4   :  { %6505 = vmatmul.msk.bf16.gmra.mxu0 %vm231_vm1, %v5462_v44 }
0x15e7   :  { %v3755_v17 = vpop.xlane.xlu1 %3754 }
0x15e8   :  { %7075 = vrcp.f32 %v3755_v17 }
0x15ee   :  { %v7076_v42 = vpop.eup %7075 }
0x15ef   :  { %v3947_v9 = vmul.f32 %v7076_v42, %v9037_v22  ;;  %v9603_v22 = vld [vmem:[%s9853_s7 + $0x8] sm:$0xff] }
0x15f0   :  { %v5519_v61 = vperm.slane %v9603_v22, 3 }
0x15f1   :  { %v5443_v53 = vsel %vm723_vm6, %v3947_v9, %v6728_v46 }
0x15f2   :  { %v5451_v37 = vsel %vm2688_vm9, %v5443_v53, %v6733_v6 }
0x15f3   :  { %v5459_v25 = vsel %vm2697_vm10, %v5451_v37, %v6738_v3 }
0x15f4   :  { %v5463_v27 = vpack.c.bf16 %v5459_v25, %v5458_v38 }
0x15f6   :  { %6506 = vmatmul.msk.bf16.gmra.mxu0 %vm231_vm1, %v5463_v27 }
0x15fc   :  { %v5491_v62 = vpop.f32.mrf.mxu0 }
0x15fd   :  { %v5511_v23 = vadd.f32 %v5491_v62, %v8576_v24 }
0x15ff   :  { %v9607_v20 = vadd.f32 %v5519_v61, %v5511_v23 }
0x1601   :  { %v5528_v29 = vsel %vm231_vm1, %v9607_v20, 0.0 }
0x1602   :  { %5529 = vadd.xlane.f32.xlu0 %v5528_v29 }
0x1604   :  { %v5493_v48 = vpop.f32.mrf.mxu0 }
0x1605   :  { %v5512_v39 = vadd.f32 %v5493_v48, %v8583_v1 }
0x1607   :  { %v9612_v32 = vadd.f32 %v5519_v61, %v5512_v39 }
0x1609   :  { %v5531_v5 = vsel %vm231_vm1, %v9612_v32, 0.0 }
0x160a   :  { %5532 = vadd.xlane.f32.xlu1 %v5531_v5 }
0x160c   :  { %v5496_v59 = vpop.f32.mrf.mxu0 }
0x160d   :  { %v5513_v58 = vadd.f32 %v5496_v59, %v9895_v57  ;;  %v6587_v59 = vld [vmem:[%s9852_s5 + $0x34] sm:$0xf]  ;;  %v6511_v57 = vld [vmem:[%s9852_s5 + $0x38] sm:$0xf0] }
0x160f   :  { %v9617_v26 = vadd.f32 %v5519_v61, %v5513_v58 }
0x1611   :  { %v5534_v24 = vsel %vm231_vm1, %v9617_v26, 0.0 }
0x1612   :  { %5535 = vadd.xlane.f32.xlu2 %v5534_v24  ;;  %v6514_v24 = vor.u32 %v6587_v59, %v6511_v57 }
0x1614   :  { %v5498_v15 = vpop.f32.mrf.mxu0  ;;  %5753 = vmatpush.bf16.msra.mxu1 %v6514_v24 }
0x1615   :  { %v5514_v41 = vadd.f32 %v5498_v15, %v9896_v2 }
0x1617   :  { %v9622_v21 = vadd.f32 %v5519_v61, %v5514_v41  ;;  %v6585_v41 = vld [vmem:[%s9852_s5 + $0x24] sm:$0xf] }
0x1619   :  { %v5537_v1 = vsel %vm231_vm1, %v9622_v21, 0.0 }
0x161a   :  { %5538 = vadd.xlane.f32.xlu0 %v5537_v1  ;;  %v6507_v1 = vld [vmem:[%s9852_s5 + $0x28] sm:$0xf0] }
0x1641   :  { %v5501_v63 = vpop.f32.mrf.mxu0 }
0x1642   :  { %v5515_v40 = vadd.f32 %v5501_v63, %v9897_v11  ;;  %v6510_v63 = vor.u32 %v6585_v41, %v6507_v1 }
0x1644   :  { %v9627_v7 = vadd.f32 %v5519_v61, %v5515_v40  ;;  %5754 = vmatpush.bf16.msra.mxu1 %v6510_v63 }
0x1646   :  { %v5540_v49 = vsel %vm231_vm1, %v9627_v7, 0.0 }
0x1647   :  { %5541 = vadd.xlane.f32.xlu1 %v5540_v49 }
0x1649   :  { %v5503_v34 = vpop.f32.mrf.mxu0 }
0x164a   :  { %v5516_v36 = vadd.f32 %v5503_v34, %v9898_v18 }
0x164c   :  { %v9632_v19 = vadd.f32 %v5519_v61, %v5516_v36 }
0x164e   :  { %v5543_v55 = vsel %vm231_vm1, %v9632_v19, 0.0 }
0x164f   :  { %5544 = vadd.xlane.f32.xlu0 %v5543_v55 }
0x1673   :  { %v5506_v51 = vpop.f32.mrf.mxu0 }
0x1674   :  { %v5517_v28 = vadd.f32 %v5506_v51, %v9900_v52 }
0x1675   :  { %v5530_v10 = vpop.xlane.xlu0 %5529 }
0x1676   :  { %v5552_v12 = vmul.f32 %v5530_v10, %v9899_v47  ;;  %v9645_v44 = vadd.f32 %v5519_v61, %v5517_v28 }
0x1678   :  { %v9638_v50 = vsub.f32 %v9607_v20, %v5552_v12  ;;  %v5546_v33 = vsel %vm231_vm1, %v9645_v44, 0.0 }
0x167a   :  { %v5568_v30 = vmul.f32 %v9638_v50, %v9638_v50 }
0x167b   :  { %v5508_v16 = vpop.f32.mrf.mxu0 }
0x167c   :  { %v5576_v60 = vsel %vm231_vm1, %v5568_v30, 0.0  ;;  %v5518_v17 = vadd.f32 %v5508_v16, %v9901_v13 }
0x167d   :  { %v5533_v56 = vpop.xlane.xlu1 %5532  ;;  %5577 = vadd.xlane.f32.xlu1 %v5576_v60 }
0x167e   :  { %v5553_v0 = vmul.f32 %v5533_v56, %v9899_v47  ;;  %v9657_v31 = vadd.f32 %v5519_v61, %v5518_v17 }
0x1680   :  { %v9648_v35 = vsub.f32 %v9612_v32, %v5553_v0  ;;  %v5549_v6 = vsel %vm231_vm1, %v9657_v31, 0.0 }
0x1682   :  { %v5569_v8 = vmul.f32 %v9648_v35, %v9648_v35 }
0x1684   :  { %v5579_v45 = vsel %vm231_vm1, %v5569_v8, 0.0 }
0x1685   :  { %v5536_v43 = vpop.xlane.xlu2 %5535  ;;  %5580 = vadd.xlane.f32.xlu0 %v5579_v45  ;;  %5547 = vadd.xlane.f32.xlu1 %v5546_v33 }
0x1686   :  { %v5554_v42 = vmul.f32 %v5536_v43, %v9899_v47 }
0x1688   :  { %v9660_v14 = vsub.f32 %v9617_v26, %v5554_v42 }
0x168a   :  { %v5570_v46 = vmul.f32 %v9660_v14, %v9660_v14 }
0x168c   :  { %v5582_v9 = vsel %vm231_vm1, %v5570_v46, 0.0 }
0x168d   :  { %v5539_v54 = vpop.xlane.xlu0 %5538  ;;  %5583 = vadd.xlane.f32.xlu1 %v5582_v9  ;;  %5550 = vadd.xlane.f32.xlu0 %v5549_v6 }
0x168e   :  { %v5555_v3 = vmul.f32 %v5539_v54, %v9899_v47 }
0x1690   :  { %v9669_v4 = vsub.f32 %v9622_v21, %v5555_v3 }
0x1692   :  { %v5571_v53 = vmul.f32 %v9669_v4, %v9669_v4 }
0x1694   :  { %v5585_v37 = vsel %vm231_vm1, %v5571_v53, 0.0 }
0x1695   :  { %5586 = vadd.xlane.f32.xlu0 %v5585_v37 }
0x16ba   :  { %v5542_v38 = vpop.xlane.xlu1 %5541 }
0x16bb   :  { %v5556_v25 = vmul.f32 %v5542_v38, %v9899_v47  ;;  %v9719_v38 = vperm.slane %v9603_v22, 4 }
0x16bd   :  { %v9676_v27 = vsub.f32 %v9627_v7, %v5556_v25 }
0x16bf   :  { %v5572_v61 = vmul.f32 %v9676_v27, %v9676_v27 }
0x16c1   :  { %v5588_v62 = vsel %vm231_vm1, %v5572_v61, 0.0 }
0x16c2   :  { %v5545_v23 = vpop.xlane.xlu0 %5544  ;;  %5589 = vadd.xlane.f32.xlu1 %v5588_v62 }
0x16c3   :  { %v5557_v29 = vmul.f32 %v5545_v23, %v9899_v47 }
0x16c5   :  { %v9683_v48 = vsub.f32 %v9632_v19, %v5557_v29 }
0x16c7   :  { %v5573_v39 = vmul.f32 %v9683_v48, %v9683_v48 }
0x16c9   :  { %v5591_v5 = vsel %vm231_vm1, %v5573_v39, 0.0 }
0x16ca   :  { %5592 = vadd.xlane.f32.xlu0 %v5591_v5  ;;  %v9723_v5 = vperm.slane %v9603_v22, 5 }
0x16f0   :  { %v5578_v58 = vpop.xlane.xlu1 %5577 }
0x16f1   :  { %v5600_v15 = vmul.f32 %v5578_v58, %v9899_v47 }
0x16f3   :  { %v5608_v2 = vadd.f32 1e-05, %v5600_v15 }
0x16f5   :  { %7077 = vrsqrt.f32 %v5608_v2  ;;  %vm5622_vm7 = vweird.f32 %v5608_v2 }
0x16f8   :  { %v5581_v11 = vpop.xlane.xlu0 %5580  ;;  %v5548_v40 = vpop.xlane.xlu1 %5547 }
0x16f9   :  { %v5601_v49 = vmul.f32 %v5581_v11, %v9899_v47  ;;  %v5558_v34 = vmul.f32 %v5548_v40, %v9899_v47 }
0x16fb   :  { %v7078_v18 = vpop.eup %7077  ;;  %v5609_v36 = vadd.f32 1e-05, %v5601_v49  ;;  %v9704_v55 = vsub.f32 %v9645_v44, %v5558_v34 }
0x16fc   :  { %v5617_v10 = vmul.f32 %v7078_v18, %v5608_v2  ;;  %vm5623_vm6 = vweird.f32 %v7078_v18 }
0x16fd   :  { %7079 = vrsqrt.f32 %v5609_v36  ;;  %v5574_v12 = vmul.f32 %v9704_v55, %v9704_v55  ;;  %vm5624_vm10 = vmor %vm5622_vm7, %vm5623_vm6  ;;  %vm5632_vm0 = vweird.f32 %v5609_v36 }
0x16fe   :  { %v5618_v51 = vmul.f32 %v7078_v18, %v5617_v10 }
0x16ff   :  { %v5594_v30 = vsel %vm231_vm1, %v5574_v12, 0.0 }
0x1700   :  { %v5619_v52 = vmul.f32 0.5, %v5618_v51  ;;  %5595 = vadd.xlane.f32.xlu2 %v5594_v30  ;;  %v5584_v28 = vpop.xlane.xlu1 %5583  ;;  %v5551_v60 = vpop.xlane.xlu0 %5550 }
0x1701   :  { %v5602_v56 = vmul.f32 %v5584_v28, %v9899_v47  ;;  %v5559_v0 = vmul.f32 %v5551_v60, %v9899_v47 }
0x1702   :  { %v5620_v16 = vsub.f32 1.5, %v5619_v52 }
0x1703   :  { %v7080_v8 = vpop.eup %7079  ;;  %v5610_v13 = vadd.f32 1e-05, %v5602_v56  ;;  %v9712_v17 = vsub.f32 %v9657_v31, %v5559_v0 }
0x1704   :  { %v5621_v45 = vmul.f32 %v7078_v18, %v5620_v16  ;;  %v5627_v33 = vmul.f32 %v7080_v8, %v5609_v36  ;;  %vm5633_vm15 = vweird.f32 %v7080_v8 }
0x1705   :  { %7081 = vrsqrt.f32 %v5610_v13  ;;  %v5575_v43 = vmul.f32 %v9712_v17, %v9712_v17  ;;  %vm5634_vm2 = vmor %vm5632_vm0, %vm5633_vm15  ;;  %vm5642_vm4 = vweird.f32 %v5610_v13 }
0x1706   :  { %v5628_v42 = vmul.f32 %v7080_v8, %v5627_v33  ;;  %v5625_v9 = vsel %vm5624_vm10, %v7078_v18, %v5621_v45 }
0x1707   :  { %v5597_v46 = vsel %vm231_vm1, %v5575_v43, 0.0  ;;  %v5696_v25 = vmul.f32 %v5625_v9, %v9638_v50 }
0x1708   :  { %v5629_v6 = vmul.f32 0.5, %v5628_v42  ;;  %5598 = vadd.xlane.f32.xlu1 %v5597_v46  ;;  %v5587_v54 = vpop.xlane.xlu0 %5586 }
0x1709   :  { %v5603_v3 = vmul.f32 %v5587_v54, %v9899_v47  ;;  %v5705_v59 = vmul.f32 %v9719_v38, %v5696_v25 }
0x170a   :  { %v5630_v53 = vsub.f32 1.5, %v5629_v6 }
0x170b   :  { %v7082_v37 = vpop.eup %7081  ;;  %v5611_v61 = vadd.f32 1e-05, %v5603_v3  ;;  %v5714_v2 = vadd.f32 %v9723_v5, %v5705_v59 }
0x170c   :  { %v5631_v62 = vmul.f32 %v7080_v8, %v5630_v53  ;;  %v5637_v23 = vmul.f32 %v7082_v37, %v5610_v13  ;;  %vm5643_vm3 = vweird.f32 %v7082_v37 }
0x170d   :  { %7083 = vrsqrt.f32 %v5611_v61  ;;  %vm5644_vm5 = vmor %vm5642_vm4, %vm5643_vm3  ;;  %vm5652_vm11 = vweird.f32 %v5611_v61 }
0x170e   :  { %v5635_v29 = vsel %vm5634_vm2, %v7080_v8, %v5631_v62  ;;  %v5638_v39 = vmul.f32 %v7082_v37, %v5637_v23 }
0x170f   :  { %v5697_v57 = vmul.f32 %v5635_v29, %v9648_v35 }
0x1710   :  { %v5639_v58 = vmul.f32 0.5, %v5638_v39 }
0x1711   :  { %v5706_v24 = vmul.f32 %v9719_v38, %v5697_v57 }
0x1712   :  { %v5640_v15 = vsub.f32 1.5, %v5639_v58 }
0x1713   :  { %v7084_v50 = vpop.eup %7083  ;;  %v5715_v41 = vadd.f32 %v9723_v5, %v5706_v24 }
0x1714   :  { %v5641_v1 = vmul.f32 %v7082_v37, %v5640_v15  ;;  %v5647_v63 = vmul.f32 %v7084_v50, %v5611_v61  ;;  %vm5653_vm8 = vweird.f32 %v7084_v50 }
0x1715   :  { %v5722_v11 = vpack.c.bf16 %v5715_v41, %v5714_v2  ;;  %vm5654_vm12 = vmor %vm5652_vm11, %vm5653_vm8  ;;  %v6595_v41 = vld [vmem:[%s9854_s6 + $0x70] sm:$0xff] }
0x1716   :  { %v5648_v40 = vmul.f32 %v7084_v50, %v5647_v63  ;;  %v5645_v49 = vsel %vm5644_vm5, %v7082_v37, %v5641_v1 }
0x1717   :  { %6515 = vmatmul.msk.bf16.vlgmr.msra.gmra.mxu1 %vm231_vm1, %v5722_v11  ;;  %v5698_v18 = vmul.f32 %v5645_v49, %v9660_v14  ;;  %v6594_v49 = vld [vmem:[%s9854_s6 + $0x68] sm:$0xff] }
0x1718   :  { %v5649_v35 = vmul.f32 0.5, %v5648_v40 }
0x1719   :  { %v5707_v51 = vmul.f32 %v9719_v38, %v5698_v18  ;;  %v6593_v18 = vld [vmem:[%s9854_s6 + $0x60] sm:$0xff] }
0x171a   :  { %v5650_v34 = vsub.f32 1.5, %v5649_v35 }
0x171b   :  { %v5716_v52 = vadd.f32 %v9723_v5, %v5707_v51 }
0x171c   :  { %v5651_v36 = vmul.f32 %v7084_v50, %v5650_v34 }
0x171e   :  { %v5655_v10 = vsel %vm5654_vm12, %v7084_v50, %v5651_v36  ;;  %vm6023_vm12 = vcmask 1041409  }
0x171f   :  { %v5699_v12 = vmul.f32 %v5655_v10, %v9669_v4 }
0x1721   :  { %v5708_v30 = vmul.f32 %v9719_v38, %v5699_v12 }
0x1723   :  { %v5717_v28 = vadd.f32 %v9723_v5, %v5708_v30  ;;  %v6592_v30 = vld [vmem:[%s9854_s6 + $0x58] sm:$0xff] }
0x1725   :  { %v5723_v60 = vpack.c.bf16 %v5717_v28, %v5716_v52 }
0x1727   :  { %6516 = vmatmul.msk.bf16.gmra.mxu1 %vm231_vm1, %v5723_v60 }
0x1735   :  { %v5590_v56 = vpop.xlane.xlu1 %5589 }
0x1736   :  { %v5604_v14 = vmul.f32 %v5590_v56, %v9899_v47  ;;  %v6591_v56 = vld [vmem:[%s9854_s6 + $0x50] sm:$0xff] }
0x1738   :  { %v5612_v0 = vadd.f32 1e-05, %v5604_v14 }
0x173a   :  { %7085 = vrsqrt.f32 %v5612_v0  ;;  %vm5662_vm14 = vweird.f32 %v5612_v0 }
0x173d   :  { %v5593_v16 = vpop.xlane.xlu0 %5592 }
0x173e   :  { %v5605_v8 = vmul.f32 %v5593_v16, %v9899_v47 }
0x1740   :  { %v7086_v4 = vpop.eup %7085  ;;  %v5613_v13 = vadd.f32 1e-05, %v5605_v8  ;;  %v9769_v8 = vperm.slane %v9603_v22, 6 }
0x1741   :  { %v5657_v45 = vmul.f32 %v7086_v4, %v5612_v0  ;;  %vm5663_vm13 = vweird.f32 %v7086_v4 }
0x1742   :  { %7087 = vrsqrt.f32 %v5613_v13  ;;  %vm5664_vm6 = vmor %vm5662_vm14, %vm5663_vm13  ;;  %vm5672_vm10 = vweird.f32 %v5613_v13  ;;  %vm6025_vm13 = vcmask 1042434   ;;  %vm6027_vm14 = vcmask 1043459  }
0x1743   :  { %v5658_v33 = vmul.f32 %v7086_v4, %v5657_v45 }
0x1745   :  { %v5659_v43 = vmul.f32 0.5, %v5658_v33 }
0x1747   :  { %v5660_v42 = vsub.f32 1.5, %v5659_v43 }
0x1748   :  { %v7088_v46 = vpop.eup %7087 }
0x1749   :  { %v5661_v9 = vmul.f32 %v7086_v4, %v5660_v42  ;;  %v5667_v6 = vmul.f32 %v7088_v46, %v5613_v13  ;;  %vm5673_vm7 = vweird.f32 %v7088_v46  ;;  %v6589_v42 = vld [vmem:[%s9854_s6 + $0x40] sm:$0xff] }
0x174a   :  { %vm5674_vm15 = vmor %vm5672_vm10, %vm5673_vm7  ;;  %vm6031_vm7 = vcmask 1045509   ;;  %vm6033_vm10 = vcmask 1046534  }
0x174b   :  { %v5668_v54 = vmul.f32 %v7088_v46, %v5667_v6  ;;  %v5665_v3 = vsel %vm5664_vm6, %v7086_v4, %v5661_v9  ;;  %v6590_v4 = vld [vmem:[%s9854_s6 + $0x48] sm:$0xff]  ;;  %vm6029_vm6 = vcmask 1044484  }
0x174c   :  { %v5700_v25 = vmul.f32 %v5665_v3, %v9676_v27 }
0x174d   :  { %v5669_v53 = vmul.f32 0.5, %v5668_v54 }
0x174e   :  { %v5709_v29 = vmul.f32 %v9719_v38, %v5700_v25 }
0x174f   :  { %v5670_v37 = vsub.f32 1.5, %v5669_v53 }
0x1750   :  { %v5718_v59 = vadd.f32 %v9723_v5, %v5709_v29 }
0x1751   :  { %v5671_v61 = vmul.f32 %v7088_v46, %v5670_v37 }
0x1753   :  { %v5675_v62 = vsel %vm5674_vm15, %v7088_v46, %v5671_v61  ;;  %vm6035_vm15 = vcmask 1047559  }
0x1754   :  { %v5701_v23 = vmul.f32 %v5675_v62, %v9683_v48  ;;  %v6596_v48 = vld [vmem:[%s9854_s6 + $0x78] sm:$0xff] }
0x1755   :  { %5900 = vmatpush.bf16.msrb.mxu2 %v6596_v48 }
0x1756   :  { %v5710_v39 = vmul.f32 %v9719_v38, %v5701_v23 }
0x1758   :  { %v5719_v57 = vadd.f32 %v9723_v5, %v5710_v39 }
0x1759   :  { %5901 = vmatpush.bf16.msrb.mxu2 %v6595_v41 }
0x175a   :  { %v5724_v58 = vpack.c.bf16 %v5719_v57, %v5718_v59 }
0x175c   :  { %6517 = vmatmul.msk.bf16.gmra.mxu1 %vm231_vm1, %v5724_v58 }
0x175d   :  { %5902 = vmatpush.bf16.msrb.mxu2 %v6594_v49 }
0x1761   :  { %5903 = vmatpush.bf16.msrb.mxu2 %v6593_v18 }
0x1765   :  { %5904 = vmatpush.bf16.msrb.mxu2 %v6592_v30 }
0x1769   :  { %5905 = vmatpush.bf16.msrb.mxu2 %v6591_v56 }
0x176d   :  { %5906 = vmatpush.bf16.msrb.mxu2 %v6590_v4 }
0x1771   :  { %5907 = vmatpush.bf16.msrb.mxu2 %v6589_v42 }
0x1773   :  { %v5596_v24 = vpop.xlane.xlu2 %5595 }
0x1774   :  { %v5606_v27 = vmul.f32 %v5596_v24, %v9899_v47 }
0x1776   :  { %v5614_v15 = vadd.f32 1e-05, %v5606_v27 }
0x1778   :  { %7089 = vrsqrt.f32 %v5614_v15  ;;  %vm5682_vm2 = vweird.f32 %v5614_v15 }
0x177b   :  { %v5599_v50 = vpop.xlane.xlu1 %5598 }
0x177c   :  { %v5607_v2 = vmul.f32 %v5599_v50, %v9899_v47 }
0x177e   :  { %v7090_v1 = vpop.eup %7089  ;;  %v5615_v63 = vadd.f32 1e-05, %v5607_v2 }
0x177f   :  { %v5677_v11 = vmul.f32 %v7090_v1, %v5614_v15  ;;  %vm5683_vm0 = vweird.f32 %v7090_v1 }
0x1780   :  { %7091 = vrsqrt.f32 %v5615_v63  ;;  %vm5684_vm3 = vmor %vm5682_vm2, %vm5683_vm0  ;;  %vm5692_vm5 = vweird.f32 %v5615_v63 }
0x1781   :  { %v5678_v40 = vmul.f32 %v7090_v1, %v5677_v11 }
0x1783   :  { %v5679_v35 = vmul.f32 0.5, %v5678_v40 }
0x1785   :  { %v5680_v34 = vsub.f32 1.5, %v5679_v35 }
0x1786   :  { %v7092_v36 = vpop.eup %7091 }
0x1787   :  { %v5681_v10 = vmul.f32 %v7090_v1, %v5680_v34  ;;  %v5687_v12 = vmul.f32 %v7092_v36, %v5615_v63  ;;  %vm5693_vm4 = vweird.f32 %v7092_v36 }
0x1788   :  { %vm5694_vm8 = vmor %vm5692_vm5, %vm5693_vm4 }
0x1789   :  { %v5688_v51 = vmul.f32 %v7092_v36, %v5687_v12  ;;  %v5685_v52 = vsel %vm5684_vm3, %v7090_v1, %v5681_v10 }
0x178a   :  { %v5702_v14 = vmul.f32 %v5685_v52, %v9704_v55 }
0x178b   :  { %v5689_v28 = vmul.f32 0.5, %v5688_v51 }
0x178c   :  { %v5711_v45 = vmul.f32 %v9719_v38, %v5702_v14 }
0x178d   :  { %v5690_v60 = vsub.f32 1.5, %v5689_v28 }
0x178e   :  { %v5720_v46 = vadd.f32 %v9723_v5, %v5711_v45 }
0x178f   :  { %v5691_v0 = vmul.f32 %v7092_v36, %v5690_v60 }
0x1791   :  { %v5695_v16 = vsel %vm5694_vm8, %v7092_v36, %v5691_v0 }
0x1792   :  { %v5703_v13 = vmul.f32 %v5695_v16, %v9712_v17 }
0x1794   :  { %v5756_v33 = vpop.f32.mrf.mxu1  ;;  %v5712_v55 = vmul.f32 %v9719_v38, %v5703_v13 }
0x1795   :  { %v5757_v43 = vadd.f32 %v5756_v33, %v9769_v8 }
0x1796   :  { %v5721_v9 = vadd.f32 %v9723_v5, %v5712_v55 }
0x1797   :  { %v5776_v6 = vmul.f32 %v5757_v43, %v5757_v43 }
0x1798   :  { %v5725_v54 = vpack.c.bf16 %v5721_v9, %v5720_v46 }
0x1799   :  { %v5784_v17 = vmul.f32 %v5776_v6, %v5757_v43 }
0x179a   :  { %6518 = vmatmul.msk.bf16.gmra.mxu1 %vm231_vm1, %v5725_v54 }
0x179b   :  { %v5792_v3 = vmul.f32 0.044715, %v5784_v17 }
0x179c   :  { %v5758_v53 = vpop.f32.mrf.mxu1 }
0x179d   :  { %v5800_v37 = vadd.f32 %v5792_v3, %v5757_v43  ;;  %v5759_v38 = vadd.f32 %v5758_v53, %v9769_v8 }
0x179f   :  { %v5808_v25 = vmul.f32 0.7978846, %v5800_v37  ;;  %v5777_v61 = vmul.f32 %v5759_v38, %v5759_v38 }
0x17a1   :  { %v5785_v62 = vmul.f32 %v5777_v61, %v5759_v38  ;;  %7093 = vtanh.f32 %v5808_v25 }
0x17a3   :  { %v5793_v23 = vmul.f32 0.044715, %v5785_v62 }
0x17a4   :  { %v5761_v29 = vpop.f32.mrf.mxu1 }
0x17a5   :  { %v5801_v39 = vadd.f32 %v5793_v23, %v5759_v38  ;;  %v5762_v5 = vadd.f32 %v5761_v29, %v9769_v8 }
0x17a7   :  { %v5809_v59 = vmul.f32 0.7978846, %v5801_v39  ;;  %v5778_v57 = vmul.f32 %v5762_v5, %v5762_v5  ;;  %v7094_v58 = vpop.eup %7093 }
0x17a8   :  { %v5824_v15 = vadd.f32 1.0, %v7094_v58 }
0x17a9   :  { %7095 = vtanh.f32 %v5809_v59  ;;  %v5786_v24 = vmul.f32 %v5778_v57, %v5762_v5 }
0x17aa   :  { %v5832_v11 = vmul.f32 0.5, %v5824_v15 }
0x17ab   :  { %v5794_v27 = vmul.f32 0.044715, %v5786_v24 }
0x17ac   :  { %v5763_v48 = vpop.f32.mrf.mxu1  ;;  %v5840_v18 = vmul.f32 %v5832_v11, %v5757_v43 }
0x17ad   :  { %v5802_v50 = vadd.f32 %v5794_v27, %v5762_v5  ;;  %v5764_v2 = vadd.f32 %v5763_v48, %v9769_v8 }
0x17af   :  { %v7096_v41 = vpop.eup %7095  ;;  %v5810_v1 = vmul.f32 0.7978846, %v5802_v50  ;;  %v5779_v63 = vmul.f32 %v5764_v2, %v5764_v2 }
0x17b0   :  { %v5825_v40 = vadd.f32 1.0, %v7096_v41 }
0x17b1   :  { %v5787_v49 = vmul.f32 %v5779_v63, %v5764_v2  ;;  %7097 = vtanh.f32 %v5810_v1 }
0x17b2   :  { %v5833_v35 = vmul.f32 0.5, %v5825_v40 }
0x17b3   :  { %v5795_v34 = vmul.f32 0.044715, %v5787_v49 }
0x17b4   :  { %v5841_v36 = vmul.f32 %v5833_v35, %v5759_v38 }
0x17b5   :  { %v5803_v10 = vadd.f32 %v5795_v34, %v5764_v2 }
0x17b6   :  { %v5848_v12 = vpack.c.bf16 %v5841_v36, %v5840_v18 }
0x17b7   :  { %v5811_v51 = vmul.f32 0.7978846, %v5803_v10  ;;  %v7098_v30 = vpop.eup %7097 }
0x17b8   :  { %5908 = vmatmul.bf16.vlgmr.msrb.gmra.mxu2 %v5848_v12  ;;  %v5826_v52 = vadd.f32 1.0, %v7098_v30 }
0x17b9   :  { %7099 = vtanh.f32 %v5811_v51 }
0x17ba   :  { %v5834_v56 = vmul.f32 0.5, %v5826_v52 }
0x17bc   :  { %v5842_v0 = vmul.f32 %v5834_v56, %v5762_v5 }
0x17bf   :  { %v7100_v28 = vpop.eup %7099 }
0x17c0   :  { %v5827_v60 = vadd.f32 1.0, %v7100_v28 }
0x17c2   :  { %v5835_v14 = vmul.f32 0.5, %v5827_v60 }
0x17c4   :  { %v5843_v16 = vmul.f32 %v5835_v14, %v5764_v2 }
0x17c6   :  { %v5849_v4 = vpack.c.bf16 %v5843_v16, %v5842_v0  ;;  %v9902_v0 = vlaneseq }
0x17c8   :  { %5913 = vmatmul.bf16.gmra.mxu2 %v5849_v4  ;;  %v5947_v16 = vshrl.u32 %v9902_v0, 7 }
0x17ca   :  { %vm5948_vm11 = vcmp.eq.s32.totalorder %v5947_v16, 0 }
0x17d9   :  { %v5766_v13 = vpop.f32.mrf.mxu1 }
0x17da   :  { %v5767_v45 = vadd.f32 %v5766_v13, %v9769_v8 }
0x17dc   :  { %v5780_v33 = vmul.f32 %v5767_v45, %v5767_v45 }
0x17de   :  { %v5788_v55 = vmul.f32 %v5780_v33, %v5767_v45 }
0x17e0   :  { %v5796_v43 = vmul.f32 0.044715, %v5788_v55  ;;  %v5937_v55 = vperm.slane %v9603_v22, 7 }
0x17e1   :  { %v5768_v42 = vpop.f32.mrf.mxu1 }
0x17e2   :  { %v5804_v46 = vadd.f32 %v5796_v43, %v5767_v45  ;;  %v5769_v9 = vadd.f32 %v5768_v42, %v9769_v8 }
0x17e4   :  { %v5812_v6 = vmul.f32 0.7978846, %v5804_v46  ;;  %v5781_v54 = vmul.f32 %v5769_v9, %v5769_v9 }
0x17e6   :  { %v5789_v17 = vmul.f32 %v5781_v54, %v5769_v9  ;;  %7101 = vtanh.f32 %v5812_v6 }
0x17e8   :  { %v5797_v3 = vmul.f32 0.044715, %v5789_v17 }
0x17ea   :  { %v5805_v53 = vadd.f32 %v5797_v3, %v5769_v9  ;;  %v7131_v3 = vmov 0.0  }
0x17ec   :  { %v5813_v37 = vmul.f32 0.7978846, %v5805_v53  ;;  %v7102_v38 = vpop.eup %7101 }
0x17ed   :  { %v5828_v25 = vadd.f32 1.0, %v7102_v38 }
0x17ee   :  { %7103 = vtanh.f32 %v5813_v37 }
0x17ef   :  { %v5836_v23 = vmul.f32 0.5, %v5828_v25 }
0x17f1   :  { %v5844_v39 = vmul.f32 %v5836_v23, %v5767_v45 }
0x17f4   :  { %v7104_v61 = vpop.eup %7103 }
0x17f5   :  { %v5829_v62 = vadd.f32 1.0, %v7104_v61 }
0x17f7   :  { %v5837_v29 = vmul.f32 0.5, %v5829_v62 }
0x17f9   :  { %v5845_v5 = vmul.f32 %v5837_v29, %v5769_v9 }
0x17fb   :  { %v5850_v59 = vpack.c.bf16 %v5845_v5, %v5844_v39 }
0x17fd   :  { %5918 = vmatmul.bf16.gmra.mxu2 %v5850_v59 }
0x1817   :  { %v5771_v57 = vpop.f32.mrf.mxu1 }
0x1818   :  { %v5772_v58 = vadd.f32 %v5771_v57, %v9769_v8 }
0x181a   :  { %v5782_v24 = vmul.f32 %v5772_v58, %v5772_v58 }
0x181c   :  { %v5790_v27 = vmul.f32 %v5782_v24, %v5772_v58 }
0x181e   :  { %v5798_v15 = vmul.f32 0.044715, %v5790_v27 }
0x181f   :  { %v5773_v48 = vpop.f32.mrf.mxu1 }
0x1820   :  { %v5806_v50 = vadd.f32 %v5798_v15, %v5772_v58  ;;  %v5774_v2 = vadd.f32 %v5773_v48, %v9769_v8 }
0x1822   :  { %v5814_v41 = vmul.f32 0.7978846, %v5806_v50  ;;  %v5783_v1 = vmul.f32 %v5774_v2, %v5774_v2 }
0x1824   :  { %v5791_v63 = vmul.f32 %v5783_v1, %v5774_v2  ;;  %7105 = vtanh.f32 %v5814_v41 }
0x1826   :  { %v5799_v11 = vmul.f32 0.044715, %v5791_v63 }
0x1828   :  { %v5807_v40 = vadd.f32 %v5799_v11, %v5774_v2 }
0x182a   :  { %v5815_v49 = vmul.f32 0.7978846, %v5807_v40  ;;  %v7106_v35 = vpop.eup %7105 }
0x182b   :  { %v5830_v34 = vadd.f32 1.0, %v7106_v35 }
0x182c   :  { %7107 = vtanh.f32 %v5815_v49 }
0x182d   :  { %v5838_v10 = vmul.f32 0.5, %v5830_v34 }
0x182f   :  { %v5846_v51 = vmul.f32 %v5838_v10, %v5772_v58 }
0x1832   :  { %v7108_v18 = vpop.eup %7107 }
0x1833   :  { %v5831_v36 = vadd.f32 1.0, %v7108_v18 }
0x1835   :  { %v5839_v12 = vmul.f32 0.5, %v5831_v36 }
0x1837   :  { %v5847_v30 = vmul.f32 %v5839_v12, %v5774_v2 }
0x1839   :  { %v5851_v52 = vpack.c.bf16 %v5847_v30, %v5846_v51 }
0x183b   :  { %5923 = vmatmul.bf16.gmra.mxu2 %v5851_v52  ;;  %v5909_v28 = vpop.f32.mrf.mxu2 }
0x183c   :  { %v5929_v33 = vadd.f32 %v5909_v28, %v9607_v20 }
0x183e   :  { %v5938_v54 = vadd.f32 %v5937_v55, %v5929_v33 }
0x1843   :  { %v5911_v8 = vpop.f32.mrf.mxu2 }
0x1844   :  { %v5930_v4 = vadd.f32 %v5911_v8, %v9612_v32  ;;  %v6551_v32 = vsel %vm5948_vm11, 1.0, %v7131_v3 }
0x1845   :  { %v5951_v20 = vmul.f32 %v6551_v32, %v5938_v54 }
0x1846   :  { %v5939_v46 = vadd.f32 %v5937_v55, %v5930_v4 }
0x1847   :  { %v5959_v62 = vsel %vm231_vm1, %v5951_v20, 0.0 }
0x1848   :  { %v5960_v59 = vrot.slane %v5959_v62, 4 }
0x184a   :  { %v5961_v41 = vadd.f32 %v5960_v59, %v5959_v62 }
0x184b   :  { %v5914_v60 = vpop.f32.mrf.mxu2 }
0x184c   :  { %v5931_v13 = vadd.f32 %v5914_v60, %v9617_v26  ;;  %v5952_v26 = vmul.f32 %v6551_v32, %v5939_v46  ;;  %v5962_v18 = vrot.slane %v5961_v41, 2 }
0x184e   :  { %v5940_v6 = vadd.f32 %v5937_v55, %v5931_v13 }
0x1850   :  { %v5953_v38 = vmul.f32 %v6551_v32, %v5940_v6 }
0x1853   :  { %v5916_v56 = vpop.f32.mrf.mxu2 }
0x1854   :  { %v5932_v43 = vadd.f32 %v5916_v56, %v9622_v21  ;;  %v5966_v21 = vsel %vm231_vm1, %v5952_v26, 0.0  ;;  %v5963_v56 = vadd.f32 %v5962_v18, %v5961_v41 }
0x1855   :  { %v5967_v23 = vrot.slane %v5966_v21, 4 }
0x1856   :  { %v5941_v17 = vadd.f32 %v5937_v55, %v5932_v43  ;;  %v5964_v46 = vrot.slane %v5963_v56, 1 }
0x1857   :  { %v5968_v15 = vadd.f32 %v5967_v23, %v5966_v21 }
0x1858   :  { %v5954_v25 = vmul.f32 %v6551_v32, %v5941_v17  ;;  %v5965_v26 = vadd.f32 %v5964_v46, %v5963_v56 }
0x1859   :  { %v5969_v40 = vrot.slane %v5968_v15, 2 }
0x185b   :  { %v5970_v30 = vadd.f32 %v5969_v40, %v5968_v15 }
0x185d   :  { %v5971_v13 = vrot.slane %v5970_v30, 1 }
0x185f   :  { %v5972_v54 = vadd.f32 %v5971_v13, %v5970_v30 }
0x1861   :  { %v6024_v20 = vsel %vm6023_vm12, %v5972_v54, %v5965_v26 }
0x1880   :  { %v5919_v14 = vpop.f32.mrf.mxu2 }
0x1881   :  { %v5933_v42 = vadd.f32 %v5919_v14, %v9627_v7  ;;  %v5973_v7 = vsel %vm231_vm1, %v5953_v38, 0.0 }
0x1882   :  { %v5974_v39 = vrot.slane %v5973_v7, 4 }
0x1883   :  { %v5942_v53 = vadd.f32 %v5937_v55, %v5933_v42 }
0x1884   :  { %v5975_v50 = vadd.f32 %v5974_v39, %v5973_v7 }
0x1885   :  { %v5955_v22 = vmul.f32 %v6551_v32, %v5942_v53 }
0x1886   :  { %v5976_v35 = vrot.slane %v5975_v50, 2 }
0x1887   :  { %v5987_v29 = vsel %vm231_vm1, %v5955_v22, 0.0 }
0x1888   :  { %v5921_v45 = vpop.f32.mrf.mxu2  ;;  %v5988_v24 = vrot.slane %v5987_v29, 4  ;;  %v5977_v8 = vadd.f32 %v5976_v35, %v5975_v50 }
0x1889   :  { %v5934_v9 = vadd.f32 %v5921_v45, %v9632_v19  ;;  %v5980_v19 = vsel %vm231_vm1, %v5954_v25, 0.0 }
0x188a   :  { %v5981_v57 = vrot.slane %v5980_v19, 4  ;;  %v5989_v63 = vadd.f32 %v5988_v24, %v5987_v29  ;;  %v5978_v33 = vrot.slane %v5977_v8, 1 }
0x188b   :  { %v5943_v37 = vadd.f32 %v5937_v55, %v5934_v9 }
0x188c   :  { %v5982_v1 = vadd.f32 %v5981_v57, %v5980_v19  ;;  %v5990_v51 = vrot.slane %v5989_v63, 2 }
0x188d   :  { %v5956_v61 = vmul.f32 %v6551_v32, %v5943_v37 }
0x188e   :  { %v5983_v36 = vrot.slane %v5982_v1, 2  ;;  %v5991_v16 = vadd.f32 %v5990_v51, %v5989_v63 }
0x188f   :  { %v5994_v5 = vsel %vm231_vm1, %v5956_v61, 0.0 }
0x1890   :  { %v5995_v48 = vrot.slane %v5994_v5, 4  ;;  %v5984_v14 = vadd.f32 %v5983_v36, %v5982_v1 }
0x1892   :  { %v5996_v49 = vadd.f32 %v5995_v48, %v5994_v5  ;;  %v5985_v9 = vrot.slane %v5984_v14, 1 }
0x1894   :  { %v5997_v52 = vrot.slane %v5996_v49, 2  ;;  %v5986_v37 = vadd.f32 %v5985_v9, %v5984_v14 }
0x1896   :  { %v5998_v45 = vadd.f32 %v5997_v52, %v5996_v49 }
0x1898   :  { %v5999_v17 = vrot.slane %v5998_v45, 1 }
0x189a   :  { %v6000_v25 = vadd.f32 %v5999_v17, %v5998_v45 }
0x18be   :  { %v5924_v58 = vpop.f32.mrf.mxu2 }
0x18bf   :  { %v5935_v27 = vadd.f32 %v5924_v58, %v9645_v44 }
0x18c1   :  { %v5944_v2 = vadd.f32 %v5937_v55, %v5935_v27 }
0x18c3   :  { %v5957_v11 = vmul.f32 %v6551_v32, %v5944_v2 }
0x18c5   :  { %v6001_v34 = vsel %vm231_vm1, %v5957_v11, 0.0 }
0x18c6   :  { %v6002_v10 = vrot.slane %v6001_v34, 4  ;;  %v5926_v12 = vpop.f32.mrf.mxu2 }
0x18c7   :  { %v5936_v44 = vadd.f32 %v5926_v12, %v9657_v31  ;;  %v5992_v31 = vrot.slane %v5991_v16, 1 }
0x18c8   :  { %v6003_v28 = vadd.f32 %v6002_v10, %v6001_v34 }
0x18c9   :  { %v5945_v60 = vadd.f32 %v5937_v55, %v5936_v44  ;;  %v5979_v55 = vadd.f32 %v5978_v33, %v5977_v8 }
0x18ca   :  { %v6004_v0 = vrot.slane %v6003_v28, 2 }
0x18cb   :  { %v5958_v4 = vmul.f32 %v6551_v32, %v5945_v60  ;;  %v5993_v32 = vadd.f32 %v5992_v31, %v5991_v16  ;;  %v6026_v61 = vsel %vm6025_vm13, %v5979_v55, %v6024_v20 }
0x18cc   :  { %v6005_v43 = vadd.f32 %v6004_v0, %v6003_v28  ;;  %v6028_v62 = vsel %vm6027_vm14, %v5986_v37, %v6026_v61 }
0x18cd   :  { %v6008_v42 = vsel %vm231_vm1, %v5958_v4, 0.0  ;;  %v6030_v19 = vsel %vm6029_vm6, %v5993_v32, %v6028_v62 }
0x18ce   :  { %v6009_v6 = vrot.slane %v6008_v42, 4  ;;  %v6006_v53 = vrot.slane %v6005_v43, 1  ;;  %v6032_v29 = vsel %vm6031_vm7, %v6000_v25, %v6030_v19 }
0x18d0   :  { %v6010_v3 = vadd.f32 %v6009_v6, %v6008_v42  ;;  %v6007_v21 = vadd.f32 %v6006_v53, %v6005_v43 }
0x18d2   :  { %v6011_v38 = vrot.slane %v6010_v3, 2  ;;  %v6034_v39 = vsel %vm6033_vm10, %v6007_v21, %v6032_v29 }
0x18d4   :  { %v6012_v22 = vadd.f32 %v6011_v38, %v6010_v3  ;;  %v6598_v3 = vld [vmem:[%s9855_s4 + $0x8] sm:$0xff] }
0x18d5   :  { %6218 = vmatpush.bf16.msrb.mxu3 %v6598_v3 }
0x18d6   :  { %v6013_v7 = vrot.slane %v6012_v22, 1 }
0x18d8   :  { %v6014_v23 = vadd.f32 %v6013_v7, %v6012_v22 }
0x18da   :  { %v6036_v5 = vsel %vm6035_vm15, %v6014_v23, %v6034_v39 }
0x18db   :  { %v6038_v59 = vsel %vm231_vm1, %v6036_v5, 0.0 }
0x18dc   :  { %6039 = vadd.xlane.f32.xlu0 %v6038_v59 }
0x194f   :  { %v6040_v57 = vpop.xlane.xlu0 %6039 }
0x1950   :  { %v6041_v58 = vmul.f32 %v6040_v57, %v9899_v47 }
0x1952   :  { %v6043_v24 = vrot.slane %v6041_v58, 1  ;;  %v6044_v27 = vrot.slane %v6041_v58, 2  ;;  %v6045_v15 = vrot.slane %v6041_v58, 3  ;;  %v6046_v48 = vrot.slane %v6041_v58, 4 }
0x1953   :  { %v6047_v50 = vrot.slane %v6041_v58, 5  ;;  %v6048_v2 = vrot.slane %v6041_v58, 6  ;;  %v6049_v41 = vrot.slane %v6041_v58, 7  ;;  %v6058_v1 = vsub.f32 %v5965_v26, %v6041_v58 }
0x1954   :  { %v6059_v63 = vsub.f32 %v5972_v54, %v6043_v24  ;;  %v6060_v11 = vsub.f32 %v5979_v55, %v6044_v27  ;;  %v6061_v40 = vsub.f32 %v5986_v37, %v6045_v15  ;;  %v6062_v49 = vsub.f32 %v5993_v32, %v6046_v48  ;;  %v6597_v55 = vld [vmem:[%s9855_s4] sm:$0xff] }
0x1955   :  { %v6063_v35 = vsub.f32 %v6000_v25, %v6047_v50  ;;  %v6064_v34 = vsub.f32 %v6007_v21, %v6048_v2  ;;  %v6065_v18 = vsub.f32 %v6014_v23, %v6049_v41  ;;  %v6066_v44 = vmul.f32 %v6058_v1, %v6058_v1  ;;  %6219 = vmatpush.bf16.msrb.mxu3 %v6597_v55 }
0x1956   :  { %v6067_v36 = vmul.f32 %v6059_v63, %v6059_v63  ;;  %v6068_v10 = vmul.f32 %v6060_v11, %v6060_v11  ;;  %v6069_v12 = vmul.f32 %v6061_v40, %v6061_v40  ;;  %v6070_v51 = vmul.f32 %v6062_v49, %v6062_v49 }
0x1957   :  { %v6071_v30 = vmul.f32 %v6063_v35, %v6063_v35  ;;  %v6072_v8 = vmul.f32 %v6064_v34, %v6064_v34  ;;  %v6073_v60 = vmul.f32 %v6065_v18, %v6065_v18 }
0x1958   :  { %v6082_v52 = vrot.slane %v6067_v36, 7  ;;  %v6084_v28 = vrot.slane %v6068_v10, 6  ;;  %v6086_v14 = vrot.slane %v6069_v12, 5  ;;  %v6088_v16 = vrot.slane %v6070_v51, 4 }
0x1959   :  { %v6090_v13 = vrot.slane %v6071_v30, 3  ;;  %v6092_v33 = vrot.slane %v6072_v8, 2  ;;  %v6094_v42 = vrot.slane %v6073_v60, 1 }
0x195a   :  { %v6083_v56 = vsel %vm6023_vm12, %v6082_v52, %v6066_v44 }
0x195b   :  { %v6085_v0 = vsel %vm6025_vm13, %v6084_v28, %v6083_v56 }
0x195c   :  { %v6087_v4 = vsel %vm6027_vm14, %v6086_v14, %v6085_v0 }
0x195d   :  { %v6089_v45 = vsel %vm6029_vm6, %v6088_v16, %v6087_v4 }
0x195e   :  { %v6091_v43 = vsel %vm6031_vm7, %v6090_v13, %v6089_v45 }
0x195f   :  { %v6093_v46 = vsel %vm6033_vm10, %v6092_v33, %v6091_v43 }
0x1960   :  { %v6095_v9 = vsel %vm6035_vm15, %v6094_v42, %v6093_v46 }
0x1961   :  { %v6097_v6 = vsel %vm231_vm1, %v6095_v9, 0.0 }
0x1962   :  { %6098 = vadd.xlane.f32.xlu2 %v6097_v6 }
0x19d5   :  { %v6099_v31 = vpop.xlane.xlu2 %6098 }
0x19d6   :  { %v6100_v54 = vmul.f32 %v6099_v31, %v9899_v47  ;;  %v7113_v47 = vld [vmem:[%s9851_s2] sm:$0xf] }
0x19d7   :  { %v6136_v25 = vperm.slane %v7113_v47, 2  ;;  %v6145_v22 = vperm.slane %v7113_v47, 3 }
0x19d8   :  { %v6101_v17 = vadd.f32 1e-05, %v6100_v54 }
0x19da   :  { %7109 = vrsqrt.f32 %v6101_v17  ;;  %vm6108_vm2 = vweird.f32 %v6101_v17 }
0x19e0   :  { %v7110_v53 = vpop.eup %7109 }
0x19e1   :  { %v6103_v26 = vmul.f32 %v7110_v53, %v6101_v17  ;;  %vm6109_vm0 = vweird.f32 %v7110_v53 }
0x19e2   :  { %vm6110_vm3 = vmor %vm6108_vm2, %vm6109_vm0 }
0x19e3   :  { %v6104_v37 = vmul.f32 %v7110_v53, %v6103_v26 }
0x19e5   :  { %v6105_v38 = vmul.f32 0.5, %v6104_v37 }
0x19e7   :  { %v6106_v32 = vsub.f32 1.5, %v6105_v38 }
0x19e9   :  { %v6107_v20 = vmul.f32 %v7110_v53, %v6106_v32 }
0x19eb   :  { %v6111_v21 = vsel %vm6110_vm3, %v7110_v53, %v6107_v20 }
0x19ec   :  { %v6113_v61 = vrot.slane %v6111_v21, 1  ;;  %v6114_v7 = vrot.slane %v6111_v21, 2  ;;  %v6115_v62 = vrot.slane %v6111_v21, 3  ;;  %v6116_v19 = vrot.slane %v6111_v21, 4 }
0x19ed   :  { %v6117_v23 = vrot.slane %v6111_v21, 5  ;;  %v6118_v29 = vrot.slane %v6111_v21, 6  ;;  %v6119_v39 = vrot.slane %v6111_v21, 7  ;;  %v6128_v5 = vmul.f32 %v6111_v21, %v6058_v1 }
0x19ee   :  { %v6129_v59 = vmul.f32 %v6113_v61, %v6059_v63  ;;  %v6130_v57 = vmul.f32 %v6114_v7, %v6060_v11  ;;  %v6131_v58 = vmul.f32 %v6115_v62, %v6061_v40  ;;  %v6132_v24 = vmul.f32 %v6116_v19, %v6062_v49 }
0x19ef   :  { %v6133_v27 = vmul.f32 %v6117_v23, %v6063_v35  ;;  %v6134_v15 = vmul.f32 %v6118_v29, %v6064_v34  ;;  %v6135_v48 = vmul.f32 %v6119_v39, %v6065_v18  ;;  %v6137_v50 = vmul.f32 %v6136_v25, %v6128_v5 }
0x19f0   :  { %v6138_v2 = vmul.f32 %v6136_v25, %v6129_v59  ;;  %v6139_v41 = vmul.f32 %v6136_v25, %v6130_v57  ;;  %v6140_v36 = vmul.f32 %v6136_v25, %v6131_v58  ;;  %v6141_v10 = vmul.f32 %v6136_v25, %v6132_v24 }
0x19f1   :  { %v6142_v12 = vmul.f32 %v6136_v25, %v6133_v27  ;;  %v6146_v51 = vadd.f32 %v6145_v22, %v6137_v50  ;;  %v6143_v44 = vmul.f32 %v6136_v25, %v6134_v15  ;;  %v6144_v30 = vmul.f32 %v6136_v25, %v6135_v48 }
0x19f2   :  { %v6147_v52 = vadd.f32 %v6145_v22, %v6138_v2  ;;  %v6148_v28 = vadd.f32 %v6145_v22, %v6139_v41  ;;  %v6149_v8 = vadd.f32 %v6145_v22, %v6140_v36  ;;  %v6150_v1 = vadd.f32 %v6145_v22, %v6141_v10 }
0x19f3   :  { %v6158_v63 = vpack.c.bf16 %v6146_v51, %v6146_v51  ;;  %v6151_v11 = vadd.f32 %v6145_v22, %v6142_v12  ;;  %v6152_v40 = vadd.f32 %v6145_v22, %v6143_v44  ;;  %v6153_v49 = vadd.f32 %v6145_v22, %v6144_v30 }
0x19f4   :  { %v6159_v35 = vpack.c.bf16 %v6147_v52, %v6147_v52  ;;  %v6160_v34 = vpack.c.bf16 %v6148_v28, %v6148_v28  ;;  %v6161_v18 = vpack.c.bf16 %v6149_v8, %v6149_v8  ;;  %v6162_v60 = vpack.c.bf16 %v6150_v1, %v6150_v1 }
0x19f5   :  { %v6163_v56 = vpack.c.bf16 %v6151_v11, %v6151_v11  ;;  %v6164_v14 = vpack.c.bf16 %v6152_v40, %v6152_v40  ;;  %v6165_v4 = vpack.c.bf16 %v6153_v49, %v6153_v49  ;;  %v6174_v33 = vunpack.c.l.b16 %v6158_v63 }
0x19f6   :  { %v6175_v0 = vunpack.c.l.b16 %v6159_v35  ;;  %v6176_v16 = vunpack.c.l.b16 %v6160_v34  ;;  %v6177_v13 = vunpack.c.l.b16 %v6161_v18  ;;  %v6178_v45 = vunpack.c.l.b16 %v6162_v60 }
0x19f7   :  { %v6179_v46 = vunpack.c.l.b16 %v6163_v56  ;;  %v6180_v9 = vunpack.c.l.b16 %v6164_v14  ;;  %v6181_v6 = vunpack.c.l.b16 %v6165_v4 }
0x19f8   :  { %v6182_v43 = vrot.slane %v6175_v0, 7  ;;  %v6184_v42 = vrot.slane %v6176_v16, 6  ;;  %v6186_v54 = vrot.slane %v6177_v13, 5  ;;  %v6188_v3 = vrot.slane %v6178_v45, 4 }
0x19f9   :  { %v6190_v53 = vrot.slane %v6179_v46, 3  ;;  %v6192_v37 = vrot.slane %v6180_v9, 2  ;;  %v6194_v32 = vrot.slane %v6181_v6, 1 }
0x19fa   :  { %v6183_v31 = vsel %vm6023_vm12, %v6182_v43, %v6174_v33 }
0x19fb   :  { %v6185_v17 = vsel %vm6025_vm13, %v6184_v42, %v6183_v31 }
0x19fc   :  { %v6187_v55 = vsel %vm6027_vm14, %v6186_v54, %v6185_v17 }
0x19fd   :  { %v6189_v26 = vsel %vm6029_vm6, %v6188_v3, %v6187_v55 }
0x19fe   :  { %v6191_v38 = vsel %vm6031_vm7, %v6190_v53, %v6189_v26 }
0x19ff   :  { %v6193_v20 = vsel %vm6033_vm10, %v6192_v37, %v6191_v38 }
0x1a00   :  { %v6195_v47 = vsel %vm6035_vm15, %v6194_v32, %v6193_v20 }
0x1a01   :  { %v6196_v25 = vpack.c.b16 %v6195_v47, %v6195_v47 }
0x1a03   :  { %6560 = vmatmul.msk.bf16.vlgmr.msrb.gmra.mxu3 %vm231_vm1, %v6196_v25 }
0x1a86   :  { %v6221_v22 = vpop.f32.mrf.mxu3 }
0x1a87   :  { %6225 = vst.msk [vmem:[%s9856_s8] sm:$0xff] %vm2688_vm9, %v6221_v22 }
0x1a8e   :  { %v6223_v21 = vpop.f32.mrf.mxu3 }

</bundles_post_ra>
